<compile_context>
chip_gen: v6e
topology: v6e:2x2x1
jax: 0.10.0
libtpu: 0.0.40
codegen_flags: <defaults>
</compile_context>

<pallas_src>
import functools

import numpy as np

import jax
import jax.numpy as jnp
from jax.experimental import pallas as pl
from jax.experimental.pallas import tpu as pltpu


def _round_up(x, m):
    return ((x + m - 1) // m) * m


def _vmem():
    return pl.BlockSpec(memory_space=pltpu.MemorySpace.VMEM)


# ---------------------------------------------------------------------------
# The single fused kernel
# ---------------------------------------------------------------------------
def _c3d_fused_kernel(
    # ---- inputs (all VMEM resident) ----
    x_ref,                                    # (N*H*W, Cin)  rows in (n,h,w) order
    cw1_ref, cb1_ref,                         # (9*Cin, C1), (1, C1)
    cw2_ref, cb2_ref,                         # (9*C1, C2), (1, C2)
    cw3_ref, cb3_ref,                         # (9*C2, C3), (1, C3)
    m1_ref, m2_ref,                           # conv tap masks (R1, 9), (R2, 9)
    sel1_ref, sel2_ref,                       # pool selection matrices
    fw1_ref, fb1_ref, fw2_ref, fb2_ref,       # fc weights (in, out) / biases (1, out)
    fw3_ref, fb3_ref, fw4_ref, fb4_ref,
    fw5_ref, fb5_ref,
    # ---- output ----
    out_ref,                                  # (N, 5) softmax probabilities
    # ---- VMEM scratch (zero-padded row buffers for shifted tap reads) ----
    xbuf, c1buf, p1buf, c2buf, c3buf, p2buf,
    *, N, H, W):
  H2, W2 = H // 2, W // 2
  R1 = N * H * W                 # conv1 output rows
  R2 = N * H2 * W2               # conv2 / conv3 output rows
  HW3 = (H2 // 2) * (W2 // 2)    # spatial positions after pool2 (= 6)
  P1 = _round_up(W + 1, 8)       # sublane-aligned leading pad of xbuf
  P2 = _round_up(W2 + 1, 8)      # sublane-aligned leading pad of p1buf / c2buf

  # Zero all scratch once so masked-out / never-selected pad rows are finite.
  for buf in (xbuf, c1buf, p1buf, c2buf, c3buf, p2buf):
    buf[...] = jnp.zeros_like(buf)

  def conv3x3_relu(src_buf, base, rows, width, cin, w_ref, b_ref, m_ref):
    """3x3 'same' conv = 9 masked row-shifted VMEM reads + accumulating matmuls."""
    acc = None
    for ky in range(3):
      for kx in range(3):
        k = ky * 3 + kx
        shift = (ky - 1) * width + (kx - 1)
        tap = src_buf[base + shift: base + shift + rows, :]      # (rows, cin)
        tap = tap * m_ref[:, k:k + 1]                            # 2-D zero padding
        part = jnp.dot(tap, w_ref[k * cin:(k + 1) * cin, :],
                       preferred_element_type=jnp.float32)
        acc = part if acc is None else acc + part
    return jnp.maximum(acc + b_ref[...], 0.0)

  def maxpool2x2(src_buf, rows, width, sel_ref):
    """2x2/2 max-pool: 4 shifted reads + max, then a 0/1 selection matmul."""
    u = jnp.maximum(
        jnp.maximum(src_buf[0:rows, :], src_buf[1:1 + rows, :]),
        jnp.maximum(src_buf[width:width + rows, :],
                    src_buf[width + 1:width + 1 + rows, :]))
    return jnp.dot(sel_ref[...], u, preferred_element_type=jnp.float32)

  # ---- conv / pool trunk (fully VMEM resident) ------------------------------
  xbuf[P1:P1 + R1, :] = x_ref[...]
  c1buf[0:R1, :] = conv3x3_relu(xbuf, P1, R1, W, x_ref.shape[1],
                                cw1_ref, cb1_ref, m1_ref)
  p1buf[P2:P2 + R2, :] = maxpool2x2(c1buf, R1, W, sel1_ref)
  c2buf[P2:P2 + R2, :] = conv3x3_relu(p1buf, P2, R2, W2, p1buf.shape[1],
                                      cw2_ref, cb2_ref, m2_ref)
  c3buf[0:R2, :] = conv3x3_relu(c2buf, P2, R2, W2, c2buf.shape[1],
                                cw3_ref, cb3_ref, m2_ref)
  p2buf[0:N * HW3, :] = maxpool2x2(c3buf, R2, W2, sel2_ref)

  # ---- flatten + fc1 --------------------------------------------------------
  # p2buf rows are ordered (spatial, n); fc1's weight rows were permuted on the
  # host to the same (spatial, channel) order, so PyTorch's channel-major
  # .view(-1, 192) flatten is reproduced exactly by this grouped matmul
  # without any in-kernel transpose/reshape.
  c_last = c3buf.shape[1]
  h = None
  for hw in range(HW3):
    part = jnp.dot(p2buf[hw * N:(hw + 1) * N, :],
                   fw1_ref[hw * c_last:(hw + 1) * c_last, :],
                   preferred_element_type=jnp.float32)
    h = part if h is None else h + part
  h = jnp.maximum(h + fb1_ref[...], 0.0)

  # TODO(synk): nn.Dropout(p=0.1) applied as identity (inference semantics).
  h = jnp.maximum(jnp.dot(h, fw2_ref[...],
                          preferred_element_type=jnp.float32) + fb2_ref[...], 0.0)
  h = jnp.maximum(jnp.dot(h, fw3_ref[...],
                          preferred_element_type=jnp.float32) + fb3_ref[...], 0.0)
  h = jnp.maximum(jnp.dot(h, fw4_ref[...],
                          preferred_element_type=jnp.float32) + fb4_ref[...], 0.0)
  logits = jnp.dot(h, fw5_ref[...],
                   preferred_element_type=jnp.float32) + fb5_ref[...]

  # softmax (nn.Softmax() on a 2-D input -> dim=1)
  z = logits - jnp.max(logits, axis=-1, keepdims=True)
  e = jnp.exp(z)
  inv = pl.reciprocal(jnp.sum(e, axis=-1, keepdims=True), approx=True)
  out_ref[...] = (e * inv).astype(out_ref.dtype)


# ---------------------------------------------------------------------------
# Host-side (trace-time) constant builders
# ---------------------------------------------------------------------------
def _conv_tap_masks(N, H, W):
  """(N*H*W, 9) f32: column k=ky*3+kx is 1 where the shifted tap is in-bounds."""
  r = np.arange(N * H * W)
  h = (r // W) % H
  w = r % W
  cols = []
  for ky in range(3):
    for kx in range(3):
      ok = ((h + ky - 1 >= 0) & (h + ky - 1 < H) &
            (w + kx - 1 >= 0) & (w + kx - 1 < W))
      cols.append(ok.astype(np.float32))
  return np.stack(cols, axis=1)


def _pool_select(N, H, W, spatial_major):
  """0/1 matrix gathering the top-left element of every 2x2 pool window."""
  Ho, Wo = H // 2, W // 2
  sel = np.zeros((N * Ho * Wo, N * H * W), np.float32)
  for n in range(N):
    for ho in range(Ho):
      for wo in range(Wo):
        src = n * H * W + (2 * ho) * W + 2 * wo
        if spatial_major:                      # (h'w', n) order -> feeds fc1
          dst = (ho * Wo + wo) * N + n
        else:                                  # (n, h', w') order -> feeds conv2
          dst = n * Ho * Wo + ho * Wo + wo
        sel[dst, src] = 1.0
  return sel


# ---------------------------------------------------------------------------
# Forward wrapper
# ---------------------------------------------------------------------------
def c3d_forward(x, params):
  """x: (N, 2, H, W) NCHW float32; params: PyTorch-shaped weights."""
  N, cin, H, W = x.shape
  H2, W2 = H // 2, W // 2
  HW3 = (H2 // 2) * (W2 // 2)
  R1, R2 = N * H * W, N * H2 * W2
  P1, P2 = _round_up(W + 1, 8), _round_up(W2 + 1, 8)

  c1o = params["conv1_w"].shape[0]
  c2o = params["conv2_w"].shape[0]
  c3o = params["conv3_w"].shape[0]
  n_out = params["fc5_w"].shape[0]

  # --- tiny host-side repacking (layout plumbing only) ----------------------
  x2d = jnp.transpose(x, (0, 2, 3, 1)).reshape(R1, cin)   # rows (n,h,w), lanes c

  def conv_w(w):        # (Cout, Cin, 3, 3) -> (9*Cin, Cout), tap-major rows
    co, ci = w.shape[0], w.shape[1]
    return jnp.transpose(w, (2, 3, 1, 0)).reshape(9 * ci, co)

  def fc_w(w):          # PyTorch (out, in) -> (in, out)
    return jnp.transpose(w)

  def bias2d(b):
    return b.reshape(1, -1)

  # fc1: permute input rows from PyTorch's channel-major flatten order
  # (c*HW3 + hw) to the kernel's spatial-major order (hw*C + c).
  w1t = fc_w(params["fc1_w"])                             # (C3*HW3, out1)
  out1 = w1t.shape[1]
  fw1 = w1t.reshape(c3o, HW3, out1).transpose(1, 0, 2).reshape(c3o * HW3, out1)

  m1 = jnp.asarray(_conv_tap_masks(N, H, W))
  m2 = jnp.asarray(_conv_tap_masks(N, H2, W2))
  sel1 = jnp.asarray(_pool_select(N, H, W, spatial_major=False))
  sel2 = jnp.asarray(_pool_select(N, H2, W2, spatial_major=True))

  scratch = [
      pltpu.VMEM((R1 + 2 * P1, cin), jnp.float32),                 # xbuf
      pltpu.VMEM((_round_up(R1 + W + 1, 8), c1o), jnp.float32),    # c1buf
      pltpu.VMEM((R2 + 2 * P2, c1o), jnp.float32),                 # p1buf
      pltpu.VMEM((R2 + 2 * P2, c2o), jnp.float32),                 # c2buf
      pltpu.VMEM((_round_up(R2 + W2 + 1, 8), c3o), jnp.float32),   # c3buf
      pltpu.VMEM((_round_up(N * HW3, 8), c3o), jnp.float32),       # p2buf
  ]

  args = (
      x2d,
      conv_w(params["conv1_w"]), bias2d(params["conv1_b"]),
      conv_w(params["conv2_w"]), bias2d(params["conv2_b"]),
      conv_w(params["conv3_w"]), bias2d(params["conv3_b"]),
      m1, m2, sel1, sel2,
      fw1, bias2d(params["fc1_b"]),
      fc_w(params["fc2_w"]), bias2d(params["fc2_b"]),
      fc_w(params["fc3_w"]), bias2d(params["fc3_b"]),
      fc_w(params["fc4_w"]), bias2d(params["fc4_b"]),
      fc_w(params["fc5_w"]), bias2d(params["fc5_b"]),
  )

  return pl.pallas_call(
      functools.partial(_c3d_fused_kernel, N=N, H=H, W=W),
      out_shape=jax.ShapeDtypeStruct((N, n_out), jnp.float32),
      in_specs=[_vmem()] * len(args),
      out_specs=_vmem(),
      scratch_shapes=scratch,
  )(*args)


# ---------------------------------------------------------------------------
# Pure-JAX reference (for correctness check) and parameter init
# ---------------------------------------------------------------------------
def c3d_reference(x, p):
  def conv(h, w, b):
    y = jax.lax.conv_general_dilated(
        h, w, window_strides=(1, 1), padding=((1, 1), (1, 1)),
        dimension_numbers=("NCHW", "OIHW", "NCHW"))
    return jax.nn.relu(y + b[None, :, None, None])

  def pool(h):
    return jax.lax.reduce_window(h, jnp.array(-jnp.inf, h.dtype), jax.lax.max,
                                 (1, 1, 2, 2), (1, 1, 2, 2), "VALID")

  h = pool(conv(x, p["conv1_w"], p["conv1_b"]))
  h = conv(h, p["conv2_w"], p["conv2_b"])
  h = pool(conv(h, p["conv3_w"], p["conv3_b"]))
  h = h.reshape(-1, p["fc1_w"].shape[1])
  for i in (1, 2, 3, 4):
    h = jax.nn.relu(h @ p[f"fc{i}_w"].T + p[f"fc{i}_b"])
  logits = h @ p["fc5_w"].T + p["fc5_b"]
  return jax.nn.softmax(logits, axis=-1)


def init_params(key):
  p = {}
  conv_defs = [("conv1", 2, 8), ("conv2", 8, 16), ("conv3", 16, 32)]
  fc_defs = [("fc1", 192, 96), ("fc2", 96, 48), ("fc3", 48, 24),
             ("fc4", 24, 12), ("fc5", 12, 5)]
  keys = jax.random.split(key, 2 * (len(conv_defs) + len(fc_defs)))
  ki = 0
  for name, cin, cout in conv_defs:
    p[f"{name}_w"] = (jax.random.normal(keys[ki], (cout, cin, 3, 3), jnp.float32)
                      / np.sqrt(9 * cin))
    p[f"{name}_b"] = 0.1 * jax.random.normal(keys[ki + 1], (cout,), jnp.float32)
    ki += 2
  for name, fin, fout in fc_defs:
    p[f"{name}_w"] = (jax.random.normal(keys[ki], (fout, fin), jnp.float32)
                      / np.sqrt(fin))
    p[f"{name}_b"] = 0.1 * jax.random.normal(keys[ki + 1], (fout,), jnp.float32)
    ki += 2
  return p


if __name__ == "__main__":
  key = jax.random.PRNGKey(0)
  kx, kp = jax.random.split(key)
  # NCHW input (2, 2, 8, 12): after two 2x2 pools -> 32*2*3 = 192 features,
  # consistent with fc1 = nn.Linear(192, 96).
  x = jax.random.normal(kx, (2, 2, 8, 12), jnp.float32)
  params = init_params(kp)

  probs = jax.block_until_ready(jax.jit(c3d_forward)(x, params))
  ref = jax.block_until_ready(jax.jit(c3d_reference)(x, params))

  assert probs.shape == (2, 5)
  assert bool(jnp.all(jnp.isfinite(probs)))
  # loose tolerances because the in-kernel softmax uses the EUP approximate
  # reciprocal (pl.reciprocal(..., approx=True))
  assert bool(jnp.allclose(jnp.sum(probs, axis=-1), 1.0, atol=1e-2))
  assert bool(jnp.allclose(probs, ref, atol=1e-2))
  print("KERNEL_OK")
</pallas_src>

<mosaic_0001>
module attributes {stable_mosaic.version = 11 : i64} {
  func.func @_c3d_fused_kernel(%arg0: memref<192x2xf32, #tpu.memory_space<vmem>>, %arg1: memref<18x8xf32, #tpu.memory_space<vmem>>, %arg2: memref<1x8xf32, #tpu.memory_space<vmem>>, %arg3: memref<72x16xf32, #tpu.memory_space<vmem>>, %arg4: memref<1x16xf32, #tpu.memory_space<vmem>>, %arg5: memref<144x32xf32, #tpu.memory_space<vmem>>, %arg6: memref<1x32xf32, #tpu.memory_space<vmem>>, %arg7: memref<192x9xf32, #tpu.memory_space<vmem>>, %arg8: memref<48x9xf32, #tpu.memory_space<vmem>>, %arg9: memref<48x192xf32, #tpu.memory_space<vmem>>, %arg10: memref<12x48xf32, #tpu.memory_space<vmem>>, %arg11: memref<192x96xf32, #tpu.memory_space<vmem>>, %arg12: memref<1x96xf32, #tpu.memory_space<vmem>>, %arg13: memref<96x48xf32, #tpu.memory_space<vmem>>, %arg14: memref<1x48xf32, #tpu.memory_space<vmem>>, %arg15: memref<48x24xf32, #tpu.memory_space<vmem>>, %arg16: memref<1x24xf32, #tpu.memory_space<vmem>>, %arg17: memref<24x12xf32, #tpu.memory_space<vmem>>, %arg18: memref<1x12xf32, #tpu.memory_space<vmem>>, %arg19: memref<12x5xf32, #tpu.memory_space<vmem>>, %arg20: memref<1x5xf32, #tpu.memory_space<vmem>>, %arg21: memref<2x5xf32, #tpu.memory_space<vmem>>, %arg22: memref<224x2xf32, #tpu.memory_space<vmem>>, %arg23: memref<208x8xf32, #tpu.memory_space<vmem>>, %arg24: memref<64x8xf32, #tpu.memory_space<vmem>>, %arg25: memref<64x16xf32, #tpu.memory_space<vmem>>, %arg26: memref<56x32xf32, #tpu.memory_space<vmem>>, %arg27: memref<16x32xf32, #tpu.memory_space<vmem>>) attributes {dimension_semantics = [], scalar_prefetch = 0 : i64, scratch_operands = 6 : i64, tpu.core_type = #tpu.core_type<tc>} {
    %cst = arith.constant 0.000000e+00 : f32
    %0 = vector.broadcast %cst : f32 to vector<224x2xf32>
    %c0 = arith.constant 0 : index
    %c0_0 = arith.constant 0 : index
    %1 = vector.load %arg22[%c0, %c0_0] : memref<224x2xf32, #tpu.memory_space<vmem>>, vector<224x2xf32>
    tpu.vector_store %arg22[%c0, %c0_0], %0 {strides = array<i32>} : memref<224x2xf32, #tpu.memory_space<vmem>>, vector<224x2xf32>,
    %cst_1 = arith.constant 0.000000e+00 : f32
    %2 = vector.broadcast %cst_1 : f32 to vector<208x8xf32>
    %c0_2 = arith.constant 0 : index
    %c0_3 = arith.constant 0 : index
    %3 = vector.load %arg23[%c0_2, %c0_3] : memref<208x8xf32, #tpu.memory_space<vmem>>, vector<208x8xf32>
    tpu.vector_store %arg23[%c0_2, %c0_3], %2 {strides = array<i32>} : memref<208x8xf32, #tpu.memory_space<vmem>>, vector<208x8xf32>,
    %cst_4 = arith.constant 0.000000e+00 : f32
    %4 = vector.broadcast %cst_4 : f32 to vector<64x8xf32>
    %c0_5 = arith.constant 0 : index
    %c0_6 = arith.constant 0 : index
    %5 = vector.load %arg24[%c0_5, %c0_6] : memref<64x8xf32, #tpu.memory_space<vmem>>, vector<64x8xf32>
    tpu.vector_store %arg24[%c0_5, %c0_6], %4 {strides = array<i32>} : memref<64x8xf32, #tpu.memory_space<vmem>>, vector<64x8xf32>,
    %cst_7 = arith.constant 0.000000e+00 : f32
    %6 = vector.broadcast %cst_7 : f32 to vector<64x16xf32>
    %c0_8 = arith.constant 0 : index
    %c0_9 = arith.constant 0 : index
    %7 = vector.load %arg25[%c0_8, %c0_9] : memref<64x16xf32, #tpu.memory_space<vmem>>, vector<64x16xf32>
    tpu.vector_store %arg25[%c0_8, %c0_9], %6 {strides = array<i32>} : memref<64x16xf32, #tpu.memory_space<vmem>>, vector<64x16xf32>,
    %cst_10 = arith.constant 0.000000e+00 : f32
    %8 = vector.broadcast %cst_10 : f32 to vector<56x32xf32>
    %c0_11 = arith.constant 0 : index
    %c0_12 = arith.constant 0 : index
    %9 = vector.load %arg26[%c0_11, %c0_12] : memref<56x32xf32, #tpu.memory_space<vmem>>, vector<56x32xf32>
    tpu.vector_store %arg26[%c0_11, %c0_12], %8 {strides = array<i32>} : memref<56x32xf32, #tpu.memory_space<vmem>>, vector<56x32xf32>,
    %cst_13 = arith.constant 0.000000e+00 : f32
    %10 = vector.broadcast %cst_13 : f32 to vector<16x32xf32>
    %c0_14 = arith.constant 0 : index
    %c0_15 = arith.constant 0 : index
    %11 = vector.load %arg27[%c0_14, %c0_15] : memref<16x32xf32, #tpu.memory_space<vmem>>, vector<16x32xf32>
    tpu.vector_store %arg27[%c0_14, %c0_15], %10 {strides = array<i32>} : memref<16x32xf32, #tpu.memory_space<vmem>>, vector<16x32xf32>,
    %c0_16 = arith.constant 0 : index
    %c0_17 = arith.constant 0 : index
    %12 = vector.load %arg0[%c0_16, %c0_17] : memref<192x2xf32, #tpu.memory_space<vmem>>, vector<192x2xf32>
    %c16 = arith.constant 16 : index
    %c0_18 = arith.constant 0 : index
    %13 = vector.load %arg22[%c16, %c0_18] : memref<224x2xf32, #tpu.memory_space<vmem>>, vector<192x2xf32>
    tpu.vector_store %arg22[%c16, %c0_18], %12 {strides = array<i32>} : memref<224x2xf32, #tpu.memory_space<vmem>>, vector<192x2xf32>,
    %c3 = arith.constant 3 : index
    %c0_19 = arith.constant 0 : index
    %14 = vector.load %arg22[%c3, %c0_19] : memref<224x2xf32, #tpu.memory_space<vmem>>, vector<192x2xf32>
    %c0_20 = arith.constant 0 : index
    %c0_21 = arith.constant 0 : index
    %15 = vector.load %arg7[%c0_20, %c0_21] : memref<192x9xf32, #tpu.memory_space<vmem>>, vector<192x1xf32>
    %16 = vector.broadcast %15 : vector<192x1xf32> to vector<192x2xf32>
    %17 = arith.mulf %14, %16 : vector<192x2xf32>
    %c0_22 = arith.constant 0 : index
    %c0_23 = arith.constant 0 : index
    %18 = vector.load %arg1[%c0_22, %c0_23] : memref<18x8xf32, #tpu.memory_space<vmem>>, vector<2x8xf32>
    %cst_24 = arith.constant dense<0.000000e+00> : vector<192x8xf32>
    %19 = tpu.matmul %17, %18, %cst_24 {dimension_numbers = #tpu.dot_dimension_numbers<[1], [0], [0], [1], [0, 0, 1, 1], [], []>} : vector<192x2xf32>, vector<2x8xf32>, vector<192x8xf32> -> vector<192x8xf32>
    %c4 = arith.constant 4 : index
    %c0_25 = arith.constant 0 : index
    %20 = vector.load %arg22[%c4, %c0_25] : memref<224x2xf32, #tpu.memory_space<vmem>>, vector<192x2xf32>
    %c0_26 = arith.constant 0 : index
    %c1 = arith.constant 1 : index
    %21 = vector.load %arg7[%c0_26, %c1] : memref<192x9xf32, #tpu.memory_space<vmem>>, vector<192x1xf32>
    %22 = vector.broadcast %21 : vector<192x1xf32> to vector<192x2xf32>
    %23 = arith.mulf %20, %22 : vector<192x2xf32>
    %c2 = arith.constant 2 : index
    %c0_27 = arith.constant 0 : index
    %24 = vector.load %arg1[%c2, %c0_27] : memref<18x8xf32, #tpu.memory_space<vmem>>, vector<2x8xf32>
    %cst_28 = arith.constant dense<0.000000e+00> : vector<192x8xf32>
    %25 = tpu.matmul %23, %24, %cst_28 {dimension_numbers = #tpu.dot_dimension_numbers<[1], [0], [0], [1], [0, 0, 1, 1], [], []>} : vector<192x2xf32>, vector<2x8xf32>, vector<192x8xf32> -> vector<192x8xf32>
    %26 = arith.addf %19, %25 : vector<192x8xf32>
    %c5 = arith.constant 5 : index
    %c0_29 = arith.constant 0 : index
    %27 = vector.load %arg22[%c5, %c0_29] : memref<224x2xf32, #tpu.memory_space<vmem>>, vector<192x2xf32>
    %c0_30 = arith.constant 0 : index
    %c2_31 = arith.constant 2 : index
    %28 = vector.load %arg7[%c0_30, %c2_31] : memref<192x9xf32, #tpu.memory_space<vmem>>, vector<192x1xf32>
    %29 = vector.broadcast %28 : vector<192x1xf32> to vector<192x2xf32>
    %30 = arith.mulf %27, %29 : vector<192x2xf32>
    %c4_32 = arith.constant 4 : index
    %c0_33 = arith.constant 0 : index
    %31 = vector.load %arg1[%c4_32, %c0_33] : memref<18x8xf32, #tpu.memory_space<vmem>>, vector<2x8xf32>
    %cst_34 = arith.constant dense<0.000000e+00> : vector<192x8xf32>
    %32 = tpu.matmul %30, %31, %cst_34 {dimension_numbers = #tpu.dot_dimension_numbers<[1], [0], [0], [1], [0, 0, 1, 1], [], []>} : vector<192x2xf32>, vector<2x8xf32>, vector<192x8xf32> -> vector<192x8xf32>
    %33 = arith.addf %26, %32 : vector<192x8xf32>
    %c15 = arith.constant 15 : index
    %c0_35 = arith.constant 0 : index
    %34 = vector.load %arg22[%c15, %c0_35] : memref<224x2xf32, #tpu.memory_space<vmem>>, vector<192x2xf32>
    %c0_36 = arith.constant 0 : index
    %c3_37 = arith.constant 3 : index
    %35 = vector.load %arg7[%c0_36, %c3_37] : memref<192x9xf32, #tpu.memory_space<vmem>>, vector<192x1xf32>
    %36 = vector.broadcast %35 : vector<192x1xf32> to vector<192x2xf32>
    %37 = arith.mulf %34, %36 : vector<192x2xf32>
    %c6 = arith.constant 6 : index
    %c0_38 = arith.constant 0 : index
    %38 = vector.load %arg1[%c6, %c0_38] : memref<18x8xf32, #tpu.memory_space<vmem>>, vector<2x8xf32>
    %cst_39 = arith.constant dense<0.000000e+00> : vector<192x8xf32>
    %39 = tpu.matmul %37, %38, %cst_39 {dimension_numbers = #tpu.dot_dimension_numbers<[1], [0], [0], [1], [0, 0, 1, 1], [], []>} : vector<192x2xf32>, vector<2x8xf32>, vector<192x8xf32> -> vector<192x8xf32>
    %40 = arith.addf %33, %39 : vector<192x8xf32>
    %c16_40 = arith.constant 16 : index
    %c0_41 = arith.constant 0 : index
    %41 = vector.load %arg22[%c16_40, %c0_41] : memref<224x2xf32, #tpu.memory_space<vmem>>, vector<192x2xf32>
    %c0_42 = arith.constant 0 : index
    %c4_43 = arith.constant 4 : index
    %42 = vector.load %arg7[%c0_42, %c4_43] : memref<192x9xf32, #tpu.memory_space<vmem>>, vector<192x1xf32>
    %43 = vector.broadcast %42 : vector<192x1xf32> to vector<192x2xf32>
    %44 = arith.mulf %41, %43 : vector<192x2xf32>
    %c8 = arith.constant 8 : index
    %c0_44 = arith.constant 0 : index
    %45 = vector.load %arg1[%c8, %c0_44] : memref<18x8xf32, #tpu.memory_space<vmem>>, vector<2x8xf32>
    %cst_45 = arith.constant dense<0.000000e+00> : vector<192x8xf32>
    %46 = tpu.matmul %44, %45, %cst_45 {dimension_numbers = #tpu.dot_dimension_numbers<[1], [0], [0], [1], [0, 0, 1, 1], [], []>} : vector<192x2xf32>, vector<2x8xf32>, vector<192x8xf32> -> vector<192x8xf32>
    %47 = arith.addf %40, %46 : vector<192x8xf32>
    %c17 = arith.constant 17 : index
    %c0_46 = arith.constant 0 : index
    %48 = vector.load %arg22[%c17, %c0_46] : memref<224x2xf32, #tpu.memory_space<vmem>>, vector<192x2xf32>
    %c0_47 = arith.constant 0 : index
    %c5_48 = arith.constant 5 : index
    %49 = vector.load %arg7[%c0_47, %c5_48] : memref<192x9xf32, #tpu.memory_space<vmem>>, vector<192x1xf32>
    %50 = vector.broadcast %49 : vector<192x1xf32> to vector<192x2xf32>
    %51 = arith.mulf %48, %50 : vector<192x2xf32>
    %c10 = arith.constant 10 : index
    %c0_49 = arith.constant 0 : index
    %52 = vector.load %arg1[%c10, %c0_49] : memref<18x8xf32, #tpu.memory_space<vmem>>, vector<2x8xf32>
    %cst_50 = arith.constant dense<0.000000e+00> : vector<192x8xf32>
    %53 = tpu.matmul %51, %52, %cst_50 {dimension_numbers = #tpu.dot_dimension_numbers<[1], [0], [0], [1], [0, 0, 1, 1], [], []>} : vector<192x2xf32>, vector<2x8xf32>, vector<192x8xf32> -> vector<192x8xf32>
    %54 = arith.addf %47, %53 : vector<192x8xf32>
    %c27 = arith.constant 27 : index
    %c0_51 = arith.constant 0 : index
    %55 = vector.load %arg22[%c27, %c0_51] : memref<224x2xf32, #tpu.memory_space<vmem>>, vector<192x2xf32>
    %c0_52 = arith.constant 0 : index
    %c6_53 = arith.constant 6 : index
    %56 = vector.load %arg7[%c0_52, %c6_53] : memref<192x9xf32, #tpu.memory_space<vmem>>, vector<192x1xf32>
    %57 = vector.broadcast %56 : vector<192x1xf32> to vector<192x2xf32>
    %58 = arith.mulf %55, %57 : vector<192x2xf32>
    %c12 = arith.constant 12 : index
    %c0_54 = arith.constant 0 : index
    %59 = vector.load %arg1[%c12, %c0_54] : memref<18x8xf32, #tpu.memory_space<vmem>>, vector<2x8xf32>
    %cst_55 = arith.constant dense<0.000000e+00> : vector<192x8xf32>
    %60 = tpu.matmul %58, %59, %cst_55 {dimension_numbers = #tpu.dot_dimension_numbers<[1], [0], [0], [1], [0, 0, 1, 1], [], []>} : vector<192x2xf32>, vector<2x8xf32>, vector<192x8xf32> -> vector<192x8xf32>
    %61 = arith.addf %54, %60 : vector<192x8xf32>
    %c28 = arith.constant 28 : index
    %c0_56 = arith.constant 0 : index
    %62 = vector.load %arg22[%c28, %c0_56] : memref<224x2xf32, #tpu.memory_space<vmem>>, vector<192x2xf32>
    %c0_57 = arith.constant 0 : index
    %c7 = arith.constant 7 : index
    %63 = vector.load %arg7[%c0_57, %c7] : memref<192x9xf32, #tpu.memory_space<vmem>>, vector<192x1xf32>
    %64 = vector.broadcast %63 : vector<192x1xf32> to vector<192x2xf32>
    %65 = arith.mulf %62, %64 : vector<192x2xf32>
    %c14 = arith.constant 14 : index
    %c0_58 = arith.constant 0 : index
    %66 = vector.load %arg1[%c14, %c0_58] : memref<18x8xf32, #tpu.memory_space<vmem>>, vector<2x8xf32>
    %cst_59 = arith.constant dense<0.000000e+00> : vector<192x8xf32>
    %67 = tpu.matmul %65, %66, %cst_59 {dimension_numbers = #tpu.dot_dimension_numbers<[1], [0], [0], [1], [0, 0, 1, 1], [], []>} : vector<192x2xf32>, vector<2x8xf32>, vector<192x8xf32> -> vector<192x8xf32>
    %68 = arith.addf %61, %67 : vector<192x8xf32>
    %c29 = arith.constant 29 : index
    %c0_60 = arith.constant 0 : index
    %69 = vector.load %arg22[%c29, %c0_60] : memref<224x2xf32, #tpu.memory_space<vmem>>, vector<192x2xf32>
    %c0_61 = arith.constant 0 : index
    %c8_62 = arith.constant 8 : index
    %70 = vector.load %arg7[%c0_61, %c8_62] : memref<192x9xf32, #tpu.memory_space<vmem>>, vector<192x1xf32>
    %71 = vector.broadcast %70 : vector<192x1xf32> to vector<192x2xf32>
    %72 = arith.mulf %69, %71 : vector<192x2xf32>
    %c16_63 = arith.constant 16 : index
    %c0_64 = arith.constant 0 : index
    %73 = vector.load %arg1[%c16_63, %c0_64] : memref<18x8xf32, #tpu.memory_space<vmem>>, vector<2x8xf32>
    %cst_65 = arith.constant dense<0.000000e+00> : vector<192x8xf32>
    %74 = tpu.matmul %72, %73, %cst_65 {dimension_numbers = #tpu.dot_dimension_numbers<[1], [0], [0], [1], [0, 0, 1, 1], [], []>} : vector<192x2xf32>, vector<2x8xf32>, vector<192x8xf32> -> vector<192x8xf32>
    %75 = arith.addf %68, %74 : vector<192x8xf32>
    %c0_66 = arith.constant 0 : index
    %c0_67 = arith.constant 0 : index
    %76 = vector.load %arg2[%c0_66, %c0_67] : memref<1x8xf32, #tpu.memory_space<vmem>>, vector<1x8xf32>
    %77 = vector.broadcast %76 : vector<1x8xf32> to vector<192x8xf32>
    %78 = arith.addf %75, %77 : vector<192x8xf32>
    %cst_68 = arith.constant 0.000000e+00 : f32
    %79 = vector.broadcast %cst_68 : f32 to vector<192x8xf32>
    %80 = arith.maximumf %78, %79 : vector<192x8xf32>
    %c0_69 = arith.constant 0 : index
    %c0_70 = arith.constant 0 : index
    %81 = vector.load %arg23[%c0_69, %c0_70] : memref<208x8xf32, #tpu.memory_space<vmem>>, vector<192x8xf32>
    tpu.vector_store %arg23[%c0_69, %c0_70], %80 {strides = array<i32>} : memref<208x8xf32, #tpu.memory_space<vmem>>, vector<192x8xf32>,
    %c0_71 = arith.constant 0 : index
    %c0_72 = arith.constant 0 : index
    %82 = vector.load %arg23[%c0_71, %c0_72] : memref<208x8xf32, #tpu.memory_space<vmem>>, vector<192x8xf32>
    %c1_73 = arith.constant 1 : index
    %c0_74 = arith.constant 0 : index
    %83 = vector.load %arg23[%c1_73, %c0_74] : memref<208x8xf32, #tpu.memory_space<vmem>>, vector<192x8xf32>
    %84 = arith.maximumf %82, %83 : vector<192x8xf32>
    %c12_75 = arith.constant 12 : index
    %c0_76 = arith.constant 0 : index
    %85 = vector.load %arg23[%c12_75, %c0_76] : memref<208x8xf32, #tpu.memory_space<vmem>>, vector<192x8xf32>
    %c13 = arith.constant 13 : index
    %c0_77 = arith.constant 0 : index
    %86 = vector.load %arg23[%c13, %c0_77] : memref<208x8xf32, #tpu.memory_space<vmem>>, vector<192x8xf32>
    %87 = arith.maximumf %85, %86 : vector<192x8xf32>
    %88 = arith.maximumf %84, %87 : vector<192x8xf32>
    %c0_78 = arith.constant 0 : index
    %c0_79 = arith.constant 0 : index
    %89 = vector.load %arg9[%c0_78, %c0_79] : memref<48x192xf32, #tpu.memory_space<vmem>>, vector<48x192xf32>
    %cst_80 = arith.constant dense<0.000000e+00> : vector<48x8xf32>
    %90 = tpu.matmul %89, %88, %cst_80 {dimension_numbers = #tpu.dot_dimension_numbers<[1], [0], [0], [1], [0, 0, 1, 1], [], []>} : vector<48x192xf32>, vector<192x8xf32>, vector<48x8xf32> -> vector<48x8xf32>
    %c8_81 = arith.constant 8 : index
    %c0_82 = arith.constant 0 : index
    %91 = vector.load %arg24[%c8_81, %c0_82] : memref<64x8xf32, #tpu.memory_space<vmem>>, vector<48x8xf32>
    tpu.vector_store %arg24[%c8_81, %c0_82], %90 {strides = array<i32>} : memref<64x8xf32, #tpu.memory_space<vmem>>, vector<48x8xf32>,
    %c1_83 = arith.constant 1 : index
    %c0_84 = arith.constant 0 : index
    %92 = vector.load %arg24[%c1_83, %c0_84] : memref<64x8xf32, #tpu.memory_space<vmem>>, vector<48x8xf32>
    %c0_85 = arith.constant 0 : index
    %c0_86 = arith.constant 0 : index
    %93 = vector.load %arg8[%c0_85, %c0_86] : memref<48x9xf32, #tpu.memory_space<vmem>>, vector<48x1xf32>
    %94 = vector.broadcast %93 : vector<48x1xf32> to vector<48x8xf32>
    %95 = arith.mulf %92, %94 : vector<48x8xf32>
    %c0_87 = arith.constant 0 : index
    %c0_88 = arith.constant 0 : index
    %96 = vector.load %arg3[%c0_87, %c0_88] : memref<72x16xf32, #tpu.memory_space<vmem>>, vector<8x16xf32>
    %cst_89 = arith.constant dense<0.000000e+00> : vector<48x16xf32>
    %97 = tpu.matmul %95, %96, %cst_89 {dimension_numbers = #tpu.dot_dimension_numbers<[1], [0], [0], [1], [0, 0, 1, 1], [], []>} : vector<48x8xf32>, vector<8x16xf32>, vector<48x16xf32> -> vector<48x16xf32>
    %c2_90 = arith.constant 2 : index
    %c0_91 = arith.constant 0 : index
    %98 = vector.load %arg24[%c2_90, %c0_91] : memref<64x8xf32, #tpu.memory_space<vmem>>, vector<48x8xf32>
    %c0_92 = arith.constant 0 : index
    %c1_93 = arith.constant 1 : index
    %99 = vector.load %arg8[%c0_92, %c1_93] : memref<48x9xf32, #tpu.memory_space<vmem>>, vector<48x1xf32>
    %100 = vector.broadcast %99 : vector<48x1xf32> to vector<48x8xf32>
    %101 = arith.mulf %98, %100 : vector<48x8xf32>
    %c8_94 = arith.constant 8 : index
    %c0_95 = arith.constant 0 : index
    %102 = vector.load %arg3[%c8_94, %c0_95] : memref<72x16xf32, #tpu.memory_space<vmem>>, vector<8x16xf32>
    %cst_96 = arith.constant dense<0.000000e+00> : vector<48x16xf32>
    %103 = tpu.matmul %101, %102, %cst_96 {dimension_numbers = #tpu.dot_dimension_numbers<[1], [0], [0], [1], [0, 0, 1, 1], [], []>} : vector<48x8xf32>, vector<8x16xf32>, vector<48x16xf32> -> vector<48x16xf32>
    %104 = arith.addf %97, %103 : vector<48x16xf32>
    %c3_97 = arith.constant 3 : index
    %c0_98 = arith.constant 0 : index
    %105 = vector.load %arg24[%c3_97, %c0_98] : memref<64x8xf32, #tpu.memory_space<vmem>>, vector<48x8xf32>
    %c0_99 = arith.constant 0 : index
    %c2_100 = arith.constant 2 : index
    %106 = vector.load %arg8[%c0_99, %c2_100] : memref<48x9xf32, #tpu.memory_space<vmem>>, vector<48x1xf32>
    %107 = vector.broadcast %106 : vector<48x1xf32> to vector<48x8xf32>
    %108 = arith.mulf %105, %107 : vector<48x8xf32>
    %c16_101 = arith.constant 16 : index
    %c0_102 = arith.constant 0 : index
    %109 = vector.load %arg3[%c16_101, %c0_102] : memref<72x16xf32, #tpu.memory_space<vmem>>, vector<8x16xf32>
    %cst_103 = arith.constant dense<0.000000e+00> : vector<48x16xf32>
    %110 = tpu.matmul %108, %109, %cst_103 {dimension_numbers = #tpu.dot_dimension_numbers<[1], [0], [0], [1], [0, 0, 1, 1], [], []>} : vector<48x8xf32>, vector<8x16xf32>, vector<48x16xf32> -> vector<48x16xf32>
    %111 = arith.addf %104, %110 : vector<48x16xf32>
    %c7_104 = arith.constant 7 : index
    %c0_105 = arith.constant 0 : index
    %112 = vector.load %arg24[%c7_104, %c0_105] : memref<64x8xf32, #tpu.memory_space<vmem>>, vector<48x8xf32>
    %c0_106 = arith.constant 0 : index
    %c3_107 = arith.constant 3 : index
    %113 = vector.load %arg8[%c0_106, %c3_107] : memref<48x9xf32, #tpu.memory_space<vmem>>, vector<48x1xf32>
    %114 = vector.broadcast %113 : vector<48x1xf32> to vector<48x8xf32>
    %115 = arith.mulf %112, %114 : vector<48x8xf32>
    %c24 = arith.constant 24 : index
    %c0_108 = arith.constant 0 : index
    %116 = vector.load %arg3[%c24, %c0_108] : memref<72x16xf32, #tpu.memory_space<vmem>>, vector<8x16xf32>
    %cst_109 = arith.constant dense<0.000000e+00> : vector<48x16xf32>
    %117 = tpu.matmul %115, %116, %cst_109 {dimension_numbers = #tpu.dot_dimension_numbers<[1], [0], [0], [1], [0, 0, 1, 1], [], []>} : vector<48x8xf32>, vector<8x16xf32>, vector<48x16xf32> -> vector<48x16xf32>
    %118 = arith.addf %111, %117 : vector<48x16xf32>
    %c8_110 = arith.constant 8 : index
    %c0_111 = arith.constant 0 : index
    %119 = vector.load %arg24[%c8_110, %c0_111] : memref<64x8xf32, #tpu.memory_space<vmem>>, vector<48x8xf32>
    %c0_112 = arith.constant 0 : index
    %c4_113 = arith.constant 4 : index
    %120 = vector.load %arg8[%c0_112, %c4_113] : memref<48x9xf32, #tpu.memory_space<vmem>>, vector<48x1xf32>
    %121 = vector.broadcast %120 : vector<48x1xf32> to vector<48x8xf32>
    %122 = arith.mulf %119, %121 : vector<48x8xf32>
    %c32 = arith.constant 32 : index
    %c0_114 = arith.constant 0 : index
    %123 = vector.load %arg3[%c32, %c0_114] : memref<72x16xf32, #tpu.memory_space<vmem>>, vector<8x16xf32>
    %cst_115 = arith.constant dense<0.000000e+00> : vector<48x16xf32>
    %124 = tpu.matmul %122, %123, %cst_115 {dimension_numbers = #tpu.dot_dimension_numbers<[1], [0], [0], [1], [0, 0, 1, 1], [], []>} : vector<48x8xf32>, vector<8x16xf32>, vector<48x16xf32> -> vector<48x16xf32>
    %125 = arith.addf %118, %124 : vector<48x16xf32>
    %c9 = arith.constant 9 : index
    %c0_116 = arith.constant 0 : index
    %126 = vector.load %arg24[%c9, %c0_116] : memref<64x8xf32, #tpu.memory_space<vmem>>, vector<48x8xf32>
    %c0_117 = arith.constant 0 : index
    %c5_118 = arith.constant 5 : index
    %127 = vector.load %arg8[%c0_117, %c5_118] : memref<48x9xf32, #tpu.memory_space<vmem>>, vector<48x1xf32>
    %128 = vector.broadcast %127 : vector<48x1xf32> to vector<48x8xf32>
    %129 = arith.mulf %126, %128 : vector<48x8xf32>
    %c40 = arith.constant 40 : index
    %c0_119 = arith.constant 0 : index
    %130 = vector.load %arg3[%c40, %c0_119] : memref<72x16xf32, #tpu.memory_space<vmem>>, vector<8x16xf32>
    %cst_120 = arith.constant dense<0.000000e+00> : vector<48x16xf32>
    %131 = tpu.matmul %129, %130, %cst_120 {dimension_numbers = #tpu.dot_dimension_numbers<[1], [0], [0], [1], [0, 0, 1, 1], [], []>} : vector<48x8xf32>, vector<8x16xf32>, vector<48x16xf32> -> vector<48x16xf32>
    %132 = arith.addf %125, %131 : vector<48x16xf32>
    %c13_121 = arith.constant 13 : index
    %c0_122 = arith.constant 0 : index
    %133 = vector.load %arg24[%c13_121, %c0_122] : memref<64x8xf32, #tpu.memory_space<vmem>>, vector<48x8xf32>
    %c0_123 = arith.constant 0 : index
    %c6_124 = arith.constant 6 : index
    %134 = vector.load %arg8[%c0_123, %c6_124] : memref<48x9xf32, #tpu.memory_space<vmem>>, vector<48x1xf32>
    %135 = vector.broadcast %134 : vector<48x1xf32> to vector<48x8xf32>
    %136 = arith.mulf %133, %135 : vector<48x8xf32>
    %c48 = arith.constant 48 : index
    %c0_125 = arith.constant 0 : index
    %137 = vector.load %arg3[%c48, %c0_125] : memref<72x16xf32, #tpu.memory_space<vmem>>, vector<8x16xf32>
    %cst_126 = arith.constant dense<0.000000e+00> : vector<48x16xf32>
    %138 = tpu.matmul %136, %137, %cst_126 {dimension_numbers = #tpu.dot_dimension_numbers<[1], [0], [0], [1], [0, 0, 1, 1], [], []>} : vector<48x8xf32>, vector<8x16xf32>, vector<48x16xf32> -> vector<48x16xf32>
    %139 = arith.addf %132, %138 : vector<48x16xf32>
    %c14_127 = arith.constant 14 : index
    %c0_128 = arith.constant 0 : index
    %140 = vector.load %arg24[%c14_127, %c0_128] : memref<64x8xf32, #tpu.memory_space<vmem>>, vector<48x8xf32>
    %c0_129 = arith.constant 0 : index
    %c7_130 = arith.constant 7 : index
    %141 = vector.load %arg8[%c0_129, %c7_130] : memref<48x9xf32, #tpu.memory_space<vmem>>, vector<48x1xf32>
    %142 = vector.broadcast %141 : vector<48x1xf32> to vector<48x8xf32>
    %143 = arith.mulf %140, %142 : vector<48x8xf32>
    %c56 = arith.constant 56 : index
    %c0_131 = arith.constant 0 : index
    %144 = vector.load %arg3[%c56, %c0_131] : memref<72x16xf32, #tpu.memory_space<vmem>>, vector<8x16xf32>
    %cst_132 = arith.constant dense<0.000000e+00> : vector<48x16xf32>
    %145 = tpu.matmul %143, %144, %cst_132 {dimension_numbers = #tpu.dot_dimension_numbers<[1], [0], [0], [1], [0, 0, 1, 1], [], []>} : vector<48x8xf32>, vector<8x16xf32>, vector<48x16xf32> -> vector<48x16xf32>
    %146 = arith.addf %139, %145 : vector<48x16xf32>
    %c15_133 = arith.constant 15 : index
    %c0_134 = arith.constant 0 : index
    %147 = vector.load %arg24[%c15_133, %c0_134] : memref<64x8xf32, #tpu.memory_space<vmem>>, vector<48x8xf32>
    %c0_135 = arith.constant 0 : index
    %c8_136 = arith.constant 8 : index
    %148 = vector.load %arg8[%c0_135, %c8_136] : memref<48x9xf32, #tpu.memory_space<vmem>>, vector<48x1xf32>
    %149 = vector.broadcast %148 : vector<48x1xf32> to vector<48x8xf32>
    %150 = arith.mulf %147, %149 : vector<48x8xf32>
    %c64 = arith.constant 64 : index
    %c0_137 = arith.constant 0 : index
    %151 = vector.load %arg3[%c64, %c0_137] : memref<72x16xf32, #tpu.memory_space<vmem>>, vector<8x16xf32>
    %cst_138 = arith.constant dense<0.000000e+00> : vector<48x16xf32>
    %152 = tpu.matmul %150, %151, %cst_138 {dimension_numbers = #tpu.dot_dimension_numbers<[1], [0], [0], [1], [0, 0, 1, 1], [], []>} : vector<48x8xf32>, vector<8x16xf32>, vector<48x16xf32> -> vector<48x16xf32>
    %153 = arith.addf %146, %152 : vector<48x16xf32>
    %c0_139 = arith.constant 0 : index
    %c0_140 = arith.constant 0 : index
    %154 = vector.load %arg4[%c0_139, %c0_140] : memref<1x16xf32, #tpu.memory_space<vmem>>, vector<1x16xf32>
    %155 = vector.broadcast %154 : vector<1x16xf32> to vector<48x16xf32>
    %156 = arith.addf %153, %155 : vector<48x16xf32>
    %cst_141 = arith.constant 0.000000e+00 : f32
    %157 = vector.broadcast %cst_141 : f32 to vector<48x16xf32>
    %158 = arith.maximumf %156, %157 : vector<48x16xf32>
    %c8_142 = arith.constant 8 : index
    %c0_143 = arith.constant 0 : index
    %159 = vector.load %arg25[%c8_142, %c0_143] : memref<64x16xf32, #tpu.memory_space<vmem>>, vector<48x16xf32>
    tpu.vector_store %arg25[%c8_142, %c0_143], %158 {strides = array<i32>} : memref<64x16xf32, #tpu.memory_space<vmem>>, vector<48x16xf32>,
    %c1_144 = arith.constant 1 : index
    %c0_145 = arith.constant 0 : index
    %160 = vector.load %arg25[%c1_144, %c0_145] : memref<64x16xf32, #tpu.memory_space<vmem>>, vector<48x16xf32>
    %c0_146 = arith.constant 0 : index
    %c0_147 = arith.constant 0 : index
    %161 = vector.load %arg8[%c0_146, %c0_147] : memref<48x9xf32, #tpu.memory_space<vmem>>, vector<48x1xf32>
    %162 = vector.broadcast %161 : vector<48x1xf32> to vector<48x16xf32>
    %163 = arith.mulf %160, %162 : vector<48x16xf32>
    %c0_148 = arith.constant 0 : index
    %c0_149 = arith.constant 0 : index
    %164 = vector.load %arg5[%c0_148, %c0_149] : memref<144x32xf32, #tpu.memory_space<vmem>>, vector<16x32xf32>
    %cst_150 = arith.constant dense<0.000000e+00> : vector<48x32xf32>
    %165 = tpu.matmul %163, %164, %cst_150 {dimension_numbers = #tpu.dot_dimension_numbers<[1], [0], [0], [1], [0, 0, 1, 1], [], []>} : vector<48x16xf32>, vector<16x32xf32>, vector<48x32xf32> -> vector<48x32xf32>
    %c2_151 = arith.constant 2 : index
    %c0_152 = arith.constant 0 : index
    %166 = vector.load %arg25[%c2_151, %c0_152] : memref<64x16xf32, #tpu.memory_space<vmem>>, vector<48x16xf32>
    %c0_153 = arith.constant 0 : index
    %c1_154 = arith.constant 1 : index
    %167 = vector.load %arg8[%c0_153, %c1_154] : memref<48x9xf32, #tpu.memory_space<vmem>>, vector<48x1xf32>
    %168 = vector.broadcast %167 : vector<48x1xf32> to vector<48x16xf32>
    %169 = arith.mulf %166, %168 : vector<48x16xf32>
    %c16_155 = arith.constant 16 : index
    %c0_156 = arith.constant 0 : index
    %170 = vector.load %arg5[%c16_155, %c0_156] : memref<144x32xf32, #tpu.memory_space<vmem>>, vector<16x32xf32>
    %cst_157 = arith.constant dense<0.000000e+00> : vector<48x32xf32>
    %171 = tpu.matmul %169, %170, %cst_157 {dimension_numbers = #tpu.dot_dimension_numbers<[1], [0], [0], [1], [0, 0, 1, 1], [], []>} : vector<48x16xf32>, vector<16x32xf32>, vector<48x32xf32> -> vector<48x32xf32>
    %172 = arith.addf %165, %171 : vector<48x32xf32>
    %c3_158 = arith.constant 3 : index
    %c0_159 = arith.constant 0 : index
    %173 = vector.load %arg25[%c3_158, %c0_159] : memref<64x16xf32, #tpu.memory_space<vmem>>, vector<48x16xf32>
    %c0_160 = arith.constant 0 : index
    %c2_161 = arith.constant 2 : index
    %174 = vector.load %arg8[%c0_160, %c2_161] : memref<48x9xf32, #tpu.memory_space<vmem>>, vector<48x1xf32>
    %175 = vector.broadcast %174 : vector<48x1xf32> to vector<48x16xf32>
    %176 = arith.mulf %173, %175 : vector<48x16xf32>
    %c32_162 = arith.constant 32 : index
    %c0_163 = arith.constant 0 : index
    %177 = vector.load %arg5[%c32_162, %c0_163] : memref<144x32xf32, #tpu.memory_space<vmem>>, vector<16x32xf32>
    %cst_164 = arith.constant dense<0.000000e+00> : vector<48x32xf32>
    %178 = tpu.matmul %176, %177, %cst_164 {dimension_numbers = #tpu.dot_dimension_numbers<[1], [0], [0], [1], [0, 0, 1, 1], [], []>} : vector<48x16xf32>, vector<16x32xf32>, vector<48x32xf32> -> vector<48x32xf32>
    %179 = arith.addf %172, %178 : vector<48x32xf32>
    %c7_165 = arith.constant 7 : index
    %c0_166 = arith.constant 0 : index
    %180 = vector.load %arg25[%c7_165, %c0_166] : memref<64x16xf32, #tpu.memory_space<vmem>>, vector<48x16xf32>
    %c0_167 = arith.constant 0 : index
    %c3_168 = arith.constant 3 : index
    %181 = vector.load %arg8[%c0_167, %c3_168] : memref<48x9xf32, #tpu.memory_space<vmem>>, vector<48x1xf32>
    %182 = vector.broadcast %181 : vector<48x1xf32> to vector<48x16xf32>
    %183 = arith.mulf %180, %182 : vector<48x16xf32>
    %c48_169 = arith.constant 48 : index
    %c0_170 = arith.constant 0 : index
    %184 = vector.load %arg5[%c48_169, %c0_170] : memref<144x32xf32, #tpu.memory_space<vmem>>, vector<16x32xf32>
    %cst_171 = arith.constant dense<0.000000e+00> : vector<48x32xf32>
    %185 = tpu.matmul %183, %184, %cst_171 {dimension_numbers = #tpu.dot_dimension_numbers<[1], [0], [0], [1], [0, 0, 1, 1], [], []>} : vector<48x16xf32>, vector<16x32xf32>, vector<48x32xf32> -> vector<48x32xf32>
    %186 = arith.addf %179, %185 : vector<48x32xf32>
    %c8_172 = arith.constant 8 : index
    %c0_173 = arith.constant 0 : index
    %187 = vector.load %arg25[%c8_172, %c0_173] : memref<64x16xf32, #tpu.memory_space<vmem>>, vector<48x16xf32>
    %c0_174 = arith.constant 0 : index
    %c4_175 = arith.constant 4 : index
    %188 = vector.load %arg8[%c0_174, %c4_175] : memref<48x9xf32, #tpu.memory_space<vmem>>, vector<48x1xf32>
    %189 = vector.broadcast %188 : vector<48x1xf32> to vector<48x16xf32>
    %190 = arith.mulf %187, %189 : vector<48x16xf32>
    %c64_176 = arith.constant 64 : index
    %c0_177 = arith.constant 0 : index
    %191 = vector.load %arg5[%c64_176, %c0_177] : memref<144x32xf32, #tpu.memory_space<vmem>>, vector<16x32xf32>
    %cst_178 = arith.constant dense<0.000000e+00> : vector<48x32xf32>
    %192 = tpu.matmul %190, %191, %cst_178 {dimension_numbers = #tpu.dot_dimension_numbers<[1], [0], [0], [1], [0, 0, 1, 1], [], []>} : vector<48x16xf32>, vector<16x32xf32>, vector<48x32xf32> -> vector<48x32xf32>
    %193 = arith.addf %186, %192 : vector<48x32xf32>
    %c9_179 = arith.constant 9 : index
    %c0_180 = arith.constant 0 : index
    %194 = vector.load %arg25[%c9_179, %c0_180] : memref<64x16xf32, #tpu.memory_space<vmem>>, vector<48x16xf32>
    %c0_181 = arith.constant 0 : index
    %c5_182 = arith.constant 5 : index
    %195 = vector.load %arg8[%c0_181, %c5_182] : memref<48x9xf32, #tpu.memory_space<vmem>>, vector<48x1xf32>
    %196 = vector.broadcast %195 : vector<48x1xf32> to vector<48x16xf32>
    %197 = arith.mulf %194, %196 : vector<48x16xf32>
    %c80 = arith.constant 80 : index
    %c0_183 = arith.constant 0 : index
    %198 = vector.load %arg5[%c80, %c0_183] : memref<144x32xf32, #tpu.memory_space<vmem>>, vector<16x32xf32>
    %cst_184 = arith.constant dense<0.000000e+00> : vector<48x32xf32>
    %199 = tpu.matmul %197, %198, %cst_184 {dimension_numbers = #tpu.dot_dimension_numbers<[1], [0], [0], [1], [0, 0, 1, 1], [], []>} : vector<48x16xf32>, vector<16x32xf32>, vector<48x32xf32> -> vector<48x32xf32>
    %200 = arith.addf %193, %199 : vector<48x32xf32>
    %c13_185 = arith.constant 13 : index
    %c0_186 = arith.constant 0 : index
    %201 = vector.load %arg25[%c13_185, %c0_186] : memref<64x16xf32, #tpu.memory_space<vmem>>, vector<48x16xf32>
    %c0_187 = arith.constant 0 : index
    %c6_188 = arith.constant 6 : index
    %202 = vector.load %arg8[%c0_187, %c6_188] : memref<48x9xf32, #tpu.memory_space<vmem>>, vector<48x1xf32>
    %203 = vector.broadcast %202 : vector<48x1xf32> to vector<48x16xf32>
    %204 = arith.mulf %201, %203 : vector<48x16xf32>
    %c96 = arith.constant 96 : index
    %c0_189 = arith.constant 0 : index
    %205 = vector.load %arg5[%c96, %c0_189] : memref<144x32xf32, #tpu.memory_space<vmem>>, vector<16x32xf32>
    %cst_190 = arith.constant dense<0.000000e+00> : vector<48x32xf32>
    %206 = tpu.matmul %204, %205, %cst_190 {dimension_numbers = #tpu.dot_dimension_numbers<[1], [0], [0], [1], [0, 0, 1, 1], [], []>} : vector<48x16xf32>, vector<16x32xf32>, vector<48x32xf32> -> vector<48x32xf32>
    %207 = arith.addf %200, %206 : vector<48x32xf32>
    %c14_191 = arith.constant 14 : index
    %c0_192 = arith.constant 0 : index
    %208 = vector.load %arg25[%c14_191, %c0_192] : memref<64x16xf32, #tpu.memory_space<vmem>>, vector<48x16xf32>
    %c0_193 = arith.constant 0 : index
    %c7_194 = arith.constant 7 : index
    %209 = vector.load %arg8[%c0_193, %c7_194] : memref<48x9xf32, #tpu.memory_space<vmem>>, vector<48x1xf32>
    %210 = vector.broadcast %209 : vector<48x1xf32> to vector<48x16xf32>
    %211 = arith.mulf %208, %210 : vector<48x16xf32>
    %c112 = arith.constant 112 : index
    %c0_195 = arith.constant 0 : index
    %212 = vector.load %arg5[%c112, %c0_195] : memref<144x32xf32, #tpu.memory_space<vmem>>, vector<16x32xf32>
    %cst_196 = arith.constant dense<0.000000e+00> : vector<48x32xf32>
    %213 = tpu.matmul %211, %212, %cst_196 {dimension_numbers = #tpu.dot_dimension_numbers<[1], [0], [0], [1], [0, 0, 1, 1], [], []>} : vector<48x16xf32>, vector<16x32xf32>, vector<48x32xf32> -> vector<48x32xf32>
    %214 = arith.addf %207, %213 : vector<48x32xf32>
    %c15_197 = arith.constant 15 : index
    %c0_198 = arith.constant 0 : index
    %215 = vector.load %arg25[%c15_197, %c0_198] : memref<64x16xf32, #tpu.memory_space<vmem>>, vector<48x16xf32>
    %c0_199 = arith.constant 0 : index
    %c8_200 = arith.constant 8 : index
    %216 = vector.load %arg8[%c0_199, %c8_200] : memref<48x9xf32, #tpu.memory_space<vmem>>, vector<48x1xf32>
    %217 = vector.broadcast %216 : vector<48x1xf32> to vector<48x16xf32>
    %218 = arith.mulf %215, %217 : vector<48x16xf32>
    %c128 = arith.constant 128 : index
    %c0_201 = arith.constant 0 : index
    %219 = vector.load %arg5[%c128, %c0_201] : memref<144x32xf32, #tpu.memory_space<vmem>>, vector<16x32xf32>
    %cst_202 = arith.constant dense<0.000000e+00> : vector<48x32xf32>
    %220 = tpu.matmul %218, %219, %cst_202 {dimension_numbers = #tpu.dot_dimension_numbers<[1], [0], [0], [1], [0, 0, 1, 1], [], []>} : vector<48x16xf32>, vector<16x32xf32>, vector<48x32xf32> -> vector<48x32xf32>
    %221 = arith.addf %214, %220 : vector<48x32xf32>
    %c0_203 = arith.constant 0 : index
    %c0_204 = arith.constant 0 : index
    %222 = vector.load %arg6[%c0_203, %c0_204] : memref<1x32xf32, #tpu.memory_space<vmem>>, vector<1x32xf32>
    %223 = vector.broadcast %222 : vector<1x32xf32> to vector<48x32xf32>
    %224 = arith.addf %221, %223 : vector<48x32xf32>
    %cst_205 = arith.constant 0.000000e+00 : f32
    %225 = vector.broadcast %cst_205 : f32 to vector<48x32xf32>
    %226 = arith.maximumf %224, %225 : vector<48x32xf32>
    %c0_206 = arith.constant 0 : index
    %c0_207 = arith.constant 0 : index
    %227 = vector.load %arg26[%c0_206, %c0_207] : memref<56x32xf32, #tpu.memory_space<vmem>>, vector<48x32xf32>
    tpu.vector_store %arg26[%c0_206, %c0_207], %226 {strides = array<i32>} : memref<56x32xf32, #tpu.memory_space<vmem>>, vector<48x32xf32>,
    %c0_208 = arith.constant 0 : index
    %c0_209 = arith.constant 0 : index
    %228 = vector.load %arg26[%c0_208, %c0_209] : memref<56x32xf32, #tpu.memory_space<vmem>>, vector<48x32xf32>
    %c1_210 = arith.constant 1 : index
    %c0_211 = arith.constant 0 : index
    %229 = vector.load %arg26[%c1_210, %c0_211] : memref<56x32xf32, #tpu.memory_space<vmem>>, vector<48x32xf32>
    %230 = arith.maximumf %228, %229 : vector<48x32xf32>
    %c6_212 = arith.constant 6 : index
    %c0_213 = arith.constant 0 : index
    %231 = vector.load %arg26[%c6_212, %c0_213] : memref<56x32xf32, #tpu.memory_space<vmem>>, vector<48x32xf32>
    %c7_214 = arith.constant 7 : index
    %c0_215 = arith.constant 0 : index
    %232 = vector.load %arg26[%c7_214, %c0_215] : memref<56x32xf32, #tpu.memory_space<vmem>>, vector<48x32xf32>
    %233 = arith.maximumf %231, %232 : vector<48x32xf32>
    %234 = arith.maximumf %230, %233 : vector<48x32xf32>
    %c0_216 = arith.constant 0 : index
    %c0_217 = arith.constant 0 : index
    %235 = vector.load %arg10[%c0_216, %c0_217] : memref<12x48xf32, #tpu.memory_space<vmem>>, vector<12x48xf32>
    %cst_218 = arith.constant dense<0.000000e+00> : vector<12x32xf32>
    %236 = tpu.matmul %235, %234, %cst_218 {dimension_numbers = #tpu.dot_dimension_numbers<[1], [0], [0], [1], [0, 0, 1, 1], [], []>} : vector<12x48xf32>, vector<48x32xf32>, vector<12x32xf32> -> vector<12x32xf32>
    %c0_219 = arith.constant 0 : index
    %c0_220 = arith.constant 0 : index
    %237 = vector.load %arg27[%c0_219, %c0_220] : memref<16x32xf32, #tpu.memory_space<vmem>>, vector<12x32xf32>
    tpu.vector_store %arg27[%c0_219, %c0_220], %236 {strides = array<i32>} : memref<16x32xf32, #tpu.memory_space<vmem>>, vector<12x32xf32>,
    %c0_221 = arith.constant 0 : index
    %c0_222 = arith.constant 0 : index
    %238 = vector.load %arg27[%c0_221, %c0_222] : memref<16x32xf32, #tpu.memory_space<vmem>>, vector<2x32xf32>
    %c0_223 = arith.constant 0 : index
    %c0_224 = arith.constant 0 : index
    %239 = vector.load %arg11[%c0_223, %c0_224] : memref<192x96xf32, #tpu.memory_space<vmem>>, vector<32x96xf32>
    %cst_225 = arith.constant dense<0.000000e+00> : vector<2x96xf32>
    %240 = tpu.matmul %238, %239, %cst_225 {dimension_numbers = #tpu.dot_dimension_numbers<[1], [0], [0], [1], [0, 0, 1, 1], [], []>} : vector<2x32xf32>, vector<32x96xf32>, vector<2x96xf32> -> vector<2x96xf32>
    %c2_226 = arith.constant 2 : index
    %c0_227 = arith.constant 0 : index
    %241 = vector.load %arg27[%c2_226, %c0_227] : memref<16x32xf32, #tpu.memory_space<vmem>>, vector<2x32xf32>
    %c32_228 = arith.constant 32 : index
    %c0_229 = arith.constant 0 : index
    %242 = vector.load %arg11[%c32_228, %c0_229] : memref<192x96xf32, #tpu.memory_space<vmem>>, vector<32x96xf32>
    %cst_230 = arith.constant dense<0.000000e+00> : vector<2x96xf32>
    %243 = tpu.matmul %241, %242, %cst_230 {dimension_numbers = #tpu.dot_dimension_numbers<[1], [0], [0], [1], [0, 0, 1, 1], [], []>} : vector<2x32xf32>, vector<32x96xf32>, vector<2x96xf32> -> vector<2x96xf32>
    %244 = arith.addf %240, %243 : vector<2x96xf32>
    %c4_231 = arith.constant 4 : index
    %c0_232 = arith.constant 0 : index
    %245 = vector.load %arg27[%c4_231, %c0_232] : memref<16x32xf32, #tpu.memory_space<vmem>>, vector<2x32xf32>
    %c64_233 = arith.constant 64 : index
    %c0_234 = arith.constant 0 : index
    %246 = vector.load %arg11[%c64_233, %c0_234] : memref<192x96xf32, #tpu.memory_space<vmem>>, vector<32x96xf32>
    %cst_235 = arith.constant dense<0.000000e+00> : vector<2x96xf32>
    %247 = tpu.matmul %245, %246, %cst_235 {dimension_numbers = #tpu.dot_dimension_numbers<[1], [0], [0], [1], [0, 0, 1, 1], [], []>} : vector<2x32xf32>, vector<32x96xf32>, vector<2x96xf32> -> vector<2x96xf32>
    %248 = arith.addf %244, %247 : vector<2x96xf32>
    %c6_236 = arith.constant 6 : index
    %c0_237 = arith.constant 0 : index
    %249 = vector.load %arg27[%c6_236, %c0_237] : memref<16x32xf32, #tpu.memory_space<vmem>>, vector<2x32xf32>
    %c96_238 = arith.constant 96 : index
    %c0_239 = arith.constant 0 : index
    %250 = vector.load %arg11[%c96_238, %c0_239] : memref<192x96xf32, #tpu.memory_space<vmem>>, vector<32x96xf32>
    %cst_240 = arith.constant dense<0.000000e+00> : vector<2x96xf32>
    %251 = tpu.matmul %249, %250, %cst_240 {dimension_numbers = #tpu.dot_dimension_numbers<[1], [0], [0], [1], [0, 0, 1, 1], [], []>} : vector<2x32xf32>, vector<32x96xf32>, vector<2x96xf32> -> vector<2x96xf32>
    %252 = arith.addf %248, %251 : vector<2x96xf32>
    %c8_241 = arith.constant 8 : index
    %c0_242 = arith.constant 0 : index
    %253 = vector.load %arg27[%c8_241, %c0_242] : memref<16x32xf32, #tpu.memory_space<vmem>>, vector<2x32xf32>
    %c128_243 = arith.constant 128 : index
    %c0_244 = arith.constant 0 : index
    %254 = vector.load %arg11[%c128_243, %c0_244] : memref<192x96xf32, #tpu.memory_space<vmem>>, vector<32x96xf32>
    %cst_245 = arith.constant dense<0.000000e+00> : vector<2x96xf32>
    %255 = tpu.matmul %253, %254, %cst_245 {dimension_numbers = #tpu.dot_dimension_numbers<[1], [0], [0], [1], [0, 0, 1, 1], [], []>} : vector<2x32xf32>, vector<32x96xf32>, vector<2x96xf32> -> vector<2x96xf32>
    %256 = arith.addf %252, %255 : vector<2x96xf32>
    %c10_246 = arith.constant 10 : index
    %c0_247 = arith.constant 0 : index
    %257 = vector.load %arg27[%c10_246, %c0_247] : memref<16x32xf32, #tpu.memory_space<vmem>>, vector<2x32xf32>
    %c160 = arith.constant 160 : index
    %c0_248 = arith.constant 0 : index
    %258 = vector.load %arg11[%c160, %c0_248] : memref<192x96xf32, #tpu.memory_space<vmem>>, vector<32x96xf32>
    %cst_249 = arith.constant dense<0.000000e+00> : vector<2x96xf32>
    %259 = tpu.matmul %257, %258, %cst_249 {dimension_numbers = #tpu.dot_dimension_numbers<[1], [0], [0], [1], [0, 0, 1, 1], [], []>} : vector<2x32xf32>, vector<32x96xf32>, vector<2x96xf32> -> vector<2x96xf32>
    %260 = arith.addf %256, %259 : vector<2x96xf32>
    %c0_250 = arith.constant 0 : index
    %c0_251 = arith.constant 0 : index
    %261 = vector.load %arg12[%c0_250, %c0_251] : memref<1x96xf32, #tpu.memory_space<vmem>>, vector<1x96xf32>
    %262 = vector.broadcast %261 : vector<1x96xf32> to vector<2x96xf32>
    %263 = arith.addf %260, %262 : vector<2x96xf32>
    %cst_252 = arith.constant 0.000000e+00 : f32
    %264 = vector.broadcast %cst_252 : f32 to vector<2x96xf32>
    %265 = arith.maximumf %263, %264 : vector<2x96xf32>
    %c0_253 = arith.constant 0 : index
    %c0_254 = arith.constant 0 : index
    %266 = vector.load %arg13[%c0_253, %c0_254] : memref<96x48xf32, #tpu.memory_space<vmem>>, vector<96x48xf32>
    %cst_255 = arith.constant dense<0.000000e+00> : vector<2x48xf32>
    %267 = tpu.matmul %265, %266, %cst_255 {dimension_numbers = #tpu.dot_dimension_numbers<[1], [0], [0], [1], [0, 0, 1, 1], [], []>} : vector<2x96xf32>, vector<96x48xf32>, vector<2x48xf32> -> vector<2x48xf32>
    %c0_256 = arith.constant 0 : index
    %c0_257 = arith.constant 0 : index
    %268 = vector.load %arg14[%c0_256, %c0_257] : memref<1x48xf32, #tpu.memory_space<vmem>>, vector<1x48xf32>
    %269 = vector.broadcast %268 : vector<1x48xf32> to vector<2x48xf32>
    %270 = arith.addf %267, %269 : vector<2x48xf32>
    %cst_258 = arith.constant 0.000000e+00 : f32
    %271 = vector.broadcast %cst_258 : f32 to vector<2x48xf32>
    %272 = arith.maximumf %270, %271 : vector<2x48xf32>
    %c0_259 = arith.constant 0 : index
    %c0_260 = arith.constant 0 : index
    %273 = vector.load %arg15[%c0_259, %c0_260] : memref<48x24xf32, #tpu.memory_space<vmem>>, vector<48x24xf32>
    %cst_261 = arith.constant dense<0.000000e+00> : vector<2x24xf32>
    %274 = tpu.matmul %272, %273, %cst_261 {dimension_numbers = #tpu.dot_dimension_numbers<[1], [0], [0], [1], [0, 0, 1, 1], [], []>} : vector<2x48xf32>, vector<48x24xf32>, vector<2x24xf32> -> vector<2x24xf32>
    %c0_262 = arith.constant 0 : index
    %c0_263 = arith.constant 0 : index
    %275 = vector.load %arg16[%c0_262, %c0_263] : memref<1x24xf32, #tpu.memory_space<vmem>>, vector<1x24xf32>
    %276 = vector.broadcast %275 : vector<1x24xf32> to vector<2x24xf32>
    %277 = arith.addf %274, %276 : vector<2x24xf32>
    %cst_264 = arith.constant 0.000000e+00 : f32
    %278 = vector.broadcast %cst_264 : f32 to vector<2x24xf32>
    %279 = arith.maximumf %277, %278 : vector<2x24xf32>
    %c0_265 = arith.constant 0 : index
    %c0_266 = arith.constant 0 : index
    %280 = vector.load %arg17[%c0_265, %c0_266] : memref<24x12xf32, #tpu.memory_space<vmem>>, vector<24x12xf32>
    %cst_267 = arith.constant dense<0.000000e+00> : vector<2x12xf32>
    %281 = tpu.matmul %279, %280, %cst_267 {dimension_numbers = #tpu.dot_dimension_numbers<[1], [0], [0], [1], [0, 0, 1, 1], [], []>} : vector<2x24xf32>, vector<24x12xf32>, vector<2x12xf32> -> vector<2x12xf32>
    %c0_268 = arith.constant 0 : index
    %c0_269 = arith.constant 0 : index
    %282 = vector.load %arg18[%c0_268, %c0_269] : memref<1x12xf32, #tpu.memory_space<vmem>>, vector<1x12xf32>
    %283 = vector.broadcast %282 : vector<1x12xf32> to vector<2x12xf32>
    %284 = arith.addf %281, %283 : vector<2x12xf32>
    %cst_270 = arith.constant 0.000000e+00 : f32
    %285 = vector.broadcast %cst_270 : f32 to vector<2x12xf32>
    %286 = arith.maximumf %284, %285 : vector<2x12xf32>
    %c0_271 = arith.constant 0 : index
    %c0_272 = arith.constant 0 : index
    %287 = vector.load %arg19[%c0_271, %c0_272] : memref<12x5xf32, #tpu.memory_space<vmem>>, vector<12x5xf32>
    %cst_273 = arith.constant dense<0.000000e+00> : vector<2x5xf32>
    %288 = tpu.matmul %286, %287, %cst_273 {dimension_numbers = #tpu.dot_dimension_numbers<[1], [0], [0], [1], [0, 0, 1, 1], [], []>} : vector<2x12xf32>, vector<12x5xf32>, vector<2x5xf32> -> vector<2x5xf32>
    %c0_274 = arith.constant 0 : index
    %c0_275 = arith.constant 0 : index
    %289 = vector.load %arg20[%c0_274, %c0_275] : memref<1x5xf32, #tpu.memory_space<vmem>>, vector<1x5xf32>
    %290 = vector.broadcast %289 : vector<1x5xf32> to vector<2x5xf32>
    %291 = arith.addf %288, %290 : vector<2x5xf32>
    %cst_276 = arith.constant dense<0xFF800000> : vector<2xf32>
    %292 = vector.multi_reduction <maximumf>, %291, %cst_276 [1] : vector<2x5xf32> to vector<2xf32>
    %293 = vector.shape_cast %292 : vector<2xf32> to vector<2x1xf32>
    %294 = vector.broadcast %293 : vector<2x1xf32> to vector<2x5xf32>
    %295 = arith.subf %291, %294 : vector<2x5xf32>
    %296 = math.exp %295 : vector<2x5xf32>
    %cst_277 = arith.constant dense<0.000000e+00> : vector<2xf32>
    %297 = vector.multi_reduction <add>, %296, %cst_277 [1] : vector<2x5xf32> to vector<2xf32>
    %298 = vector.shape_cast %297 : vector<2xf32> to vector<2x1xf32>
    %299 = tpu.reciprocal %298 {approx = true} : vector<2x1xf32> -> vector<2x1xf32>
    %300 = vector.broadcast %299 : vector<2x1xf32> to vector<2x5xf32>
    %301 = arith.mulf %296, %300 : vector<2x5xf32>
    %c0_278 = arith.constant 0 : index
    %c0_279 = arith.constant 0 : index
    %302 = vector.load %arg21[%c0_278, %c0_279] : memref<2x5xf32, #tpu.memory_space<vmem>>, vector<2x5xf32>
    tpu.vector_store %arg21[%c0_278, %c0_279], %301 {strides = array<i32>} : memref<2x5xf32, #tpu.memory_space<vmem>>, vector<2x5xf32>,
    return
  }
}

</mosaic_0001>

<bundles_post_ra>
// kernel: c3d_forward.1
= control target key start
LH: loop header
LB: loop body
LE: loop exit
PB: predicated region body
PF: predicated region fallthrough
CT: control target
= control target key end

     0   :  { %s12867_s0 = inlined_call_operand.vmem [shape: f32[192,2], index: 0, kind: input, shape index: {}]   ;;  %s12868_s1 = inlined_call_operand.vmem [shape: f32[18,8], index: 1, kind: input, shape index: {}]   ;;  %s12869_s2 = inlined_call_operand.vmem [shape: f32[1,8], index: 2, kind: input, shape index: {}]   ;;  %s12870_s3 = inlined_call_operand.vmem [shape: f32[72,16], index: 3, kind: input, shape index: {}]   ;;  %s12871_s4 = inlined_call_operand.vmem [shape: f32[1,16], index: 4, kind: input, shape index: {}]   ;;  %s12872_s5 = inlined_call_operand.vmem [shape: f32[144,32], index: 5, kind: input, shape index: {}]   ;;  %s12873_s6 = inlined_call_operand.vmem [shape: f32[1,32], index: 6, kind: input, shape index: {}]   ;;  %s12874_s7 = inlined_call_operand.vmem [shape: f32[192,9], index: 7, kind: input, shape index: {}]   ;;  %s12875_s8 = inlined_call_operand.vmem [shape: f32[48,9], index: 8, kind: input, shape index: {}]   ;;  %s12876_s9 = inlined_call_operand.vmem [shape: f32[48,192], index: 9, kind: input, shape index: {}]   ;;  %s12877_s10 = inlined_call_operand.vmem [shape: f32[12,48], index: 10, kind: input, shape index: {}]   ;;  %s12878_s11 = inlined_call_operand.vmem [shape: f32[192,96], index: 11, kind: input, shape index: {}]   ;;  %s12879_s12 = inlined_call_operand.vmem [shape: f32[1,96], index: 12, kind: input, shape index: {}]   ;;  %s12880_s13 = inlined_call_operand.vmem [shape: f32[96,48], index: 13, kind: input, shape index: {}]   ;;  %s12881_s14 = inlined_call_operand.vmem [shape: f32[1,48], index: 14, kind: input, shape index: {}]   ;;  %s12882_s15 = inlined_call_operand.vmem [shape: f32[48,24], index: 15, kind: input, shape index: {}]   ;;  %s12883_s16 = inlined_call_operand.vmem [shape: f32[1,24], index: 16, kind: input, shape index: {}]   ;;  %s12884_s17 = inlined_call_operand.vmem [shape: f32[24,12], index: 17, kind: input, shape index: {}]   ;;  %s12885_s18 = inlined_call_operand.vmem [shape: f32[1,12], index: 18, kind: input, shape index: {}]   ;;  %s12886_s19 = inlined_call_operand.vmem [shape: f32[12,5], index: 19, kind: input, shape index: {}]   ;;  %s12887_s20 = inlined_call_operand.vmem [shape: f32[1,5], index: 20, kind: input, shape index: {}]   ;;  %s12888_s21 = inlined_call_operand.hbm [shape: f32[2,5], index: 21, kind: output, shape index: {}]  }
   0x1   :  { %12920 = sst [smem:[#allocation54_spill]] %s12867_s0 }
   0x2   :  { %12921 = sst [smem:[#allocation55_spill]] %s12868_s1 }
   0x3   :  { %12922 = sst [smem:[#allocation56_spill]] %s12869_s2 }
   0x4   :  { %12923 = sst [smem:[#allocation57_spill]] %s12870_s3 }
   0x5   :  { %12924 = sst [smem:[#allocation58_spill]] %s12871_s4 }
   0x6   :  { %12925 = sst [smem:[#allocation59_spill]] %s12872_s5 }
   0x7   :  { %v10155_v0 = vld [vmem:[%s12874_s7 + $0x10] sm:$0xff]  ;;  %v10160_v1 = vld [vmem:[%s12874_s7] sm:$0xff]  ;;  %v12903_v2 = vmov 1   ;;  %vm69_vm0 = vcmask 15360   ;;  %v12901_v3 = vmov 0.0   ;;  %v10225_v4 = vld [vmem:[%s12874_s7 + $0x18] sm:$0xff] }
   0x8   :  { %9793 = vset.pattern.permute.xlu1 %v12903_v2  ;;  %9792 = vset.pattern.permute.xlu0 %v12903_v2  ;;  %72 = vst.msk [vmem:[#allocation2 + $0x10] sm:$0xff] %vm69_vm0, %v12901_v3  ;;  %73 = vst.msk [vmem:[#allocation2 + $0x18] sm:$0xff] %vm69_vm0, %v12901_v3  ;;  %v10230_v5 = vld [vmem:[%s12874_s7 + $0x8] sm:$0xff]  ;;  %v10242_v7 = vld [vmem:[%s12874_s7 + $0x20] sm:$0xff]  ;;  %s12926_s24 = sld [smem:[#allocation54_spill]]  ;;  %vm610_vm1 = vcmask 1041408  }
   0x9   :  { %426 = vperm.xlu1 %9793, %v10155_v0   ;;  %418 = vperm.xlu0 %9792, %v10160_v1   ;;  %70 = vst.msk [vmem:[#allocation2] sm:$0xff] %vm69_vm0, %v12901_v3  ;;  %71 = vst.msk [vmem:[#allocation2 + $0x8] sm:$0xff] %vm69_vm0, %v12901_v3  ;;  %v10237_v6 = vld [vmem:[%s12874_s7 + $0x28] sm:$0xff]  ;;  %v10256_v11 = vld [vmem:[%s12874_s7 + $0x38] sm:$0xff]  ;;  %s12927_s5 = sld [smem:[#allocation55_spill]] }
   0xa   :  { %74 = vst.msk [vmem:[#allocation2 + $0x20] sm:$0xff] %vm69_vm0, %v12901_v3  ;;  %75 = vst.msk [vmem:[#allocation2 + $0x28] sm:$0xff] %vm69_vm0, %v12901_v3  ;;  %v10261_v12 = vld [vmem:[%s12874_s7 + $0x30] sm:$0xff] }
   0xb   :  { %76 = vst.msk [vmem:[#allocation2 + $0x30] sm:$0xff] %vm69_vm0, %v12901_v3  ;;  %77 = vst.msk [vmem:[#allocation2 + $0x38] sm:$0xff] %vm69_vm0, %v12901_v3 }
   0xc   :  { %78 = vst.msk [vmem:[#allocation2 + $0x40] sm:$0xff] %vm69_vm0, %v12901_v3  ;;  %79 = vst.msk [vmem:[#allocation2 + $0x48] sm:$0xff] %vm69_vm0, %v12901_v3 }
   0xd   :  { %80 = vst.msk [vmem:[#allocation2 + $0x50] sm:$0xff] %vm69_vm0, %v12901_v3  ;;  %81 = vst.msk [vmem:[#allocation2 + $0x58] sm:$0xff] %vm69_vm0, %v12901_v3  ;;  %430 = vperm.xlu1 %9793, %v10225_v4   ;;  %422 = vperm.xlu0 %9792, %v10230_v5  }
   0xe   :  { %82 = vst.msk [vmem:[#allocation2 + $0x60] sm:$0xff] %vm69_vm0, %v12901_v3  ;;  %83 = vst.msk [vmem:[#allocation2 + $0x68] sm:$0xff] %vm69_vm0, %v12901_v3  ;;  %v152_v8 = vld [vmem:[%s12926_s24] sm:$0xff]  ;;  %v153_v9 = vld [vmem:[%s12926_s24 + $0x8] sm:$0xff] }
   0xf   :  { %84 = vst.msk [vmem:[#allocation2 + $0x70] sm:$0xff] %vm69_vm0, %v12901_v3  ;;  %85 = vst.msk [vmem:[#allocation2 + $0x78] sm:$0xff] %vm69_vm0, %v12901_v3  ;;  %v154_v10 = vld [vmem:[%s12926_s24 + $0x10] sm:$0xff]  ;;  %v537_v13 = vld [vmem:[%s12927_s5 + $0x2] sm:$0x3] }
  0x10   :  { %86 = vst.msk [vmem:[#allocation2 + $0x80] sm:$0xff] %vm69_vm0, %v12901_v3  ;;  %87 = vst.msk [vmem:[#allocation2 + $0x88] sm:$0xff] %vm69_vm0, %v12901_v3  ;;  %v155_v14 = vld [vmem:[%s12926_s24 + $0x18] sm:$0xff]  ;;  %v156_v15 = vld [vmem:[%s12926_s24 + $0x20] sm:$0xff]  ;;  %9083 = vmatprep.subr.msk.mxu0 %vm610_vm1, %v537_v13 }
  0x11   :  { %88 = vst.msk [vmem:[#allocation2 + $0x90] sm:$0xff] %vm69_vm0, %v12901_v3  ;;  %89 = vst.msk [vmem:[#allocation2 + $0x98] sm:$0xff] %vm69_vm0, %v12901_v3  ;;  %438 = vperm.xlu1 %9793, %v10237_v6   ;;  %434 = vperm.xlu0 %9792, %v10242_v7   ;;  %v157_v16 = vld [vmem:[%s12926_s24 + $0x28] sm:$0xff]  ;;  %v158_v17 = vld [vmem:[%s12926_s24 + $0x30] sm:$0xff] }
  0x12   :  { %90 = vst.msk [vmem:[#allocation2 + $0xa0] sm:$0xff] %vm69_vm0, %v12901_v3  ;;  %91 = vst.msk [vmem:[#allocation2 + $0xa8] sm:$0xff] %vm69_vm0, %v12901_v3  ;;  %v159_v18 = vld [vmem:[%s12926_s24 + $0x38] sm:$0xff]  ;;  %v160_v19 = vld [vmem:[%s12926_s24 + $0x40] sm:$0xff]  ;;  %9084 = vmatpush3.msk.msra.mxu0 %vm610_vm1, %v537_v13 }
  0x13   :  { %92 = vst.msk [vmem:[#allocation2 + $0xb0] sm:$0xff] %vm69_vm0, %v12901_v3  ;;  %93 = vst.msk [vmem:[#allocation2 + $0xb8] sm:$0xff] %vm69_vm0, %v12901_v3  ;;  %v161_v20 = vld [vmem:[%s12926_s24 + $0x48] sm:$0xff]  ;;  %v162_v21 = vld [vmem:[%s12926_s24 + $0x50] sm:$0xff] }
  0x14   :  { %94 = vst.msk [vmem:[#allocation2 + $0xc0] sm:$0xff] %vm69_vm0, %v12901_v3  ;;  %95 = vst.msk [vmem:[#allocation2 + $0xc8] sm:$0xff] %vm69_vm0, %v12901_v3 }
  0x15   :  { %96 = vst.msk [vmem:[#allocation2 + $0xd0] sm:$0xff] %vm69_vm0, %v12901_v3  ;;  %97 = vst.msk [vmem:[#allocation2 + $0xd8] sm:$0xff] %vm69_vm0, %v12901_v3 }
  0x16   :  { %176 = vst.msk [vmem:[#allocation2 + $0x10] sm:$0xff] %vm69_vm0, %v152_v8  ;;  %177 = vst.msk [vmem:[#allocation2 + $0x18] sm:$0xff] %vm69_vm0, %v153_v9 }
  0x17   :  { %178 = vst.msk [vmem:[#allocation2 + $0x20] sm:$0xff] %vm69_vm0, %v154_v10  ;;  %179 = vst.msk [vmem:[#allocation2 + $0x28] sm:$0xff] %vm69_vm0, %v155_v14 }
  0x18   :  { %180 = vst.msk [vmem:[#allocation2 + $0x30] sm:$0xff] %vm69_vm0, %v156_v15  ;;  %181 = vst.msk [vmem:[#allocation2 + $0x38] sm:$0xff] %vm69_vm0, %v157_v16 }
  0x19   :  { %182 = vst.msk [vmem:[#allocation2 + $0x40] sm:$0xff] %vm69_vm0, %v158_v17  ;;  %183 = vst.msk [vmem:[#allocation2 + $0x48] sm:$0xff] %vm69_vm0, %v159_v18 }
  0x1a   :  { %184 = vst.msk [vmem:[#allocation2 + $0x50] sm:$0xff] %vm69_vm0, %v160_v19  ;;  %185 = vst.msk [vmem:[#allocation2 + $0x58] sm:$0xff] %vm69_vm0, %v161_v20 }
  0x1b   :  { %26 = vsyncpa [#allocation9], 0  ;;  %186 = vst.msk [vmem:[#allocation2 + $0x60] sm:$0xff] %vm69_vm0, %v162_v21  ;;  %v163_v22 = vld [vmem:[%s12926_s24 + $0x58] sm:$0xff]  ;;  %v164_v23 = vld [vmem:[%s12926_s24 + $0x60] sm:$0xff]  ;;  %446 = vperm.xlu1 %9793, %v10256_v11   ;;  %442 = vperm.xlu0 %9792, %v10261_v12   ;;  %v12899_v51 = vmov 0  }
  0x1c   :  { %187 = vst.msk [vmem:[#allocation2 + $0x68] sm:$0xff] %vm69_vm0, %v163_v22  ;;  %188 = vst.msk [vmem:[#allocation2 + $0x70] sm:$0xff] %vm69_vm0, %v164_v23  ;;  %v10318_v24 = vld [vmem:[%s12874_s7 + $0x48] sm:$0xff]  ;;  %v10323_v25 = vld [vmem:[%s12874_s7 + $0x40] sm:$0xff]  ;;  %v12897_v52 = vmov 2   ;;  %v12895_v55 = vmov 3  }
  0x1d   :  { %v165_v26 = vld [vmem:[%s12926_s24 + $0x68] sm:$0xff]  ;;  %v166_v27 = vld [vmem:[%s12926_s24 + $0x70] sm:$0xff]  ;;  %v10338_v28 = vld [vmem:[%s12874_s7 + $0x58] sm:$0xff]  ;;  %vm98_vm2 = vcmask 64512   ;;  %s12981_s22 = sld [smem:[#allocation56_spill]]  ;;  %vm4321_vm3 = vcmask 523264  }
  0x1e   :  { %189 = vst.msk [vmem:[#allocation2 + $0x78] sm:$0xff] %vm69_vm0, %v165_v26  ;;  %190 = vst.msk [vmem:[#allocation2 + $0x80] sm:$0xff] %vm69_vm0, %v166_v27  ;;  %v10343_v29 = vld [vmem:[%s12874_s7 + $0x50] sm:$0xff]  ;;  %v167_v30 = vld [vmem:[%s12926_s24 + $0x78] sm:$0xff]  ;;  %s13024_s27 = sld [smem:[#allocation57_spill]]  ;;  %vm133_vm4 = vcmask 130048  }
  0x1f   :  { %454 = vperm.xlu1 %9793, %v10318_v24   ;;  %450 = vperm.xlu0 %9792, %v10323_v25   ;;  %v168_v31 = vld [vmem:[%s12926_s24 + $0x80] sm:$0xff]  ;;  %191 = vst.msk [vmem:[#allocation2 + $0x88] sm:$0xff] %vm69_vm0, %v167_v30  ;;  %v10358_v32 = vld [vmem:[%s12874_s7 + $0x68] sm:$0xff]  ;;  %v170_v35 = vld [vmem:[%s12926_s24 + $0x90] sm:$0xff]  ;;  %s13032_s4 = sld [smem:[#allocation59_spill]]  ;;  %vm142_vm5 = vcmask 261120  }
  0x20   :  { %192 = vst.msk [vmem:[#allocation2 + $0x90] sm:$0xff] %vm69_vm0, %v168_v31  ;;  %v10363_v33 = vld [vmem:[%s12874_s7 + $0x60] sm:$0xff]  ;;  %v169_v34 = vld [vmem:[%s12926_s24 + $0x88] sm:$0xff]  ;;  %194 = vst.msk [vmem:[#allocation2 + $0xa0] sm:$0xff] %vm69_vm0, %v170_v35  ;;  %s13049_s3 = sld [smem:[#allocation58_spill]]  ;;  %vm7352_vm6 = vcmask 392192  }
  0x21   :  { %193 = vst.msk [vmem:[#allocation2 + $0x98] sm:$0xff] %vm69_vm0, %v169_v34  ;;  %v10378_v36 = vld [vmem:[%s12874_s7 + $0x78] sm:$0xff]  ;;  %v10383_v37 = vld [vmem:[%s12874_s7 + $0x70] sm:$0xff]  ;;  %v172_v39 = vld [vmem:[%s12926_s24 + $0xa0] sm:$0xff]  ;;  %vm10040_vm7 = vmmov 0   ;;  %vm7435_vm8 = vcmask 257024  }
  0x22   :  { %v171_v38 = vld [vmem:[%s12926_s24 + $0x98] sm:$0xff]  ;;  %196 = vst.msk [vmem:[#allocation2 + $0xb0] sm:$0xff] %vm69_vm0, %v172_v39  ;;  %v10398_v40 = vld [vmem:[%s12874_s7 + $0x88] sm:$0xff]  ;;  %v10403_v41 = vld [vmem:[%s12874_s7 + $0x80] sm:$0xff]  ;;  %vm7937_vm9 = vcmask 785408   ;;  %vm8109_vm10 = vcmask 195584  }
  0x23   :  { %462 = vperm.xlu1 %9793, %v10338_v28   ;;  %458 = vperm.xlu0 %9792, %v10343_v29   ;;  %195 = vst.msk [vmem:[#allocation2 + $0xa8] sm:$0xff] %vm69_vm0, %v171_v38  ;;  %v173_v42 = vld [vmem:[%s12926_s24 + $0xa8] sm:$0xff]  ;;  %v174_v43 = vld [vmem:[%s12926_s24 + $0xb0] sm:$0xff]  ;;  %v10418_v44 = vld [vmem:[%s12874_s7 + $0x98] sm:$0xff]  ;;  %vm8197_vm11 = vcmask 1043456   ;;  %vm8193_vm12 = vcmask 97280  }
  0x24   :  { %197 = vst.msk [vmem:[#allocation2 + $0xb8] sm:$0xff] %vm69_vm0, %v173_v42  ;;  %198 = vst.msk [vmem:[#allocation2 + $0xc0] sm:$0xff] %vm69_vm0, %v174_v43  ;;  %v10423_v45 = vld [vmem:[%s12874_s7 + $0x90] sm:$0xff]  ;;  %v10430_v46 = vld [vmem:[%s12874_s7 + $0xa8] sm:$0xff]  ;;  %vm8271_vm13 = vcmask 33792  }
  0x25   :  { %v10435_v47 = vld [vmem:[%s12874_s7 + $0xa0] sm:$0xff]  ;;  %v10442_v48 = vld [vmem:[%s12874_s7 + $0xb8] sm:$0xff]  ;;  %v10447_v49 = vld [vmem:[%s12874_s7 + $0xb0] sm:$0xff] }
  0x26   :  { %v392_v50 = vld [vmem:[%s12927_s5] sm:$0x3]  ;;  %v10475_v53 = vld [vmem:[%s12927_s5 + $0x4] sm:$0x3]  ;;  %v394_v59 = vld [vmem:[#allocation2 + $0xc] sm:$0xff] }
  0x27   :  { %470 = vperm.xlu1 %9793, %v10358_v32   ;;  %466 = vperm.xlu0 %9792, %v10363_v33   ;;  %v393_v54 = vld [vmem:[#allocation2 + $0x4] sm:$0xff]  ;;  %v395_v60 = vld [vmem:[#allocation2 + $0x14] sm:$0xff]  ;;  %v396_v9 = vld [vmem:[#allocation2 + $0x1c] sm:$0xff] }
  0x28   :  { %9121 = vmatprep.subr.msk.mxu1 %vm610_vm1, %v392_v50  ;;  %9159 = vmatprep.subr.msk.mxu0 %vm610_vm1, %v10475_v53  ;;  %v397_v10 = vld [vmem:[#allocation2 + $0x24] sm:$0xff]  ;;  %v398_v17 = vld [vmem:[#allocation2 + $0x2c] sm:$0xff]  ;;  %v399_v18 = vld [vmem:[#allocation2 + $0x34] sm:$0xff] }
  0x29   :  { %9122 = vmatpush3.msk.msra.mxu1 %vm610_vm1, %v392_v50  ;;  %v400_v23 = vld [vmem:[#allocation2 + $0x3c] sm:$0xff]  ;;  %v401_v26 = vld [vmem:[#allocation2 + $0x44] sm:$0xff]  ;;  %v402_v35 = vld [vmem:[#allocation2 + $0x4c] sm:$0xff] }
  0x2a   :  { %v403_v38 = vld [vmem:[#allocation2 + $0x54] sm:$0xff]  ;;  %v1932_v3 = vld [vmem:[#allocation2 + $0x88] sm:$0xff] }
  0x2b   :  { %478 = vperm.xlu1 %9793, %v10378_v36   ;;  %474 = vperm.xlu0 %9792, %v10383_v37  }
  0x2f   :  { %486 = vperm.xlu1 %9793, %v10398_v40   ;;  %482 = vperm.xlu0 %9792, %v10403_v41  }
  0x33   :  { %494 = vperm.xlu1 %9793, %v10418_v44   ;;  %490 = vperm.xlu0 %9792, %v10423_v45  }
  0x37   :  { %502 = vperm.xlu1 %9793, %v10430_v46   ;;  %498 = vperm.xlu0 %9792, %v10435_v47  }
  0x3b   :  { %510 = vperm.xlu1 %9793, %v10442_v48   ;;  %506 = vperm.xlu0 %9792, %v10447_v49  }
  0x3f   :  { %9795 = vset.pattern.permute.xlu1 %v12899_v51  ;;  %9794 = vset.pattern.permute.xlu0 %v12899_v51 }
  0x40   :  { %255 = vperm.xlu1 %9795, %v10230_v5   ;;  %250 = vperm.xlu0 %9794, %v10160_v1  }
  0x44   :  { %9796 = vset.pattern.permute.xlu1 %v12897_v52  ;;  %270 = vperm.xlu0 %9794, %v10242_v7  }
  0x45   :  { %1084 = vperm.xlu1 %9796, %v10160_v1  }
  0x48   :  { %290 = vperm.xlu0 %9794, %v10323_v25  }
  0x49   :  { %9797 = vset.pattern.permute.xlu1 %v12899_v51 }
  0x4a   :  { %260 = vperm.xlu1 %9797, %v10155_v0  }
  0x4c   :  { %310 = vperm.xlu0 %9794, %v10363_v33  }
  0x4e   :  { %265 = vperm.xlu1 %9797, %v10225_v4  }
  0x50   :  { %330 = vperm.xlu0 %9794, %v10403_v41  }
  0x52   :  { %9798 = vset.pattern.permute.xlu1 %v12897_v52 }
  0x53   :  { %1096 = vperm.xlu1 %9798, %v10225_v4  }
  0x54   :  { %350 = vperm.xlu0 %9794, %v10435_v47  }
  0x57   :  { %9799 = vset.pattern.permute.xlu1 %v12899_v51 }
  0x58   :  { %275 = vperm.xlu1 %9799, %v10237_v6   ;;  %9815 = vset.pattern.permute.xlu0 %v12897_v52 }
  0x59   :  { %1088 = vperm.xlu0 %9815, %v10230_v5  }
  0x5c   :  { %9800 = vset.pattern.permute.xlu1 %v12897_v52 }
  0x5d   :  { %1100 = vperm.xlu1 %9800, %v10242_v7   ;;  %1092 = vperm.xlu0 %9815, %v10155_v0  }
  0x61   :  { %9801 = vset.pattern.permute.xlu1 %v12899_v51  ;;  %1104 = vperm.xlu0 %9815, %v10237_v6  }
  0x62   :  { %280 = vperm.xlu1 %9801, %v10261_v12  }
  0x65   :  { %1108 = vperm.xlu0 %9815, %v10261_v12  }
  0x66   :  { %285 = vperm.xlu1 %9801, %v10256_v11  }
  0x69   :  { %1120 = vperm.xlu0 %9815, %v10318_v24  }
  0x6a   :  { %9802 = vset.pattern.permute.xlu1 %v12897_v52 }
  0x6b   :  { %1112 = vperm.xlu1 %9802, %v10256_v11  }
  0x6d   :  { %1124 = vperm.xlu0 %9815, %v10343_v29  }
  0x6f   :  { %9803 = vset.pattern.permute.xlu1 %v12899_v51 }
  0x70   :  { %295 = vperm.xlu1 %9803, %v10318_v24  }
  0x71   :  { %1136 = vperm.xlu0 %9815, %v10358_v32  }
  0x74   :  { %9804 = vset.pattern.permute.xlu1 %v12897_v52 }
  0x75   :  { %1116 = vperm.xlu1 %9804, %v10323_v25   ;;  %1140 = vperm.xlu0 %9815, %v10383_v37  }
  0x79   :  { %9805 = vset.pattern.permute.xlu1 %v12899_v51  ;;  %1152 = vperm.xlu0 %9815, %v10398_v40  }
  0x7a   :  { %300 = vperm.xlu1 %9805, %v10343_v29  }
  0x7d   :  { %1156 = vperm.xlu0 %9815, %v10423_v45  }
  0x7e   :  { %305 = vperm.xlu1 %9805, %v10338_v28  }
  0x81   :  { %1168 = vperm.xlu0 %9815, %v10430_v46  }
  0x82   :  { %9806 = vset.pattern.permute.xlu1 %v12897_v52 }
  0x83   :  { %1128 = vperm.xlu1 %9806, %v10338_v28  }
  0x84   :  { %v427_v56 = vpop.permute.xlu1 %426  ;;  %v419_v57 = vpop.permute.xlu0 %418 }
  0x85   :  { %1172 = vperm.xlu0 %9815, %v10447_v49   ;;  %v513_v58 = vmul.f32 %v419_v57, %v393_v54  ;;  %v515_v8 = vmul.f32 %v427_v56, %v395_v60  ;;  %v405_v54 = vld [vmem:[#allocation2 + $0x64] sm:$0xff]  ;;  %v12893_v60 = vmov 4  }
  0x87   :  { %9807 = vset.pattern.permute.xlu1 %v12899_v51  ;;  %9085 = vmatprep.mubr.msk.f32.mxu0 %vm69_vm0, %v513_v58 }
  0x88   :  { %315 = vperm.xlu1 %9807, %v10358_v32   ;;  %v431_v61 = vpop.permute.xlu1 %430  ;;  %v423_v62 = vpop.permute.xlu0 %422 }
  0x89   :  { %9820 = vset.pattern.permute.xlu0 %v12895_v55  ;;  %v514_v63 = vmul.f32 %v423_v62, %v394_v59  ;;  %v516_v15 = vmul.f32 %v431_v61, %v396_v9  ;;  %v406_v61 = vld [vmem:[#allocation2 + $0x6c] sm:$0xff]  ;;  %v407_v62 = vld [vmem:[#allocation2 + $0x74] sm:$0xff] }
  0x8a   :  { %1513 = vperm.xlu0 %9820, %v10160_v1  }
  0x8b   :  { %9086 = vmatmul.mubr.msk.f32.vlgmr.msra.gmra.mxu0 %vm69_vm0, %v514_v63 }
  0x8c   :  { %9808 = vset.pattern.permute.xlu1 %v12897_v52  ;;  %v439_v13 = vpop.permute.xlu1 %438  ;;  %9088 = vmatprep.mubr.msk.f32.mxu0 %vm69_vm0, %v515_v8  ;;  %v435_v14 = vpop.permute.xlu0 %434 }
  0x8d   :  { %1132 = vperm.xlu1 %9808, %v10363_v33   ;;  %v517_v16 = vmul.f32 %v435_v14, %v397_v10  ;;  %9160 = vmatpush3.msk.msra.mxu0 %vm610_vm1, %v10475_v53  ;;  %v518_v21 = vmul.f32 %v439_v13, %v398_v17  ;;  %v404_v53 = vld [vmem:[#allocation2 + $0x5c] sm:$0xff]  ;;  %v409_v14 = vld [vmem:[#allocation2 + $0x84] sm:$0xff] }
  0x8e   :  { %1529 = vperm.xlu0 %9820, %v10242_v7   ;;  %v408_v13 = vld [vmem:[#allocation2 + $0x7c] sm:$0xff] }
  0x8f   :  { %9089 = vmatmul.mubr.msk.f32.gmra.mxu0 %vm69_vm0, %v516_v15 }
  0x90   :  { %9091 = vmatprep.mubr.msk.f32.mxu0 %vm69_vm0, %v517_v16 }
  0x91   :  { %9809 = vset.pattern.permute.xlu1 %v12899_v51 }
  0x92   :  { %320 = vperm.xlu1 %9809, %v10383_v37   ;;  %1545 = vperm.xlu0 %9820, %v10323_v25  }
  0x93   :  { %9092 = vmatmul.mubr.msk.f32.gmra.mxu0 %vm69_vm0, %v518_v21 }
  0x96   :  { %v447_v19 = vpop.permute.xlu1 %446  ;;  %325 = vperm.xlu1 %9809, %v10378_v36   ;;  %v443_v20 = vpop.permute.xlu0 %442  ;;  %1561 = vperm.xlu0 %9820, %v10363_v33  }
  0x97   :  { %v519_v22 = vmul.f32 %v443_v20, %v399_v18  ;;  %v520_v31 = vmul.f32 %v447_v19, %v400_v23  ;;  %v410_v19 = vld [vmem:[#allocation2 + $0x8c] sm:$0xff]  ;;  %v411_v20 = vld [vmem:[#allocation2 + $0x94] sm:$0xff] }
  0x99   :  { %9094 = vmatprep.mubr.msk.f32.mxu0 %vm69_vm0, %v519_v22 }
  0x9a   :  { %v455_v27 = vpop.permute.xlu1 %454  ;;  %9810 = vset.pattern.permute.xlu1 %v12897_v52  ;;  %v451_v30 = vpop.permute.xlu0 %450  ;;  %1577 = vperm.xlu0 %9820, %v10403_v41  }
  0x9b   :  { %1144 = vperm.xlu1 %9810, %v10378_v36   ;;  %v521_v34 = vmul.f32 %v451_v30, %v401_v26  ;;  %9095 = vmatmul.mubr.msk.f32.gmra.mxu0 %vm69_vm0, %v520_v31  ;;  %v522_v43 = vmul.f32 %v455_v27, %v402_v35  ;;  %v412_v27 = vld [vmem:[#allocation2 + $0x9c] sm:$0xff]  ;;  %v413_v30 = vld [vmem:[#allocation2 + $0xa4] sm:$0xff] }
  0x9d   :  { %9097 = vmatprep.mubr.msk.f32.mxu0 %vm69_vm0, %v521_v34 }
  0x9e   :  { %v463_v39 = vpop.permute.xlu1 %462  ;;  %v459_v42 = vpop.permute.xlu0 %458  ;;  %1593 = vperm.xlu0 %9820, %v10435_v47  }
  0x9f   :  { %9811 = vset.pattern.permute.xlu1 %v12899_v51  ;;  %v523_v50 = vmul.f32 %v459_v42, %v403_v38  ;;  %9098 = vmatmul.mubr.msk.f32.gmra.mxu0 %vm69_vm0, %v522_v43  ;;  %v524_v58 = vmul.f32 %v463_v39, %v404_v53  ;;  %v414_v39 = vld [vmem:[#allocation2 + $0xac] sm:$0xff]  ;;  %v415_v42 = vld [vmem:[#allocation2 + $0xb4] sm:$0xff] }
  0xa0   :  { %335 = vperm.xlu1 %9811, %v10398_v40  }
  0xa1   :  { %9100 = vmatprep.mubr.msk.f32.mxu0 %vm69_vm0, %v523_v50 }
  0xa2   :  { %v471_v56 = vpop.permute.xlu1 %470  ;;  %v467_v57 = vpop.permute.xlu0 %466  ;;  %9841 = vset.pattern.permute.xlu0 %v12893_v60 }
  0xa3   :  { %v525_v59 = vmul.f32 %v467_v57, %v405_v54  ;;  %1946 = vperm.xlu0 %9841, %v10230_v5   ;;  %9101 = vmatmul.mubr.msk.f32.gmra.mxu0 %vm69_vm0, %v524_v58  ;;  %v526_v9 = vmul.f32 %v471_v56, %v406_v61  ;;  %v416_v56 = vld [vmem:[#allocation2 + $0xbc] sm:$0xff]  ;;  %v201_v57 = vld [vmem:[#allocation2 + $0xb] sm:$0xff] }
  0xa4   :  { %9812 = vset.pattern.permute.xlu1 %v12897_v52  ;;  %v200_v58 = vld [vmem:[#allocation2 + $0x3] sm:$0xff] }
  0xa5   :  { %1148 = vperm.xlu1 %9812, %v10403_v41   ;;  %9103 = vmatprep.mubr.msk.f32.mxu0 %vm69_vm0, %v525_v59 }
  0xa6   :  { %v479_v63 = vpop.permute.xlu1 %478  ;;  %v475_v8 = vpop.permute.xlu0 %474 }
  0xa7   :  { %v527_v10 = vmul.f32 %v475_v8, %v407_v62  ;;  %1950 = vperm.xlu0 %9841, %v10155_v0   ;;  %9104 = vmatmul.mubr.msk.f32.gmra.mxu0 %vm69_vm0, %v526_v9  ;;  %v528_v17 = vmul.f32 %v479_v63, %v408_v13  ;;  %v1059_v9 = vld [vmem:[#allocation2 + $0x5] sm:$0xff] }
  0xa9   :  { %9813 = vset.pattern.permute.xlu1 %v12899_v51  ;;  %9106 = vmatprep.mubr.msk.f32.mxu0 %vm69_vm0, %v527_v10 }
  0xaa   :  { %v487_v15 = vpop.permute.xlu1 %486  ;;  %340 = vperm.xlu1 %9813, %v10423_v45   ;;  %v483_v16 = vpop.permute.xlu0 %482 }
  0xab   :  { %v529_v18 = vmul.f32 %v483_v16, %v409_v14  ;;  %1962 = vperm.xlu0 %9841, %v10237_v6   ;;  %9107 = vmatmul.mubr.msk.f32.gmra.mxu0 %vm69_vm0, %v528_v17  ;;  %v530_v23 = vmul.f32 %v487_v15, %v410_v19  ;;  %v202_v16 = vld [vmem:[#allocation2 + $0x13] sm:$0xff] }
  0xad   :  { %9109 = vmatprep.mubr.msk.f32.mxu0 %vm69_vm0, %v529_v18  ;;  %v204_v18 = vld [vmem:[#allocation2 + $0x23] sm:$0xff] }
  0xae   :  { %v495_v21 = vpop.permute.xlu1 %494  ;;  %345 = vperm.xlu1 %9813, %v10418_v44   ;;  %v491_v22 = vpop.permute.xlu0 %490 }
  0xaf   :  { %v531_v26 = vmul.f32 %v491_v22, %v411_v20  ;;  %1966 = vperm.xlu0 %9841, %v10261_v12   ;;  %9110 = vmatmul.mubr.msk.f32.gmra.mxu0 %vm69_vm0, %v530_v23  ;;  %v532_v35 = vmul.f32 %v495_v21, %v412_v27  ;;  %v203_v21 = vld [vmem:[#allocation2 + $0x1b] sm:$0xff] }
  0xb1   :  { %9112 = vmatprep.mubr.msk.f32.mxu0 %vm69_vm0, %v531_v26 }
  0xb2   :  { %v503_v31 = vpop.permute.xlu1 %502  ;;  %9814 = vset.pattern.permute.xlu1 %v12897_v52  ;;  %v499_v34 = vpop.permute.xlu0 %498 }
  0xb3   :  { %1160 = vperm.xlu1 %9814, %v10418_v44   ;;  %v533_v38 = vmul.f32 %v499_v34, %v413_v30  ;;  %1978 = vperm.xlu0 %9841, %v10318_v24   ;;  %v534_v53 = vmul.f32 %v503_v31, %v414_v39  ;;  %v1632_v30 = vld [vmem:[%s12927_s5 + $0x6] sm:$0x3]  ;;  %v1060_v39 = vld [vmem:[#allocation2 + $0xd] sm:$0xff] }
  0xb4   :  { %9113 = vmatmul.mubr.msk.f32.gmra.mxu0 %vm69_vm0, %v532_v35  ;;  %9197 = vmatprep.subr.msk.mxu1 %vm610_vm1, %v1632_v30  ;;  %v205_v35 = vld [vmem:[#allocation2 + $0x2b] sm:$0xff] }
  0xb5   :  { %9115 = vmatprep.mubr.msk.f32.mxu0 %vm69_vm0, %v533_v38  ;;  %v2061_v38 = vld [vmem:[%s12927_s5 + $0x8] sm:$0x3] }
  0xb6   :  { %v511_v43 = vpop.permute.xlu1 %510  ;;  %v507_v50 = vpop.permute.xlu0 %506  ;;  %9235 = vmatprep.subr.msk.mxu0 %vm610_vm1, %v2061_v38 }
  0xb7   :  { %9816 = vset.pattern.permute.xlu1 %v12899_v51  ;;  %v535_v54 = vmul.f32 %v507_v50, %v415_v42  ;;  %1982 = vperm.xlu0 %9841, %v10343_v29   ;;  %v536_v59 = vmul.f32 %v511_v43, %v416_v56  ;;  %v1061_v56 = vld [vmem:[#allocation2 + $0x15] sm:$0xff] }
  0xb8   :  { %355 = vperm.xlu1 %9816, %v10430_v46   ;;  %9116 = vmatmul.mubr.msk.f32.gmra.mxu0 %vm69_vm0, %v534_v53  ;;  %v12909_v53 = vmov 5  }
  0xb9   :  { %9118 = vmatprep.mubr.msk.f32.mxu0 %vm69_vm0, %v535_v54 }
  0xbb   :  { %v256_v61 = vpop.permute.xlu1 %255  ;;  %v251_v62 = vpop.permute.xlu0 %250  ;;  %1994 = vperm.xlu0 %9841, %v10358_v32  }
  0xbc   :  { %v369_v63 = vmul.f32 %v256_v61, %v201_v57  ;;  %9817 = vset.pattern.permute.xlu1 %v12897_v52  ;;  %v368_v8 = vmul.f32 %v251_v62, %v200_v58  ;;  %9119 = vmatmul.mubr.msk.f32.gmra.mxu0 %vm69_vm0, %v536_v59  ;;  %v1062_v57 = vld [vmem:[#allocation2 + $0x1d] sm:$0xff]  ;;  %v1063_v59 = vld [vmem:[#allocation2 + $0x25] sm:$0xff] }
  0xbd   :  { %1164 = vperm.xlu1 %9817, %v10435_v47  }
  0xbe   :  { %9123 = vmatprep.mubr.msk.f32.mxu1 %vm69_vm0, %v368_v8 }
  0xbf   :  { %9124 = vmatmul.mubr.msk.f32.vlgmr.msra.gmra.mxu1 %vm69_vm0, %v369_v63  ;;  %v271_v10 = vpop.permute.xlu0 %270  ;;  %1998 = vperm.xlu0 %9841, %v10383_v37  }
  0xc0   :  { %v1085_v13 = vpop.permute.xlu1 %1084  ;;  %v372_v22 = vmul.f32 %v271_v10, %v204_v18  ;;  %9198 = vmatpush3.msk.msra.mxu1 %vm610_vm1, %v1632_v30  ;;  %v1065_v18 = vld [vmem:[#allocation2 + $0x35] sm:$0xff] }
  0xc1   :  { %v1179_v14 = vmul.f32 %v1085_v13, %v1059_v9  ;;  %9818 = vset.pattern.permute.xlu1 %v12899_v51  ;;  %v206_v9 = vld [vmem:[#allocation2 + $0x33] sm:$0xff] }
  0xc2   :  { %360 = vperm.xlu1 %9818, %v10447_v49  }
  0xc3   :  { %9161 = vmatprep.mubr.msk.f32.mxu0 %vm69_vm0, %v1179_v14  ;;  %v10579_v15 = vpop.permute.xlu0 %290  ;;  %2010 = vperm.xlu0 %9841, %v10398_v40  }
  0xc5   :  { %v261_v17 = vpop.permute.xlu1 %260 }
  0xc6   :  { %v370_v19 = vmul.f32 %v261_v17, %v202_v16  ;;  %365 = vperm.xlu1 %9818, %v10442_v48   ;;  %v208_v16 = vld [vmem:[#allocation2 + $0x43] sm:$0xff] }
  0xc7   :  { %v10583_v20 = vpop.permute.xlu0 %310  ;;  %2014 = vperm.xlu0 %9841, %v10423_v45  }
  0xc8   :  { %9126 = vmatprep.mubr.msk.f32.mxu1 %vm69_vm0, %v370_v19  ;;  %v207_v19 = vld [vmem:[#allocation2 + $0x3b] sm:$0xff] }
  0xc9   :  { %v266_v23 = vpop.permute.xlu1 %265 }
  0xca   :  { %v371_v26 = vmul.f32 %v266_v23, %v203_v21  ;;  %9819 = vset.pattern.permute.xlu1 %v12897_v52 }
  0xcb   :  { %1176 = vperm.xlu1 %9819, %v10442_v48   ;;  %v10589_v27 = vpop.permute.xlu0 %330  ;;  %2026 = vperm.xlu0 %9841, %v10430_v46  }
  0xcc   :  { %9127 = vmatmul.mubr.msk.f32.gmra.mxu1 %vm69_vm0, %v371_v26 }
  0xcd   :  { %9129 = vmatprep.mubr.msk.f32.mxu1 %vm69_vm0, %v372_v22  ;;  %v376_v22 = vmul.f32 %v10579_v15, %v208_v16 }
  0xce   :  { %v1097_v31 = vpop.permute.xlu1 %1096 }
  0xcf   :  { %9821 = vset.pattern.permute.xlu1 %v12895_v55  ;;  %v10600_v34 = vpop.permute.xlu0 %350  ;;  %2030 = vperm.xlu0 %9841, %v10447_v49   ;;  %v1182_v63 = vmul.f32 %v1097_v31, %v1062_v57  ;;  %v1066_v31 = vld [vmem:[#allocation2 + $0x3d] sm:$0xff]  ;;  %v1069_v57 = vld [vmem:[#allocation2 + $0x55] sm:$0xff] }
  0xd0   :  { %1517 = vperm.xlu1 %9821, %v10230_v5  }
  0xd3   :  { %v276_v42 = vpop.permute.xlu1 %275  ;;  %9846 = vset.pattern.permute.xlu0 %v12909_v53 }
  0xd4   :  { %v373_v43 = vmul.f32 %v276_v42, %v205_v35  ;;  %9822 = vset.pattern.permute.xlu1 %v12893_v60  ;;  %v1089_v50 = vpop.permute.xlu0 %1088  ;;  %2371 = vperm.xlu0 %9846, %v10160_v1  }
  0xd5   :  { %v1180_v54 = vmul.f32 %v1089_v50, %v1060_v39  ;;  %1942 = vperm.xlu1 %9822, %v10160_v1   ;;  %v1064_v1 = vld [vmem:[#allocation2 + $0x2d] sm:$0xff]  ;;  %v12911_v50 = vmov 6  }
  0xd6   :  { %9130 = vmatmul.mubr.msk.f32.gmra.mxu1 %vm69_vm0, %v373_v43  ;;  %v1068_v43 = vld [vmem:[#allocation2 + $0x4d] sm:$0xff] }
  0xd7   :  { %9162 = vmatmul.mubr.msk.f32.vlgmr.msra.gmra.mxu0 %vm69_vm0, %v1180_v54  ;;  %v1067_v54 = vld [vmem:[#allocation2 + $0x45] sm:$0xff] }
  0xd8   :  { %v1101_v58 = vpop.permute.xlu1 %1100  ;;  %v1093_v61 = vpop.permute.xlu0 %1092  ;;  %9236 = vmatpush3.msk.msra.mxu0 %vm610_vm1, %v2061_v38  ;;  %2387 = vperm.xlu0 %9846, %v10242_v7   ;;  %v209_v38 = vld [vmem:[#allocation2 + $0x4b] sm:$0xff] }
  0xd9   :  { %v1181_v62 = vmul.f32 %v1093_v61, %v1061_v56  ;;  %9823 = vset.pattern.permute.xlu1 %v12895_v55  ;;  %v1183_v8 = vmul.f32 %v1101_v58, %v1063_v59 }
  0xda   :  { %1521 = vperm.xlu1 %9823, %v10155_v0  }
  0xdb   :  { %9164 = vmatprep.mubr.msk.f32.mxu0 %vm69_vm0, %v1181_v62 }
  0xdc   :  { %9165 = vmatmul.mubr.msk.f32.gmra.mxu0 %vm69_vm0, %v1182_v63  ;;  %v1105_v10 = vpop.permute.xlu0 %1104  ;;  %2403 = vperm.xlu0 %9846, %v10323_v25  }
  0xdd   :  { %v281_v13 = vpop.permute.xlu1 %280  ;;  %v1184_v14 = vmul.f32 %v1105_v10, %v1064_v1  ;;  %9167 = vmatprep.mubr.msk.f32.mxu0 %vm69_vm0, %v1183_v8  ;;  %v212_v1 = vld [vmem:[#allocation2 + $0x63] sm:$0xff]  ;;  %v211_v8 = vld [vmem:[#allocation2 + $0x5b] sm:$0xff] }
  0xde   :  { %v374_v17 = vmul.f32 %v281_v13, %v206_v9  ;;  %1525 = vperm.xlu1 %9823, %v10225_v4   ;;  %v380_v9 = vmul.f32 %v10583_v20, %v212_v1  ;;  %v1070_v13 = vld [vmem:[#allocation2 + $0x5d] sm:$0xff]  ;;  %v213_v20 = vld [vmem:[#allocation2 + $0x6b] sm:$0xff] }
  0xe0   :  { %9132 = vmatprep.mubr.msk.f32.mxu1 %vm69_vm0, %v374_v17  ;;  %9168 = vmatmul.mubr.msk.f32.gmra.mxu0 %vm69_vm0, %v1184_v14  ;;  %v1109_v21 = vpop.permute.xlu0 %1108  ;;  %v1072_v17 = vld [vmem:[#allocation2 + $0x6d] sm:$0xff] }
  0xe1   :  { %v286_v23 = vpop.permute.xlu1 %285  ;;  %v1185_v26 = vmul.f32 %v1109_v21, %v1065_v18  ;;  %2419 = vperm.xlu0 %9846, %v10363_v33   ;;  %v1071_v18 = vld [vmem:[#allocation2 + $0x65] sm:$0xff]  ;;  %v1073_v21 = vld [vmem:[#allocation2 + $0x75] sm:$0xff] }
  0xe2   :  { %v375_v30 = vmul.f32 %v286_v23, %v207_v19  ;;  %9824 = vset.pattern.permute.xlu1 %v12893_v60 }
  0xe3   :  { %1954 = vperm.xlu1 %9824, %v10225_v4   ;;  %9170 = vmatprep.mubr.msk.f32.mxu0 %vm69_vm0, %v1185_v26 }
  0xe4   :  { %9133 = vmatmul.mubr.msk.f32.gmra.mxu1 %vm69_vm0, %v375_v30  ;;  %v1121_v4 = vpop.permute.xlu0 %1120 }
  0xe5   :  { %9135 = vmatprep.mubr.msk.f32.mxu1 %vm69_vm0, %v376_v22  ;;  %2435 = vperm.xlu0 %9846, %v10403_v41   ;;  %v1188_v59 = vmul.f32 %v1121_v4, %v1068_v43 }
  0xe6   :  { %v1113_v35 = vpop.permute.xlu1 %1112 }
  0xe7   :  { %v1186_v15 = vmul.f32 %v1113_v35, %v1066_v31  ;;  %9825 = vset.pattern.permute.xlu1 %v12895_v55  ;;  %v216_v31 = vld [vmem:[#allocation2 + $0x83] sm:$0xff] }
  0xe8   :  { %1533 = vperm.xlu1 %9825, %v10237_v6   ;;  %v1125_v56 = vpop.permute.xlu0 %1124 }
  0xe9   :  { %9171 = vmatmul.mubr.msk.f32.gmra.mxu0 %vm69_vm0, %v1186_v15  ;;  %2451 = vperm.xlu0 %9846, %v10435_v47   ;;  %v1189_v62 = vmul.f32 %v1125_v56, %v1069_v57  ;;  %v215_v15 = vld [vmem:[#allocation2 + $0x7b] sm:$0xff] }
  0xeb   :  { %v296_v39 = vpop.permute.xlu1 %295 }
  0xec   :  { %v377_v42 = vmul.f32 %v296_v39, %v209_v38  ;;  %9826 = vset.pattern.permute.xlu1 %v12893_v60  ;;  %v1137_v16 = vpop.permute.xlu0 %1136  ;;  %v384_v38 = vmul.f32 %v10589_v27, %v216_v31  ;;  %v217_v27 = vld [vmem:[#allocation2 + $0x8b] sm:$0xff] }
  0xed   :  { %1958 = vperm.xlu1 %9826, %v10242_v7   ;;  %9867 = vset.pattern.permute.xlu0 %v12911_v50  ;;  %v210_v7 = vld [vmem:[#allocation2 + $0x53] sm:$0xff]  ;;  %v1192_v22 = vmul.f32 %v1137_v16, %v1072_v17 }
  0xee   :  { %9136 = vmatmul.mubr.msk.f32.gmra.mxu1 %vm69_vm0, %v377_v42  ;;  %2804 = vperm.xlu0 %9867, %v10230_v5   ;;  %v1074_v42 = vld [vmem:[#allocation2 + $0x7d] sm:$0xff]  ;;  %v1488_v31 = vld [vmem:[#allocation2 + $0xf] sm:$0xff] }
  0xf0   :  { %v1117_v58 = vpop.permute.xlu1 %1116  ;;  %v1141_v19 = vpop.permute.xlu0 %1140 }
  0xf1   :  { %v1187_v61 = vmul.f32 %v1117_v58, %v1067_v54  ;;  %9827 = vset.pattern.permute.xlu1 %v12895_v55  ;;  %v1193_v26 = vmul.f32 %v1141_v19, %v1073_v21  ;;  %v1080_v19 = vld [vmem:[#allocation2 + $0xad] sm:$0xff]  ;;  %v1081_v21 = vld [vmem:[#allocation2 + $0xb5] sm:$0xff] }
  0xf2   :  { %1537 = vperm.xlu1 %9827, %v10261_v12   ;;  %2808 = vperm.xlu0 %9867, %v10155_v0  }
  0xf3   :  { %9173 = vmatprep.mubr.msk.f32.mxu0 %vm69_vm0, %v1187_v61  ;;  %v1075_v61 = vld [vmem:[#allocation2 + $0x85] sm:$0xff] }
  0xf4   :  { %9174 = vmatmul.mubr.msk.f32.gmra.mxu0 %vm69_vm0, %v1188_v59  ;;  %v1076_v59 = vld [vmem:[#allocation2 + $0x8d] sm:$0xff] }
  0xf5   :  { %v301_v63 = vpop.permute.xlu1 %300  ;;  %9176 = vmatprep.mubr.msk.f32.mxu0 %vm69_vm0, %v1189_v62  ;;  %v1077_v62 = vld [vmem:[#allocation2 + $0x95] sm:$0xff] }
  0xf6   :  { %v378_v5 = vmul.f32 %v301_v63, %v210_v7  ;;  %1541 = vperm.xlu1 %9827, %v10256_v11   ;;  %2820 = vperm.xlu0 %9867, %v10237_v6  }
  0xf8   :  { %9138 = vmatprep.mubr.msk.f32.mxu1 %vm69_vm0, %v378_v5 }
  0xf9   :  { %v306_v0 = vpop.permute.xlu1 %305 }
  0xfa   :  { %v379_v10 = vmul.f32 %v306_v0, %v211_v8  ;;  %9828 = vset.pattern.permute.xlu1 %v12893_v60  ;;  %2824 = vperm.xlu0 %9867, %v10261_v12   ;;  %v218_v8 = vld [vmem:[#allocation2 + $0x93] sm:$0xff] }
  0xfb   :  { %1970 = vperm.xlu1 %9828, %v10256_v11  }
  0xfc   :  { %9139 = vmatmul.mubr.msk.f32.gmra.mxu1 %vm69_vm0, %v379_v10 }
  0xfd   :  { %9141 = vmatprep.mubr.msk.f32.mxu1 %vm69_vm0, %v380_v9  ;;  %v220_v9 = vld [vmem:[#allocation2 + $0xa3] sm:$0xff] }
  0xfe   :  { %v1129_v14 = vpop.permute.xlu1 %1128  ;;  %2836 = vperm.xlu0 %9867, %v10318_v24  }
  0xff   :  { %v1190_v6 = vmul.f32 %v1129_v14, %v1070_v13  ;;  %9829 = vset.pattern.permute.xlu1 %v12895_v55  ;;  %v219_v13 = vld [vmem:[#allocation2 + $0x9b] sm:$0xff]  ;;  %v388_v14 = vmul.f32 %v10600_v34, %v220_v9  ;;  %v221_v34 = vld [vmem:[#allocation2 + $0xab] sm:$0xff] }
 0x100   :  { %1549 = vperm.xlu1 %9829, %v10318_v24   ;;  %v1492_v9 = vld [vmem:[#allocation2 + $0x2f] sm:$0xff] }
 0x101   :  { %9177 = vmatmul.mubr.msk.f32.gmra.mxu0 %vm69_vm0, %v1190_v6 }
 0x102   :  { %2840 = vperm.xlu0 %9867, %v10343_v29  }
 0x103   :  { %v316_v11 = vpop.permute.xlu1 %315 }
 0x104   :  { %v381_v12 = vmul.f32 %v316_v11, %v213_v20  ;;  %9830 = vset.pattern.permute.xlu1 %v12893_v60  ;;  %v1078_v20 = vld [vmem:[#allocation2 + $0x9d] sm:$0xff] }
 0x105   :  { %1974 = vperm.xlu1 %9830, %v10323_v25   ;;  %v214_v25 = vld [vmem:[#allocation2 + $0x73] sm:$0xff] }
 0x106   :  { %9142 = vmatmul.mubr.msk.f32.gmra.mxu1 %vm69_vm0, %v381_v12  ;;  %2852 = vperm.xlu0 %9867, %v10358_v32  }
 0x108   :  { %v1133_v24 = vpop.permute.xlu1 %1132 }
 0x109   :  { %v1191_v23 = vmul.f32 %v1133_v24, %v1071_v18  ;;  %9831 = vset.pattern.permute.xlu1 %v12895_v55  ;;  %v1079_v24 = vld [vmem:[#allocation2 + $0xa5] sm:$0xff] }
 0x10a   :  { %1553 = vperm.xlu1 %9831, %v10343_v29   ;;  %2856 = vperm.xlu0 %9867, %v10383_v37   ;;  %v1153_v29 = vpop.permute.xlu0 %1152 }
 0x10b   :  { %9179 = vmatprep.mubr.msk.f32.mxu0 %vm69_vm0, %v1191_v23  ;;  %v1196_v63 = vmul.f32 %v1153_v29, %v1076_v59  ;;  %v223_v29 = vld [vmem:[#allocation2 + $0xbb] sm:$0xff] }
 0x10c   :  { %9180 = vmatmul.mubr.msk.f32.gmra.mxu0 %vm69_vm0, %v1192_v22 }
 0x10d   :  { %v321_v30 = vpop.permute.xlu1 %320  ;;  %9182 = vmatprep.mubr.msk.f32.mxu0 %vm69_vm0, %v1193_v26 }
 0x10e   :  { %v382_v35 = vmul.f32 %v321_v30, %v214_v25  ;;  %1557 = vperm.xlu1 %9831, %v10338_v28   ;;  %2868 = vperm.xlu0 %9867, %v10398_v40   ;;  %v1157_v43 = vpop.permute.xlu0 %1156  ;;  %v222_v30 = vld [vmem:[#allocation2 + $0xb3] sm:$0xff] }
 0x10f   :  { %v1197_v5 = vmul.f32 %v1157_v43, %v1077_v62 }
 0x110   :  { %9144 = vmatprep.mubr.msk.f32.mxu1 %vm69_vm0, %v382_v35 }
 0x111   :  { %v326_v4 = vpop.permute.xlu1 %325 }
 0x112   :  { %v383_v39 = vmul.f32 %v326_v4, %v215_v15  ;;  %9832 = vset.pattern.permute.xlu1 %v12893_v60  ;;  %2872 = vperm.xlu0 %9867, %v10423_v45   ;;  %v1169_v57 = vpop.permute.xlu0 %1168 }
 0x113   :  { %1986 = vperm.xlu1 %9832, %v10338_v28   ;;  %v1200_v22 = vmul.f32 %v1169_v57, %v1080_v19  ;;  %v10780_v19 = vld [vmem:[%s12874_s7 + $0x8] sm:$0xff] }
 0x114   :  { %9145 = vmatmul.mubr.msk.f32.gmra.mxu1 %vm69_vm0, %v383_v39  ;;  %v1082_v39 = vld [vmem:[#allocation2 + $0xbd] sm:$0xff] }
 0x115   :  { %9147 = vmatprep.mubr.msk.f32.mxu1 %vm69_vm0, %v384_v38 }
 0x116   :  { %v1145_v54 = vpop.permute.xlu1 %1144  ;;  %2884 = vperm.xlu0 %9867, %v10430_v46  }
 0x117   :  { %v1194_v56 = vmul.f32 %v1145_v54, %v1074_v42  ;;  %9833 = vset.pattern.permute.xlu1 %v12895_v55 }
 0x118   :  { %1565 = vperm.xlu1 %9833, %v10358_v32   ;;  %v1173_v32 = vpop.permute.xlu0 %1172 }
 0x119   :  { %9183 = vmatmul.mubr.msk.f32.gmra.mxu0 %vm69_vm0, %v1194_v56  ;;  %v1489_v56 = vld [vmem:[#allocation2 + $0x17] sm:$0xff] }
 0x11a   :  { %2888 = vperm.xlu0 %9867, %v10447_v49  }
 0x11b   :  { %v336_v28 = vpop.permute.xlu1 %335 }
 0x11c   :  { %v385_v58 = vmul.f32 %v336_v28, %v217_v27  ;;  %9834 = vset.pattern.permute.xlu1 %v12893_v60  ;;  %v1514_v10 = vpop.permute.xlu0 %1513 }
 0x11d   :  { %1990 = vperm.xlu1 %9834, %v10363_v33   ;;  %v1608_v38 = vmul.f32 %v1514_v10, %v1488_v31 }
 0x11e   :  { %9148 = vmatmul.mubr.msk.f32.gmra.mxu1 %vm69_vm0, %v385_v58  ;;  %v1918_v58 = vld [vmem:[#allocation2 + $0x18] sm:$0xff] }
 0x120   :  { %v1149_v7 = vpop.permute.xlu1 %1148  ;;  %v10700_v16 = vpop.permute.xlu0 %1529 }
 0x121   :  { %v1195_v1 = vmul.f32 %v1149_v7, %v1075_v61  ;;  %9835 = vset.pattern.permute.xlu1 %v12895_v55  ;;  %v1919_v61 = vld [vmem:[#allocation2 + $0x20] sm:$0xff] }
 0x122   :  { %1569 = vperm.xlu1 %9835, %v10383_v37  }
 0x123   :  { %9185 = vmatprep.mubr.msk.f32.mxu0 %vm69_vm0, %v1195_v1 }
 0x124   :  { %9186 = vmatmul.mubr.msk.f32.gmra.mxu0 %vm69_vm0, %v1196_v63  ;;  %v10706_v17 = vpop.permute.xlu0 %1545 }
 0x125   :  { %v341_v33 = vpop.permute.xlu1 %340  ;;  %9188 = vmatprep.mubr.msk.f32.mxu0 %vm69_vm0, %v1197_v5 }
 0x126   :  { %v386_v0 = vmul.f32 %v341_v33, %v218_v8  ;;  %1573 = vperm.xlu1 %9835, %v10378_v36  }
 0x128   :  { %9150 = vmatprep.mubr.msk.f32.mxu1 %vm69_vm0, %v386_v0  ;;  %v10711_v26 = vpop.permute.xlu0 %1561 }
 0x129   :  { %v346_v6 = vpop.permute.xlu1 %345 }
 0x12a   :  { %v387_v37 = vmul.f32 %v346_v6, %v219_v13  ;;  %9836 = vset.pattern.permute.xlu1 %v12893_v60  ;;  %v1491_v13 = vld [vmem:[#allocation2 + $0x27] sm:$0xff] }
 0x12b   :  { %2002 = vperm.xlu1 %9836, %v10378_v36  }
 0x12c   :  { %9151 = vmatmul.mubr.msk.f32.gmra.mxu1 %vm69_vm0, %v387_v37  ;;  %v10719_v15 = vpop.permute.xlu0 %1577 }
 0x12d   :  { %9153 = vmatprep.mubr.msk.f32.mxu1 %vm69_vm0, %v388_v14 }
 0x12e   :  { %v1161_v11 = vpop.permute.xlu1 %1160 }
 0x12f   :  { %v1198_v12 = vmul.f32 %v1161_v11, %v1078_v20  ;;  %9837 = vset.pattern.permute.xlu1 %v12895_v55  ;;  %v10760_v20 = vld [vmem:[%s12874_s7 + $0xb8] sm:$0xff]  ;;  %v2490_v11 = vld [vmem:[%s12927_s5 + $0xa] sm:$0x3] }
 0x130   :  { %1581 = vperm.xlu1 %9837, %v10398_v40   ;;  %v1201_v40 = vmul.f32 %v1173_v32, %v1081_v21  ;;  %v10725_v42 = vpop.permute.xlu0 %1593  ;;  %9273 = vmatprep.subr.msk.mxu1 %vm610_vm1, %v2490_v11 }
 0x131   :  { %9189 = vmatmul.mubr.msk.f32.gmra.mxu0 %vm69_vm0, %v1198_v12 }
 0x133   :  { %v356_v18 = vpop.permute.xlu1 %355 }
 0x134   :  { %v389_v36 = vmul.f32 %v356_v18, %v221_v34  ;;  %9838 = vset.pattern.permute.xlu1 %v12893_v60  ;;  %v1947_v27 = vpop.permute.xlu0 %1946 }
 0x135   :  { %2006 = vperm.xlu1 %9838, %v10403_v41   ;;  %v2038_v7 = vmul.f32 %v1947_v27, %v1918_v58 }
 0x136   :  { %9154 = vmatmul.mubr.msk.f32.gmra.mxu1 %vm69_vm0, %v389_v36 }
 0x138   :  { %v1165_v23 = vpop.permute.xlu1 %1164  ;;  %v1951_v59 = vpop.permute.xlu0 %1950 }
 0x139   :  { %v1199_v25 = vmul.f32 %v1165_v23, %v1079_v24  ;;  %9839 = vset.pattern.permute.xlu1 %v12895_v55  ;;  %v2039_v1 = vmul.f32 %v1951_v59, %v1919_v61  ;;  %v1493_v24 = vld [vmem:[#allocation2 + $0x37] sm:$0xff]  ;;  %v10824_v59 = vld [vmem:[%s12874_s7 + $0x20] sm:$0xff]  ;;  %v1496_v61 = vld [vmem:[#allocation2 + $0x4f] sm:$0xff] }
 0x13a   :  { %1585 = vperm.xlu1 %9839, %v10423_v45  }
 0x13b   :  { %9191 = vmatprep.mubr.msk.f32.mxu0 %vm69_vm0, %v1199_v25 }
 0x13c   :  { %9192 = vmatmul.mubr.msk.f32.gmra.mxu0 %vm69_vm0, %v1200_v22  ;;  %v2919_v22 = vld [vmem:[%s12927_s5 + $0xc] sm:$0x3]  ;;  %v1963_v23 = vpop.permute.xlu0 %1962 }
 0x13d   :  { %v361_v41 = vpop.permute.xlu1 %360  ;;  %9194 = vmatprep.mubr.msk.f32.mxu0 %vm69_vm0, %v1201_v40  ;;  %9311 = vmatprep.subr.msk.mxu0 %vm610_vm1, %v2919_v22 }
 0x13e   :  { %v390_v35 = vmul.f32 %v361_v41, %v222_v30  ;;  %1589 = vperm.xlu1 %9839, %v10418_v44   ;;  %v10797_v41 = vld [vmem:[%s12874_s7] sm:$0xff] }
 0x140   :  { %9156 = vmatprep.mubr.msk.f32.mxu1 %vm69_vm0, %v390_v35  ;;  %v1922_v35 = vld [vmem:[#allocation2 + $0x38] sm:$0xff] }
 0x141   :  { %v366_v4 = vpop.permute.xlu1 %365 }
 0x142   :  { %v391_v45 = vmul.f32 %v366_v4, %v223_v29  ;;  %9840 = vset.pattern.permute.xlu1 %v12893_v60  ;;  %v1921_v29 = vld [vmem:[#allocation2 + $0x30] sm:$0xff]  ;;  %v1923_v4 = vld [vmem:[#allocation2 + $0x40] sm:$0xff] }
 0x143   :  { %2018 = vperm.xlu1 %9840, %v10418_v44   ;;  %v175_v44 = vld [vmem:[%s12926_s24 + $0xb8] sm:$0xff] }
 0x144   :  { %9157 = vmatmul.mubr.msk.f32.gmra.mxu1 %vm69_vm0, %v391_v45  ;;  %199 = vst.msk [vmem:[#allocation2 + $0xc8] sm:$0xff] %vm69_vm0, %v175_v44 }
 0x145   :  { %9199 = vmatprep.mubr.msk.f32.mxu1 %vm69_vm0, %v1608_v38  ;;  %v1967_v38 = vpop.permute.xlu0 %1966 }
 0x146   :  { %v1177_v43 = vpop.permute.xlu1 %1176  ;;  %v2043_v27 = vmul.f32 %v1967_v38, %v1923_v4 }
 0x147   :  { %v1202_v54 = vmul.f32 %v1177_v43, %v1082_v39  ;;  %9842 = vset.pattern.permute.xlu1 %v12895_v55  ;;  %v2042_v43 = vmul.f32 %v1963_v23, %v1922_v35 }
 0x148   :  { %1597 = vperm.xlu1 %9842, %v10430_v46   ;;  %v1917_v46 = vld [vmem:[#allocation2 + $0x10] sm:$0xff] }
 0x149   :  { %9195 = vmatmul.mubr.msk.f32.gmra.mxu0 %vm69_vm0, %v1202_v54  ;;  %v12905_v54 = vmov 7  }
 0x14a   :  { %9872 = vset.pattern.permute.xlu0 %v12905_v54 }
 0x14b   :  { %v1518_v57 = vpop.permute.xlu1 %1517  ;;  %v10739_v32 = vpop.f32.mrf.mxu0  ;;  %3229 = vperm.xlu0 %9872, %v10797_v41  }
 0x14c   :  { %v1609_v28 = vmul.f32 %v1518_v57, %v1489_v56  ;;  %9843 = vset.pattern.permute.xlu1 %v12893_v60  ;;  %v10813_v57 = vld [vmem:[%s12874_s7 + $0x10] sm:$0xff] }
 0x14d   :  { %2022 = vperm.xlu1 %9843, %v10435_v47   ;;  %v10742_v5 = vpop.f32.mrf.mxu0  ;;  %v1490_v47 = vld [vmem:[#allocation2 + $0x1f] sm:$0xff] }
 0x14e   :  { %9200 = vmatmul.mubr.msk.f32.vlgmr.msra.gmra.mxu1 %vm69_vm0, %v1609_v28  ;;  %v1494_v28 = vld [vmem:[#allocation2 + $0x3f] sm:$0xff] }
 0x14f   :  { %v10746_v33 = vpop.f32.mrf.mxu0  ;;  %9274 = vmatpush3.msk.msra.mxu1 %vm610_vm1, %v2490_v11  ;;  %3245 = vperm.xlu0 %9872, %v10824_v59   ;;  %v10855_v11 = vld [vmem:[%s12874_s7 + $0x28] sm:$0xff] }
 0x150   :  { %v1943_v62 = vpop.permute.xlu1 %1942 }
 0x151   :  { %v2037_v63 = vmul.f32 %v1943_v62, %v1917_v46  ;;  %9844 = vset.pattern.permute.xlu1 %v12895_v55  ;;  %v10750_v10 = vpop.f32.mrf.mxu0 }
 0x152   :  { %1601 = vperm.xlu1 %9844, %v10447_v49   ;;  %12928 = vst [vmem:[#allocation11_spill] sm:$0xff] %v10750_v10  ;;  %v1612_v49 = vmul.f32 %v10700_v16, %v1492_v9  ;;  %v1920_v16 = vld [vmem:[#allocation2 + $0x28] sm:$0xff]  ;;  %v10840_v9 = vld [vmem:[%s12874_s7 + $0x40] sm:$0xff] }
 0x153   :  { %9237 = vmatprep.mubr.msk.f32.mxu0 %vm69_vm0, %v2037_v63  ;;  %v10754_v6 = vpop.f32.mrf.mxu0  ;;  %v1495_v63 = vld [vmem:[#allocation2 + $0x47] sm:$0xff]  ;;  %3261 = vperm.xlu0 %9872, %v10840_v9  }
 0x154   :  { %9238 = vmatmul.mubr.msk.f32.vlgmr.msra.gmra.mxu0 %vm69_vm0, %v2038_v7  ;;  %v10830_v7 = vld [vmem:[%s12874_s7 + $0x18] sm:$0xff] }
 0x155   :  { %v1522_v8 = vpop.permute.xlu1 %1521  ;;  %9240 = vmatprep.mubr.msk.f32.mxu0 %vm69_vm0, %v2039_v1  ;;  %9312 = vmatpush3.msk.msra.mxu0 %vm610_vm1, %v2919_v22  ;;  %v1616_v1 = vmul.f32 %v10706_v17, %v1496_v61  ;;  %v12907_v17 = vmov 8  }
 0x156   :  { %v1610_v0 = vmul.f32 %v1522_v8, %v1490_v47  ;;  %1605 = vperm.xlu1 %9844, %v10442_v48   ;;  %v10763_v48 = vpop.f32.mrf.mxu0 }
 0x157   :  { %12929 = vst [vmem:[#allocation12_spill] sm:$0xff] %v10763_v48  ;;  %9881 = vset.pattern.permute.xlu0 %v12907_v17 }
 0x158   :  { %9202 = vmatprep.mubr.msk.f32.mxu1 %vm69_vm0, %v1610_v0  ;;  %3662 = vperm.xlu0 %9881, %v10780_v19  }
 0x159   :  { %v1526_v14 = vpop.permute.xlu1 %1525 }
 0x15a   :  { %v1611_v37 = vmul.f32 %v1526_v14, %v1491_v13  ;;  %9845 = vset.pattern.permute.xlu1 %v12893_v60  ;;  %v1924_v13 = vld [vmem:[#allocation2 + $0x48] sm:$0xff] }
 0x15b   :  { %2034 = vperm.xlu1 %9845, %v10760_v20   ;;  %v10770_v12 = vpop.f32.mrf.mxu0 }
 0x15c   :  { %9203 = vmatmul.mubr.msk.f32.gmra.mxu1 %vm69_vm0, %v1611_v37  ;;  %3666 = vperm.xlu0 %9881, %v10813_v57  }
 0x15d   :  { %9205 = vmatprep.mubr.msk.f32.mxu1 %vm69_vm0, %v1612_v49  ;;  %v10775_v36 = vpop.f32.mrf.mxu0 }
 0x15e   :  { %v1955_v34 = vpop.permute.xlu1 %1954  ;;  %12930 = vst [vmem:[#allocation13_spill] sm:$0xff] %v10775_v36 }
 0x15f   :  { %v2040_v18 = vmul.f32 %v1955_v34, %v1920_v16  ;;  %9847 = vset.pattern.permute.xlu1 %v12909_v53  ;;  %v10783_v21 = vpop.f32.mrf.mxu0  ;;  %v1497_v34 = vld [vmem:[#allocation2 + $0x57] sm:$0xff] }
 0x160   :  { %2375 = vperm.xlu1 %9847, %v10780_v19   ;;  %3678 = vperm.xlu0 %9881, %v10855_v11  }
 0x161   :  { %9241 = vmatmul.mubr.msk.f32.gmra.mxu0 %vm69_vm0, %v2040_v18  ;;  %v10790_v25 = vpop.f32.mrf.mxu0  ;;  %v1979_v18 = vpop.permute.xlu0 %1978 }
 0x162   :  { %12931 = vst [vmem:[#allocation14_spill] sm:$0xff] %v10790_v25 }
 0x163   :  { %v1534_v40 = vpop.permute.xlu1 %1533  ;;  %v10800_v31 = vpop.f32.mrf.mxu0 }
 0x164   :  { %v1613_v30 = vmul.f32 %v1534_v40, %v1493_v24  ;;  %9848 = vset.pattern.permute.xlu1 %v12911_v50  ;;  %v1926_v40 = vld [vmem:[#allocation2 + $0x58] sm:$0xff] }
 0x165   :  { %2800 = vperm.xlu1 %9848, %v10797_v41   ;;  %v10803_v45 = vpop.f32.mrf.mxu0  ;;  %v1983_v35 = vpop.permute.xlu0 %1982 }
 0x166   :  { %9206 = vmatmul.mubr.msk.f32.gmra.mxu1 %vm69_vm0, %v1613_v30  ;;  %12932 = vst [vmem:[#allocation15_spill] sm:$0xff] %v10803_v45  ;;  %v1925_v30 = vld [vmem:[#allocation2 + $0x50] sm:$0xff] }
 0x167   :  { %v10807_v44 = vpop.f32.mrf.mxu0 }
 0x168   :  { %v1959_v39 = vpop.permute.xlu1 %1958 }
 0x169   :  { %v2041_v56 = vmul.f32 %v1959_v39, %v1921_v29  ;;  %9849 = vset.pattern.permute.xlu1 %v12909_v53  ;;  %v10818_v58 = vpop.f32.mrf.mxu0  ;;  %v1927_v29 = vld [vmem:[#allocation2 + $0x60] sm:$0xff] }
 0x16a   :  { %2379 = vperm.xlu1 %9849, %v10813_v57   ;;  %12933 = vst [vmem:[#allocation16_spill] sm:$0xff] %v10818_v58 }
 0x16b   :  { %9243 = vmatprep.mubr.msk.f32.mxu0 %vm69_vm0, %v2041_v56  ;;  %v10835_v47 = vpop.f32.mrf.mxu0 }
 0x16c   :  { %9244 = vmatmul.mubr.msk.f32.gmra.mxu0 %vm69_vm0, %v2042_v43  ;;  %v2046_v43 = vmul.f32 %v1979_v18, %v1926_v40 }
 0x16d   :  { %v1538_v46 = vpop.permute.xlu1 %1537  ;;  %9246 = vmatprep.mubr.msk.f32.mxu0 %vm69_vm0, %v2043_v27  ;;  %v10846_v49 = vpop.f32.mrf.mxu0 }
 0x16e   :  { %v1614_v62 = vmul.f32 %v1538_v46, %v1494_v28  ;;  %2383 = vperm.xlu1 %9849, %v10830_v7   ;;  %12934 = vst [vmem:[#allocation17_spill] sm:$0xff] %v10846_v49  ;;  %v2047_v28 = vmul.f32 %v1983_v35, %v1927_v29  ;;  %v10877_v46 = vld [vmem:[%s12874_s7 + $0x30] sm:$0xff]  ;;  %v12943_v49 = vmov 5  }
 0x16f   :  { %v10858_v16 = vpop.f32.mrf.mxu0  ;;  %3682 = vperm.xlu0 %9881, %v10877_v46  }
 0x170   :  { %9208 = vmatprep.mubr.msk.f32.mxu1 %vm69_vm0, %v1614_v62 }
 0x171   :  { %v1542_v8 = vpop.permute.xlu1 %1541  ;;  %v10863_v23 = vpop.f32.mrf.mxu0 }
 0x172   :  { %v1615_v0 = vmul.f32 %v1542_v8, %v1495_v63  ;;  %9850 = vset.pattern.permute.xlu1 %v12911_v50  ;;  %12935 = vst [vmem:[#allocation18_spill] sm:$0xff] %v10863_v23  ;;  %v1500_v63 = vld [vmem:[#allocation2 + $0x6f] sm:$0xff]  ;;  %v10889_v8 = vld [vmem:[%s12874_s7 + $0x38] sm:$0xff] }
 0x173   :  { %2812 = vperm.xlu1 %9850, %v10830_v7  }
 0x174   :  { %9209 = vmatmul.mubr.msk.f32.gmra.mxu1 %vm69_vm0, %v1615_v0  ;;  %v10871_v56 = vpop.f32.mrf.mxu0  ;;  %v10895_v0 = vld [vmem:[%s12874_s7 + $0x48] sm:$0xff] }
 0x175   :  { %9211 = vmatprep.mubr.msk.f32.mxu1 %vm69_vm0, %v1616_v1  ;;  %3694 = vperm.xlu0 %9881, %v10895_v0  }
 0x176   :  { %v1971_v14 = vpop.permute.xlu1 %1970  ;;  %v10883_v61 = vpop.f32.mrf.mxu0 }
 0x177   :  { %v2044_v37 = vmul.f32 %v1971_v14, %v1924_v13  ;;  %9851 = vset.pattern.permute.xlu1 %v12909_v53  ;;  %v1499_v13 = vld [vmem:[#allocation2 + $0x67] sm:$0xff]  ;;  %v1620_v14 = vmul.f32 %v10711_v26, %v1500_v63 }
 0x178   :  { %2391 = vperm.xlu1 %9851, %v10855_v11   ;;  %v1928_v26 = vld [vmem:[#allocation2 + $0x68] sm:$0xff] }
 0x179   :  { %9247 = vmatmul.mubr.msk.f32.gmra.mxu0 %vm69_vm0, %v2044_v37  ;;  %v10900_v37 = vpop.f32.mrf.mxu0 }
 0x17b   :  { %v1550_v24 = vpop.permute.xlu1 %1549 }
 0x17c   :  { %v1617_v22 = vmul.f32 %v1550_v24, %v1497_v34  ;;  %9852 = vset.pattern.permute.xlu1 %v12911_v50 }
 0x17d   :  { %2816 = vperm.xlu1 %9852, %v10824_v59  }
 0x17e   :  { %9212 = vmatmul.mubr.msk.f32.gmra.mxu1 %vm69_vm0, %v1617_v22  ;;  %v10908_v22 = vld [vmem:[%s12874_s7 + $0x50] sm:$0xff] }
 0x17f   :  { %v9125_v38 = vpop.f32.mrf.mxu1  ;;  %3698 = vperm.xlu0 %9881, %v10908_v22  }
 0x180   :  { %v10869_v4 = vadd.f32 %v9125_v38, %v10739_v32  ;;  %v1975_v39 = vpop.permute.xlu1 %1974  ;;  %v1498_v32 = vld [vmem:[#allocation2 + $0x5f] sm:$0xff]  ;;  %v10920_v38 = vld [vmem:[%s12874_s7 + $0x68] sm:$0xff] }
 0x181   :  { %v2045_v27 = vmul.f32 %v1975_v39, %v1925_v30  ;;  %9853 = vset.pattern.permute.xlu1 %v12909_v53  ;;  %v10902_v18 = vpop.f32.mrf.mxu1  ;;  %v10913_v30 = vpop.f32.mrf.mxu0 }
 0x182   :  { %2395 = vperm.xlu1 %9853, %v10877_v46   ;;  %12936 = vst [vmem:[#allocation19_spill] sm:$0xff] %v10902_v18 }
 0x183   :  { %9249 = vmatprep.mubr.msk.f32.mxu0 %vm69_vm0, %v2045_v27  ;;  %3710 = vperm.xlu0 %9881, %v10920_v38   ;;  %v1995_v27 = vpop.permute.xlu0 %1994 }
 0x184   :  { %9250 = vmatmul.mubr.msk.f32.gmra.mxu0 %vm69_vm0, %v2046_v43  ;;  %v10925_v43 = vpop.f32.mrf.mxu0 }
 0x185   :  { %v1554_v62 = vpop.permute.xlu1 %1553  ;;  %9252 = vmatprep.mubr.msk.f32.mxu0 %vm69_vm0, %v2047_v28  ;;  %v10931_v28 = vld [vmem:[%s12874_s7 + $0x70] sm:$0xff] }
 0x186   :  { %v1618_v1 = vmul.f32 %v1554_v62, %v1498_v32  ;;  %2399 = vperm.xlu1 %9853, %v10889_v8  }
 0x187   :  { %3714 = vperm.xlu0 %9881, %v10931_v28  }
 0x188   :  { %9214 = vmatprep.mubr.msk.f32.mxu1 %vm69_vm0, %v1618_v1  ;;  %v10937_v1 = vpop.f32.mrf.mxu0 }
 0x189   :  { %v1558_v34 = vpop.permute.xlu1 %1557 }
 0x18a   :  { %v1619_v24 = vmul.f32 %v1558_v34, %v1499_v13  ;;  %9854 = vset.pattern.permute.xlu1 %v12911_v50  ;;  %v1930_v13 = vld [vmem:[#allocation2 + $0x78] sm:$0xff]  ;;  %v1929_v34 = vld [vmem:[#allocation2 + $0x70] sm:$0xff] }
 0x18b   :  { %2828 = vperm.xlu1 %9854, %v10889_v8   ;;  %9889 = vset.pattern.permute.xlu0 %v12905_v54 }
 0x18c   :  { %v9128_v40 = vpop.f32.mrf.mxu1  ;;  %9215 = vmatmul.mubr.msk.f32.gmra.mxu1 %vm69_vm0, %v1619_v24  ;;  %v1999_v24 = vpop.permute.xlu0 %1998 }
 0x18d   :  { %v956_v35 = vadd.f32 %v9128_v40, %v10746_v33  ;;  %9217 = vmatprep.mubr.msk.f32.mxu1 %vm69_vm0, %v1620_v14  ;;  %v1501_v33 = vld [vmem:[#allocation2 + $0x77] sm:$0xff]  ;;  %v1931_v40 = vld [vmem:[#allocation2 + $0x80] sm:$0xff] }
 0x18e   :  { %v1987_v29 = vpop.permute.xlu1 %1986  ;;  %v10934_v62 = vpop.f32.mrf.mxu1  ;;  %v2051_v52 = vmul.f32 %v1999_v24, %v1931_v40 }
 0x18f   :  { %v2048_v39 = vmul.f32 %v1987_v29, %v1928_v26  ;;  %9855 = vset.pattern.permute.xlu1 %v12909_v53  ;;  %12937 = vst [vmem:[#allocation20_spill] sm:$0xff] %v10934_v62 }
 0x190   :  { %2407 = vperm.xlu1 %9855, %v10895_v0  }
 0x191   :  { %9253 = vmatmul.mubr.msk.f32.gmra.mxu0 %vm69_vm0, %v2048_v39  ;;  %v10946_v39 = vld [vmem:[%s12874_s7 + $0x60] sm:$0xff] }
 0x192   :  { %3277 = vperm.xlu0 %9889, %v10946_v39  }
 0x193   :  { %v1566_v32 = vpop.permute.xlu1 %1565 }
 0x194   :  { %v1621_v63 = vmul.f32 %v1566_v32, %v1501_v33  ;;  %9856 = vset.pattern.permute.xlu1 %v12911_v50 }
 0x195   :  { %2832 = vperm.xlu1 %9856, %v10840_v9  }
 0x196   :  { %v9131_v14 = vpop.f32.mrf.mxu1  ;;  %9218 = vmatmul.mubr.msk.f32.gmra.mxu1 %vm69_vm0, %v1621_v63  ;;  %v2050_v63 = vmul.f32 %v1995_v27, %v1930_v13 }
 0x197   :  { %v966_v26 = vadd.f32 %v9131_v14, %v10754_v6  ;;  %v9163_v29 = vpop.f32.mrf.mxu0  ;;  %v1502_v6 = vld [vmem:[#allocation2 + $0x7f] sm:$0xff] }
 0x198   :  { %v10950_v33 = vadd.f32 %v9163_v29, %v10869_v4  ;;  %v1991_v32 = vpop.permute.xlu1 %1990  ;;  %v10960_v14 = vld [vmem:[%s12874_s7 + $0x80] sm:$0xff]  ;;  %v10987_v51 = vpop.f32.mrf.mxu1 }
 0x199   :  { %v2049_v60 = vmul.f32 %v1991_v32, %v1929_v34  ;;  %9857 = vset.pattern.permute.xlu1 %v12909_v53  ;;  %v10953_v55 = vpop.f32.mrf.mxu0  ;;  %3293 = vperm.xlu0 %9889, %v10960_v14   ;;  %v1504_v34 = vld [vmem:[#allocation2 + $0x8f] sm:$0xff]  ;;  %v1503_v29 = vld [vmem:[#allocation2 + $0x87] sm:$0xff]  ;;  %v2011_v32 = vpop.permute.xlu0 %2010  ;;  %12940 = vst [vmem:[#allocation23_spill] sm:$0xff] %v10987_v51 }
 0x19a   :  { %12938 = vst [vmem:[#allocation21_spill] sm:$0xff] %v10953_v55  ;;  %2411 = vperm.xlu1 %9857, %v10908_v22  }
 0x19b   :  { %9255 = vmatprep.mubr.msk.f32.mxu0 %vm69_vm0, %v2049_v60  ;;  %v10970_v60 = vld [vmem:[%s12874_s7 + $0x58] sm:$0xff] }
 0x19c   :  { %v9166_v4 = vpop.f32.mrf.mxu0  ;;  %9256 = vmatmul.mubr.msk.f32.gmra.mxu0 %vm69_vm0, %v2050_v63  ;;  %v1624_v63 = vmul.f32 %v10719_v15, %v1504_v34  ;;  %v10996_v15 = vld [vmem:[%s12874_s7 + $0xa0] sm:$0xff] }
 0x19d   :  { %v10964_v27 = vadd.f32 %v9166_v4, %v956_v35  ;;  %v1570_v13 = vpop.permute.xlu1 %1569  ;;  %9258 = vmatprep.mubr.msk.f32.mxu0 %vm69_vm0, %v2051_v52  ;;  %9893 = vset.pattern.permute.xlu0 %v12907_v17  ;;  %v10980_v52 = vld [vmem:[%s12874_s7 + $0x88] sm:$0xff] }
 0x19e   :  { %v1622_v24 = vmul.f32 %v1570_v13, %v1502_v6  ;;  %2415 = vperm.xlu1 %9857, %v10970_v60   ;;  %v10973_v40 = vpop.f32.mrf.mxu0  ;;  %3726 = vperm.xlu0 %9893, %v10980_v52  }
 0x19f   :  { %12939 = vst [vmem:[#allocation22_spill] sm:$0xff] %v10973_v40 }
 0x1a0   :  { %v9169_v35 = vpop.f32.mrf.mxu0  ;;  %9220 = vmatprep.mubr.msk.f32.mxu1 %vm69_vm0, %v1622_v24  ;;  %v2015_v24 = vpop.permute.xlu0 %2014 }
 0x1a1   :  { %v10984_v6 = vadd.f32 %v9169_v35, %v966_v26  ;;  %v1574_v4 = vpop.permute.xlu1 %1573 }
 0x1a2   :  { %v1623_v13 = vmul.f32 %v1574_v4, %v1503_v29  ;;  %9858 = vset.pattern.permute.xlu1 %v12911_v50  ;;  %9896 = vset.pattern.permute.xlu0 %v12905_v54  ;;  %v10999_v34 = vpop.f32.mrf.mxu0 }
 0x1a3   :  { %2844 = vperm.xlu1 %9858, %v10970_v60   ;;  %3309 = vperm.xlu0 %9896, %v10996_v15   ;;  %12941 = vst [vmem:[#allocation24_spill] sm:$0xff] %v10999_v34 }
 0x1a4   :  { %9221 = vmatmul.mubr.msk.f32.gmra.mxu1 %vm69_vm0, %v1623_v13  ;;  %v9134_v2 = vpop.f32.mrf.mxu1  ;;  %v11005_v13 = vpop.permute.xlu0 %2026 }
 0x1a5   :  { %9223 = vmatprep.mubr.msk.f32.mxu1 %vm69_vm0, %v1624_v63  ;;  %v976_v35 = vadd.f32 %v9134_v2, %v10770_v12  ;;  %v1505_v63 = vld [vmem:[#allocation2 + $0x97] sm:$0xff] }
 0x1a6   :  { %v2003_v26 = vpop.permute.xlu1 %2002 }
 0x1a7   :  { %v2052_v29 = vmul.f32 %v2003_v26, %v1932_v3  ;;  %9859 = vset.pattern.permute.xlu1 %v12909_v53  ;;  %9897 = vset.pattern.permute.xlu0 %v12907_v17  ;;  %v11013_v3 = vld [vmem:[%s12874_s7 + $0x90] sm:$0xff]  ;;  %v1934_v26 = vld [vmem:[#allocation2 + $0x98] sm:$0xff]  ;;  %v11024_v17 = vld [vmem:[%s12874_s7 + $0xa8] sm:$0xff] }
 0x1a8   :  { %2423 = vperm.xlu1 %9859, %v10920_v38   ;;  %3730 = vperm.xlu0 %9897, %v11013_v3   ;;  %v2031_v53 = vpop.permute.xlu0 %2030 }
 0x1a9   :  { %v9172_v4 = vpop.f32.mrf.mxu0  ;;  %9259 = vmatmul.mubr.msk.f32.gmra.mxu0 %vm69_vm0, %v2052_v29  ;;  %v11018_v29 = vpop.f32.mrf.mxu1 }
 0x1aa   :  { %v11008_v54 = vadd.f32 %v9172_v4, %v976_v35  ;;  %12942 = vst [vmem:[#allocation25_spill] sm:$0xff] %v11018_v29  ;;  %v1933_v35 = vld [vmem:[#allocation2 + $0x90] sm:$0xff]  ;;  %v1935_v4 = vld [vmem:[#allocation2 + $0xa0] sm:$0xff]  ;;  %v11048_v29 = vld [vmem:[%s12874_s7 + $0x78] sm:$0xff] }
 0x1ab   :  { %v1582_v2 = vpop.permute.xlu1 %1581  ;;  %v2055_v58 = vmul.f32 %v2015_v24, %v1935_v4  ;;  %v11028_v45 = vpop.f32.mrf.mxu0 }
 0x1ac   :  { %v1625_v12 = vmul.f32 %v1582_v2, %v1505_v63  ;;  %9860 = vset.pattern.permute.xlu1 %v12911_v50  ;;  %3742 = vperm.xlu0 %9897, %v11024_v17   ;;  %v2054_v50 = vmul.f32 %v2011_v32, %v1934_v26  ;;  %12944 = vst [vmem:[#allocation26_spill] sm:$0xff] %v11028_v45  ;;  %v1506_v32 = vld [vmem:[#allocation2 + $0x9f] sm:$0xff]  ;;  %v11043_v4 = vpop.permute.xlu0 %2371 }
 0x1ad   :  { %2848 = vperm.xlu1 %9860, %v10946_v39  }
 0x1ae   :  { %9224 = vmatmul.mubr.msk.f32.gmra.mxu1 %vm69_vm0, %v1625_v12  ;;  %v9137_v63 = vpop.f32.mrf.mxu1  ;;  %v11034_v12 = vld [vmem:[%s12874_s7 + $0xb0] sm:$0xff] }
 0x1af   :  { %v986_v25 = vadd.f32 %v9137_v63, %v10783_v21  ;;  %v12945_v21 = vmov 1   ;;  %v12946_v63 = vmov 6  }
 0x1b0   :  { %v2007_v2 = vpop.permute.xlu1 %2006  ;;  %3746 = vperm.xlu0 %9897, %v11034_v12  }
 0x1b1   :  { %v2053_v23 = vmul.f32 %v2007_v2, %v1933_v35  ;;  %9861 = vset.pattern.permute.xlu1 %v12943_v49  ;;  %v1508_v2 = vld [vmem:[#allocation2 + $0xaf] sm:$0xff] }
 0x1b2   :  { %2427 = vperm.xlu1 %9861, %v10931_v28  }
 0x1b3   :  { %9261 = vmatprep.mubr.msk.f32.mxu0 %vm69_vm0, %v2053_v23  ;;  %v1507_v23 = vld [vmem:[#allocation2 + $0xa7] sm:$0xff] }
 0x1b4   :  { %v9175_v26 = vpop.f32.mrf.mxu0  ;;  %9262 = vmatmul.mubr.msk.f32.gmra.mxu0 %vm69_vm0, %v2054_v50  ;;  %9902 = vset.pattern.permute.xlu0 %v12945_v21  ;;  %v1628_v50 = vmul.f32 %v10725_v42, %v1508_v2 }
 0x1b5   :  { %v11040_v24 = vadd.f32 %v9175_v26, %v986_v25  ;;  %v1586_v35 = vpop.permute.xlu1 %1585  ;;  %9264 = vmatprep.mubr.msk.f32.mxu0 %vm69_vm0, %v2055_v58  ;;  %v11055_v26 = vpop.f32.mrf.mxu1 }
 0x1b6   :  { %v1626_v45 = vmul.f32 %v1586_v35, %v1506_v32  ;;  %2431 = vperm.xlu1 %9861, %v11048_v29   ;;  %12947 = vst [vmem:[#allocation27_spill] sm:$0xff] %v11055_v26  ;;  %v11058_v32 = vpop.permute.xlu0 %2387  ;;  %v1936_v35 = vld [vmem:[#allocation2 + $0xa8] sm:$0xff] }
 0x1b8   :  { %9226 = vmatprep.mubr.msk.f32.mxu1 %vm69_vm0, %v1626_v45  ;;  %v11062_v45 = vpop.f32.mrf.mxu0 }
 0x1b9   :  { %v1590_v25 = vpop.permute.xlu1 %1589  ;;  %12948 = vst [vmem:[#allocation28_spill] sm:$0xff] %v11062_v45  ;;  %v1938_v45 = vld [vmem:[#allocation2 + $0xb8] sm:$0xff] }
 0x1ba   :  { %v1627_v58 = vmul.f32 %v1590_v25, %v1507_v23  ;;  %9862 = vset.pattern.permute.xlu1 %v12946_v63  ;;  %v1509_v25 = vld [vmem:[#allocation2 + $0xb7] sm:$0xff]  ;;  %v11068_v26 = vpop.permute.xlu0 %2403 }
 0x1bb   :  { %2860 = vperm.xlu1 %9862, %v11048_v29  }
 0x1bc   :  { %9227 = vmatmul.mubr.msk.f32.gmra.mxu1 %vm69_vm0, %v1627_v58  ;;  %v9140_v36 = vpop.f32.mrf.mxu1 }
 0x1bd   :  { %9229 = vmatprep.mubr.msk.f32.mxu1 %vm69_vm0, %v1628_v50  ;;  %v996_v2 = vadd.f32 %v9140_v36, %v10800_v31  ;;  %v1939_v36 = vld [vmem:[#allocation2 + $0xc0] sm:$0xff]  ;;  %v1937_v31 = vld [vmem:[#allocation2 + $0xb0] sm:$0xff] }
 0x1be   :  { %v2019_v34 = vpop.permute.xlu1 %2018 }
 0x1bf   :  { %v2056_v42 = vmul.f32 %v2019_v34, %v1936_v35  ;;  %9863 = vset.pattern.permute.xlu1 %v12943_v49  ;;  %v11074_v34 = vpop.f32.mrf.mxu1  ;;  %v11077_v35 = vpop.permute.xlu0 %2419 }
 0x1c0   :  { %2439 = vperm.xlu1 %9863, %v10980_v52   ;;  %12949 = vst [vmem:[#allocation29_spill] sm:$0xff] %v11074_v34 }
 0x1c1   :  { %v9178_v23 = vpop.f32.mrf.mxu0  ;;  %9265 = vmatmul.mubr.msk.f32.gmra.mxu0 %vm69_vm0, %v2056_v42  ;;  %v2058_v42 = vmul.f32 %v11005_v13, %v1938_v45 }
 0x1c2   :  { %v11070_v58 = vadd.f32 %v9178_v23, %v996_v2  ;;  %v2059_v23 = vmul.f32 %v2031_v53, %v1939_v36  ;;  %v2346_v53 = vld [vmem:[#allocation2 + $0x11] sm:$0xff] }
 0x1c3   :  { %v1598_v51 = vpop.permute.xlu1 %1597  ;;  %v11093_v36 = vld [vmem:[%s12874_s7 + $0x98] sm:$0xff] }
 0x1c4   :  { %v1629_v50 = vmul.f32 %v1598_v51, %v1509_v25  ;;  %9864 = vset.pattern.permute.xlu1 %v12946_v63  ;;  %v11081_v51 = vpop.f32.mrf.mxu0 }
 0x1c5   :  { %2864 = vperm.xlu1 %9864, %v10960_v14   ;;  %12950 = vst [vmem:[#allocation30_spill] sm:$0xff] %v11081_v51 }
 0x1c6   :  { %9230 = vmatmul.mubr.msk.f32.gmra.mxu1 %vm69_vm0, %v1629_v50  ;;  %v9143_v48 = vpop.f32.mrf.mxu1  ;;  %v1510_v50 = vld [vmem:[#allocation2 + $0xbf] sm:$0xff] }
 0x1c7   :  { %v1006_v25 = vadd.f32 %v9143_v48, %v10807_v44  ;;  %v11096_v48 = vpop.permute.xlu0 %2435  ;;  %v1511_v44 = vld [vmem:[#allocation2 + $0xc7] sm:$0xff] }
 0x1c8   :  { %v2023_v2 = vpop.permute.xlu1 %2022 }
 0x1c9   :  { %v2057_v40 = vmul.f32 %v2023_v2, %v1937_v31  ;;  %9865 = vset.pattern.permute.xlu1 %v12943_v49  ;;  %v1940_v2 = vld [vmem:[#allocation2 + $0xc8] sm:$0xff] }
 0x1ca   :  { %2443 = vperm.xlu1 %9865, %v11013_v3  }
 0x1cb   :  { %9267 = vmatprep.mubr.msk.f32.mxu0 %vm69_vm0, %v2057_v40  ;;  %v2466_v40 = vmul.f32 %v11043_v4, %v2346_v53 }
 0x1cc   :  { %v9181_v34 = vpop.f32.mrf.mxu0  ;;  %9268 = vmatmul.mubr.msk.f32.gmra.mxu0 %vm69_vm0, %v2058_v42  ;;  %v11101_v42 = vpop.f32.mrf.mxu1 }
 0x1cd   :  { %v11087_v62 = vadd.f32 %v9181_v34, %v1006_v25  ;;  %v1602_v13 = vpop.permute.xlu1 %1601  ;;  %9270 = vmatprep.mubr.msk.f32.mxu0 %vm69_vm0, %v2059_v23  ;;  %12951 = vst [vmem:[#allocation31_spill] sm:$0xff] %v11101_v42  ;;  %v11105_v23 = vpop.permute.xlu0 %2451 }
 0x1ce   :  { %v1630_v45 = vmul.f32 %v1602_v13, %v1510_v50  ;;  %2447 = vperm.xlu1 %9865, %v11093_v36   ;;  %v11108_v13 = vpop.f32.mrf.mxu0 }
 0x1cf   :  { %12952 = vst [vmem:[#allocation32_spill] sm:$0xff] %v11108_v13 }
 0x1d0   :  { %9232 = vmatprep.mubr.msk.f32.mxu1 %vm69_vm0, %v1630_v45 }
 0x1d1   :  { %v1606_v34 = vpop.permute.xlu1 %1605 }
 0x1d2   :  { %v1631_v31 = vmul.f32 %v1606_v34, %v1511_v44  ;;  %9866 = vset.pattern.permute.xlu1 %v12946_v63  ;;  %v2347_v44 = vld [vmem:[#allocation2 + $0x19] sm:$0xff] }
 0x1d3   :  { %2876 = vperm.xlu1 %9866, %v11093_v36  }
 0x1d4   :  { %9233 = vmatmul.mubr.msk.f32.gmra.mxu1 %vm69_vm0, %v1631_v31  ;;  %v9146_v25 = vpop.f32.mrf.mxu1  ;;  %v2805_v31 = vpop.permute.xlu0 %2804 }
 0x1d5   :  { %9275 = vmatprep.mubr.msk.f32.mxu1 %vm69_vm0, %v2466_v40  ;;  %v1016_v53 = vadd.f32 %v9146_v25, %v10835_v47  ;;  %v2776_v40 = vld [vmem:[#allocation2 + $0x23] sm:$0xff]  ;;  %v2775_v47 = vld [vmem:[#allocation2 + $0x1b] sm:$0xff] }
 0x1d6   :  { %v2035_v50 = vpop.permute.xlu1 %2034  ;;  %v2896_v10 = vmul.f32 %v2805_v31, %v2776_v40  ;;  %v2350_v31 = vld [vmem:[#allocation2 + $0x31] sm:$0xff] }
 0x1d7   :  { %v2060_v4 = vmul.f32 %v2035_v50, %v1940_v2  ;;  %9868 = vset.pattern.permute.xlu1 %v12943_v49  ;;  %v11118_v2 = vpop.f32.mrf.mxu1  ;;  %v2777_v50 = vld [vmem:[#allocation2 + $0x2b] sm:$0xff] }
 0x1d8   :  { %2455 = vperm.xlu1 %9868, %v11024_v17   ;;  %12953 = vst [vmem:[#allocation33_spill] sm:$0xff] %v11118_v2  ;;  %v2809_v25 = vpop.permute.xlu0 %2808  ;;  %v2348_v2 = vld [vmem:[#allocation2 + $0x21] sm:$0xff] }
 0x1d9   :  { %v9184_v45 = vpop.f32.mrf.mxu0  ;;  %9271 = vmatmul.mubr.msk.f32.gmra.mxu0 %vm69_vm0, %v2060_v4 }
 0x1da   :  { %v11114_v34 = vadd.f32 %v9184_v45, %v1016_v53  ;;  %v2897_v45 = vmul.f32 %v2809_v25, %v2777_v50 }
 0x1db   :  { %v2376_v42 = vpop.permute.xlu1 %2375 }
 0x1dc   :  { %v2467_v51 = vmul.f32 %v2376_v42, %v2347_v44  ;;  %9869 = vset.pattern.permute.xlu1 %v12946_v63  ;;  %v11122_v42 = vpop.f32.mrf.mxu0 }
 0x1dd   :  { %2880 = vperm.xlu1 %9869, %v10996_v15   ;;  %12954 = vst [vmem:[#allocation34_spill] sm:$0xff] %v11122_v42 }
 0x1de   :  { %9276 = vmatmul.mubr.msk.f32.vlgmr.msra.gmra.mxu1 %vm69_vm0, %v2467_v51  ;;  %v9149_v13 = vpop.f32.mrf.mxu1 }
 0x1df   :  { %v1026_v44 = vadd.f32 %v9149_v13, %v10858_v16  ;;  %v2470_v16 = vmul.f32 %v11058_v32, %v2350_v31  ;;  %v2351_v31 = vld [vmem:[#allocation2 + $0x39] sm:$0xff] }
 0x1e0   :  { %v2801_v4 = vpop.permute.xlu1 %2800  ;;  %v11135_v50 = vpop.f32.mrf.mxu1 }
 0x1e1   :  { %v2895_v53 = vmul.f32 %v2801_v4, %v2775_v47  ;;  %9870 = vset.pattern.permute.xlu1 %v12943_v49  ;;  %v2349_v47 = vld [vmem:[#allocation2 + $0x29] sm:$0xff]  ;;  %12955 = vst [vmem:[#allocation35_spill] sm:$0xff] %v11135_v50  ;;  %v12956_v4 = vmov 0.0  }
 0x1e2   :  { %2459 = vperm.xlu1 %9870, %v11034_v12   ;;  %100 = vst.msk [vmem:[#allocation3 + $0x8] sm:$0xff] %vm98_vm2, %v12956_v4  ;;  %99 = vst.msk [vmem:[#allocation3] sm:$0xff] %vm98_vm2, %v12956_v4 }
 0x1e3   :  { %9313 = vmatprep.mubr.msk.f32.mxu0 %vm69_vm0, %v2895_v53  ;;  %101 = vst.msk [vmem:[#allocation3 + $0x10] sm:$0xff] %vm98_vm2, %v12956_v4  ;;  %102 = vst.msk [vmem:[#allocation3 + $0x18] sm:$0xff] %vm98_vm2, %v12956_v4 }
 0x1e4   :  { %v9187_v51 = vpop.f32.mrf.mxu0  ;;  %9314 = vmatmul.mubr.msk.f32.vlgmr.msra.gmra.mxu0 %vm69_vm0, %v2896_v10  ;;  %v3348_v10 = vld [vmem:[%s12927_s5 + $0xe] sm:$0x3]  ;;  %103 = vst.msk [vmem:[#allocation3 + $0x20] sm:$0xff] %vm98_vm2, %v12956_v4  ;;  %104 = vst.msk [vmem:[#allocation3 + $0x28] sm:$0xff] %vm98_vm2, %v12956_v4 }
 0x1e5   :  { %v11128_v55 = vadd.f32 %v9187_v51, %v1026_v44  ;;  %v2380_v18 = vpop.permute.xlu1 %2379  ;;  %9316 = vmatprep.mubr.msk.f32.mxu0 %vm69_vm0, %v2897_v45  ;;  %9349 = vmatprep.subr.msk.mxu1 %vm610_vm1, %v3348_v10  ;;  %v12958_v45 = vmov 7   ;;  %105 = vst.msk [vmem:[#allocation3 + $0x30] sm:$0xff] %vm98_vm2, %v12956_v4  ;;  %106 = vst.msk [vmem:[#allocation3 + $0x38] sm:$0xff] %vm98_vm2, %v12956_v4 }
 0x1e6   :  { %v2468_v40 = vmul.f32 %v2380_v18, %v2348_v2  ;;  %2463 = vperm.xlu1 %9870, %v10760_v20   ;;  %v2778_v18 = vld [vmem:[#allocation2 + $0x33] sm:$0xff]  ;;  %9350 = vmatpush3.msk.msra.mxu1 %vm610_vm1, %v3348_v10  ;;  %v11146_v53 = vpop.f32.mrf.mxu0  ;;  %107 = vst.msk [vmem:[#allocation3 + $0x40] sm:$0xff] %vm98_vm2, %v12956_v4  ;;  %108 = vst.msk [vmem:[#allocation3 + $0x48] sm:$0xff] %vm98_vm2, %v12956_v4 }
 0x1e7   :  { %4340 = vmatprep.subr.mxu1 %v12956_v4  ;;  %12957 = vst [vmem:[#allocation36_spill] sm:$0xff] %v11146_v53  ;;  %109 = vst.msk [vmem:[#allocation3 + $0x50] sm:$0xff] %vm98_vm2, %v12956_v4 }
 0x1e8   :  { %9278 = vmatprep.mubr.msk.f32.mxu1 %vm69_vm0, %v2468_v40  ;;  %v3777_v40 = vld [vmem:[%s12927_s5 + $0x10] sm:$0x3]  ;;  %110 = vst.msk [vmem:[#allocation3 + $0x58] sm:$0xff] %vm98_vm2, %v12956_v4  ;;  %111 = vst.msk [vmem:[#allocation3 + $0x60] sm:$0xff] %vm98_vm2, %v12956_v4 }
 0x1e9   :  { %v2384_v13 = vpop.permute.xlu1 %2383  ;;  %9387 = vmatprep.subr.msk.mxu0 %vm610_vm1, %v3777_v40  ;;  %112 = vst.msk [vmem:[#allocation3 + $0x68] sm:$0xff] %vm98_vm2, %v12956_v4  ;;  %113 = vst.msk [vmem:[#allocation3 + $0x70] sm:$0xff] %vm98_vm2, %v12956_v4 }
 0x1ea   :  { %v2469_v25 = vmul.f32 %v2384_v13, %v2349_v47  ;;  %9871 = vset.pattern.permute.xlu1 %v12946_v63  ;;  %9388 = vmatpush3.msk.msra.mxu0 %vm610_vm1, %v3777_v40  ;;  %114 = vst.msk [vmem:[#allocation3 + $0x78] sm:$0xff] %vm98_vm2, %v12956_v4  ;;  %115 = vst.msk [vmem:[#allocation3 + $0x80] sm:$0xff] %vm98_vm2, %v12956_v4 }
 0x1eb   :  { %2892 = vperm.xlu1 %9871, %v10760_v20   ;;  %116 = vst.msk [vmem:[#allocation3 + $0x88] sm:$0xff] %vm98_vm2, %v12956_v4  ;;  %117 = vst.msk [vmem:[#allocation3 + $0x90] sm:$0xff] %vm98_vm2, %v12956_v4 }
 0x1ec   :  { %9279 = vmatmul.mubr.msk.f32.gmra.mxu1 %vm69_vm0, %v2469_v25  ;;  %v9152_v2 = vpop.f32.mrf.mxu1  ;;  %118 = vst.msk [vmem:[#allocation3 + $0x98] sm:$0xff] %vm98_vm2, %v12956_v4  ;;  %119 = vst.msk [vmem:[#allocation3 + $0xa0] sm:$0xff] %vm98_vm2, %v12956_v4 }
 0x1ed   :  { %9281 = vmatprep.mubr.msk.f32.mxu1 %vm69_vm0, %v2470_v16  ;;  %v1036_v44 = vadd.f32 %v9152_v2, %v10871_v56  ;;  %v2821_v16 = vpop.permute.xlu0 %2820  ;;  %v12959_v56 = vmov 8   ;;  %120 = vst.msk [vmem:[#allocation3 + $0xa8] sm:$0xff] %vm98_vm2, %v12956_v4  ;;  %121 = vst.msk [vmem:[#allocation3 + $0xb0] sm:$0xff] %vm98_vm2, %v12956_v4 }
 0x1ee   :  { %v2813_v32 = vpop.permute.xlu1 %2812  ;;  %v11161_v10 = vpop.f32.mrf.mxu1  ;;  %122 = vst.msk [vmem:[#allocation3 + $0xb8] sm:$0xff] %vm98_vm2, %v12956_v4  ;;  %123 = vst.msk [vmem:[#allocation3 + $0xc0] sm:$0xff] %vm98_vm2, %v12956_v4 }
 0x1ef   :  { %v2898_v20 = vmul.f32 %v2813_v32, %v2778_v18  ;;  %9873 = vset.pattern.permute.xlu1 %v12958_v45  ;;  %v2779_v18 = vld [vmem:[#allocation2 + $0x3b] sm:$0xff]  ;;  %v2781_v32 = vld [vmem:[#allocation2 + $0x4b] sm:$0xff]  ;;  %124 = vst.msk [vmem:[#allocation3 + $0xc8] sm:$0xff] %vm98_vm2, %v12956_v4  ;;  %125 = vst.msk [vmem:[#allocation4] sm:$0xff] %vm98_vm2, %v12956_v4 }
 0x1f0   :  { %3233 = vperm.xlu1 %9873, %v10780_v19   ;;  %v2780_v19 = vld [vmem:[#allocation2 + $0x43] sm:$0xff]  ;;  %126 = vst.msk [vmem:[#allocation4 + $0x8] sm:$0xff] %vm98_vm2, %v12956_v4  ;;  %127 = vst.msk [vmem:[#allocation4 + $0x10] sm:$0xff] %vm98_vm2, %v12956_v4 }
 0x1f1   :  { %v9190_v51 = vpop.f32.mrf.mxu0  ;;  %9317 = vmatmul.mubr.msk.f32.gmra.mxu0 %vm69_vm0, %v2898_v20  ;;  %v2825_v2 = vpop.permute.xlu0 %2824  ;;  %128 = vst.msk [vmem:[#allocation4 + $0x18] sm:$0xff] %vm98_vm2, %v12956_v4  ;;  %129 = vst.msk [vmem:[#allocation4 + $0x20] sm:$0xff] %vm98_vm2, %v12956_v4 }
 0x1f2   :  { %v11155_v47 = vadd.f32 %v9190_v51, %v1036_v44  ;;  %v2900_v51 = vmul.f32 %v2821_v16, %v2780_v19  ;;  %v2901_v40 = vmul.f32 %v2825_v2, %v2781_v32  ;;  %v2354_v16 = vld [vmem:[#allocation2 + $0x51] sm:$0xff]  ;;  %130 = vst.msk [vmem:[#allocation4 + $0x28] sm:$0xff] %vm98_vm2, %v12956_v4  ;;  %131 = vst.msk [vmem:[#allocation4 + $0x30] sm:$0xff] %vm98_vm2, %v12956_v4 }
 0x1f3   :  { %v2392_v13 = vpop.permute.xlu1 %2391  ;;  %v2782_v32 = vld [vmem:[#allocation2 + $0x53] sm:$0xff]  ;;  %132 = vst.msk [vmem:[#allocation4 + $0x38] sm:$0xff] %vm98_vm2, %v12956_v4 }
 0x1f4   :  { %v2471_v25 = vmul.f32 %v2392_v13, %v2351_v31  ;;  %9874 = vset.pattern.permute.xlu1 %v12959_v56  ;;  %v11165_v31 = vpop.f32.mrf.mxu0  ;;  %v2352_v13 = vld [vmem:[#allocation2 + $0x41] sm:$0xff] }
 0x1f5   :  { %3658 = vperm.xlu1 %9874, %v10797_v41  }
 0x1f6   :  { %9282 = vmatmul.mubr.msk.f32.gmra.mxu1 %vm69_vm0, %v2471_v25  ;;  %v9155_v20 = vpop.f32.mrf.mxu1 }
 0x1f7   :  { %v1046_v41 = vadd.f32 %v9155_v20, %v10900_v37 }
 0x1f8   :  { %v2817_v44 = vpop.permute.xlu1 %2816  ;;  %v11178_v2 = vpop.f32.mrf.mxu1 }
 0x1f9   :  { %v2899_v53 = vmul.f32 %v2817_v44, %v2779_v18  ;;  %9875 = vset.pattern.permute.xlu1 %v12958_v45  ;;  %v2353_v18 = vld [vmem:[#allocation2 + $0x49] sm:$0xff] }
 0x1fa   :  { %3237 = vperm.xlu1 %9875, %v10813_v57   ;;  %v2474_v57 = vmul.f32 %v11068_v26, %v2354_v16 }
 0x1fb   :  { %9319 = vmatprep.mubr.msk.f32.mxu0 %vm69_vm0, %v2899_v53 }
 0x1fc   :  { %v9193_v25 = vpop.f32.mrf.mxu0  ;;  %9320 = vmatmul.mubr.msk.f32.gmra.mxu0 %vm69_vm0, %v2900_v51 }
 0x1fd   :  { %v11171_v50 = vadd.f32 %v9193_v25, %v1046_v41  ;;  %v2396_v42 = vpop.permute.xlu1 %2395  ;;  %9322 = vmatprep.mubr.msk.f32.mxu0 %vm69_vm0, %v2901_v40 }
 0x1fe   :  { %v2472_v19 = vmul.f32 %v2396_v42, %v2352_v13  ;;  %3241 = vperm.xlu1 %9875, %v10830_v7   ;;  %v11183_v44 = vpop.f32.mrf.mxu0  ;;  %v2837_v13 = vpop.permute.xlu0 %2836 }
 0x200   :  { %9284 = vmatprep.mubr.msk.f32.mxu1 %vm69_vm0, %v2472_v19 }
 0x201   :  { %v2400_v37 = vpop.permute.xlu1 %2399 }
 0x202   :  { %v2473_v53 = vmul.f32 %v2400_v37, %v2353_v18  ;;  %9876 = vset.pattern.permute.xlu1 %v12959_v56  ;;  %v2784_v18 = vld [vmem:[#allocation2 + $0x63] sm:$0xff]  ;;  %v2785_v37 = vld [vmem:[#allocation2 + $0x6b] sm:$0xff] }
 0x203   :  { %3670 = vperm.xlu1 %9876, %v10830_v7   ;;  %v2355_v7 = vld [vmem:[#allocation2 + $0x59] sm:$0xff] }
 0x204   :  { %9285 = vmatmul.mubr.msk.f32.gmra.mxu1 %vm69_vm0, %v2473_v53  ;;  %v9158_v20 = vpop.f32.mrf.mxu1 }
 0x205   :  { %9287 = vmatprep.mubr.msk.f32.mxu1 %vm69_vm0, %v2474_v57  ;;  %v1056_v26 = vadd.f32 %v9158_v20, %v10925_v43  ;;  %v2841_v43 = vpop.permute.xlu0 %2840  ;;  %v2904_v20 = vmul.f32 %v2837_v13, %v2784_v18 }
 0x206   :  { %v2829_v42 = vpop.permute.xlu1 %2828  ;;  %v11191_v16 = vpop.f32.mrf.mxu1 }
 0x207   :  { %v2902_v51 = vmul.f32 %v2829_v42, %v2782_v32  ;;  %9877 = vset.pattern.permute.xlu1 %v12958_v45 }
 0x208   :  { %3249 = vperm.xlu1 %9877, %v10855_v11   ;;  %v2783_v11 = vld [vmem:[#allocation2 + $0x5b] sm:$0xff] }
 0x209   :  { %v9196_v40 = vpop.f32.mrf.mxu0  ;;  %9323 = vmatmul.mubr.msk.f32.gmra.mxu0 %vm69_vm0, %v2902_v51  ;;  %v2905_v51 = vmul.f32 %v2841_v43, %v2785_v37  ;;  %v2786_v37 = vld [vmem:[#allocation2 + $0x73] sm:$0xff] }
 0x20a   :  { %v11189_v41 = vadd.f32 %v9196_v40, %v1056_v26 }
 0x20b   :  { %v2408_v25 = vpop.permute.xlu1 %2407  ;;  %v11198_v26 = vpop.f32.mrf.mxu0 }
 0x20c   :  { %v2475_v19 = vmul.f32 %v2408_v25, %v2355_v7  ;;  %9878 = vset.pattern.permute.xlu1 %v12959_v56 }
 0x20d   :  { %3674 = vperm.xlu1 %9878, %v10824_v59   ;;  %v2356_v59 = vld [vmem:[#allocation2 + $0x61] sm:$0xff] }
 0x20e   :  { %v9201_v57 = vpop.f32.mrf.mxu1  ;;  %9288 = vmatmul.mubr.msk.f32.gmra.mxu1 %vm69_vm0, %v2475_v19  ;;  %v2357_v19 = vld [vmem:[#allocation2 + $0x69] sm:$0xff] }
 0x20f   :  { %v1894_v53 = vadd.f32 %v9201_v57, %v10950_v33  ;;  %v2358_v33 = vld [vmem:[#allocation2 + $0x71] sm:$0xff] }
 0x210   :  { %v2833_v32 = vpop.permute.xlu1 %2832  ;;  %v11209_v57 = vpop.f32.mrf.mxu1 }
 0x211   :  { %v2903_v42 = vmul.f32 %v2833_v32, %v2783_v11  ;;  %9879 = vset.pattern.permute.xlu1 %v12958_v45 }
 0x212   :  { %3253 = vperm.xlu1 %9879, %v10877_v46   ;;  %v2478_v46 = vmul.f32 %v11077_v35, %v2358_v33  ;;  %v2788_v33 = vld [vmem:[#allocation2 + $0x83] sm:$0xff] }
 0x213   :  { %9325 = vmatprep.mubr.msk.f32.mxu0 %vm69_vm0, %v2903_v42 }
 0x214   :  { %v9239_v40 = vpop.f32.mrf.mxu0  ;;  %9326 = vmatmul.mubr.msk.f32.gmra.mxu0 %vm69_vm0, %v2904_v20 }
 0x215   :  { %v11203_v7 = vadd.f32 %v9239_v40, %v1894_v53  ;;  %v2412_v25 = vpop.permute.xlu1 %2411  ;;  %9328 = vmatprep.mubr.msk.f32.mxu0 %vm69_vm0, %v2905_v51 }
 0x216   :  { %v2476_v13 = vmul.f32 %v2412_v25, %v2356_v59  ;;  %3257 = vperm.xlu1 %9879, %v10889_v8   ;;  %v11216_v20 = vpop.f32.mrf.mxu0  ;;  %v2853_v59 = vpop.permute.xlu0 %2852 }
 0x218   :  { %9290 = vmatprep.mubr.msk.f32.mxu1 %vm69_vm0, %v2476_v13 }
 0x219   :  { %v2416_v18 = vpop.permute.xlu1 %2415 }
 0x21a   :  { %v2477_v11 = vmul.f32 %v2416_v18, %v2357_v19  ;;  %9880 = vset.pattern.permute.xlu1 %v12959_v56  ;;  %v2857_v19 = vpop.permute.xlu0 %2856 }
 0x21b   :  { %3686 = vperm.xlu1 %9880, %v10889_v8   ;;  %v2359_v8 = vld [vmem:[#allocation2 + $0x79] sm:$0xff] }
 0x21c   :  { %v9204_v43 = vpop.f32.mrf.mxu1  ;;  %9291 = vmatmul.mubr.msk.f32.gmra.mxu1 %vm69_vm0, %v2477_v11 }
 0x21d   :  { %v1896_v53 = vadd.f32 %v9204_v43, %v10964_v27  ;;  %9293 = vmatprep.mubr.msk.f32.mxu1 %vm69_vm0, %v2478_v46  ;;  %v2789_v46 = vld [vmem:[#allocation2 + $0x8b] sm:$0xff]  ;;  %v2908_v43 = vmul.f32 %v2853_v59, %v2788_v33 }
 0x21e   :  { %v2845_v32 = vpop.permute.xlu1 %2844  ;;  %v11223_v25 = vpop.f32.mrf.mxu1 }
 0x21f   :  { %v2906_v35 = vmul.f32 %v2845_v32, %v2786_v37  ;;  %9882 = vset.pattern.permute.xlu1 %v12958_v45 }
 0x220   :  { %3265 = vperm.xlu1 %9882, %v10895_v0   ;;  %v2787_v0 = vld [vmem:[#allocation2 + $0x7b] sm:$0xff] }
 0x221   :  { %v9242_v42 = vpop.f32.mrf.mxu0  ;;  %9329 = vmatmul.mubr.msk.f32.gmra.mxu0 %vm69_vm0, %v2906_v35 }
 0x222   :  { %v11221_v51 = vadd.f32 %v9242_v42, %v1896_v53  ;;  %v2909_v53 = vmul.f32 %v2857_v19, %v2789_v46  ;;  %v2790_v19 = vld [vmem:[#allocation2 + $0x93] sm:$0xff] }
 0x223   :  { %v2424_v40 = vpop.permute.xlu1 %2423  ;;  %v11230_v32 = vpop.f32.mrf.mxu0 }
 0x224   :  { %v2479_v27 = vmul.f32 %v2424_v40, %v2359_v8  ;;  %9883 = vset.pattern.permute.xlu1 %v12959_v56  ;;  %v2361_v40 = vld [vmem:[#allocation2 + $0x89] sm:$0xff] }
 0x225   :  { %3690 = vperm.xlu1 %9883, %v10840_v9   ;;  %v2360_v9 = vld [vmem:[#allocation2 + $0x81] sm:$0xff] }
 0x226   :  { %v9207_v13 = vpop.f32.mrf.mxu1  ;;  %9294 = vmatmul.mubr.msk.f32.gmra.mxu1 %vm69_vm0, %v2479_v27 }
 0x227   :  { %v1898_v18 = vadd.f32 %v9207_v13, %v10984_v6  ;;  %v2362_v6 = vld [vmem:[#allocation2 + $0x91] sm:$0xff] }
 0x228   :  { %v2849_v11 = vpop.permute.xlu1 %2848  ;;  %v11241_v33 = vpop.f32.mrf.mxu1 }
 0x229   :  { %v2907_v37 = vmul.f32 %v2849_v11, %v2787_v0  ;;  %9884 = vset.pattern.permute.xlu1 %v12958_v45 }
 0x22a   :  { %3269 = vperm.xlu1 %9884, %v10908_v22   ;;  %v2482_v22 = vmul.f32 %v11096_v48, %v2362_v6 }
 0x22b   :  { %9331 = vmatprep.mubr.msk.f32.mxu0 %vm69_vm0, %v2907_v37 }
 0x22c   :  { %v9245_v35 = vpop.f32.mrf.mxu0  ;;  %9332 = vmatmul.mubr.msk.f32.gmra.mxu0 %vm69_vm0, %v2908_v43 }
 0x22d   :  { %v11235_v42 = vadd.f32 %v9245_v35, %v1898_v18  ;;  %v2428_v8 = vpop.permute.xlu1 %2427  ;;  %9334 = vmatprep.mubr.msk.f32.mxu0 %vm69_vm0, %v2909_v53  ;;  %v2869_v53 = vpop.permute.xlu0 %2868 }
 0x22e   :  { %v2480_v59 = vmul.f32 %v2428_v8, %v2360_v9  ;;  %3273 = vperm.xlu1 %9884, %v10970_v60   ;;  %v11248_v11 = vpop.f32.mrf.mxu0  ;;  %v2792_v8 = vld [vmem:[#allocation2 + $0xa3] sm:$0xff] }
 0x230   :  { %9296 = vmatprep.mubr.msk.f32.mxu1 %vm69_vm0, %v2480_v59 }
 0x231   :  { %v2432_v27 = vpop.permute.xlu1 %2431  ;;  %v2873_v59 = vpop.permute.xlu0 %2872 }
 0x232   :  { %v2481_v13 = vmul.f32 %v2432_v27, %v2361_v40  ;;  %9885 = vset.pattern.permute.xlu1 %v12959_v56  ;;  %v2793_v40 = vld [vmem:[#allocation2 + $0xab] sm:$0xff] }
 0x233   :  { %3702 = vperm.xlu1 %9885, %v10970_v60   ;;  %v2363_v60 = vld [vmem:[#allocation2 + $0x99] sm:$0xff] }
 0x234   :  { %v9210_v0 = vpop.f32.mrf.mxu1  ;;  %9297 = vmatmul.mubr.msk.f32.gmra.mxu1 %vm69_vm0, %v2481_v13  ;;  %v2912_v13 = vmul.f32 %v2869_v53, %v2792_v8  ;;  %v2365_v53 = vld [vmem:[#allocation2 + $0xa9] sm:$0xff] }
 0x235   :  { %v1900_v46 = vadd.f32 %v9210_v0, %v11008_v54  ;;  %9299 = vmatprep.mubr.msk.f32.mxu1 %vm69_vm0, %v2482_v22 }
 0x236   :  { %v2861_v18 = vpop.permute.xlu1 %2860  ;;  %v11255_v35 = vpop.f32.mrf.mxu1 }
 0x237   :  { %v2910_v48 = vmul.f32 %v2861_v18, %v2790_v19  ;;  %9886 = vset.pattern.permute.xlu1 %v12958_v45  ;;  %12960 = vst [vmem:[#allocation37_spill] sm:$0xff] %v11255_v35  ;;  %v2913_v19 = vmul.f32 %v2873_v59, %v2793_v40 }
 0x238   :  { %3281 = vperm.xlu1 %9886, %v10920_v38   ;;  %v2791_v38 = vld [vmem:[#allocation2 + $0x9b] sm:$0xff] }
 0x239   :  { %v9248_v43 = vpop.f32.mrf.mxu0  ;;  %9335 = vmatmul.mubr.msk.f32.gmra.mxu0 %vm69_vm0, %v2910_v48 }
 0x23a   :  { %v11253_v37 = vadd.f32 %v9248_v43, %v1900_v46 }
 0x23b   :  { %v2440_v9 = vpop.permute.xlu1 %2439  ;;  %v11262_v46 = vpop.f32.mrf.mxu0 }
 0x23c   :  { %v2483_v54 = vmul.f32 %v2440_v9, %v2363_v60  ;;  %9887 = vset.pattern.permute.xlu1 %v12959_v56  ;;  %12961 = vst [vmem:[#allocation38_spill] sm:$0xff] %v11262_v46 }
 0x23d   :  { %3706 = vperm.xlu1 %9887, %v10946_v39   ;;  %v2364_v39 = vld [vmem:[#allocation2 + $0xa1] sm:$0xff] }
 0x23e   :  { %v9213_v6 = vpop.f32.mrf.mxu1  ;;  %9300 = vmatmul.mubr.msk.f32.gmra.mxu1 %vm69_vm0, %v2483_v54 }
 0x23f   :  { %v1902_v22 = vadd.f32 %v9213_v6, %v11040_v24  ;;  %v2366_v24 = vld [vmem:[#allocation2 + $0xb1] sm:$0xff] }
 0x240   :  { %v2865_v27 = vpop.permute.xlu1 %2864  ;;  %v11273_v54 = vpop.f32.mrf.mxu1 }
 0x241   :  { %v2911_v0 = vmul.f32 %v2865_v27, %v2791_v38  ;;  %9888 = vset.pattern.permute.xlu1 %v12958_v45  ;;  %12962 = vst [vmem:[#allocation39_spill] sm:$0xff] %v11273_v54  ;;  %v2794_v38 = vld [vmem:[#allocation2 + $0xb3] sm:$0xff] }
 0x242   :  { %3285 = vperm.xlu1 %9888, %v10931_v28   ;;  %v2486_v28 = vmul.f32 %v11105_v23, %v2366_v24 }
 0x243   :  { %9337 = vmatprep.mubr.msk.f32.mxu0 %vm69_vm0, %v2911_v0 }
 0x244   :  { %v9251_v18 = vpop.f32.mrf.mxu0  ;;  %9338 = vmatmul.mubr.msk.f32.gmra.mxu0 %vm69_vm0, %v2912_v13 }
 0x245   :  { %v11267_v48 = vadd.f32 %v9251_v18, %v1902_v22  ;;  %v2444_v43 = vpop.permute.xlu1 %2443  ;;  %9340 = vmatprep.mubr.msk.f32.mxu0 %vm69_vm0, %v2913_v19  ;;  %v2885_v22 = vpop.permute.xlu0 %2884 }
 0x246   :  { %v2484_v60 = vmul.f32 %v2444_v43, %v2364_v39  ;;  %3289 = vperm.xlu1 %9888, %v11048_v29   ;;  %v11280_v27 = vpop.f32.mrf.mxu0  ;;  %v2796_v43 = vld [vmem:[#allocation2 + $0xc3] sm:$0xff] }
 0x247   :  { %12963 = vst [vmem:[#allocation40_spill] sm:$0xff] %v11280_v27  ;;  %v3650_v27 = vld [vmem:[#allocation2 + $0xa5] sm:$0xff] }
 0x248   :  { %9302 = vmatprep.mubr.msk.f32.mxu1 %vm69_vm0, %v2484_v60  ;;  %v2797_v60 = vld [vmem:[#allocation2 + $0xcb] sm:$0xff] }
 0x249   :  { %v2448_v9 = vpop.permute.xlu1 %2447  ;;  %v2889_v19 = vpop.permute.xlu0 %2888 }
 0x24a   :  { %v2485_v8 = vmul.f32 %v2448_v9, %v2365_v53  ;;  %9890 = vset.pattern.permute.xlu1 %v12959_v56  ;;  %v2916_v9 = vmul.f32 %v2885_v22, %v2796_v43 }
 0x24b   :  { %3718 = vperm.xlu1 %9890, %v11048_v29   ;;  %v2367_v29 = vld [vmem:[#allocation2 + $0xb9] sm:$0xff] }
 0x24c   :  { %v9216_v6 = vpop.f32.mrf.mxu1  ;;  %9303 = vmatmul.mubr.msk.f32.gmra.mxu1 %vm69_vm0, %v2485_v8 }
 0x24d   :  { %v1904_v59 = vadd.f32 %v9216_v6, %v11070_v58  ;;  %9305 = vmatprep.mubr.msk.f32.mxu1 %vm69_vm0, %v2486_v28  ;;  %v3230_v8 = vpop.permute.xlu0 %3229 }
 0x24e   :  { %v2877_v40 = vpop.permute.xlu1 %2876  ;;  %v11287_v58 = vpop.f32.mrf.mxu1 }
 0x24f   :  { %v2914_v23 = vmul.f32 %v2877_v40, %v2794_v38  ;;  %9891 = vset.pattern.permute.xlu1 %v12958_v45  ;;  %12964 = vst [vmem:[#allocation41_spill] sm:$0xff] %v11287_v58  ;;  %v2917_v38 = vmul.f32 %v2889_v19, %v2797_v60  ;;  %v2369_v19 = vld [vmem:[#allocation2 + $0xc9] sm:$0xff] }
 0x250   :  { %3297 = vperm.xlu1 %9891, %v10980_v52   ;;  %v2795_v52 = vld [vmem:[#allocation2 + $0xbb] sm:$0xff] }
 0x251   :  { %v9254_v13 = vpop.f32.mrf.mxu0  ;;  %9341 = vmatmul.mubr.msk.f32.gmra.mxu0 %vm69_vm0, %v2914_v23 }
 0x252   :  { %v11285_v0 = vadd.f32 %v9254_v13, %v1904_v59  ;;  %v3204_v13 = vld [vmem:[#allocation2 + $0x1c] sm:$0xff] }
 0x253   :  { %v2456_v39 = vpop.permute.xlu1 %2455  ;;  %v11294_v59 = vpop.f32.mrf.mxu0 }
 0x254   :  { %v2487_v18 = vmul.f32 %v2456_v39, %v2367_v29  ;;  %9892 = vset.pattern.permute.xlu1 %v12959_v56  ;;  %12965 = vst [vmem:[#allocation42_spill] sm:$0xff] %v11294_v59  ;;  %v3246_v29 = vpop.permute.xlu0 %3245  ;;  %v3324_v39 = vmul.f32 %v3230_v8, %v3204_v13 }
 0x255   :  { %3722 = vperm.xlu1 %9892, %v10960_v14   ;;  %v2368_v14 = vld [vmem:[#allocation2 + $0xc1] sm:$0xff] }
 0x256   :  { %v9219_v24 = vpop.f32.mrf.mxu1  ;;  %9306 = vmatmul.mubr.msk.f32.gmra.mxu1 %vm69_vm0, %v2487_v18 }
 0x257   :  { %v1906_v53 = vadd.f32 %v9219_v24, %v11087_v62 }
 0x258   :  { %v2881_v28 = vpop.permute.xlu1 %2880  ;;  %v11304_v18 = vpop.f32.mrf.mxu1 }
 0x259   :  { %v2915_v6 = vmul.f32 %v2881_v28, %v2795_v52  ;;  %9894 = vset.pattern.permute.xlu1 %v12958_v45  ;;  %12966 = vst [vmem:[#allocation43_spill] sm:$0xff] %v11304_v18  ;;  %v2798_v52 = vld [vmem:[#allocation2 + $0xd3] sm:$0xff]  ;;  %v11309_v60 = vpop.permute.xlu0 %3261 }
 0x25a   :  { %3301 = vperm.xlu1 %9894, %v11013_v3  }
 0x25b   :  { %9343 = vmatprep.mubr.msk.f32.mxu0 %vm69_vm0, %v2915_v6 }
 0x25c   :  { %v9257_v40 = vpop.f32.mrf.mxu0  ;;  %9344 = vmatmul.mubr.msk.f32.gmra.mxu0 %vm69_vm0, %v2916_v9 }
 0x25d   :  { %v11299_v23 = vadd.f32 %v9257_v40, %v1906_v53  ;;  %v2460_v62 = vpop.permute.xlu1 %2459  ;;  %9346 = vmatprep.mubr.msk.f32.mxu0 %vm69_vm0, %v2917_v38 }
 0x25e   :  { %v2488_v22 = vmul.f32 %v2460_v62, %v2368_v14  ;;  %3305 = vperm.xlu1 %9894, %v11093_v36   ;;  %v11313_v9 = vpop.f32.mrf.mxu0  ;;  %v3663_v14 = vpop.permute.xlu0 %3662 }
 0x25f   :  { %12967 = vst [vmem:[#allocation44_spill] sm:$0xff] %v11313_v9 }
 0x260   :  { %9308 = vmatprep.mubr.msk.f32.mxu1 %vm69_vm0, %v2488_v22  ;;  %v3634_v22 = vld [vmem:[#allocation2 + $0x25] sm:$0xff] }
 0x261   :  { %v2464_v3 = vpop.permute.xlu1 %2463 }
 0x262   :  { %v2489_v43 = vmul.f32 %v2464_v3, %v2369_v19  ;;  %9895 = vset.pattern.permute.xlu1 %v12959_v56  ;;  %v3667_v19 = vpop.permute.xlu0 %3666  ;;  %v3635_v3 = vld [vmem:[#allocation2 + $0x2d] sm:$0xff] }
 0x263   :  { %3734 = vperm.xlu1 %9895, %v11093_v36   ;;  %v3205_v36 = vld [vmem:[#allocation2 + $0x24] sm:$0xff] }
 0x264   :  { %v9222_v24 = vpop.f32.mrf.mxu1  ;;  %9309 = vmatmul.mubr.msk.f32.gmra.mxu1 %vm69_vm0, %v2489_v43 }
 0x265   :  { %v1908_v53 = vadd.f32 %v9222_v24, %v11114_v34  ;;  %9351 = vmatprep.mubr.msk.f32.mxu1 %vm69_vm0, %v3324_v39  ;;  %v3754_v24 = vmul.f32 %v3663_v14, %v3634_v22 }
 0x266   :  { %v2893_v28 = vpop.permute.xlu1 %2892  ;;  %v11320_v62 = vpop.f32.mrf.mxu1 }
 0x267   :  { %v2918_v8 = vmul.f32 %v2893_v28, %v2798_v52  ;;  %9898 = vset.pattern.permute.xlu1 %v12958_v45  ;;  %12968 = vst [vmem:[#allocation45_spill] sm:$0xff] %v11320_v62 }
 0x268   :  { %3313 = vperm.xlu1 %9898, %v11024_v17   ;;  %v3633_v17 = vld [vmem:[#allocation2 + $0x1d] sm:$0xff] }
 0x269   :  { %v9260_v6 = vpop.f32.mrf.mxu0  ;;  %9347 = vmatmul.mubr.msk.f32.gmra.mxu0 %vm69_vm0, %v2918_v8 }
 0x26a   :  { %v11318_v38 = vadd.f32 %v9260_v6, %v1908_v53  ;;  %v3755_v53 = vmul.f32 %v3667_v19, %v3635_v3  ;;  %v3636_v3 = vld [vmem:[#allocation2 + $0x35] sm:$0xff] }
 0x26b   :  { %v3234_v40 = vpop.permute.xlu1 %3233  ;;  %v11327_v28 = vpop.f32.mrf.mxu0 }
 0x26c   :  { %v3325_v34 = vmul.f32 %v3234_v40, %v3205_v36  ;;  %9899 = vset.pattern.permute.xlu1 %v12959_v56  ;;  %12969 = vst [vmem:[#allocation46_spill] sm:$0xff] %v11327_v28  ;;  %v10001_v40 = vld [vmem:[%s12874_s7 + $0xb8] sm:$0xff] }
 0x26d   :  { %3738 = vperm.xlu1 %9899, %v10996_v15   ;;  %v3206_v15 = vld [vmem:[#allocation2 + $0x2c] sm:$0xff] }
 0x26e   :  { %v9225_v13 = vpop.f32.mrf.mxu1  ;;  %9352 = vmatmul.mubr.msk.f32.vlgmr.msra.gmra.mxu1 %vm69_vm0, %v3325_v34  ;;  %v3207_v34 = vld [vmem:[#allocation2 + $0x34] sm:$0xff] }
 0x26f   :  { %v1910_v39 = vadd.f32 %v9225_v13, %v11128_v55  ;;  %v3208_v55 = vld [vmem:[#allocation2 + $0x3c] sm:$0xff] }
 0x270   :  { %v3659_v43 = vpop.permute.xlu1 %3658  ;;  %v11339_v13 = vpop.f32.mrf.mxu1 }
 0x271   :  { %v3753_v52 = vmul.f32 %v3659_v43, %v3633_v17  ;;  %9900 = vset.pattern.permute.xlu1 %v12958_v45  ;;  %12970 = vst [vmem:[#allocation47_spill] sm:$0xff] %v11339_v13 }
 0x272   :  { %3317 = vperm.xlu1 %9900, %v11034_v12   ;;  %v3328_v12 = vmul.f32 %v3246_v29, %v3208_v55 }
 0x273   :  { %9389 = vmatprep.mubr.msk.f32.mxu0 %vm69_vm0, %v3753_v52 }
 0x274   :  { %v9263_v8 = vpop.f32.mrf.mxu0  ;;  %9390 = vmatmul.mubr.msk.f32.vlgmr.msra.gmra.mxu0 %vm69_vm0, %v3754_v24 }
 0x275   :  { %v11332_v6 = vadd.f32 %v9263_v8, %v1910_v39  ;;  %v3238_v36 = vpop.permute.xlu1 %3237  ;;  %9392 = vmatprep.mubr.msk.f32.mxu0 %vm69_vm0, %v3755_v53  ;;  %v3209_v53 = vld [vmem:[#allocation2 + $0x44] sm:$0xff]  ;;  %v3679_v8 = vpop.permute.xlu0 %3678 }
 0x276   :  { %v3326_v14 = vmul.f32 %v3238_v36, %v3206_v15  ;;  %3321 = vperm.xlu1 %9900, %v10001_v40   ;;  %v11345_v24 = vpop.f32.mrf.mxu0 }
 0x277   :  { %12971 = vst [vmem:[#allocation48_spill] sm:$0xff] %v11345_v24 }
 0x278   :  { %9354 = vmatprep.mubr.msk.f32.mxu1 %vm69_vm0, %v3326_v14 }
 0x279   :  { %v3242_v22 = vpop.permute.xlu1 %3241 }
 0x27a   :  { %v3327_v17 = vmul.f32 %v3242_v22, %v3207_v34  ;;  %9901 = vset.pattern.permute.xlu1 %v12959_v56  ;;  %v3637_v34 = vld [vmem:[#allocation2 + $0x3d] sm:$0xff]  ;;  %v3639_v22 = vld [vmem:[#allocation2 + $0x4d] sm:$0xff] }
 0x27b   :  { %3750 = vperm.xlu1 %9901, %v10001_v40  }
 0x27c   :  { %v9228_v19 = vpop.f32.mrf.mxu1  ;;  %9355 = vmatmul.mubr.msk.f32.gmra.mxu1 %vm69_vm0, %v3327_v17 }
 0x27d   :  { %v1912_v39 = vadd.f32 %v9228_v19, %v11155_v47  ;;  %9357 = vmatprep.mubr.msk.f32.mxu1 %vm69_vm0, %v3328_v12  ;;  %v3638_v47 = vld [vmem:[#allocation2 + $0x45] sm:$0xff]  ;;  %v3683_v12 = vpop.permute.xlu0 %3682 }
 0x27e   :  { %v3671_v43 = vpop.permute.xlu1 %3670  ;;  %v11351_v55 = vpop.f32.mrf.mxu1 }
 0x27f   :  { %v3756_v52 = vmul.f32 %v3671_v43, %v3636_v3  ;;  %9903 = vset.pattern.permute.xlu1 %v12945_v21  ;;  %v3758_v3 = vmul.f32 %v3679_v8, %v3638_v47 }
 0x281   :  { %v9266_v29 = vpop.f32.mrf.mxu0  ;;  %9393 = vmatmul.mubr.msk.f32.gmra.mxu0 %vm69_vm0, %v3756_v52  ;;  %v3759_v52 = vmul.f32 %v3683_v12, %v3639_v22  ;;  %v3695_v8 = vpop.permute.xlu0 %3694 }
 0x282   :  { %v11349_v15 = vadd.f32 %v9266_v29, %v1912_v39  ;;  %v3210_v29 = vld [vmem:[#allocation2 + $0x4c] sm:$0xff] }
 0x283   :  { %v3250_v36 = vpop.permute.xlu1 %3249  ;;  %v11355_v39 = vpop.f32.mrf.mxu0 }
 0x284   :  { %v3329_v14 = vmul.f32 %v3250_v36, %v3209_v53 }
 0x286   :  { %v9231_v40 = vpop.f32.mrf.mxu1  ;;  %9358 = vmatmul.mubr.msk.f32.gmra.mxu1 %vm69_vm0, %v3329_v14  ;;  %v3212_v14 = vld [vmem:[#allocation2 + $0x5c] sm:$0xff] }
 0x287   :  { %v1914_v17 = vadd.f32 %v9231_v40, %v11171_v50  ;;  %v3211_v50 = vld [vmem:[#allocation2 + $0x54] sm:$0xff]  ;;  %v3332_v47 = vmul.f32 %v11309_v60, %v3212_v14  ;;  %v3213_v60 = vld [vmem:[#allocation2 + $0x64] sm:$0xff] }
 0x288   :  { %v3675_v19 = vpop.permute.xlu1 %3674 }
 0x289   :  { %v3757_v43 = vmul.f32 %v3675_v19, %v3637_v34  ;;  %v11364_v34 = vpop.f32.mrf.mxu1 }
 0x28b   :  { %9395 = vmatprep.mubr.msk.f32.mxu0 %vm69_vm0, %v3757_v43 }
 0x28c   :  { %v9269_v21 = vpop.f32.mrf.mxu0  ;;  %9396 = vmatmul.mubr.msk.f32.gmra.mxu0 %vm69_vm0, %v3758_v3  ;;  %v3699_v3 = vpop.permute.xlu0 %3698 }
 0x28d   :  { %v11359_v53 = vadd.f32 %v9269_v21, %v1914_v17  ;;  %v3254_v36 = vpop.permute.xlu1 %3253  ;;  %9398 = vmatprep.mubr.msk.f32.mxu0 %vm69_vm0, %v3759_v52  ;;  %v3640_v21 = vld [vmem:[#allocation2 + $0x55] sm:$0xff] }
 0x28e   :  { %v3330_v56 = vmul.f32 %v3254_v36, %v3210_v29  ;;  %v11369_v43 = vpop.f32.mrf.mxu0 }
 0x290   :  { %9360 = vmatprep.mubr.msk.f32.mxu1 %vm69_vm0, %v3330_v56 }
 0x291   :  { %v3258_v40 = vpop.permute.xlu1 %3257 }
 0x292   :  { %v3331_v12 = vmul.f32 %v3258_v40, %v3211_v50  ;;  %v11374_v50 = vpop.permute.xlu0 %3710  ;;  %v3642_v40 = vld [vmem:[#allocation2 + $0x65] sm:$0xff] }
 0x294   :  { %v9234_v22 = vpop.f32.mrf.mxu1  ;;  %9361 = vmatmul.mubr.msk.f32.gmra.mxu1 %vm69_vm0, %v3331_v12  ;;  %v3762_v12 = vmul.f32 %v3695_v8, %v3642_v40 }
 0x295   :  { %v1916_v17 = vadd.f32 %v9234_v22, %v11189_v41  ;;  %9363 = vmatprep.mubr.msk.f32.mxu1 %vm69_vm0, %v3332_v47  ;;  %v3641_v41 = vld [vmem:[#allocation2 + $0x5d] sm:$0xff]  ;;  %v3643_v47 = vld [vmem:[#allocation2 + $0x6d] sm:$0xff] }
 0x296   :  { %v3687_v19 = vpop.permute.xlu1 %3686  ;;  %v3763_v13 = vmul.f32 %v3699_v3, %v3643_v47  ;;  %v3644_v3 = vld [vmem:[#allocation2 + $0x75] sm:$0xff]  ;;  %v11385_v47 = vpop.f32.mrf.mxu1 }
 0x297   :  { %v3760_v56 = vmul.f32 %v3687_v19, %v3640_v21  ;;  %v11377_v21 = vpop.permute.xlu0 %3714  ;;  %v3214_v19 = vld [vmem:[#allocation2 + $0x6c] sm:$0xff] }
 0x299   :  { %v9272_v52 = vpop.f32.mrf.mxu0  ;;  %9399 = vmatmul.mubr.msk.f32.gmra.mxu0 %vm69_vm0, %v3760_v56 }
 0x29a   :  { %v11372_v29 = vadd.f32 %v9272_v52, %v1916_v17 }
 0x29b   :  { %v3266_v36 = vpop.permute.xlu1 %3265  ;;  %v3278_v52 = vpop.permute.xlu0 %3277 }
 0x29c   :  { %v3333_v14 = vmul.f32 %v3266_v36, %v3213_v60  ;;  %v3216_v60 = vld [vmem:[#allocation2 + $0x7c] sm:$0xff]  ;;  %v3215_v36 = vld [vmem:[#allocation2 + $0x74] sm:$0xff] }
 0x29e   :  { %9364 = vmatmul.mubr.msk.f32.gmra.mxu1 %vm69_vm0, %v3333_v14  ;;  %v3336_v14 = vmul.f32 %v3278_v52, %v3216_v60  ;;  %v3645_v52 = vld [vmem:[#allocation2 + $0x7d] sm:$0xff]  ;;  %v3646_v60 = vld [vmem:[#allocation2 + $0x85] sm:$0xff] }
 0x2a0   :  { %v3691_v22 = vpop.permute.xlu1 %3690 }
 0x2a1   :  { %v3761_v24 = vmul.f32 %v3691_v22, %v3641_v41 }
 0x2a3   :  { %9401 = vmatprep.mubr.msk.f32.mxu0 %vm69_vm0, %v3761_v24 }
 0x2a4   :  { %9402 = vmatmul.mubr.msk.f32.gmra.mxu0 %vm69_vm0, %v3762_v12  ;;  %v11388_v12 = vpop.f32.mrf.mxu1 }
 0x2a5   :  { %v3270_v17 = vpop.permute.xlu1 %3269  ;;  %9404 = vmatprep.mubr.msk.f32.mxu0 %vm69_vm0, %v3763_v13  ;;  %v3217_v13 = vld [vmem:[#allocation2 + $0x84] sm:$0xff] }
 0x2a6   :  { %v3334_v56 = vmul.f32 %v3270_v17, %v3214_v19  ;;  %v11458_v17 = vpop.f32.mrf.mxu0 }
 0x2a8   :  { %9366 = vmatprep.mubr.msk.f32.mxu1 %vm69_vm0, %v3334_v56  ;;  %v11460_v56 = vpop.f32.mrf.mxu1 }
 0x2a9   :  { %v3274_v8 = vpop.permute.xlu1 %3273 }
 0x2aa   :  { %v3335_v40 = vmul.f32 %v3274_v8, %v3215_v36  ;;  %v11463_v36 = vpop.f32.mrf.mxu0  ;;  %v3647_v8 = vld [vmem:[#allocation2 + $0x8d] sm:$0xff] }
 0x2ac   :  { %9367 = vmatmul.mubr.msk.f32.gmra.mxu1 %vm69_vm0, %v3335_v40 }
 0x2ad   :  { %9369 = vmatprep.mubr.msk.f32.mxu1 %vm69_vm0, %v3336_v14  ;;  %v11465_v14 = vpop.f32.mrf.mxu1 }
 0x2ae   :  { %v3703_v24 = vpop.permute.xlu1 %3702 }
 0x2af   :  { %v3764_v41 = vmul.f32 %v3703_v24, %v3644_v3  ;;  %v3766_v24 = vmul.f32 %v11374_v50, %v3646_v60  ;;  %v11472_v4 = vpop.f32.mrf.mxu1  ;;  %v3294_v50 = vpop.permute.xlu0 %3293  ;;  %v3220_v60 = vld [vmem:[#allocation2 + $0x9c] sm:$0xff] }
 0x2b1   :  { %9405 = vmatmul.mubr.msk.f32.gmra.mxu0 %vm69_vm0, %v3764_v41  ;;  %v11468_v41 = vpop.f32.mrf.mxu0 }
 0x2b3   :  { %v3282_v22 = vpop.permute.xlu1 %3281  ;;  %v3727_v49 = vpop.permute.xlu0 %3726 }
 0x2b4   :  { %v3337_v19 = vmul.f32 %v3282_v22, %v3217_v13  ;;  %v3767_v13 = vmul.f32 %v11377_v21, %v3647_v8  ;;  %v3218_v22 = vld [vmem:[#allocation2 + $0x8c] sm:$0xff]  ;;  %v3770_v46 = vmul.f32 %v3727_v49, %v3650_v27 }
 0x2b6   :  { %9370 = vmatmul.mubr.msk.f32.gmra.mxu1 %vm69_vm0, %v3337_v19  ;;  %v11475_v19 = vpop.f32.mrf.mxu0  ;;  %v11478_v28 = vpop.f32.mrf.mxu1 }
 0x2b7   :  { %v3310_v59 = vpop.permute.xlu0 %3309 }
 0x2b8   :  { %v3707_v40 = vpop.permute.xlu1 %3706  ;;  %v11481_v21 = vpop.f32.mrf.mxu0 }
 0x2b9   :  { %v3765_v3 = vmul.f32 %v3707_v40, %v3645_v52  ;;  %v3219_v40 = vld [vmem:[#allocation2 + $0x94] sm:$0xff]  ;;  %v11483_v62 = vpop.f32.mrf.mxu1 }
 0x2bb   :  { %9407 = vmatprep.mubr.msk.f32.mxu0 %vm69_vm0, %v3765_v3  ;;  %v3340_v3 = vmul.f32 %v3294_v50, %v3220_v60  ;;  %v3221_v60 = vld [vmem:[#allocation2 + $0xa4] sm:$0xff] }
 0x2bc   :  { %9408 = vmatmul.mubr.msk.f32.gmra.mxu0 %vm69_vm0, %v3766_v24  ;;  %v11485_v63 = vpop.f32.mrf.mxu0 }
 0x2bd   :  { %v3286_v45 = vpop.permute.xlu1 %3285  ;;  %9410 = vmatprep.mubr.msk.f32.mxu0 %vm69_vm0, %v3767_v13  ;;  %v3648_v13 = vld [vmem:[#allocation2 + $0x95] sm:$0xff] }
 0x2be   :  { %v3338_v52 = vmul.f32 %v3286_v45, %v3218_v22 }
 0x2c0   :  { %9372 = vmatprep.mubr.msk.f32.mxu1 %vm69_vm0, %v3338_v52  ;;  %v11490_v52 = vpop.f32.mrf.mxu0 }
 0x2c1   :  { %v3290_v8 = vpop.permute.xlu1 %3289  ;;  %12972 = vst [vmem:[#allocation49_spill] sm:$0xff] %v11490_v52 }
 0x2c2   :  { %v3339_v24 = vmul.f32 %v3290_v8, %v3219_v40 }
 0x2c4   :  { %v9286_v9 = vpop.f32.mrf.mxu1  ;;  %9373 = vmatmul.mubr.msk.f32.gmra.mxu1 %vm69_vm0, %v3339_v24 }
 0x2c5   :  { %v2758_v45 = vadd.f32 %v9286_v9, %v11253_v37  ;;  %9375 = vmatprep.mubr.msk.f32.mxu1 %vm69_vm0, %v3340_v3  ;;  %v3649_v37 = vld [vmem:[#allocation2 + $0x9d] sm:$0xff]  ;;  %v3731_v9 = vpop.permute.xlu0 %3730  ;;  %v3651_v3 = vld [vmem:[#allocation2 + $0xad] sm:$0xff] }
 0x2c6   :  { %v3719_v22 = vpop.permute.xlu1 %3718  ;;  %v11495_v58 = vpop.f32.mrf.mxu1 }
 0x2c7   :  { %v3768_v18 = vmul.f32 %v3719_v22, %v3648_v13 }
 0x2c9   :  { %v9324_v50 = vpop.f32.mrf.mxu0  ;;  %9411 = vmatmul.mubr.msk.f32.gmra.mxu0 %vm69_vm0, %v3768_v18  ;;  %v3771_v18 = vmul.f32 %v3731_v9, %v3651_v3  ;;  %v3652_v9 = vld [vmem:[#allocation2 + $0xb5] sm:$0xff] }
 0x2ca   :  { %v11493_v40 = vadd.f32 %v9324_v50, %v2758_v45  ;;  %v3222_v45 = vld [vmem:[#allocation2 + $0xac] sm:$0xff] }
 0x2cb   :  { %v3298_v8 = vpop.permute.xlu1 %3297  ;;  %v11499_v52 = vpop.f32.mrf.mxu0 }
 0x2cc   :  { %12973 = vst [vmem:[#allocation50_spill] sm:$0xff] %v11493_v40  ;;  %v3341_v24 = vmul.f32 %v3298_v8, %v3221_v60  ;;  %v3224_v40 = vld [vmem:[#allocation2 + $0xbc] sm:$0xff] }
 0x2ce   :  { %v9289_v54 = vpop.f32.mrf.mxu1  ;;  %9376 = vmatmul.mubr.msk.f32.gmra.mxu1 %vm69_vm0, %v3341_v24 }
 0x2cf   :  { %v2760_v13 = vadd.f32 %v9289_v54, %v11267_v48  ;;  %v3223_v48 = vld [vmem:[#allocation2 + $0xb4] sm:$0xff]  ;;  %v3344_v54 = vmul.f32 %v3310_v59, %v3224_v40  ;;  %v3225_v59 = vld [vmem:[#allocation2 + $0xc4] sm:$0xff] }
 0x2d0   :  { %v3723_v22 = vpop.permute.xlu1 %3722  ;;  %v11507_v27 = vpop.f32.mrf.mxu1 }
 0x2d1   :  { %v3769_v35 = vmul.f32 %v3723_v22, %v3649_v37 }
 0x2d3   :  { %9413 = vmatprep.mubr.msk.f32.mxu0 %vm69_vm0, %v3769_v35 }
 0x2d4   :  { %v9327_v50 = vpop.f32.mrf.mxu0  ;;  %9414 = vmatmul.mubr.msk.f32.gmra.mxu0 %vm69_vm0, %v3770_v46 }
 0x2d5   :  { %v11503_v60 = vadd.f32 %v9327_v50, %v2760_v13  ;;  %v3302_v8 = vpop.permute.xlu1 %3301  ;;  %9416 = vmatprep.mubr.msk.f32.mxu0 %vm69_vm0, %v3771_v18  ;;  %v3743_v18 = vpop.permute.xlu0 %3742 }
 0x2d6   :  { %v3342_v24 = vmul.f32 %v3302_v8, %v3222_v45  ;;  %v11512_v13 = vpop.f32.mrf.mxu0 }
 0x2d7   :  { %12974 = vst [vmem:[#allocation51_spill] sm:$0xff] %v11503_v60  ;;  %12975 = vst [vmem:[#allocation52_spill] sm:$0xff] %v11512_v13 }
 0x2d8   :  { %9378 = vmatprep.mubr.msk.f32.mxu1 %vm69_vm0, %v3342_v24 }
 0x2d9   :  { %v3306_v49 = vpop.permute.xlu1 %3305 }
 0x2da   :  { %v3343_v37 = vmul.f32 %v3306_v49, %v3223_v48  ;;  %v3654_v48 = vld [vmem:[#allocation2 + $0xc5] sm:$0xff] }
 0x2dc   :  { %v9292_v35 = vpop.f32.mrf.mxu1  ;;  %9379 = vmatmul.mubr.msk.f32.gmra.mxu1 %vm69_vm0, %v3343_v37  ;;  %v3655_v37 = vld [vmem:[#allocation2 + $0xcd] sm:$0xff] }
 0x2dd   :  { %v2762_v46 = vadd.f32 %v9292_v35, %v11285_v0  ;;  %9381 = vmatprep.mubr.msk.f32.mxu1 %vm69_vm0, %v3344_v54  ;;  %v3653_v0 = vld [vmem:[#allocation2 + $0xbd] sm:$0xff]  ;;  %v3747_v54 = vpop.permute.xlu0 %3746 }
 0x2de   :  { %v3735_v3 = vpop.permute.xlu1 %3734  ;;  %v11517_v8 = vpop.f32.mrf.mxu1 }
 0x2df   :  { %v3772_v22 = vmul.f32 %v3735_v3, %v3652_v9  ;;  %v3774_v3 = vmul.f32 %v3743_v18, %v3654_v48 }
 0x2e1   :  { %v9330_v45 = vpop.f32.mrf.mxu0  ;;  %9417 = vmatmul.mubr.msk.f32.gmra.mxu0 %vm69_vm0, %v3772_v22  ;;  %v3775_v22 = vmul.f32 %v3747_v54, %v3655_v37 }
 0x2e2   :  { %v11515_v40 = vadd.f32 %v9330_v45, %v2762_v46  ;;  %v3226_v46 = vld [vmem:[#allocation2 + $0xcc] sm:$0xff] }
 0x2e3   :  { %v3314_v50 = vpop.permute.xlu1 %3313  ;;  %v11521_v13 = vpop.f32.mrf.mxu0 }
 0x2e4   :  { %12976 = vst [vmem:[#allocation53_spill] sm:$0xff] %v11515_v40  ;;  %v3345_v24 = vmul.f32 %v3314_v50, %v3225_v59  ;;  %v3227_v40 = vld [vmem:[#allocation2 + $0xd4] sm:$0xff] }
 0x2e6   :  { %v9295_v49 = vpop.f32.mrf.mxu1  ;;  %9382 = vmatmul.mubr.msk.f32.gmra.mxu1 %vm69_vm0, %v3345_v24 }
 0x2e7   :  { %v2764_v35 = vadd.f32 %v9295_v49, %v11299_v23 }
 0x2e8   :  { %v3739_v9 = vpop.permute.xlu1 %3738  ;;  %v11529_v18 = vpop.f32.mrf.mxu1 }
 0x2e9   :  { %v3773_v60 = vmul.f32 %v3739_v9, %v3653_v0 }
 0x2eb   :  { %9419 = vmatprep.mubr.msk.f32.mxu0 %vm69_vm0, %v3773_v60  ;;  %v3656_v60 = vld [vmem:[#allocation2 + $0xd5] sm:$0xff] }
 0x2ec   :  { %v9333_v45 = vpop.f32.mrf.mxu0  ;;  %9420 = vmatmul.mubr.msk.f32.gmra.mxu0 %vm69_vm0, %v3774_v3 }
 0x2ed   :  { %v11525_v59 = vadd.f32 %v9333_v45, %v2764_v35  ;;  %v3318_v50 = vpop.permute.xlu1 %3317  ;;  %9422 = vmatprep.mubr.msk.f32.mxu0 %vm69_vm0, %v3775_v22 }
 0x2ee   :  { %v3346_v24 = vmul.f32 %v3318_v50, %v3226_v46  ;;  %v11533_v37 = vpop.f32.mrf.mxu0 }
 0x2f0   :  { %9384 = vmatprep.mubr.msk.f32.mxu1 %vm69_vm0, %v3346_v24 }
 0x2f1   :  { %v3322_v23 = vpop.permute.xlu1 %3321 }
 0x2f2   :  { %v3347_v48 = vmul.f32 %v3322_v23, %v3227_v40 }
 0x2f4   :  { %v9298_v49 = vpop.f32.mrf.mxu1  ;;  %9385 = vmatmul.mubr.msk.f32.gmra.mxu1 %vm69_vm0, %v3347_v48 }
 0x2f5   :  { %v2766_v0 = vadd.f32 %v9298_v49, %v11318_v38  ;;  %v1031_v38 = vadd.f32 %v11161_v10, %v10883_v61 }
 0x2f6   :  { %v3751_v54 = vpop.permute.xlu1 %3750  ;;  %v11538_v22 = vpop.f32.mrf.mxu1 }
 0x2f7   :  { %v3776_v35 = vmul.f32 %v3751_v54, %v3656_v60  ;;  %v1482_v48 = vadd.f32 %v11165_v31, %v1031_v38 }
 0x2f9   :  { %v9336_v9 = vpop.f32.mrf.mxu0  ;;  %9423 = vmatmul.mubr.msk.f32.gmra.mxu0 %vm69_vm0, %v3776_v35 }
 0x2fa   :  { %v11536_v3 = vadd.f32 %v9336_v9, %v2766_v0  ;;  %v1911_v0 = vadd.f32 %v11351_v55, %v1482_v48  ;;  %v1041_v9 = vadd.f32 %v11178_v2, %v10913_v30 }
 0x2fb   :  { %v11541_v45 = vpop.f32.mrf.mxu0 }
 0x2fc   :  { %v2340_v35 = vadd.f32 %v11355_v39, %v1911_v0  ;;  %v1484_v10 = vadd.f32 %v11183_v44, %v1041_v9 }
 0x2fe   :  { %v9301_v46 = vpop.f32.mrf.mxu1 }
 0x2ff   :  { %v2768_v40 = vadd.f32 %v9301_v46, %v11332_v6 }
 0x300   :  { %v11547_v23 = vpop.f32.mrf.mxu1 }
 0x304   :  { %v9339_v50 = vpop.f32.mrf.mxu0 }
 0x305   :  { %v11543_v24 = vadd.f32 %v9339_v50, %v2768_v40 }
 0x306   :  { %v11552_v54 = vpop.f32.mrf.mxu0 }
 0x30c   :  { %v9304_v49 = vpop.f32.mrf.mxu1 }
 0x30d   :  { %v2770_v60 = vadd.f32 %v9304_v49, %v11349_v15  ;;  %v1913_v15 = vadd.f32 %v11364_v34, %v1484_v10  ;;  %v11574_v34 = vld [vmem:[%s12875_s8 + $0x8] sm:$0xff] }
 0x30e   :  { %v2722_v6 = vpop.f32.mrf.mxu1  ;;  %4501 = vperm.xlu1 %9903, %v11574_v34  }
 0x30f   :  { %v2769_v40 = vadd.f32 %v2722_v6, %v2340_v35  ;;  %v2342_v38 = vadd.f32 %v11369_v43, %v1913_v15  ;;  %v11582_v6 = vld [vmem:[%s12875_s8 + $0x10] sm:$0xff] }
 0x310   :  { %v12978_v15 = vld [vmem:[#allocation21_spill] sm:$0xff] }
 0x311   :  { %v9342_v46 = vpop.f32.mrf.mxu0 }
 0x312   :  { %v11557_v61 = vadd.f32 %v9342_v46, %v2770_v60  ;;  %v1051_v60 = vadd.f32 %v11191_v16, %v10937_v1  ;;  %4505 = vperm.xlu1 %9903, %v11582_v6  }
 0x313   :  { %v3151_v31 = vpop.f32.mrf.mxu0 }
 0x314   :  { %v11560_v50 = vadd.f32 %v3151_v31, %v2769_v40 }
 0x316   :  { %v9307_v55 = vpop.f32.mrf.mxu1 }
 0x317   :  { %v2772_v48 = vadd.f32 %v9307_v55, %v11359_v53  ;;  %v1486_v53 = vadd.f32 %v11198_v26, %v1051_v60  ;;  %v11590_v26 = vld [vmem:[%s12875_s8 + $0x20] sm:$0xff] }
 0x318   :  { %v2732_v39 = vpop.f32.mrf.mxu1  ;;  %4513 = vperm.xlu1 %9903, %v11590_v26  }
 0x319   :  { %v2771_v49 = vadd.f32 %v2732_v39, %v2342_v38  ;;  %v1915_v43 = vadd.f32 %v11385_v47, %v1486_v53  ;;  %v12977_v47 = vld [vmem:[#allocation19_spill] sm:$0xff]  ;;  %v12980_v53 = vmov 2  }
 0x31a   :  { %v941_v40 = vadd.f32 %v12977_v47, %v10742_v5  ;;  %v11605_v39 = vld [vmem:[%s12875_s8] sm:$0xff] }
 0x31b   :  { %v2344_v1 = vadd.f32 %v11458_v17, %v1915_v43  ;;  %4497 = vperm.xlu0 %9902, %v11605_v39  }
 0x31c   :  { %v9345_v0 = vpop.f32.mrf.mxu0  ;;  %v1464_v55 = vadd.f32 %v12978_v15, %v941_v40 }
 0x31d   :  { %v11565_v30 = vadd.f32 %v9345_v0, %v2772_v48  ;;  %v2752_v0 = vadd.f32 %v11388_v12, %v11203_v7  ;;  %v12982_v12 = vld [vmem:[#allocation11_spill] sm:$0xff] }
 0x31e   :  { %v3161_v2 = vpop.f32.mrf.mxu0  ;;  %v1893_v48 = vadd.f32 %v11209_v57, %v1464_v55 }
 0x31f   :  { %v11569_v44 = vadd.f32 %v3161_v2, %v2771_v49  ;;  %v3181_v60 = vadd.f32 %v11463_v36, %v2752_v0  ;;  %v11637_v0 = vld [vmem:[%s12875_s8 + $0x18] sm:$0xff] }
 0x320   :  { %v2322_v5 = vadd.f32 %v11216_v20, %v1893_v48  ;;  %v11620_v20 = vld [vmem:[%s12981_s22] ss:$0 sm:$0xff]  ;;  %4509 = vperm.xlu0 %9902, %v11637_v0  }
 0x322   :  { %v2751_v2 = vadd.f32 %v11460_v56, %v2322_v5  ;;  %v12983_v56 = vld [vmem:[#allocation20_spill] sm:$0xff] }
 0x324   :  { %v9310_v35 = vpop.f32.mrf.mxu1  ;;  %v3180_v43 = vadd.f32 %v11468_v41, %v2751_v2  ;;  %v12984_v41 = vld [vmem:[#allocation22_spill] sm:$0xff] }
 0x325   :  { %v2774_v16 = vadd.f32 %v9310_v35, %v11372_v29  ;;  %v12979_v29 = vmov 0  }
 0x326   :  { %v2742_v9 = vpop.f32.mrf.mxu1  ;;  %9904 = vset.pattern.permute.xlu1 %v12979_v29 }
 0x327   :  { %v2773_v46 = vadd.f32 %v2742_v9, %v2344_v1  ;;  %4455 = vperm.xlu1 %9904, %v11605_v39   ;;  %v951_v9 = vadd.f32 %v12983_v56, %v12982_v12 }
 0x329   :  { %v9348_v10 = vpop.f32.mrf.mxu0  ;;  %v1466_v40 = vadd.f32 %v12984_v41, %v951_v9  ;;  %v2756_v41 = vadd.f32 %v11478_v28, %v11235_v42 }
 0x32a   :  { %v11595_v31 = vadd.f32 %v9348_v10, %v2774_v16 }
 0x32b   :  { %v3171_v17 = vpop.f32.mrf.mxu0  ;;  %9905 = vset.pattern.permute.xlu1 %v12980_v53  ;;  %v1895_v55 = vadd.f32 %v11223_v25, %v1466_v40 }
 0x32c   :  { %v11598_v38 = vadd.f32 %v3171_v17, %v2773_v46  ;;  %4760 = vperm.xlu1 %9905, %v11605_v39  }
 0x32d   :  { %v2324_v48 = vadd.f32 %v11230_v32, %v1895_v55  ;;  %v12988_v55 = vld [vmem:[#allocation49_spill] sm:$0xff] }
 0x32e   :  { %v9353_v49 = vpop.f32.mrf.mxu1 }
 0x32f   :  { %v3610_v35 = vadd.f32 %v9353_v49, %v3181_v60  ;;  %v2754_v49 = vadd.f32 %v11465_v14, %v11221_v51  ;;  %v2753_v25 = vadd.f32 %v11472_v4, %v2324_v48  ;;  %v12985_v14 = vld [vmem:[#allocation12_spill] sm:$0xff] }
 0x330   :  { %v3490_v57 = vpop.f32.mrf.mxu1  ;;  %4764 = vperm.xlu1 %9905, %v11574_v34  }
 0x331   :  { %v3609_v16 = vadd.f32 %v3490_v57, %v3180_v43  ;;  %v3183_v2 = vadd.f32 %v11475_v19, %v2754_v49  ;;  %v3182_v60 = vadd.f32 %v11481_v21, %v2753_v25  ;;  %v12986_v57 = vld [vmem:[#allocation23_spill] sm:$0xff]  ;;  %v11668_v49 = vld [vmem:[%s12875_s8 + $0x28] sm:$0xff] }
 0x332   :  { %v961_v43 = vadd.f32 %v12986_v57, %v12985_v14  ;;  %4517 = vperm.xlu0 %9902, %v11668_v49  }
 0x334   :  { %v9391_v1 = vpop.f32.mrf.mxu0  ;;  %9906 = vset.pattern.permute.xlu1 %v12979_v29 }
 0x335   :  { %v4039_v7 = vadd.f32 %v9391_v1, %v3610_v35  ;;  %4470 = vperm.xlu1 %9906, %v11637_v0  }
 0x336   :  { %v3919_v36 = vpop.f32.mrf.mxu0  ;;  %9907 = vset.pattern.permute.xlu0 %v12980_v53 }
 0x337   :  { %v4070_v46 = vadd.f32 %v11620_v20, %v4039_v7  ;;  %v4038_v47 = vadd.f32 %v3919_v36, %v3609_v16  ;;  %v12987_v7 = vld [vmem:[#allocation24_spill] sm:$0xff]  ;;  %4768 = vperm.xlu0 %9907, %v11582_v6  }
 0x338   :  { %v1468_v12 = vadd.f32 %v12987_v7, %v961_v43  ;;  %v12992_v43 = vld [vmem:[#allocation37_spill] sm:$0xff] }
 0x339   :  { %v4094_v10 = vmax.f32 %v4070_v46, 0.0  ;;  %v4069_v15 = vadd.f32 %v11620_v20, %v4038_v47  ;;  %9909 = vset.pattern.permute.xlu1 %v12980_v53 }
 0x33a   :  { %4772 = vperm.xlu1 %9909, %v11637_v0   ;;  %v1897_v9 = vadd.f32 %v11241_v33, %v1468_v12  ;;  %v3185_v33 = vadd.f32 %v11485_v63, %v2756_v41  ;;  %v12990_v63 = vld [vmem:[#allocation25_spill] sm:$0xff] }
 0x33b   :  { %4118 = vst.msk [vmem:[#allocation3 + $0x8] sm:$0xff] %vm98_vm2, %v4094_v10  ;;  %v4093_v17 = vmax.f32 %v4069_v15, 0.0  ;;  %9908 = vset.pattern.permute.xlu0 %v12979_v29 }
 0x33c   :  { %v9356_v5 = vpop.f32.mrf.mxu1  ;;  %v2326_v47 = vadd.f32 %v11248_v11, %v1897_v9  ;;  %4460 = vperm.xlu0 %9908, %v11574_v34  }
 0x33d   :  { %4117 = vst.msk [vmem:[#allocation3] sm:$0xff] %vm98_vm2, %v4093_v17  ;;  %v3612_v51 = vadd.f32 %v9356_v5, %v3183_v2 }
 0x33e   :  { %v3500_v32 = vpop.f32.mrf.mxu1  ;;  %9910 = vset.pattern.permute.xlu1 %v12979_v29  ;;  %v2755_v10 = vadd.f32 %v11483_v62, %v2326_v47  ;;  %v12989_v62 = vld [vmem:[#allocation13_spill] sm:$0xff]  ;;  %v12997_v47 = vld [vmem:[#allocation27_spill] sm:$0xff] }
 0x33f   :  { %v3611_v1 = vadd.f32 %v3500_v32, %v3182_v60  ;;  %4475 = vperm.xlu1 %9910, %v11590_v26   ;;  %v971_v5 = vadd.f32 %v12990_v63, %v12989_v62  ;;  %v12991_v60 = vld [vmem:[#allocation26_spill] sm:$0xff] }
 0x340   :  { %v3184_v17 = vadd.f32 %v12988_v55, %v2755_v10  ;;  %v12998_v10 = vmov 4   ;;  %4465 = vperm.xlu0 %9908, %v11582_v6  }
 0x341   :  { %v9394_v35 = vpop.f32.mrf.mxu0 }
 0x342   :  { %v4041_v16 = vadd.f32 %v9394_v35, %v3612_v51  ;;  %v1470_v51 = vadd.f32 %v12991_v60, %v971_v5 }
 0x343   :  { %v3929_v56 = vpop.f32.mrf.mxu0  ;;  %9911 = vset.pattern.permute.xlu1 %v12980_v53 }
 0x344   :  { %v4072_v4 = vadd.f32 %v11620_v20, %v4041_v16  ;;  %v4040_v19 = vadd.f32 %v3929_v56, %v3611_v1  ;;  %4776 = vperm.xlu1 %9911, %v11590_v26   ;;  %v1899_v35 = vadd.f32 %v12992_v43, %v1470_v51  ;;  %v12993_v16 = vld [vmem:[#allocation38_spill] sm:$0xff]  ;;  %v12994_v56 = vmov 3   ;;  %4480 = vperm.xlu0 %9908, %v11668_v49   ;;  %v13003_v43 = vld [vmem:[#allocation51_spill] sm:$0xff] }
 0x346   :  { %v4096_v21 = vmax.f32 %v4072_v4, 0.0  ;;  %v4071_v36 = vadd.f32 %v11620_v20, %v4040_v19  ;;  %v9359_v46 = vpop.f32.mrf.mxu1  ;;  %v2328_v7 = vadd.f32 %v12993_v16, %v1899_v35 }
 0x347   :  { %v3614_v48 = vadd.f32 %v9359_v46, %v3185_v33  ;;  %v12996_v46 = vld [vmem:[#allocation14_spill] sm:$0xff] }
 0x348   :  { %4120 = vst.msk [vmem:[#allocation3 + $0x18] sm:$0xff] %vm98_vm2, %v4096_v21  ;;  %v4095_v40 = vmax.f32 %v4071_v36, 0.0  ;;  %v3510_v15 = vpop.f32.mrf.mxu1  ;;  %4780 = vperm.xlu1 %9911, %v11668_v49   ;;  %v2757_v4 = vadd.f32 %v11495_v58, %v2328_v7  ;;  %v12995_v21 = vld [vmem:[#allocation50_spill] sm:$0xff]  ;;  %v981_v41 = vadd.f32 %v12997_v47, %v12996_v46  ;;  %v4310_v58 = vld [vmem:[%s12876_s9 + $0x8] sm:$0xff]  ;;  %9912 = vset.pattern.permute.xlu0 %v12994_v56 }
 0x349   :  { %v3613_v42 = vadd.f32 %v3510_v15, %v3184_v17  ;;  %8524 = vmatprep.mubr.msk.f32.mxu1 %vm4321_vm3, %v4310_v58  ;;  %4916 = vperm.xlu0 %9912, %v11605_v39   ;;  %v13008_v58 = vld [vmem:[#allocation42_spill] sm:$0xff] }
 0x34a   :  { %4119 = vst.msk [vmem:[#allocation3 + $0x10] sm:$0xff] %vm98_vm2, %v4095_v40  ;;  %v3186_v9 = vadd.f32 %v11499_v52, %v2757_v4  ;;  %v12999_v52 = vld [vmem:[#allocation28_spill] sm:$0xff]  ;;  %v13005_v4 = vld [vmem:[#allocation29_spill] sm:$0xff] }
 0x34b   :  { %v1472_v55 = vadd.f32 %v12999_v52, %v981_v41 }
 0x34c   :  { %v9397_v11 = vpop.f32.mrf.mxu0  ;;  %9913 = vset.pattern.permute.xlu1 %v12994_v56 }
 0x34d   :  { %v4043_v28 = vadd.f32 %v9397_v11, %v3614_v48  ;;  %4920 = vperm.xlu1 %9913, %v11574_v34   ;;  %4932 = vperm.xlu0 %9912, %v11590_v26  }
 0x34e   :  { %v3939_v25 = vpop.f32.mrf.mxu0 }
 0x34f   :  { %v4074_v2 = vadd.f32 %v11620_v20, %v4043_v28  ;;  %v4042_v32 = vadd.f32 %v3939_v25, %v3613_v42  ;;  %v13000_v42 = vld [vmem:[#allocation39_spill] sm:$0xff]  ;;  %v13001_v25 = vld [vmem:[#allocation40_spill] sm:$0xff] }
 0x350   :  { %v1901_v28 = vadd.f32 %v13000_v42, %v1472_v55  ;;  %v13009_v42 = vld [vmem:[#allocation53_spill] sm:$0xff] }
 0x351   :  { %v4098_v14 = vmax.f32 %v4074_v2, 0.0  ;;  %v4073_v57 = vadd.f32 %v11620_v20, %v4042_v32  ;;  %9914 = vset.pattern.permute.xlu1 %v12998_v10  ;;  %9917 = vset.pattern.permute.xlu0 %v12998_v10 }
 0x352   :  { %5072 = vperm.xlu1 %9914, %v11605_v39   ;;  %v2330_v2 = vadd.f32 %v13001_v25, %v1901_v28  ;;  %5076 = vperm.xlu0 %9917, %v11574_v34  }
 0x353   :  { %4122 = vst.msk [vmem:[#allocation3 + $0x28] sm:$0xff] %vm98_vm2, %v4098_v14  ;;  %v4097_v1 = vmax.f32 %v4073_v57, 0.0  ;;  %v13002_v14 = vld [vmem:[#allocation52_spill] sm:$0xff] }
 0x354   :  { %v9362_v12 = vpop.f32.mrf.mxu1  ;;  %v2759_v60 = vadd.f32 %v11507_v27, %v2330_v2 }
 0x355   :  { %4121 = vst.msk [vmem:[#allocation3 + $0x20] sm:$0xff] %vm98_vm2, %v4097_v1  ;;  %v3616_v36 = vadd.f32 %v9362_v12, %v12995_v21  ;;  %v13004_v12 = vld [vmem:[#allocation15_spill] sm:$0xff] }
 0x356   :  { %v3520_v19 = vpop.f32.mrf.mxu1  ;;  %9915 = vset.pattern.permute.xlu1 %v12994_v56  ;;  %v3188_v57 = vadd.f32 %v13002_v14, %v2759_v60  ;;  %5080 = vperm.xlu0 %9917, %v11582_v6  }
 0x357   :  { %v3615_v33 = vadd.f32 %v3520_v19, %v3186_v9  ;;  %4924 = vperm.xlu1 %9915, %v11582_v6   ;;  %v991_v19 = vadd.f32 %v13005_v4, %v13004_v12  ;;  %v13015_v12 = vld [vmem:[#allocation44_spill] sm:$0xff] }
 0x359   :  { %v9400_v40 = vpop.f32.mrf.mxu0 }
 0x35a   :  { %v4045_v15 = vadd.f32 %v9400_v40, %v3616_v36  ;;  %v13006_v36 = vld [vmem:[#allocation30_spill] sm:$0xff]  ;;  %v13007_v40 = vld [vmem:[#allocation41_spill] sm:$0xff]  ;;  %5092 = vperm.xlu0 %9917, %v11668_v49  }
 0x35b   :  { %v3949_v17 = vpop.f32.mrf.mxu0  ;;  %4928 = vperm.xlu1 %9915, %v11637_v0   ;;  %v1474_v46 = vadd.f32 %v13006_v36, %v991_v19 }
 0x35c   :  { %v4076_v48 = vadd.f32 %v11620_v20, %v4045_v15  ;;  %v4044_v11 = vadd.f32 %v3949_v17, %v3615_v33 }
 0x35d   :  { %v1903_v33 = vadd.f32 %v13007_v40, %v1474_v46  ;;  %v13016_v40 = vld [vmem:[#allocation17_spill] sm:$0xff] }
 0x35e   :  { %v4100_v62 = vmax.f32 %v4076_v48, 0.0  ;;  %v4075_v63 = vadd.f32 %v11620_v20, %v4044_v11  ;;  %v9365_v5 = vpop.f32.mrf.mxu1 }
 0x35f   :  { %v3618_v35 = vadd.f32 %v9365_v5, %v13003_v43  ;;  %9916 = vset.pattern.permute.xlu1 %v12998_v10  ;;  %v2332_v52 = vadd.f32 %v13008_v58, %v1903_v33  ;;  %v13017_v33 = vld [vmem:[#allocation33_spill] sm:$0xff] }
 0x360   :  { %4124 = vst.msk [vmem:[#allocation3 + $0x38] sm:$0xff] %vm98_vm2, %v4100_v62  ;;  %v4099_v32 = vmax.f32 %v4075_v63, 0.0  ;;  %v3530_v51 = vpop.f32.mrf.mxu1  ;;  %5084 = vperm.xlu1 %9916, %v11637_v0   ;;  %v13010_v62 = vld [vmem:[#allocation16_spill] sm:$0xff]  ;;  %v13011_v63 = vld [vmem:[#allocation31_spill] sm:$0xff] }
 0x361   :  { %v3617_v16 = vadd.f32 %v3530_v51, %v3188_v57  ;;  %v2761_v17 = vadd.f32 %v11517_v8, %v2332_v52  ;;  %v1001_v5 = vadd.f32 %v13011_v63, %v13010_v62  ;;  %v13012_v8 = vld [vmem:[#allocation32_spill] sm:$0xff]  ;;  %v13013_v57 = vld [vmem:[#allocation43_spill] sm:$0xff]  ;;  %v13021_v62 = vld [vmem:[#allocation46_spill] sm:$0xff] }
 0x362   :  { %4123 = vst.msk [vmem:[#allocation3 + $0x30] sm:$0xff] %vm98_vm2, %v4099_v32 }
 0x363   :  { %v3190_v11 = vadd.f32 %v11521_v13, %v2761_v17  ;;  %v1476_v60 = vadd.f32 %v13012_v8, %v1001_v5 }
 0x364   :  { %v9403_v1 = vpop.f32.mrf.mxu0  ;;  %9918 = vset.pattern.permute.xlu1 %v12994_v56 }
 0x365   :  { %v4047_v7 = vadd.f32 %v9403_v1, %v3618_v35  ;;  %4936 = vperm.xlu1 %9918, %v11668_v49   ;;  %v1905_v43 = vadd.f32 %v13013_v57, %v1476_v60  ;;  %v13022_v60 = vld [vmem:[#allocation18_spill] sm:$0xff] }
 0x366   :  { %v3959_v27 = vpop.f32.mrf.mxu0  ;;  %v4789_v57 = vld [vmem:[%s13024_s27 + $0x10] sm:$0xff] }
 0x367   :  { %v4078_v9 = vadd.f32 %v11620_v20, %v4047_v7  ;;  %v4046_v21 = vadd.f32 %v3959_v27, %v3617_v16  ;;  %v13014_v7 = vmov 5   ;;  %v2334_v4 = vadd.f32 %v13015_v12, %v1905_v43  ;;  %9447 = vmatprep.subr.mxu0 %v4789_v57 }
 0x368   :  { %9923 = vset.pattern.permute.xlu0 %v13014_v7  ;;  %9448 = vmatpush3.msra.mxu0 %v4789_v57  ;;  %v13026_v12 = vmov 7  }
 0x369   :  { %v4102_v47 = vmax.f32 %v4078_v9, 0.0  ;;  %v4077_v41 = vadd.f32 %v11620_v20, %v4046_v21  ;;  %9919 = vset.pattern.permute.xlu1 %v12998_v10  ;;  %v2763_v27 = vadd.f32 %v11529_v18, %v2334_v4  ;;  %5240 = vperm.xlu0 %9923, %v11637_v0   ;;  %v13027_v4 = vld [vmem:[#allocation47_spill] sm:$0xff] }
 0x36a   :  { %5088 = vperm.xlu1 %9919, %v11590_v26  }
 0x36b   :  { %4126 = vst.msk [vmem:[#allocation3 + $0x48] sm:$0xff] %vm98_vm2, %v4102_v47  ;;  %v4101_v15 = vmax.f32 %v4077_v41, 0.0  ;;  %v3192_v21 = vadd.f32 %v11533_v37, %v2763_v27  ;;  %v13019_v37 = vld [vmem:[#allocation34_spill] sm:$0xff] }
 0x36c   :  { %v9368_v55 = vpop.f32.mrf.mxu1 }
 0x36d   :  { %4125 = vst.msk [vmem:[#allocation3 + $0x40] sm:$0xff] %vm98_vm2, %v4101_v15  ;;  %v3620_v28 = vadd.f32 %v9368_v55, %v13009_v42  ;;  %v1011_v15 = vadd.f32 %v13017_v33, %v13016_v40  ;;  %v13018_v55 = vmov 6   ;;  %5244 = vperm.xlu0 %9923, %v11590_v26  }
 0x36e   :  { %v3540_v48 = vpop.f32.mrf.mxu1  ;;  %9920 = vset.pattern.permute.xlu1 %v13014_v7 }
 0x36f   :  { %v3619_v2 = vadd.f32 %v3540_v48, %v3190_v11  ;;  %5228 = vperm.xlu1 %9920, %v11605_v39   ;;  %v13020_v11 = vld [vmem:[#allocation45_spill] sm:$0xff] }
 0x371   :  { %v9406_v25 = vpop.f32.mrf.mxu0  ;;  %9925 = vset.pattern.permute.xlu0 %v13018_v55 }
 0x372   :  { %v4049_v32 = vadd.f32 %v9406_v25, %v3620_v28  ;;  %5384 = vperm.xlu0 %9925, %v11605_v39  }
 0x373   :  { %v3969_v51 = vpop.f32.mrf.mxu0  ;;  %5232 = vperm.xlu1 %9920, %v11574_v34  }
 0x374   :  { %v4080_v14 = vadd.f32 %v11620_v20, %v4049_v32  ;;  %v4048_v13 = vadd.f32 %v3969_v51, %v3619_v2  ;;  %v13023_v51 = vld [vmem:[#allocation35_spill] sm:$0xff] }
 0x376   :  { %v4104_v35 = vmax.f32 %v4080_v14, 0.0  ;;  %v4079_v1 = vadd.f32 %v11620_v20, %v4048_v13  ;;  %v9371_v16 = vpop.f32.mrf.mxu1  ;;  %5400 = vperm.xlu0 %9925, %v11590_v26   ;;  %v1021_v14 = vadd.f32 %v13023_v51, %v13022_v60 }
 0x377   :  { %v3622_v36 = vadd.f32 %v9371_v16, %v11525_v59  ;;  %9921 = vset.pattern.permute.xlu1 %v13018_v55  ;;  %v1478_v59 = vadd.f32 %v13019_v37, %v1011_v15  ;;  %v13029_v37 = vmov 8  }
 0x378   :  { %4128 = vst.msk [vmem:[#allocation3 + $0x58] sm:$0xff] %vm98_vm2, %v4104_v35  ;;  %v4103_v19 = vmax.f32 %v4079_v1, 0.0  ;;  %v3550_v9 = vpop.f32.mrf.mxu1  ;;  %5388 = vperm.xlu1 %9921, %v11574_v34  }
 0x379   :  { %v3621_v47 = vadd.f32 %v3550_v9, %v3192_v21  ;;  %v1907_v42 = vadd.f32 %v13020_v11, %v1478_v59 }
 0x37a   :  { %4127 = vst.msk [vmem:[#allocation3 + $0x50] sm:$0xff] %vm98_vm2, %v4103_v19  ;;  %9929 = vset.pattern.permute.xlu0 %v13026_v12 }
 0x37b   :  { %v2336_v63 = vadd.f32 %v13021_v62, %v1907_v42  ;;  %5544 = vperm.xlu0 %9929, %v11574_v34  }
 0x37c   :  { %v9409_v46 = vpop.f32.mrf.mxu0  ;;  %9922 = vset.pattern.permute.xlu1 %v13014_v7 }
 0x37d   :  { %v4051_v41 = vadd.f32 %v9409_v46, %v3622_v36  ;;  %5236 = vperm.xlu1 %9922, %v11582_v6   ;;  %v2765_v25 = vadd.f32 %v11538_v22, %v2336_v63  ;;  %v13025_v22 = vld [vmem:[#allocation36_spill] sm:$0xff] }
 0x37e   :  { %v3979_v18 = vpop.f32.mrf.mxu0  ;;  %v13028_v36 = vld [vmem:[#allocation48_spill] sm:$0xff] }
 0x37f   :  { %v4082_v58 = vadd.f32 %v11620_v20, %v4051_v41  ;;  %v4050_v52 = vadd.f32 %v3979_v18, %v3621_v47  ;;  %v3194_v32 = vadd.f32 %v11541_v45, %v2765_v25  ;;  %v1480_v45 = vadd.f32 %v13025_v22, %v1021_v14  ;;  %5548 = vperm.xlu0 %9929, %v11582_v6  }
 0x381   :  { %v4106_v17 = vmax.f32 %v4082_v58, 0.0  ;;  %v4081_v48 = vadd.f32 %v11620_v20, %v4050_v52  ;;  %9924 = vset.pattern.permute.xlu1 %v13018_v55  ;;  %v1909_v19 = vadd.f32 %v13027_v4, %v1480_v45 }
 0x382   :  { %5392 = vperm.xlu1 %9924, %v11582_v6  }
 0x383   :  { %4130 = vst.msk [vmem:[#allocation3 + $0x68] sm:$0xff] %vm98_vm2, %v4106_v17  ;;  %v4105_v28 = vmax.f32 %v4081_v48, 0.0  ;;  %v2338_v46 = vadd.f32 %v13028_v36, %v1909_v19  ;;  %9932 = vset.pattern.permute.xlu0 %v13029_v37 }
 0x384   :  { %v9374_v5 = vpop.f32.mrf.mxu1  ;;  %5704 = vperm.xlu0 %9932, %v11582_v6  }
 0x385   :  { %4129 = vst.msk [vmem:[#allocation3 + $0x60] sm:$0xff] %vm98_vm2, %v4105_v28  ;;  %v3624_v8 = vadd.f32 %v9374_v5, %v11536_v3  ;;  %v2767_v41 = vadd.f32 %v11547_v23, %v2338_v46  ;;  %v13030_v28 = vmov 1  }
 0x386   :  { %v3560_v2 = vpop.f32.mrf.mxu1  ;;  %5396 = vperm.xlu1 %9924, %v11637_v0  }
 0x387   :  { %v3623_v43 = vadd.f32 %v3560_v2, %v3194_v32  ;;  %v3196_v33 = vadd.f32 %v11552_v54, %v2767_v41 }
 0x388   :  { %9935 = vset.pattern.permute.xlu0 %v13026_v12 }
 0x389   :  { %v9412_v13 = vpop.f32.mrf.mxu0  ;;  %5560 = vperm.xlu0 %9935, %v11668_v49  }
 0x38a   :  { %v4053_v35 = vadd.f32 %v9412_v13, %v3624_v8  ;;  %9926 = vset.pattern.permute.xlu1 %v13014_v7 }
 0x38b   :  { %v3989_v3 = vpop.f32.mrf.mxu0  ;;  %5248 = vperm.xlu1 %9926, %v11668_v49  }
 0x38c   :  { %v4084_v1 = vadd.f32 %v11620_v20, %v4053_v35  ;;  %v4052_v16 = vadd.f32 %v3989_v3, %v3623_v43 }
 0x38d   :  { %9937 = vset.pattern.permute.xlu0 %v13030_v28 }
 0x38e   :  { %v4108_v27 = vmax.f32 %v4084_v1, 0.0  ;;  %v4083_v9 = vadd.f32 %v11620_v20, %v4052_v16  ;;  %v9377_v21 = vpop.f32.mrf.mxu1  ;;  %5927 = vperm.xlu0 %9937, %v11605_v39  }
 0x38f   :  { %v3626_v15 = vadd.f32 %v9377_v21, %v11543_v24  ;;  %9927 = vset.pattern.permute.xlu1 %v13018_v55 }
 0x390   :  { %4132 = vst.msk [vmem:[#allocation3 + $0x78] sm:$0xff] %vm98_vm2, %v4108_v27  ;;  %v4107_v47 = vmax.f32 %v4083_v9, 0.0  ;;  %v3570_v40 = vpop.f32.mrf.mxu1  ;;  %5404 = vperm.xlu1 %9927, %v11668_v49   ;;  %v4154_v9 = vld [vmem:[#allocation3 + $0x68] sm:$0xff] }
 0x391   :  { %v3625_v58 = vadd.f32 %v3570_v40, %v3196_v33  ;;  %v4153_v33 = vld [vmem:[#allocation3 + $0x60] sm:$0xff] }
 0x392   :  { %4131 = vst.msk [vmem:[#allocation3 + $0x70] sm:$0xff] %vm98_vm2, %v4107_v47  ;;  %5939 = vperm.xlu0 %9937, %v11637_v0  }
 0x394   :  { %v9415_v18 = vpop.f32.mrf.mxu0  ;;  %9928 = vset.pattern.permute.xlu1 %v13026_v12 }
 0x395   :  { %v4055_v52 = vadd.f32 %v9415_v18, %v3626_v15  ;;  %5540 = vperm.xlu1 %9928, %v11605_v39   ;;  %v4177_v15 = vld [vmem:[#allocation3 + $0x61] sm:$0xff]  ;;  %v4176_v18 = vld [vmem:[#allocation3 + $0x59] sm:$0xff] }
 0x396   :  { %v3999_v59 = vpop.f32.mrf.mxu0  ;;  %5947 = vperm.xlu0 %9937, %v11668_v49  }
 0x397   :  { %v4086_v23 = vadd.f32 %v11620_v20, %v4055_v52  ;;  %v4054_v17 = vadd.f32 %v3999_v59, %v3625_v58  ;;  %v4156_v2 = vld [vmem:[#allocation3 + $0x78] sm:$0xff]  ;;  %v4224_v52 = vld [vmem:[#allocation3 + $0x64] sm:$0xff] }
 0x398   :  { %v4248_v59 = vld [vmem:[#allocation3 + $0x65] sm:$0xff] }
 0x399   :  { %v4110_v54 = vmax.f32 %v4086_v23, 0.0  ;;  %v4085_v24 = vadd.f32 %v11620_v20, %v4054_v17  ;;  %9930 = vset.pattern.permute.xlu1 %v13029_v37  ;;  %v4155_v32 = vld [vmem:[#allocation3 + $0x70] sm:$0xff] }
 0x39a   :  { %v4179_v8 = vld [vmem:[#allocation3 + $0x71] sm:$0xff]  ;;  %5696 = vperm.xlu1 %9930, %v11605_v39   ;;  %v4178_v51 = vld [vmem:[#allocation3 + $0x69] sm:$0xff]  ;;  %9942 = vset.pattern.permute.xlu0 %v12980_v53 }
 0x39b   :  { %4134 = vst.msk [vmem:[#allocation3 + $0x88] sm:$0xff] %vm98_vm2, %v4110_v54  ;;  %v4109_v48 = vmax.f32 %v4085_v24, 0.0  ;;  %v4226_v14 = vld [vmem:[#allocation3 + $0x74] sm:$0xff]  ;;  %v4225_v21 = vld [vmem:[#allocation3 + $0x6c] sm:$0xff]  ;;  %v4203_v47 = vmax.f32 %v4155_v32, %v4179_v8  ;;  %v4202_v41 = vmax.f32 %v4154_v9, %v4178_v51  ;;  %v4223_v24 = vld [vmem:[#allocation3 + $0x5c] sm:$0xff]  ;;  %v4272_v8 = vmax.f32 %v4224_v52, %v4248_v59  ;;  %6199 = vperm.xlu0 %9942, %v11582_v6  }
 0x39c   :  { %v9380_v11 = vpop.f32.mrf.mxu1  ;;  %v4250_v13 = vld [vmem:[#allocation3 + $0x75] sm:$0xff]  ;;  %v4249_v36 = vld [vmem:[#allocation3 + $0x6d] sm:$0xff]  ;;  %v4173_v9 = vld [vmem:[#allocation3 + $0x41] sm:$0xff] }
 0x39d   :  { %4133 = vst.msk [vmem:[#allocation3 + $0x80] sm:$0xff] %vm98_vm2, %v4109_v48  ;;  %v3628_v62 = vadd.f32 %v9380_v11, %v11557_v61  ;;  %v4274_v40 = vmax.f32 %v4226_v14, %v4250_v13  ;;  %v4273_v17 = vmax.f32 %v4225_v21, %v4249_v36  ;;  %v4152_v54 = vld [vmem:[#allocation3 + $0x58] sm:$0xff]  ;;  %v4220_v36 = vld [vmem:[#allocation3 + $0x44] sm:$0xff] }
 0x39e   :  { %v3580_v42 = vpop.f32.mrf.mxu1  ;;  %5700 = vperm.xlu1 %9930, %v11574_v34   ;;  %v4247_v48 = vld [vmem:[#allocation3 + $0x5d] sm:$0xff]  ;;  %v4222_v51 = vld [vmem:[#allocation3 + $0x54] sm:$0xff] }
 0x39f   :  { %v3627_v5 = vadd.f32 %v3580_v42, %v11560_v50  ;;  %v13031_v42 = vmov 0.0   ;;  %v4298_v32 = vmax.f32 %v4202_v41, %v4274_v40  ;;  %v4246_v14 = vld [vmem:[#allocation3 + $0x55] sm:$0xff]  ;;  %9943 = vset.pattern.permute.xlu0 %v12979_v29  ;;  %v4243_v52 = vld [vmem:[#allocation3 + $0x3d] sm:$0xff] }
 0x3a0   :  { %v4172_v21 = vld [vmem:[#allocation3 + $0x39] sm:$0xff]  ;;  %5889 = vperm.xlu0 %9943, %v11574_v34   ;;  %136 = vst.msk [vmem:[#allocation5 + $0x10] sm:$0xff] %vm133_vm4, %v13031_v42  ;;  %134 = vst.msk [vmem:[#allocation5] sm:$0xff] %vm133_vm4, %v13031_v42 }
 0x3a1   :  { %v9418_v63 = vpop.f32.mrf.mxu0  ;;  %135 = vst.msk [vmem:[#allocation5 + $0x8] sm:$0xff] %vm133_vm4, %v13031_v42  ;;  %137 = vst.msk [vmem:[#allocation5 + $0x18] sm:$0xff] %vm133_vm4, %v13031_v42 }
 0x3a2   :  { %v4057_v25 = vadd.f32 %v9418_v63, %v3628_v62  ;;  %v4201_v62 = vmax.f32 %v4153_v33, %v4177_v15  ;;  %v4200_v63 = vmax.f32 %v4152_v54, %v4176_v18  ;;  %9931 = vset.pattern.permute.xlu1 %v13026_v12  ;;  %v4148_v18 = vld [vmem:[#allocation3 + $0x38] sm:$0xff]  ;;  %v4147_v54 = vld [vmem:[#allocation3 + $0x30] sm:$0xff]  ;;  %138 = vst.msk [vmem:[#allocation5 + $0x20] sm:$0xff] %vm133_vm4, %v13031_v42  ;;  %139 = vst.msk [vmem:[#allocation5 + $0x28] sm:$0xff] %vm133_vm4, %v13031_v42 }
 0x3a3   :  { %v4009_v60 = vpop.f32.mrf.mxu0  ;;  %5552 = vperm.xlu1 %9931, %v11637_v0   ;;  %140 = vst.msk [vmem:[#allocation5 + $0x30] sm:$0xff] %vm133_vm4, %v13031_v42  ;;  %141 = vst.msk [vmem:[#allocation5 + $0x38] sm:$0xff] %vm133_vm4, %v13031_v42 }
 0x3a4   :  { %v4088_v57 = vadd.f32 %v11620_v20, %v4057_v25  ;;  %v4056_v61 = vadd.f32 %v4009_v60, %v3627_v5  ;;  %v4180_v43 = vld [vmem:[#allocation3 + $0x79] sm:$0xff]  ;;  %v4228_v35 = vld [vmem:[#allocation3 + $0x84] sm:$0xff]  ;;  %v4151_v5 = vld [vmem:[#allocation3 + $0x50] sm:$0xff]  ;;  %5894 = vperm.xlu0 %9943, %v11582_v6  }
 0x3a5   :  { %v4252_v22 = vld [vmem:[#allocation3 + $0x85] sm:$0xff]  ;;  %v4204_v45 = vmax.f32 %v4156_v2, %v4180_v43  ;;  %v4227_v3 = vld [vmem:[#allocation3 + $0x7c] sm:$0xff]  ;;  %v4175_v25 = vld [vmem:[#allocation3 + $0x51] sm:$0xff] }
 0x3a6   :  { %v4276_v50 = vmax.f32 %v4228_v35, %v4252_v22  ;;  %v4251_v1 = vld [vmem:[#allocation3 + $0x7d] sm:$0xff]  ;;  %v4112_v16 = vmax.f32 %v4088_v57, 0.0  ;;  %v4087_v4 = vadd.f32 %v11620_v20, %v4056_v61  ;;  %v9383_v19 = vpop.f32.mrf.mxu1  ;;  %v4174_v60 = vld [vmem:[#allocation3 + $0x49] sm:$0xff]  ;;  %v4271_v57 = vmax.f32 %v4223_v24, %v4247_v48  ;;  %v4171_v24 = vld [vmem:[#allocation3 + $0x31] sm:$0xff] }
 0x3a7   :  { %v4275_v27 = vmax.f32 %v4227_v3, %v4251_v1  ;;  %v3630_v2 = vadd.f32 %v9383_v19, %v11565_v30  ;;  %v4297_v35 = vmax.f32 %v4201_v62, %v4273_v17  ;;  %v4150_v30 = vld [vmem:[#allocation3 + $0x48] sm:$0xff]  ;;  %v4270_v3 = vmax.f32 %v4222_v51, %v4246_v14  ;;  %9933 = vset.pattern.permute.xlu1 %v13029_v37  ;;  %v4218_v62 = vld [vmem:[#allocation3 + $0x34] sm:$0xff] }
 0x3a8   :  { %v4300_v46 = vmax.f32 %v4204_v45, %v4276_v50  ;;  %4136 = vst.msk [vmem:[#allocation3 + $0x98] sm:$0xff] %vm98_vm2, %v4112_v16  ;;  %v4111_v58 = vmax.f32 %v4087_v4, 0.0  ;;  %v3590_v11 = vpop.f32.mrf.mxu1  ;;  %v4199_v45 = vmax.f32 %v4151_v5, %v4175_v25  ;;  %v4198_v50 = vmax.f32 %v4150_v30, %v4174_v60  ;;  %v4221_v1 = vld [vmem:[#allocation3 + $0x4c] sm:$0xff]  ;;  %5708 = vperm.xlu1 %9933, %v11637_v0   ;;  %v4168_v30 = vld [vmem:[#allocation3 + $0x19] sm:$0xff] }
 0x3a9   :  { %v4299_v23 = vmax.f32 %v4203_v47, %v4275_v27  ;;  %v3629_v61 = vadd.f32 %v3590_v11, %v11569_v44  ;;  %v4245_v16 = vld [vmem:[#allocation3 + $0x4d] sm:$0xff]  ;;  %v4296_v27 = vmax.f32 %v4200_v63, %v4272_v8  ;;  %v4149_v44 = vld [vmem:[#allocation3 + $0x40] sm:$0xff]  ;;  %v4242_v63 = vld [vmem:[#allocation3 + $0x35] sm:$0xff]  ;;  %v4195_v14 = vmax.f32 %v4147_v54, %v4171_v24  ;;  %5909 = vperm.xlu0 %9943, %v11668_v49  }
 0x3aa   :  { %4341 = vmatpush1.msra.mxu1 %v4300_v46  ;;  %4135 = vst.msk [vmem:[#allocation3 + $0x90] sm:$0xff] %vm98_vm2, %v4111_v58  ;;  %v4244_v46 = vld [vmem:[#allocation3 + $0x45] sm:$0xff]  ;;  %v4295_v40 = vmax.f32 %v4199_v45, %v4271_v57  ;;  %v4269_v33 = vmax.f32 %v4221_v1, %v4245_v16  ;;  %v4197_v15 = vmax.f32 %v4149_v44, %v4173_v9  ;;  %v4219_v58 = vld [vmem:[#allocation3 + $0x3c] sm:$0xff]  ;;  %v4241_v8 = vld [vmem:[#allocation3 + $0x2d] sm:$0xff] }
 0x3ab   :  { %4342 = vmatprep.subr.mxu1 %v13031_v42  ;;  %v4294_v0 = vmax.f32 %v4198_v50, %v4270_v3  ;;  %v4268_v17 = vmax.f32 %v4220_v36, %v4244_v46  ;;  %v4170_v11 = vld [vmem:[#allocation3 + $0x29] sm:$0xff]  ;;  %v4267_v25 = vmax.f32 %v4219_v58, %v4243_v52  ;;  %v4266_v57 = vmax.f32 %v4218_v62, %v4242_v63  ;;  %v4215_v44 = vld [vmem:[#allocation3 + $0x1c] sm:$0xff] }
 0x3ac   :  { %4343 = vmatpush1.msra.mxu1 %v4299_v23  ;;  %v9421_v13 = vpop.f32.mrf.mxu0  ;;  %v4196_v23 = vmax.f32 %v4148_v18, %v4172_v21  ;;  %9934 = vset.pattern.permute.xlu1 %v13026_v12  ;;  %v4293_v5 = vmax.f32 %v4197_v15, %v4269_v33  ;;  %v4240_v45 = vld [vmem:[#allocation3 + $0x25] sm:$0xff]  ;;  %v4214_v15 = vld [vmem:[#allocation3 + $0x14] sm:$0xff] }
 0x3ad   :  { %4344 = vmatprep.subr.mxu1 %v13031_v42  ;;  %v4059_v43 = vadd.f32 %v9421_v13, %v3630_v2  ;;  %5556 = vperm.xlu1 %9934, %v11590_v26   ;;  %v4146_v2 = vld [vmem:[#allocation3 + $0x28] sm:$0xff]  ;;  %v4291_v3 = vmax.f32 %v4195_v14, %v4267_v25  ;;  %v4238_v18 = vld [vmem:[#allocation3 + $0x15] sm:$0xff] }
 0x3ae   :  { %4345 = vmatpush1.msra.mxu1 %v4298_v32  ;;  %v4019_v22 = vpop.f32.mrf.mxu0  ;;  %v4217_v32 = vld [vmem:[#allocation3 + $0x2c] sm:$0xff]  ;;  %v4292_v51 = vmax.f32 %v4196_v23, %v4268_v17  ;;  %v4194_v13 = vmax.f32 %v4146_v2, %v4170_v11  ;;  %v4262_v62 = vmax.f32 %v4214_v15, %v4238_v18  ;;  %9947 = vset.pattern.permute.xlu0 %v12994_v56 }
 0x3af   :  { %4346 = vmatprep.subr.mxu1 %v13031_v42  ;;  %v4090_v4 = vadd.f32 %v11620_v20, %v4059_v43  ;;  %v4058_v19 = vadd.f32 %v4019_v22, %v3629_v61  ;;  %v4145_v61 = vld [vmem:[#allocation3 + $0x20] sm:$0xff]  ;;  %v4265_v1 = vmax.f32 %v4217_v32, %v4241_v8  ;;  %v4166_v33 = vld [vmem:[#allocation3 + $0x9] sm:$0xff]  ;;  %6348 = vperm.xlu0 %9947, %v11605_v39  }
 0x3b0   :  { %4347 = vmatpush1.msra.mxu1 %v4297_v35  ;;  %v4169_v43 = vld [vmem:[#allocation3 + $0x21] sm:$0xff]  ;;  %v4290_v21 = vmax.f32 %v4194_v13, %v4266_v57  ;;  %v4213_v54 = vld [vmem:[#allocation3 + $0xc] sm:$0xff] }
 0x3b1   :  { %4348 = vmatprep.subr.mxu1 %v13031_v42  ;;  %v4114_v47 = vmax.f32 %v4090_v4, 0.0  ;;  %v4089_v41 = vadd.f32 %v11620_v20, %v4058_v19  ;;  %v4216_v22 = vld [vmem:[#allocation3 + $0x24] sm:$0xff]  ;;  %9936 = vset.pattern.permute.xlu1 %v13029_v37  ;;  %v4193_v19 = vmax.f32 %v4145_v61, %v4169_v43  ;;  %v4237_v24 = vld [vmem:[#allocation3 + $0xd] sm:$0xff] }
 0x3b2   :  { %4349 = vmatpush1.msra.mxu1 %v4296_v27  ;;  %v4144_v27 = vld [vmem:[#allocation3 + $0x18] sm:$0xff]  ;;  %5712 = vperm.xlu1 %9936, %v11590_v26   ;;  %v4264_v46 = vmax.f32 %v4216_v22, %v4240_v45  ;;  %v4142_v17 = vld [vmem:[#allocation3 + $0x8] sm:$0xff]  ;;  %v4261_v2 = vmax.f32 %v4213_v54, %v4237_v24  ;;  %v11889_v15 = vld [vmem:[%s12875_s8 + $0x10] sm:$0xff] }
 0x3b3   :  { %4350 = vmatprep.subr.mxu1 %v13031_v42  ;;  %4138 = vst.msk [vmem:[#allocation3 + $0xa8] sm:$0xff] %vm98_vm2, %v4114_v47  ;;  %v4113_v59 = vmax.f32 %v4089_v41, 0.0  ;;  %v4192_v36 = vmax.f32 %v4144_v27, %v4168_v30  ;;  %v4143_v47 = vld [vmem:[#allocation3 + $0x10] sm:$0xff]  ;;  %v4289_v58 = vmax.f32 %v4193_v19, %v4265_v1  ;;  %v4190_v11 = vmax.f32 %v4142_v17, %v4166_v33 }
 0x3b4   :  { %4351 = vmatpush1.msra.mxu1 %v4295_v40  ;;  %v9386_v48 = vpop.f32.mrf.mxu1  ;;  %v4167_v41 = vld [vmem:[#allocation3 + $0x11] sm:$0xff]  ;;  %6364 = vperm.xlu0 %9947, %v11590_v26   ;;  %v4182_v17 = vld [vmem:[#allocation3 + $0x89] sm:$0xff] }
 0x3b5   :  { %4352 = vmatprep.subr.mxu1 %v13031_v42  ;;  %4137 = vst.msk [vmem:[#allocation3 + $0xa0] sm:$0xff] %vm98_vm2, %v4113_v59  ;;  %v3632_v35 = vadd.f32 %v9386_v48, %v11595_v31  ;;  %v4239_v31 = vld [vmem:[#allocation3 + $0x1d] sm:$0xff]  ;;  %v4191_v23 = vmax.f32 %v4143_v47, %v4167_v41  ;;  %v4288_v48 = vmax.f32 %v4192_v36, %v4264_v46  ;;  %v4230_v54 = vld [vmem:[#allocation3 + $0x94] sm:$0xff] }
 0x3b6   :  { %4353 = vmatpush1.msra.mxu1 %v4294_v0  ;;  %v3600_v60 = vpop.f32.mrf.mxu1  ;;  %v4263_v52 = vmax.f32 %v4215_v44, %v4239_v31  ;;  %5716 = vperm.xlu1 %9936, %v11668_v49   ;;  %v4286_v32 = vmax.f32 %v4190_v11, %v4262_v62  ;;  %v11882_v46 = vld [vmem:[%s12875_s8 + $0x20] sm:$0xff]  ;;  %v4254_v24 = vld [vmem:[#allocation3 + $0x95] sm:$0xff] }
 0x3b7   :  { %4354 = vmatprep.subr.mxu1 %v13031_v42  ;;  %v3631_v16 = vadd.f32 %v3600_v60, %v11598_v38  ;;  %v4236_v60 = vld [vmem:[#allocation3 + $0xc4] sm:$0xff] }
 0x3b8   :  { %4355 = vmatpush1.msra.mxu1 %v4293_v5  ;;  %v4165_v5 = vld [vmem:[#allocation3 + $0x1] sm:$0xff]  ;;  %v4287_v25 = vmax.f32 %v4191_v23, %v4263_v52  ;;  %9952 = vset.pattern.permute.xlu0 %v12998_v10  ;;  %v4183_v23 = vld [vmem:[#allocation3 + $0x91] sm:$0xff] }
 0x3b9   :  { %4356 = vmatprep.subr.mxu1 %v13031_v42  ;;  %v9424_v50 = vpop.f32.mrf.mxu0  ;;  %v11897_v62 = vld [vmem:[%s12875_s8] sm:$0xff] }
 0x3ba   :  { %4357 = vmatpush1.msra.mxu1 %v4292_v51  ;;  %v4061_v4 = vadd.f32 %v9424_v50, %v3632_v35  ;;  %9938 = vset.pattern.permute.xlu1 %v13030_v28  ;;  %v4260_v51 = vld [vmem:[#allocation3 + $0xc5] sm:$0xff] }
 0x3bb   :  { %4358 = vmatprep.subr.mxu1 %v13031_v42  ;;  %v4029_v9 = vpop.f32.mrf.mxu0  ;;  %5931 = vperm.xlu1 %9938, %v11574_v34   ;;  %v4284_v14 = vmax.f32 %v4236_v60, %v4260_v51  ;;  %v4162_v34 = vld [vmem:[#allocation3 + $0xa8] sm:$0xff]  ;;  %v4157_v60 = vld [vmem:[#allocation3 + $0x80] sm:$0xff] }
 0x3bc   :  { %4359 = vmatpush1.msra.mxu1 %v4291_v3  ;;  %v4092_v38 = vadd.f32 %v11620_v20, %v4061_v4  ;;  %v4060_v40 = vadd.f32 %v4029_v9, %v3631_v16  ;;  %v4161_v22 = vld [vmem:[#allocation3 + $0xa0] sm:$0xff]  ;;  %v11876_v3 = vld [vmem:[%s12875_s8 + $0x8] sm:$0xff] }
 0x3bd   :  { %4360 = vmatprep.subr.mxu1 %v13031_v42  ;;  %v4185_v45 = vld [vmem:[#allocation3 + $0xa1] sm:$0xff]  ;;  %v4184_v50 = vld [vmem:[#allocation3 + $0x99] sm:$0xff]  ;;  %6509 = vperm.xlu0 %9952, %v11876_v3  }
 0x3be   :  { %4361 = vmatpush1.msra.mxu1 %v4290_v21  ;;  %v4116_v59 = vmax.f32 %v4092_v38, 0.0  ;;  %v4091_v0 = vadd.f32 %v11620_v20, %v4060_v40  ;;  %v4141_v20 = vld [vmem:[#allocation3] sm:$0xff]  ;;  %v4160_v38 = vld [vmem:[#allocation3 + $0x98] sm:$0xff] }
 0x3bf   :  { %4362 = vmatprep.subr.mxu1 %v13031_v42  ;;  %v4189_v8 = vmax.f32 %v4141_v20, %v4165_v5  ;;  %5935 = vperm.xlu1 %9938, %v11582_v6   ;;  %v4232_v21 = vld [vmem:[#allocation3 + $0xa4] sm:$0xff]  ;;  %v4231_v40 = vld [vmem:[#allocation3 + $0x9c] sm:$0xff]  ;;  %v4208_v52 = vmax.f32 %v4160_v38, %v4184_v50  ;;  %v4229_v20 = vld [vmem:[#allocation3 + $0x8c] sm:$0xff] }
 0x3c0   :  { %4363 = vmatpush1.msra.mxu1 %v4289_v58  ;;  %4140 = vst.msk [vmem:[#allocation3 + $0xb8] sm:$0xff] %vm98_vm2, %v4116_v59  ;;  %v4115_v63 = vmax.f32 %v4091_v0, 0.0  ;;  %v4256_v36 = vld [vmem:[#allocation3 + $0xa5] sm:$0xff]  ;;  %v4255_v33 = vld [vmem:[#allocation3 + $0x9d] sm:$0xff]  ;;  %v4209_v58 = vmax.f32 %v4161_v22, %v4185_v45  ;;  %v4159_v0 = vld [vmem:[#allocation3 + $0x90] sm:$0xff] }
 0x3c1   :  { %4364 = vmatprep.subr.mxu1 %v13031_v42  ;;  %v4285_v39 = vmax.f32 %v4189_v8, %v4261_v2  ;;  %6513 = vperm.xlu0 %9952, %v11889_v15   ;;  %v4280_v59 = vmax.f32 %v4232_v21, %v4256_v36  ;;  %v4279_v11 = vmax.f32 %v4231_v40, %v4255_v33  ;;  %v4253_v5 = vld [vmem:[#allocation3 + $0x8d] sm:$0xff]  ;;  %v4181_v51 = vld [vmem:[#allocation3 + $0x81] sm:$0xff]  ;;  %v4316_v22 = vld [vmem:[%s12876_s9 + $0x38] sm:$0xff] }
 0x3c2   :  { %4365 = vmatpush1.msra.mxu1 %v4288_v48  ;;  %4139 = vst.msk [vmem:[#allocation3 + $0xb0] sm:$0xff] %vm98_vm2, %v4115_v63  ;;  %v4158_v63 = vld [vmem:[#allocation3 + $0x88] sm:$0xff]  ;;  %v4207_v2 = vmax.f32 %v4159_v0, %v4183_v23  ;;  %v4278_v8 = vmax.f32 %v4230_v54, %v4254_v24  ;;  %v4315_v45 = vld [vmem:[%s12876_s9 + $0x30] sm:$0xff]  ;;  %v12045_v40 = vld [vmem:[%s13024_s27 + $0x20] sm:$0xff] }
 0x3c3   :  { %4366 = vmatprep.subr.mxu1 %v13031_v42  ;;  %5943 = vperm.xlu1 %9938, %v11882_v46   ;;  %v4318_v50 = vld [vmem:[%s12876_s9 + $0x48] sm:$0xff] }
 0x3c4   :  { %4367 = vmatpush1.msra.mxu1 %v4287_v25  ;;  %v4304_v25 = vmax.f32 %v4208_v52, %v4280_v59  ;;  %9469 = vmatprep.subr.mxu0 %v12045_v40 }
 0x3c5   :  { %4368 = vmatprep.subr.mxu1 %v13031_v42  ;;  %6525 = vperm.xlu0 %9952, %v11668_v49  }
 0x3c6   :  { %4369 = vmatpush1.msra.mxu1 %v4286_v32  ;;  %v4206_v32 = vmax.f32 %v4158_v63, %v4182_v17 }
 0x3c7   :  { %4370 = vmatprep.subr.mxu1 %v13031_v42  ;;  %v4164_v13 = vld [vmem:[#allocation3 + $0xb8] sm:$0xff]  ;;  %9939 = vset.pattern.permute.xlu1 %v12979_v29 }
 0x3c8   :  { %4371 = vmatpush1.msra.mxu1 %v4285_v39  ;;  %v4188_v57 = vld [vmem:[#allocation3 + $0xb9] sm:$0xff]  ;;  %5884 = vperm.xlu1 %9939, %v11897_v62   ;;  %v4303_v39 = vmax.f32 %v4207_v2, %v4279_v11  ;;  %v4302_v49 = vmax.f32 %v4206_v32, %v4278_v8 }
 0x3c9   :  { %v4235_v28 = vld [vmem:[#allocation3 + $0xbc] sm:$0xff]  ;;  %4388 = vmatprep.subr.mxu1 %v13031_v42  ;;  %v4212_v61 = vmax.f32 %v4164_v13, %v4188_v57  ;;  %v4163_v35 = vld [vmem:[#allocation3 + $0xb0] sm:$0xff]  ;;  %v4205_v13 = vmax.f32 %v4157_v60, %v4181_v51  ;;  %9958 = vset.pattern.permute.xlu0 %v13014_v7 }
 0x3ca   :  { %v4259_v43 = vld [vmem:[#allocation3 + $0xbd] sm:$0xff]  ;;  %v4187_v26 = vld [vmem:[#allocation3 + $0xb1] sm:$0xff]  ;;  %v4186_v30 = vld [vmem:[#allocation3 + $0xa9] sm:$0xff] }
 0x3cb   :  { %v4308_v6 = vmax.f32 %v4212_v61, %v4284_v14  ;;  %v4211_v1 = vmax.f32 %v4163_v35, %v4187_v26  ;;  %v4283_v16 = vmax.f32 %v4235_v28, %v4259_v43  ;;  %v4210_v4 = vmax.f32 %v4162_v34, %v4186_v30  ;;  %v4234_v19 = vld [vmem:[#allocation3 + $0xb4] sm:$0xff]  ;;  %v4233_v44 = vld [vmem:[#allocation3 + $0xac] sm:$0xff]  ;;  %v4309_v61 = vld [vmem:[%s12876_s9] sm:$0xff] }
 0x3cc   :  { %v4258_v27 = vld [vmem:[#allocation3 + $0xb5] sm:$0xff]  ;;  %v4257_v9 = vld [vmem:[#allocation3 + $0xad] sm:$0xff]  ;;  %v4277_v14 = vmax.f32 %v4229_v20, %v4253_v5  ;;  %9940 = vset.pattern.permute.xlu1 %v12980_v53  ;;  %v4313_v30 = vld [vmem:[%s12876_s9 + $0x20] sm:$0xff] }
 0x3cd   :  { %v4282_v31 = vmax.f32 %v4234_v19, %v4258_v27  ;;  %4389 = vmatpush2.msra.mxu1 %v4308_v6  ;;  %v4307_v47 = vmax.f32 %v4211_v1, %v4283_v16  ;;  %v4281_v41 = vmax.f32 %v4233_v44, %v4257_v9  ;;  %6191 = vperm.xlu1 %9940, %v11897_v62   ;;  %v11911_v57 = vld [vmem:[%s12875_s8 + $0x18] sm:$0xff]  ;;  %v4526_v43 = vld [vmem:[%s13024_s27 + $0x8] sm:$0xff]  ;;  %v4311_v35 = vld [vmem:[%s12876_s9 + $0x10] sm:$0xff] }
 0x3ce   :  { %4390 = vmatprep.subr.mxu1 %v13031_v42  ;;  %6674 = vperm.xlu0 %9958, %v11911_v57   ;;  %v4301_v28 = vmax.f32 %v4205_v13, %v4277_v14  ;;  %v4312_v34 = vld [vmem:[%s12876_s9 + $0x18] sm:$0xff]  ;;  %v4314_v26 = vld [vmem:[%s12876_s9 + $0x28] sm:$0xff]  ;;  %v4317_v6 = vld [vmem:[%s12876_s9 + $0x40] sm:$0xff] }
 0x3cf   :  { %4391 = vmatpush2.msra.mxu1 %v4307_v47  ;;  %v4306_v18 = vmax.f32 %v4210_v4, %v4282_v31  ;;  %v4305_v48 = vmax.f32 %v4209_v58, %v4281_v41  ;;  %v4320_v1 = vld [vmem:[%s12876_s9 + $0x58] sm:$0xff]  ;;  %v11975_v16 = vld [vmem:[%s12875_s8 + $0x28] sm:$0xff]  ;;  %v11978_v4 = vpop.permute.xlu1 %4501  ;;  %v12031_v47 = vld [vmem:[%s13024_s27] sm:$0xff]  ;;  %v4498_v58 = vpop.permute.xlu0 %4497 }
 0x3d0   :  { %4392 = vmatprep.subr.mxu1 %v13031_v42 }
 0x3d1   :  { %4393 = vmatpush2.msra.mxu1 %v4306_v18  ;;  %6195 = vperm.xlu1 %9940, %v11876_v3  }
 0x3d2   :  { %4394 = vmatprep.subr.mxu1 %v13031_v42  ;;  %6678 = vperm.xlu0 %9958, %v11882_v46  }
 0x3d3   :  { %4395 = vmatpush2.msra.mxu1 %v4305_v48  ;;  %v4510_v52 = vpop.permute.xlu0 %4509 }
 0x3d4   :  { %4396 = vmatprep.subr.mxu1 %v13031_v42 }
 0x3d5   :  { %4397 = vmatpush2.msra.mxu1 %v4304_v25  ;;  %9941 = vset.pattern.permute.xlu1 %v12979_v29 }
 0x3d6   :  { %4398 = vmatprep.subr.mxu1 %v13031_v42  ;;  %5899 = vperm.xlu1 %9941, %v11911_v57  }
 0x3d7   :  { %4399 = vmatpush2.msra.mxu1 %v4303_v39  ;;  %9960 = vset.pattern.permute.xlu0 %v13018_v55  ;;  %v12074_v59 = vpop.permute.xlu0 %4517 }
 0x3d8   :  { %4400 = vmatprep.subr.mxu1 %v13031_v42  ;;  %6819 = vperm.xlu0 %9960, %v11897_v62  }
 0x3d9   :  { %4401 = vmatpush2.msra.mxu1 %v4302_v49 }
 0x3da   :  { %4402 = vmatprep.subr.mxu1 %v13031_v42  ;;  %9944 = vset.pattern.permute.xlu1 %v12980_v53 }
 0x3db   :  { %4403 = vmatpush2.msra.mxu1 %v4301_v28  ;;  %6203 = vperm.xlu1 %9944, %v11911_v57   ;;  %v4769_v0 = vpop.permute.xlu0 %4768 }
 0x3dc   :  { %4405 = vmatmul.mubr.f32.vlgmr.msra.gmra.mxu1 %v4309_v61  ;;  %9425 = vmatprep.subr.mxu1 %v4526_v43 }
 0x3dd   :  { %8525 = vmatprep.mubr.msk.f32.mxu1 %vm4321_vm3, %v4312_v34  ;;  %9426 = vmatpush3.msra.mxu1 %v4526_v43 }
 0x3de   :  { %6835 = vperm.xlu0 %9960, %v11882_v46   ;;  %9436 = vmatprep.subr.mxu1 %v12031_v47 }
 0x3df   :  { %9945 = vset.pattern.permute.xlu1 %v12979_v29  ;;  %v4319_v29 = vld [vmem:[%s12876_s9 + $0x50] sm:$0xff]  ;;  %v12076_v23 = vpop.permute.xlu0 %4460 }
 0x3e0   :  { %4410 = vmatmul.mubr.f32.gmra.mxu1 %v4311_v35  ;;  %5904 = vperm.xlu1 %9945, %v11882_v46  }
 0x3e1   :  { %8526 = vmatprep.mubr.msk.f32.mxu1 %vm4321_vm3, %v4314_v26  ;;  %v12114_v26 = vld [vmem:[%s13024_s27 + $0x18] sm:$0xff] }
 0x3e2   :  { %9964 = vset.pattern.permute.xlu0 %v13026_v12 }
 0x3e3   :  { %6980 = vperm.xlu0 %9964, %v11876_v3  }
 0x3e4   :  { %4415 = vmatmul.mubr.f32.gmra.mxu1 %v4313_v30  ;;  %9946 = vset.pattern.permute.xlu1 %v12980_v53  ;;  %v11985_v53 = vpop.permute.xlu1 %4505  ;;  %v12119_v30 = vld [vmem:[%s13024_s27 + $0x30] sm:$0xff] }
 0x3e5   :  { %8527 = vmatprep.mubr.msk.f32.mxu1 %vm4321_vm3, %v4316_v22  ;;  %6207 = vperm.xlu1 %9946, %v11882_v46  }
 0x3e7   :  { %6984 = vperm.xlu0 %9964, %v11889_v15  }
 0x3e8   :  { %4420 = vmatmul.mubr.f32.gmra.mxu1 %v4315_v45  ;;  %v11991_v19 = vpop.permute.xlu1 %4513 }
 0x3e9   :  { %8528 = vmatprep.mubr.msk.f32.mxu1 %vm4321_vm3, %v4318_v50  ;;  %6211 = vperm.xlu1 %9946, %v11975_v16  }
 0x3eb   :  { %9967 = vset.pattern.permute.xlu0 %v13029_v37 }
 0x3ec   :  { %4425 = vmatmul.mubr.f32.gmra.mxu1 %v4317_v6  ;;  %7141 = vperm.xlu0 %9967, %v11889_v15   ;;  %v11996_v27 = vpop.permute.xlu1 %4455 }
 0x3ed   :  { %8529 = vmatprep.mubr.msk.f32.mxu1 %vm4321_vm3, %v4320_v1  ;;  %9948 = vset.pattern.permute.xlu1 %v12994_v56 }
 0x3ee   :  { %6352 = vperm.xlu1 %9948, %v11876_v3  }
 0x3f0   :  { %4430 = vmatmul.mubr.f32.gmra.mxu1 %v4319_v29  ;;  %9970 = vset.pattern.permute.xlu0 %v13026_v12  ;;  %v12000_v44 = vpop.permute.xlu1 %4760 }
 0x3f1   :  { %6996 = vperm.xlu0 %9970, %v11975_v16  }
 0x3f2   :  { %9949 = vset.pattern.permute.xlu1 %v12998_v10 }
 0x3f3   :  { %6505 = vperm.xlu1 %9949, %v11897_v62  }
 0x3f4   :  { %v12004_v31 = vpop.permute.xlu1 %4764 }
 0x3f5   :  { %9972 = vset.pattern.permute.xlu0 %v13029_v37 }
 0x3f7   :  { %9950 = vset.pattern.permute.xlu1 %v12994_v56 }
 0x3f8   :  { %6356 = vperm.xlu1 %9950, %v11889_v15   ;;  %v12008_v9 = vpop.permute.xlu1 %4470 }
 0x3fc   :  { %6360 = vperm.xlu1 %9950, %v11911_v57   ;;  %v12013_v21 = vpop.permute.xlu1 %4772 }
 0x400   :  { %9951 = vset.pattern.permute.xlu1 %v12998_v10 }
 0x401   :  { %6517 = vperm.xlu1 %9951, %v11911_v57  }
 0x405   :  { %9953 = vset.pattern.permute.xlu1 %v12994_v56  ;;  %v12017_v56 = vpop.permute.xlu1 %4475 }
 0x406   :  { %6368 = vperm.xlu1 %9953, %v11975_v16  }
 0x40a   :  { %9954 = vset.pattern.permute.xlu1 %v12998_v10  ;;  %v12021_v10 = vpop.permute.xlu1 %4776 }
 0x40b   :  { %6521 = vperm.xlu1 %9954, %v11882_v46  }
 0x40e   :  { %v12025_v36 = vpop.permute.xlu1 %4780 }
 0x40f   :  { %9955 = vset.pattern.permute.xlu1 %v13014_v7 }
 0x410   :  { %6662 = vperm.xlu1 %9955, %v11897_v62  }
 0x412   :  { %v12036_v41 = vpop.permute.xlu1 %4920 }
 0x414   :  { %6666 = vperm.xlu1 %9955, %v11876_v3  }
 0x416   :  { %v12040_v38 = vpop.permute.xlu1 %5072 }
 0x418   :  { %9956 = vset.pattern.permute.xlu1 %v13018_v55 }
 0x419   :  { %6823 = vperm.xlu1 %9956, %v11876_v3  }
 0x41d   :  { %9957 = vset.pattern.permute.xlu1 %v13014_v7 }
 0x41e   :  { %6670 = vperm.xlu1 %9957, %v11889_v15  }
 0x422   :  { %9959 = vset.pattern.permute.xlu1 %v13018_v55 }
 0x423   :  { %6827 = vperm.xlu1 %9959, %v11889_v15  }
 0x427   :  { %6831 = vperm.xlu1 %9959, %v11911_v57  }
 0x42b   :  { %9961 = vset.pattern.permute.xlu1 %v13014_v7  ;;  %v12050_v7 = vpop.permute.xlu1 %4924 }
 0x42c   :  { %6682 = vperm.xlu1 %9961, %v11975_v16  }
 0x430   :  { %9962 = vset.pattern.permute.xlu1 %v13018_v55  ;;  %v12054_v55 = vpop.permute.xlu1 %4928 }
 0x431   :  { %6839 = vperm.xlu1 %9962, %v11975_v16  }
 0x434   :  { %v12059_v33 = vpop.permute.xlu1 %5084 }
 0x435   :  { %9963 = vset.pattern.permute.xlu1 %v13026_v12 }
 0x436   :  { %6976 = vperm.xlu1 %9963, %v11897_v62  }
 0x438   :  { %v12063_v15 = vpop.permute.xlu1 %4936 }
 0x43a   :  { %9965 = vset.pattern.permute.xlu1 %v13029_v37 }
 0x43b   :  { %7133 = vperm.xlu1 %9965, %v11897_v62  }
 0x43c   :  { %v12067_v18 = vpop.permute.xlu1 %5088 }
 0x43f   :  { %7137 = vperm.xlu1 %9965, %v11876_v3  }
 0x440   :  { %v12071_v3 = vpop.permute.xlu1 %5228 }
 0x443   :  { %9966 = vset.pattern.permute.xlu1 %v13026_v12 }
 0x444   :  { %6988 = vperm.xlu1 %9966, %v11911_v57   ;;  %v12080_v17 = vpop.permute.xlu1 %5232 }
 0x448   :  { %9968 = vset.pattern.permute.xlu1 %v13029_v37 }
 0x449   :  { %7145 = vperm.xlu1 %9968, %v11911_v57  }
 0x44d   :  { %9969 = vset.pattern.permute.xlu1 %v13026_v12  ;;  %v12078_v12 = vpop.permute.xlu0 %4465 }
 0x44e   :  { %6992 = vperm.xlu1 %9969, %v11882_v46  }
 0x451   :  { %v12082_v54 = vpop.permute.xlu0 %4480 }
 0x452   :  { %9971 = vset.pattern.permute.xlu1 %v13029_v37  ;;  %v12084_v37 = vpop.permute.xlu1 %5388 }
 0x453   :  { %7149 = vperm.xlu1 %9971, %v11882_v46  }
 0x455   :  { %v12086_v46 = vpop.permute.xlu0 %4916 }
 0x456   :  { %v12088_v24 = vpop.permute.xlu1 %5236 }
 0x457   :  { %7153 = vperm.xlu1 %9971, %v11975_v16  }
 0x459   :  { %v12090_v48 = vpop.permute.xlu0 %4932 }
 0x45a   :  { %v12092_v11 = vpop.permute.xlu1 %5392 }
 0x45d   :  { %v12095_v20 = vpop.permute.xlu0 %5076 }
 0x45e   :  { %v12097_v5 = vpop.permute.xlu1 %5396 }
 0x461   :  { %v12100_v51 = vpop.permute.xlu0 %5080 }
 0x462   :  { %v12102_v39 = vpop.permute.xlu1 %5248 }
 0x465   :  { %v12121_v22 = vpop.permute.xlu0 %5092 }
 0x466   :  { %v12123_v45 = vpop.permute.xlu1 %5404 }
 0x49c   :  { %v4406_v62 = vpop.f32.mrf.mxu1 }
 0x49d   :  { %4435 = vst.msk [vmem:[#allocation4 + $0x8] sm:$0xff] %vm98_vm2, %v4406_v62 }
 0x49e   :  { %v4408_v63 = vpop.f32.mrf.mxu1 }
 0x4a0   :  { %v4411_v25 = vpop.f32.mrf.mxu1 }
 0x4a1   :  { %4436 = vst.msk [vmem:[#allocation4 + $0x10] sm:$0xff] %vm98_vm2, %v4411_v25 }
 0x4a2   :  { %v4413_v2 = vpop.f32.mrf.mxu1 }
 0x4a4   :  { %v4416_v32 = vpop.f32.mrf.mxu1  ;;  %v4490_v8 = vld [vmem:[#allocation4 + $0x2] sm:$0xff] }
 0x4a5   :  { %v4753_v60 = vld [vmem:[#allocation4 + $0x3] sm:$0xff]  ;;  %4437 = vst.msk [vmem:[#allocation4 + $0x18] sm:$0xff] %vm98_vm2, %v4416_v32  ;;  %v4520_v14 = vmul.f32 %v4498_v58, %v4490_v8  ;;  %v12135_v58 = vpop.permute.xlu0 %5240 }
 0x4a6   :  { %v4783_v49 = vmul.f32 %v12000_v44, %v4753_v60  ;;  %v4418_v13 = vpop.f32.mrf.mxu1 }
 0x4a7   :  { %9427 = vmatprep.mubr.msk.f32.mxu1 %vm98_vm2, %v4520_v14 }
 0x4a8   :  { %9449 = vmatprep.mubr.msk.f32.mxu0 %vm98_vm2, %v4783_v49  ;;  %v4421_v57 = vpop.f32.mrf.mxu1  ;;  %v4491_v28 = vld [vmem:[#allocation4 + $0xa] sm:$0xff] }
 0x4a9   :  { %v4754_v61 = vld [vmem:[#allocation4 + $0xb] sm:$0xff]  ;;  %4438 = vst.msk [vmem:[#allocation4 + $0x20] sm:$0xff] %vm98_vm2, %v4421_v57  ;;  %v4521_v43 = vmul.f32 %v11978_v4, %v4491_v28  ;;  %v12145_v8 = vpop.permute.xlu0 %5244 }
 0x4aa   :  { %v4784_v34 = vmul.f32 %v12004_v31, %v4754_v61  ;;  %v4423_v35 = vpop.f32.mrf.mxu1  ;;  %v12155_v28 = vld [vmem:[#allocation4 + $0x9] sm:$0xff] }
 0x4ab   :  { %9428 = vmatmul.mubr.msk.f32.vlgmr.msra.gmra.mxu1 %vm98_vm2, %v4521_v43  ;;  %v5066_v61 = vld [vmem:[#allocation4 + $0x10] sm:$0xff] }
 0x4ac   :  { %9450 = vmatmul.mubr.msk.f32.vlgmr.msra.gmra.mxu0 %vm98_vm2, %v4784_v34  ;;  %v4426_v50 = vpop.f32.mrf.mxu1  ;;  %v4492_v6 = vld [vmem:[#allocation4 + $0x12] sm:$0xff]  ;;  %9437 = vmatpush3.msra.mxu1 %v12031_v47  ;;  %v12137_v47 = vpop.permute.xlu1 %5540 }
 0x4ad   :  { %v4755_v1 = vld [vmem:[#allocation4 + $0x13] sm:$0xff]  ;;  %9470 = vmatpush3.msra.mxu0 %v12045_v40  ;;  %4439 = vst.msk [vmem:[#allocation4 + $0x28] sm:$0xff] %vm98_vm2, %v4426_v50  ;;  %v4522_v29 = vmul.f32 %v11985_v53, %v4492_v6  ;;  %9458 = vmatprep.subr.mxu1 %v12114_v26  ;;  %v5385_v34 = vpop.permute.xlu0 %5384 }
 0x4ae   :  { %v4785_v16 = vmul.f32 %v4769_v0, %v4755_v1  ;;  %9491 = vmatprep.subr.mxu0 %v12119_v30  ;;  %v4428_v4 = vpop.f32.mrf.mxu1  ;;  %v12159_v43 = vld [vmem:[#allocation4 + $0x11] sm:$0xff] }
 0x4af   :  { %9430 = vmatprep.mubr.msk.f32.mxu1 %vm98_vm2, %v4522_v29  ;;  %v5257_v1 = vld [vmem:[%s13024_s27 + $0x28] sm:$0xff] }
 0x4b0   :  { %9452 = vmatprep.mubr.msk.f32.mxu0 %vm98_vm2, %v4785_v16  ;;  %v4431_v44 = vpop.f32.mrf.mxu1  ;;  %v4493_v31 = vld [vmem:[#allocation4 + $0x1a] sm:$0xff]  ;;  %v12147_v60 = vpop.permute.xlu1 %5696 }
 0x4b1   :  { %4440 = vst.msk [vmem:[#allocation4 + $0x30] sm:$0xff] %vm98_vm2, %v4431_v44  ;;  %v4523_v40 = vmul.f32 %v4510_v52, %v4493_v31  ;;  %v4756_v53 = vld [vmem:[#allocation4 + $0x1b] sm:$0xff] }
 0x4b2   :  { %v4433_v0 = vpop.f32.mrf.mxu1  ;;  %v4786_v62 = vmul.f32 %v12013_v21, %v4756_v53  ;;  %v4441_v52 = vld [vmem:[#allocation4 + $0x1] sm:$0xff]  ;;  %v12170_v50 = vld [vmem:[#allocation4 + $0x19] sm:$0xff] }
 0x4b3   :  { %9431 = vmatmul.mubr.msk.f32.gmra.mxu1 %vm98_vm2, %v4523_v40  ;;  %v5065_v21 = vld [vmem:[#allocation4 + $0x8] sm:$0xff]  ;;  %v5068_v6 = vld [vmem:[#allocation4 + $0x20] sm:$0xff] }
 0x4b4   :  { %9453 = vmatmul.mubr.msk.f32.gmra.mxu0 %vm98_vm2, %v4786_v62  ;;  %v4494_v63 = vld [vmem:[#allocation4 + $0x22] sm:$0xff]  ;;  %v12161_v35 = vpop.permute.xlu1 %5700  ;;  %v5098_v4 = vmul.f32 %v12059_v33, %v5068_v6  ;;  %v5377_v33 = vld [vmem:[#allocation4 + $0xd] sm:$0xff] }
 0x4b5   :  { %v4757_v25 = vld [vmem:[#allocation4 + $0x23] sm:$0xff]  ;;  %v4524_v2 = vmul.f32 %v11991_v19, %v4494_v63  ;;  %v4483_v19 = vmul.f32 %v11996_v27, %v4441_v52  ;;  %v4484_v27 = vmul.f32 %v12076_v23, %v12155_v28  ;;  %v5407_v0 = vmul.f32 %v5385_v34, %v5377_v33  ;;  %v4910_v62 = vld [vmem:[#allocation4 + $0xf] sm:$0xff] }
 0x4b6   :  { %v4787_v32 = vmul.f32 %v12021_v10, %v4757_v25  ;;  %v5095_v10 = vmul.f32 %v12040_v38, %v5065_v21  ;;  %v5096_v38 = vmul.f32 %v12095_v20, %v5066_v61  ;;  %v12178_v16 = vld [vmem:[#allocation4 + $0x21] sm:$0xff]  ;;  %v4486_v20 = vmul.f32 %v12008_v9, %v12170_v50  ;;  %v5378_v63 = vld [vmem:[#allocation4 + $0x15] sm:$0xff] }
 0x4b7   :  { %9433 = vmatprep.mubr.msk.f32.mxu1 %vm98_vm2, %v4524_v2  ;;  %v5069_v23 = vld [vmem:[#allocation4 + $0x28] sm:$0xff]  ;;  %v4487_v31 = vmul.f32 %v12017_v56, %v12178_v16  ;;  %v4911_v25 = vld [vmem:[#allocation4 + $0x17] sm:$0xff]  ;;  %v5691_v52 = vld [vmem:[#allocation4 + $0x1f] sm:$0xff] }
 0x4b8   :  { %9455 = vmatprep.mubr.msk.f32.mxu0 %vm98_vm2, %v4787_v32  ;;  %v4495_v14 = vld [vmem:[#allocation4 + $0x2a] sm:$0xff]  ;;  %v12190_v44 = vpop.permute.xlu1 %5552  ;;  %v5099_v40 = vmul.f32 %v12067_v18, %v5069_v23  ;;  %v4941_v21 = vmul.f32 %v12050_v7, %v4911_v25 }
 0x4b9   :  { %v4758_v49 = vld [vmem:[#allocation4 + $0x2b] sm:$0xff]  ;;  %v4525_v13 = vmul.f32 %v12074_v59, %v4495_v14  ;;  %v4485_v59 = vmul.f32 %v12078_v12, %v12159_v43 }
 0x4ba   :  { %v4788_v57 = vmul.f32 %v12025_v36, %v4758_v49  ;;  %v5067_v36 = vld [vmem:[#allocation4 + $0x18] sm:$0xff]  ;;  %v5725_v12 = vld [vmem:[%s13024_s27 + $0x40] sm:$0xff]  ;;  %v4909_v9 = vld [vmem:[#allocation4 + $0x7] sm:$0xff] }
 0x4bb   :  { %9434 = vmatmul.mubr.msk.f32.gmra.mxu1 %vm98_vm2, %v4525_v13  ;;  %v5097_v29 = vmul.f32 %v12100_v51, %v5067_v36  ;;  %v5401_v51 = vpop.permute.xlu0 %5400  ;;  %v12195_v53 = vld [vmem:[#allocation4 + $0x29] sm:$0xff]  ;;  %v5382_v36 = vld [vmem:[#allocation4 + $0x35] sm:$0xff] }
 0x4bc   :  { %9456 = vmatmul.mubr.msk.f32.gmra.mxu0 %vm98_vm2, %v4788_v57  ;;  %9438 = vmatprep.mubr.msk.f32.mxu1 %vm98_vm2, %v4483_v19  ;;  %v4488_v56 = vmul.f32 %v12082_v54, %v12195_v53  ;;  %v5709_v32 = vpop.permute.xlu1 %5708  ;;  %v5379_v54 = vld [vmem:[#allocation4 + $0x1d] sm:$0xff]  ;;  %v5380_v14 = vld [vmem:[#allocation4 + $0x25] sm:$0xff]  ;;  %v5381_v57 = vld [vmem:[#allocation4 + $0x2d] sm:$0xff] }
 0x4bd   :  { %9471 = vmatprep.mubr.msk.f32.mxu0 %vm98_vm2, %v5095_v10  ;;  %v5409_v49 = vmul.f32 %v12092_v11, %v5379_v54  ;;  %v4913_v13 = vld [vmem:[#allocation4 + $0x27] sm:$0xff]  ;;  %v5410_v7 = vmul.f32 %v12097_v5, %v5380_v14  ;;  %v5693_v61 = vld [vmem:[#allocation4 + $0x2f] sm:$0xff]  ;;  %v5411_v34 = vmul.f32 %v5401_v51, %v5381_v57  ;;  %v5412_v5 = vmul.f32 %v12123_v45, %v5382_v36 }
 0x4be   :  { %v5569_v19 = vld [vmem:[%s13024_s27 + $0x38] sm:$0xff]  ;;  %v4943_v11 = vmul.f32 %v12090_v48, %v4913_v13  ;;  %v5719_v48 = vmul.f32 %v12147_v60, %v4910_v62  ;;  %v5720_v45 = vmul.f32 %v12161_v35, %v4911_v25  ;;  %v5254_v60 = vmul.f32 %v12135_v58, %v12178_v16  ;;  %v5694_v35 = vld [vmem:[#allocation4 + $0x37] sm:$0xff] }
 0x4bf   :  { %9439 = vmatmul.mubr.msk.f32.vlgmr.msra.gmra.mxu1 %vm98_vm2, %v4484_v27  ;;  %v12207_v2 = vpop.permute.xlu0 %5544  ;;  %v5251_v27 = vmul.f32 %v12071_v3, %v12155_v28  ;;  %v5253_v3 = vmul.f32 %v12088_v24, %v12170_v50  ;;  %v5722_v6 = vmul.f32 %v5709_v32, %v4913_v13  ;;  %v5255_v24 = vmul.f32 %v12145_v8, %v12195_v53  ;;  %v5226_v50 = vld [vmem:[#allocation4 + $0x31] sm:$0xff]  ;;  %v5957_v33 = vld [vmem:[%s13032_s4 + $0x18] sm:$0xff] }
 0x4c0   :  { %9472 = vmatmul.mubr.msk.f32.vlgmr.msra.gmra.mxu0 %vm98_vm2, %v5096_v38  ;;  %9441 = vmatprep.mubr.msk.f32.mxu1 %vm98_vm2, %v4485_v59  ;;  %v5557_v10 = vpop.permute.xlu1 %5556  ;;  %v5256_v58 = vmul.f32 %v12102_v39, %v5226_v50  ;;  %v5534_v16 = vld [vmem:[#allocation4 + $0x16] sm:$0xff]  ;;  %v5537_v51 = vld [vmem:[#allocation4 + $0x2e] sm:$0xff] }
 0x4c1   :  { %9459 = vmatpush3.msra.mxu1 %v12114_v26  ;;  %9474 = vmatprep.mubr.msk.f32.mxu0 %vm98_vm2, %v5097_v29  ;;  %v5070_v26 = vld [vmem:[#allocation4 + $0x30] sm:$0xff]  ;;  %v5564_v8 = vmul.f32 %v12207_v2, %v5534_v16  ;;  %v12314_v25 = vld [vmem:[%s13032_s4 + $0x38] sm:$0xff] }
 0x4c2   :  { %9492 = vmatpush3.msra.mxu0 %v12119_v30  ;;  %9480 = vmatprep.subr.mxu1 %v5257_v1  ;;  %v5100_v18 = vmul.f32 %v12121_v22, %v5070_v26  ;;  %v4939_v30 = vmul.f32 %v12086_v46, %v4909_v9  ;;  %v4940_v22 = vmul.f32 %v12036_v41, %v4910_v62 }
 0x4c3   :  { %9513 = vmatprep.subr.mxu0 %v5725_v12  ;;  %9442 = vmatmul.mubr.msk.f32.gmra.mxu1 %vm98_vm2, %v4486_v20  ;;  %v5408_v46 = vmul.f32 %v12084_v37, %v5378_v63  ;;  %v4942_v41 = vmul.f32 %v5691_v52, %v12054_v55  ;;  %v5549_v37 = vpop.permute.xlu0 %5548  ;;  %v4944_v55 = vmul.f32 %v5693_v61, %v12063_v15  ;;  %v12308_v63 = vld [vmem:[%s13032_s4 + $0x28] sm:$0xff] }
 0x4c4   :  { %9475 = vmatmul.mubr.msk.f32.gmra.mxu0 %vm98_vm2, %v5098_v4  ;;  %9444 = vmatprep.mubr.msk.f32.mxu1 %vm98_vm2, %v4487_v31  ;;  %v5713_v59 = vpop.permute.xlu1 %5712  ;;  %v5252_v15 = vmul.f32 %v12080_v17, %v12159_v43  ;;  %v5536_v4 = vld [vmem:[#allocation4 + $0x26] sm:$0xff] }
 0x4c5   :  { %9477 = vmatprep.mubr.msk.f32.mxu0 %vm98_vm2, %v5099_v40  ;;  %v5723_v17 = vmul.f32 %v5713_v59, %v5693_v61  ;;  %v5566_v39 = vmul.f32 %v12190_v44, %v5536_v4  ;;  %v5567_v40 = vmul.f32 %v5557_v10, %v5537_v51 }
 0x4c7   :  { %9445 = vmatmul.mubr.msk.f32.gmra.mxu1 %vm98_vm2, %v4488_v56  ;;  %v5705_v38 = vpop.permute.xlu0 %5704  ;;  %v5919_v56 = vld [vmem:[%s13032_s4 + $0x8] sm:$0xff] }
 0x4c8   :  { %9478 = vmatmul.mubr.msk.f32.gmra.mxu0 %vm98_vm2, %v5100_v18  ;;  %9460 = vmatprep.mubr.msk.f32.mxu1 %vm98_vm2, %v4939_v30  ;;  %v5721_v28 = vmul.f32 %v5705_v38, %v5691_v52  ;;  %v5717_v43 = vpop.permute.xlu1 %5716  ;;  %v5956_v30 = vld [vmem:[%s13032_s4 + $0x10] sm:$0xff] }
 0x4c9   :  { %9493 = vmatprep.mubr.msk.f32.mxu0 %vm98_vm2, %v5407_v0  ;;  %v5724_v29 = vmul.f32 %v5717_v43, %v5694_v35  ;;  %v5918_v0 = vld [vmem:[%s13032_s4] sm:$0xff] }
 0x4cb   :  { %9461 = vmatmul.mubr.msk.f32.vlgmr.msra.gmra.mxu1 %vm98_vm2, %v4940_v22  ;;  %v5561_v31 = vpop.permute.xlu0 %5560 }
 0x4cc   :  { %9494 = vmatmul.mubr.msk.f32.vlgmr.msra.gmra.mxu0 %vm98_vm2, %v5408_v46  ;;  %9463 = vmatprep.mubr.msk.f32.mxu1 %vm98_vm2, %v4941_v21  ;;  %v12283_v44 = vpop.permute.xlu1 %5931 }
 0x4cd   :  { %9481 = vmatpush3.msra.mxu1 %v5257_v1  ;;  %9496 = vmatprep.mubr.msk.f32.mxu0 %vm98_vm2, %v5409_v49  ;;  %v5533_v1 = vld [vmem:[#allocation4 + $0xe] sm:$0xff] }
 0x4ce   :  { %9514 = vmatpush3.msra.mxu0 %v5725_v12  ;;  %9502 = vmatprep.subr.mxu1 %v5569_v19  ;;  %v5563_v23 = vmul.f32 %v12137_v47, %v5533_v1  ;;  %v5535_v12 = vld [vmem:[#allocation4 + $0x1e] sm:$0xff]  ;;  %v5538_v47 = vld [vmem:[#allocation4 + $0x36] sm:$0xff] }
 0x4cf   :  { %9464 = vmatmul.mubr.msk.f32.gmra.mxu1 %vm98_vm2, %v4942_v41  ;;  %v5565_v20 = vmul.f32 %v5549_v37, %v5535_v12  ;;  %v5568_v53 = vmul.f32 %v5561_v31, %v5538_v47  ;;  %9537 = vmatprep.subr.mxu0 %v5919_v56  ;;  %v12333_v49 = vpop.permute.xlu0 %5927 }
 0x4d0   :  { %9497 = vmatmul.mubr.msk.f32.gmra.mxu0 %vm98_vm2, %v5410_v7  ;;  %9466 = vmatprep.mubr.msk.f32.mxu1 %vm98_vm2, %v4943_v11  ;;  %v12285_v26 = vpop.permute.xlu1 %5935 }
 0x4d1   :  { %9499 = vmatprep.mubr.msk.f32.mxu0 %vm98_vm2, %v5411_v34 }
 0x4d3   :  { %9467 = vmatmul.mubr.msk.f32.gmra.mxu1 %vm98_vm2, %v4944_v55  ;;  %v12337_v37 = vpop.permute.xlu0 %5939 }
 0x4d4   :  { %9500 = vmatmul.mubr.msk.f32.gmra.mxu0 %vm98_vm2, %v5412_v5  ;;  %9482 = vmatprep.mubr.msk.f32.mxu1 %vm98_vm2, %v5251_v27  ;;  %v12287_v9 = vpop.permute.xlu1 %5943 }
 0x4d5   :  { %9515 = vmatprep.mubr.msk.f32.mxu0 %vm98_vm2, %v5719_v48 }
 0x4d7   :  { %9483 = vmatmul.mubr.msk.f32.vlgmr.msra.gmra.mxu1 %vm98_vm2, %v5252_v15  ;;  %v12341_v55 = vpop.permute.xlu0 %5947 }
 0x4d8   :  { %9516 = vmatmul.mubr.msk.f32.vlgmr.msra.gmra.mxu0 %vm98_vm2, %v5720_v45  ;;  %9485 = vmatprep.mubr.msk.f32.mxu1 %vm98_vm2, %v5253_v3  ;;  %v12295_v18 = vpop.permute.xlu1 %5884 }
 0x4d9   :  { %9503 = vmatpush3.msra.mxu1 %v5569_v19  ;;  %9518 = vmatprep.mubr.msk.f32.mxu0 %vm98_vm2, %v5721_v28 }
 0x4da   :  { %9524 = vmatprep.subr.mxu1 %v5957_v33  ;;  %9538 = vmatpush3.msra.mxu0 %v5919_v56 }
 0x4db   :  { %9486 = vmatmul.mubr.msk.f32.gmra.mxu1 %vm98_vm2, %v5254_v60  ;;  %9539 = vmatprep.subr.mxu0 %v5918_v0  ;;  %v12345_v3 = vpop.permute.xlu0 %6199 }
 0x4dc   :  { %9519 = vmatmul.mubr.msk.f32.gmra.mxu0 %vm98_vm2, %v5722_v6  ;;  %9488 = vmatprep.mubr.msk.f32.mxu1 %vm98_vm2, %v5255_v24  ;;  %v12303_v62 = vpop.permute.xlu1 %6191  ;;  %13043 = vst [vmem:[#allocation25_spill] sm:$0xff] %v12345_v3 }
 0x4dd   :  { %9521 = vmatprep.mubr.msk.f32.mxu0 %vm98_vm2, %v5723_v17  ;;  %9540 = vmatpush3.msra.mxu0 %v5918_v0  ;;  %13033 = vst [vmem:[#allocation19_spill] sm:$0xff] %v12303_v62 }
 0x4de   :  { %9563 = vmatprep.subr.mxu0 %v12314_v25 }
 0x4df   :  { %9489 = vmatmul.mubr.msk.f32.gmra.mxu1 %vm98_vm2, %v5256_v58  ;;  %v12349_v50 = vpop.permute.xlu0 %5889 }
 0x4e0   :  { %9522 = vmatmul.mubr.msk.f32.gmra.mxu0 %vm98_vm2, %v5724_v29  ;;  %9504 = vmatprep.mubr.msk.f32.mxu1 %vm98_vm2, %v5563_v23  ;;  %v12317_v2 = vpop.permute.xlu1 %6195 }
 0x4e1   :  { %13034 = vst [vmem:[#allocation21_spill] sm:$0xff] %v12317_v2 }
 0x4e3   :  { %9505 = vmatmul.mubr.msk.f32.vlgmr.msra.gmra.mxu1 %vm98_vm2, %v5564_v8 }
 0x4e4   :  { %9507 = vmatprep.mubr.msk.f32.mxu1 %vm98_vm2, %v5565_v20  ;;  %9525 = vmatpush3.msra.mxu1 %v5957_v33  ;;  %v12319_v32 = vpop.permute.xlu1 %5899  ;;  %v12355_v20 = vpop.permute.xlu0 %5894 }
 0x4e5   :  { %9526 = vmatprep.subr.mxu1 %v5956_v30 }
 0x4e6   :  { %9527 = vmatpush3.msra.mxu1 %v5956_v30 }
 0x4e7   :  { %9508 = vmatmul.mubr.msk.f32.gmra.mxu1 %vm98_vm2, %v5566_v39  ;;  %9550 = vmatprep.subr.mxu1 %v12308_v63 }
 0x4e8   :  { %9510 = vmatprep.mubr.msk.f32.mxu1 %vm98_vm2, %v5567_v40  ;;  %v12321_v54 = vpop.permute.xlu1 %6203  ;;  %v12361_v56 = vpop.permute.xlu0 %5909 }
 0x4e9   :  { %13035 = vst [vmem:[#allocation11_spill] sm:$0xff] %v12321_v54  ;;  %13047 = vst [vmem:[#allocation50_spill] sm:$0xff] %v12361_v56 }
 0x4eb   :  { %9511 = vmatmul.mubr.msk.f32.gmra.mxu1 %vm98_vm2, %v5568_v53 }
 0x4ec   :  { %v12323_v22 = vpop.permute.xlu1 %5904  ;;  %v12369_v54 = vpop.permute.xlu0 %6348 }
 0x4f0   :  { %v12325_v46 = vpop.permute.xlu1 %6207 }
 0x4f1   :  { %13036 = vst [vmem:[#allocation20_spill] sm:$0xff] %v12325_v46 }
 0x4f4   :  { %v12327_v52 = vpop.permute.xlu1 %6211 }
 0x4f5   :  { %13037 = vst [vmem:[#allocation22_spill] sm:$0xff] %v12327_v52 }
 0x4f8   :  { %v12329_v21 = vpop.permute.xlu1 %6352 }
 0x4f9   :  { %13038 = vst [vmem:[#allocation12_spill] sm:$0xff] %v12329_v21 }
 0x4fc   :  { %v12331_v14 = vpop.permute.xlu1 %6505 }
 0x4fd   :  { %13039 = vst [vmem:[#allocation23_spill] sm:$0xff] %v12331_v14 }
 0x500   :  { %v12335_v7 = vpop.permute.xlu1 %6356 }
 0x501   :  { %13040 = vst [vmem:[#allocation24_spill] sm:$0xff] %v12335_v7 }
 0x504   :  { %v12339_v36 = vpop.permute.xlu1 %6360 }
 0x505   :  { %13041 = vst [vmem:[#allocation49_spill] sm:$0xff] %v12339_v36 }
 0x508   :  { %v12343_v45 = vpop.permute.xlu1 %6517 }
 0x509   :  { %13042 = vst [vmem:[#allocation13_spill] sm:$0xff] %v12343_v45 }
 0x50c   :  { %v12347_v24 = vpop.permute.xlu1 %6368 }
 0x50d   :  { %13044 = vst [vmem:[#allocation26_spill] sm:$0xff] %v12347_v24 }
 0x510   :  { %v12353_v8 = vpop.permute.xlu1 %6521 }
 0x511   :  { %13045 = vst [vmem:[#allocation37_spill] sm:$0xff] %v12353_v8 }
 0x514   :  { %v12359_v53 = vpop.permute.xlu1 %6662 }
 0x515   :  { %13046 = vst [vmem:[#allocation38_spill] sm:$0xff] %v12359_v53 }
 0x518   :  { %v12367_v46 = vpop.permute.xlu1 %6666 }
 0x519   :  { %13048 = vst [vmem:[#allocation14_spill] sm:$0xff] %v12367_v46  ;;  %v12373_v46 = vpop.permute.xlu0 %6364 }
 0x51c   :  { %v12371_v56 = vpop.permute.xlu1 %6823 }
 0x56b   :  { %v9429_v13 = vpop.f32.mrf.mxu1 }
 0x56c   :  { %v9451_v57 = vpop.f32.mrf.mxu0 }
 0x56d   :  { %v4611_v19 = vpop.f32.mrf.mxu1 }
 0x56e   :  { %v4874_v41 = vpop.f32.mrf.mxu0 }
 0x573   :  { %v9432_v10 = vpop.f32.mrf.mxu1 }
 0x574   :  { %v9454_v61 = vpop.f32.mrf.mxu0 }
 0x575   :  { %v4621_v11 = vpop.f32.mrf.mxu1 }
 0x576   :  { %v4884_v34 = vpop.f32.mrf.mxu0 }
 0x57b   :  { %v9435_v5 = vpop.f32.mrf.mxu1 }
 0x57c   :  { %v9457_v27 = vpop.f32.mrf.mxu0 }
 0x57d   :  { %v4631_v48 = vpop.f32.mrf.mxu1 }
 0x57e   :  { %v4894_v38 = vpop.f32.mrf.mxu0 }
 0x57f   :  { %v9440_v59 = vpop.f32.mrf.mxu1 }
 0x580   :  { %v9473_v15 = vpop.f32.mrf.mxu0  ;;  %v4730_v33 = vadd.f32 %v9440_v59, %v9429_v13 }
 0x581   :  { %v4724_v28 = vpop.f32.mrf.mxu1 }
 0x582   :  { %v5186_v60 = vpop.f32.mrf.mxu0  ;;  %v4725_v42 = vadd.f32 %v4724_v28, %v4611_v19  ;;  %v4904_v14 = vadd.f32 %v9451_v57, %v4730_v33 }
 0x583   :  { %v9443_v6 = vpop.f32.mrf.mxu1 }
 0x584   :  { %v9476_v17 = vpop.f32.mrf.mxu0  ;;  %v4740_v8 = vadd.f32 %v9443_v6, %v9432_v10  ;;  %v4903_v53 = vadd.f32 %v4874_v41, %v4725_v42 }
 0x585   :  { %v4734_v43 = vpop.f32.mrf.mxu1 }
 0x586   :  { %v5196_v35 = vpop.f32.mrf.mxu0  ;;  %v4735_v36 = vadd.f32 %v4734_v43, %v4621_v11  ;;  %v4906_v21 = vadd.f32 %v9454_v61, %v4740_v8  ;;  %v12375_v8 = vpop.permute.xlu1 %6670 }
 0x587   :  { %v9446_v1 = vpop.f32.mrf.mxu1 }
 0x588   :  { %v9479_v29 = vpop.f32.mrf.mxu0  ;;  %v4750_v13 = vadd.f32 %v9446_v1, %v9435_v5  ;;  %v4905_v10 = vadd.f32 %v4884_v34, %v4735_v36 }
 0x589   :  { %v4744_v58 = vpop.f32.mrf.mxu1 }
 0x58a   :  { %v12351_v16 = vpop.f32.mrf.mxu0  ;;  %v4745_v2 = vadd.f32 %v4744_v58, %v4631_v48  ;;  %v4908_v6 = vadd.f32 %v9457_v27, %v4750_v13 }
 0x58b   :  { %v9462_v23 = vpop.f32.mrf.mxu1 }
 0x58c   :  { %v9495_v12 = vpop.f32.mrf.mxu0  ;;  %v5060_v7 = vadd.f32 %v9462_v23, %v4904_v14  ;;  %v4907_v41 = vadd.f32 %v4894_v38, %v4745_v2 }
 0x58d   :  { %v5030_v4 = vpop.f32.mrf.mxu1 }
 0x58e   :  { %v5498_v51 = vpop.f32.mrf.mxu0  ;;  %v5059_v3 = vadd.f32 %v5030_v4, %v4903_v53  ;;  %v5216_v57 = vadd.f32 %v9473_v15, %v5060_v7  ;;  %v12377_v4 = vpop.permute.xlu0 %6509 }
 0x58f   :  { %v9465_v39 = vpop.f32.mrf.mxu1 }
 0x590   :  { %v9498_v31 = vpop.f32.mrf.mxu0  ;;  %v5062_v28 = vadd.f32 %v9465_v39, %v4906_v21  ;;  %v5215_v14 = vadd.f32 %v5186_v60, %v5059_v3 }
 0x591   :  { %v5040_v47 = vpop.f32.mrf.mxu1 }
 0x592   :  { %v12357_v40 = vpop.f32.mrf.mxu0  ;;  %v5061_v11 = vadd.f32 %v5040_v47, %v4905_v10  ;;  %v5218_v48 = vadd.f32 %v9476_v17, %v5062_v28  ;;  %v12387_v10 = vpop.permute.xlu0 %6513 }
 0x593   :  { %v9468_v30 = vpop.f32.mrf.mxu1 }
 0x594   :  { %v12363_v0 = vpop.f32.mrf.mxu0  ;;  %v5064_v42 = vadd.f32 %v9468_v30, %v4908_v6  ;;  %v5217_v34 = vadd.f32 %v5196_v35, %v5061_v11 }
 0x595   :  { %v5050_v45 = vpop.f32.mrf.mxu1 }
 0x596   :  { %v12365_v24 = vpop.f32.mrf.mxu0  ;;  %v5063_v58 = vadd.f32 %v5050_v45, %v4907_v41  ;;  %v5220_v27 = vadd.f32 %v9479_v29, %v5064_v42  ;;  %v8584_v45 = vld [vmem:[%s13049_s3] ss:$0 sm:$0xff] }
 0x597   :  { %v9484_v52 = vpop.f32.mrf.mxu1 }
 0x598   :  { %v9517_v62 = vpop.f32.mrf.mxu0  ;;  %v5372_v43 = vadd.f32 %v9484_v52, %v5216_v57  ;;  %v5219_v38 = vadd.f32 %v12351_v16, %v5063_v58  ;;  %v12385_v16 = vpop.permute.xlu1 %6827 }
 0x599   :  { %v5342_v59 = vpop.f32.mrf.mxu1 }
 0x59a   :  { %v5810_v5 = vpop.f32.mrf.mxu0  ;;  %v5371_v61 = vadd.f32 %v5342_v59, %v5215_v14  ;;  %v5528_v7 = vadd.f32 %v9495_v12, %v5372_v43 }
 0x59b   :  { %v9487_v19 = vpop.f32.mrf.mxu1 }
 0x59c   :  { %v5374_v21 = vadd.f32 %v9487_v19, %v5218_v48  ;;  %v9520_v36 = vpop.f32.mrf.mxu0  ;;  %v5527_v60 = vadd.f32 %v5498_v51, %v5371_v61 }
 0x59d   :  { %v5352_v33 = vpop.f32.mrf.mxu1 }
 0x59e   :  { %v5373_v52 = vadd.f32 %v5352_v33, %v5217_v34  ;;  %v5530_v39 = vadd.f32 %v9498_v31, %v5374_v21  ;;  %v5820_v29 = vpop.f32.mrf.mxu0 }
 0x59f   :  { %v9490_v1 = vpop.f32.mrf.mxu1 }
 0x5a0   :  { %v5376_v2 = vadd.f32 %v9490_v1, %v5220_v27  ;;  %v5529_v19 = vadd.f32 %v12357_v40, %v5373_v52  ;;  %v9523_v31 = vpop.f32.mrf.mxu0 }
 0x5a1   :  { %v5362_v23 = vpop.f32.mrf.mxu1 }
 0x5a2   :  { %v5375_v47 = vadd.f32 %v5362_v23, %v5219_v38  ;;  %v5532_v28 = vadd.f32 %v12363_v0, %v5376_v2  ;;  %v5830_v58 = vpop.f32.mrf.mxu0  ;;  %v12392_v23 = vpop.permute.xlu1 %6831 }
 0x5a3   :  { %v9506_v15 = vpop.f32.mrf.mxu1 }
 0x5a4   :  { %v5684_v3 = vadd.f32 %v9506_v15, %v5528_v7  ;;  %v5531_v43 = vadd.f32 %v12365_v24, %v5375_v47  ;;  %v12395_v7 = vpop.permute.xlu0 %6525 }
 0x5a5   :  { %v5654_v17 = vpop.f32.mrf.mxu1 }
 0x5a6   :  { %v5840_v35 = vadd.f32 %v9517_v62, %v5684_v3  ;;  %v5683_v12 = vadd.f32 %v5654_v17, %v5527_v60  ;;  %v12399_v60 = vpop.permute.xlu1 %6682 }
 0x5a7   :  { %v9509_v53 = vpop.f32.mrf.mxu1 }
 0x5a8   :  { %v5853_v30 = vadd.f32 %v8584_v45, %v5840_v35  ;;  %v5839_v13 = vadd.f32 %v5810_v5, %v5683_v12  ;;  %v5686_v59 = vadd.f32 %v9509_v53, %v5530_v39  ;;  %v12406_v12 = vpop.permute.xlu0 %6674 }
 0x5a9   :  { %v5664_v51 = vpop.f32.mrf.mxu1 }
 0x5aa   :  { %v5859_v57 = vmax.f32 %v5853_v30, 0.0  ;;  %v5852_v6 = vadd.f32 %v8584_v45, %v5839_v13  ;;  %v5842_v62 = vadd.f32 %v9520_v36, %v5686_v59  ;;  %v5685_v33 = vadd.f32 %v5664_v51, %v5529_v19  ;;  %v12431_v59 = vpop.permute.xlu1 %6839  ;;  %v6692_v19 = vld [vmem:[%s13032_s4 + $0x58] sm:$0xff] }
 0x5ab   :  { %v9512_v11 = vpop.f32.mrf.mxu1 }
 0x5ac   :  { %5865 = vst.msk [vmem:[#allocation5 + $0x10] sm:$0xff] %vm133_vm4, %v5859_v57  ;;  %v5858_v14 = vmax.f32 %v5852_v6, 0.0  ;;  %v5855_v42 = vadd.f32 %v8584_v45, %v5842_v62  ;;  %v5841_v40 = vadd.f32 %v5820_v29, %v5685_v33  ;;  %v5688_v41 = vadd.f32 %v9512_v11, %v5532_v28 }
 0x5ad   :  { %v5674_v5 = vpop.f32.mrf.mxu1 }
 0x5ae   :  { %5864 = vst.msk [vmem:[#allocation5 + $0x8] sm:$0xff] %vm133_vm4, %v5858_v14  ;;  %v5861_v0 = vmax.f32 %v5855_v42, 0.0  ;;  %v5854_v1 = vadd.f32 %v8584_v45, %v5841_v40  ;;  %v5844_v61 = vadd.f32 %v9523_v31, %v5688_v41  ;;  %v5687_v48 = vadd.f32 %v5674_v5, %v5531_v43  ;;  %v13050_v31 = vld [vmem:[#allocation50_spill] sm:$0xff]  ;;  %v13051_v43 = vld [vmem:[#allocation19_spill] sm:$0xff] }
 0x5b0   :  { %5867 = vst.msk [vmem:[#allocation5 + $0x20] sm:$0xff] %vm133_vm4, %v5861_v0  ;;  %v5860_v21 = vmax.f32 %v5854_v1, 0.0  ;;  %v5857_v24 = vadd.f32 %v8584_v45, %v5844_v61  ;;  %v5843_v34 = vadd.f32 %v5830_v58, %v5687_v48  ;;  %v13052_v0 = vld [vmem:[#allocation21_spill] sm:$0xff]  ;;  %v13053_v1 = vld [vmem:[#allocation12_spill] sm:$0xff] }
 0x5b1   :  { %v13054_v58 = vld [vmem:[#allocation25_spill] sm:$0xff] }
 0x5b2   :  { %5866 = vst.msk [vmem:[#allocation5 + $0x18] sm:$0xff] %vm133_vm4, %v5860_v21  ;;  %v5863_v36 = vmax.f32 %v5857_v24, 0.0  ;;  %v5856_v27 = vadd.f32 %v8584_v45, %v5843_v34  ;;  %v13055_v24 = vld [vmem:[#allocation24_spill] sm:$0xff] }
 0x5b4   :  { %5869 = vst.msk [vmem:[#allocation5 + $0x30] sm:$0xff] %vm133_vm4, %v5863_v36  ;;  %v5862_v15 = vmax.f32 %v5856_v27, 0.0  ;;  %v6534_v27 = vld [vmem:[%s13032_s4 + $0x40] sm:$0xff] }
 0x5b5   :  { %v5920_v52 = vld [vmem:[#allocation5 + $0x2] sm:$0xff]  ;;  %v5921_v17 = vld [vmem:[#allocation5 + $0xa] sm:$0xff] }
 0x5b6   :  { %v5870_v3 = vld [vmem:[#allocation5 + $0x1] sm:$0xff]  ;;  %5868 = vst.msk [vmem:[#allocation5 + $0x28] sm:$0xff] %vm133_vm4, %v5862_v15  ;;  %v5950_v2 = vmul.f32 %v12333_v49, %v5920_v52  ;;  %v12404_v35 = vld [vmem:[#allocation5 + $0x9] sm:$0xff]  ;;  %v5951_v45 = vmul.f32 %v12283_v44, %v5921_v17 }
 0x5b7   :  { %v5912_v38 = vmul.f32 %v12295_v18, %v5870_v3  ;;  %v5913_v39 = vmul.f32 %v12349_v50, %v12404_v35  ;;  %v6220_v49 = vld [vmem:[%s13032_s4 + $0x20] sm:$0xff]  ;;  %v6377_v18 = vld [vmem:[%s13032_s4 + $0x30] sm:$0xff] }
 0x5b8   :  { %9528 = vmatprep.mubr.msk.f32.mxu1 %vm133_vm4, %v5950_v2  ;;  %v6185_v42 = vld [vmem:[#allocation5 + $0xb] sm:$0xff]  ;;  %v6691_v3 = vld [vmem:[%s13032_s4 + $0x50] sm:$0xff] }
 0x5b9   :  { %9541 = vmatprep.mubr.msk.f32.mxu0 %vm133_vm4, %v5912_v38  ;;  %9529 = vmatmul.mubr.msk.f32.vlgmr.msra.gmra.mxu1 %vm133_vm4, %v5951_v45  ;;  %v5922_v44 = vld [vmem:[#allocation5 + $0x12] sm:$0xff]  ;;  %v5923_v29 = vld [vmem:[#allocation5 + $0x1a] sm:$0xff]  ;;  %v13056_v38 = vld [vmem:[#allocation11_spill] sm:$0xff] }
 0x5ba   :  { %9542 = vmatmul.mubr.msk.f32.vlgmr.msra.gmra.mxu0 %vm133_vm4, %v5913_v39  ;;  %9551 = vmatpush3.msra.mxu1 %v12308_v63  ;;  %v12422_v50 = vld [vmem:[#allocation5 + $0x11] sm:$0xff]  ;;  %v5952_v47 = vmul.f32 %v12285_v26, %v5922_v44  ;;  %v5953_v30 = vmul.f32 %v12337_v37, %v5923_v29  ;;  %v12429_v13 = vld [vmem:[#allocation5 + $0x19] sm:$0xff]  ;;  %v6184_v37 = vld [vmem:[#allocation5 + $0x3] sm:$0xff] }
 0x5bb   :  { %9564 = vmatpush3.msra.mxu0 %v12314_v25  ;;  %v5914_v53 = vmul.f32 %v12355_v20, %v12422_v50  ;;  %9552 = vmatprep.subr.mxu1 %v6220_v49  ;;  %v5915_v63 = vmul.f32 %v12319_v32, %v12429_v13  ;;  %v6535_v26 = vld [vmem:[%s13032_s4 + $0x48] sm:$0xff]  ;;  %v12438_v25 = vpop.permute.xlu0 %6678  ;;  %v6341_v20 = vld [vmem:[#allocation5 + $0x7] sm:$0xff]  ;;  %v6214_v14 = vmul.f32 %v13051_v43, %v6184_v37  ;;  %v12461_v40 = vld [vmem:[#allocation5 + $0xf] sm:$0xff] }
 0x5bc   :  { %9565 = vmatprep.subr.mxu0 %v6377_v18  ;;  %9553 = vmatpush3.msra.mxu1 %v6220_v49  ;;  %v12467_v41 = vld [vmem:[#allocation5 + $0x17] sm:$0xff]  ;;  %v6372_v61 = vmul.f32 %v13053_v1, %v12461_v40  ;;  %v12476_v48 = vld [vmem:[#allocation5 + $0x1f] sm:$0xff] }
 0x5bd   :  { %9566 = vmatpush3.msra.mxu0 %v6377_v18  ;;  %9531 = vmatprep.mubr.msk.f32.mxu1 %vm133_vm4, %v5952_v47  ;;  %v5924_v32 = vld [vmem:[#allocation5 + $0x22] sm:$0xff]  ;;  %v5925_v28 = vld [vmem:[#allocation5 + $0x2a] sm:$0xff]  ;;  %v6373_v34 = vmul.f32 %v13055_v24, %v12467_v41  ;;  %v13057_v45 = vld [vmem:[#allocation49_spill] sm:$0xff] }
 0x5be   :  { %9544 = vmatprep.mubr.msk.f32.mxu0 %vm133_vm4, %v5914_v53  ;;  %9532 = vmatmul.mubr.msk.f32.gmra.mxu1 %vm133_vm4, %v5953_v30  ;;  %v12447_v51 = vld [vmem:[#allocation5 + $0x21] sm:$0xff]  ;;  %v5954_v57 = vmul.f32 %v12287_v9, %v5924_v32  ;;  %v5955_v62 = vmul.f32 %v12341_v55, %v5925_v28  ;;  %v12453_v33 = vld [vmem:[#allocation5 + $0x29] sm:$0xff]  ;;  %v6371_v9 = vmul.f32 %v12369_v54, %v6341_v20  ;;  %v6186_v55 = vld [vmem:[#allocation5 + $0x13] sm:$0xff] }
 0x5bf   :  { %9545 = vmatmul.mubr.msk.f32.gmra.mxu0 %vm133_vm4, %v5915_v63  ;;  %v5916_v6 = vmul.f32 %v12323_v22, %v12447_v51  ;;  %9576 = vmatprep.subr.mxu1 %v6535_v26  ;;  %v5917_v11 = vmul.f32 %v13050_v31, %v12453_v33  ;;  %v12463_v22 = vpop.permute.xlu1 %6976  ;;  %v12469_v5 = vpop.permute.xlu0 %6819  ;;  %v6215_v54 = vmul.f32 %v13052_v0, %v6185_v42  ;;  %v6187_v36 = vld [vmem:[#allocation5 + $0x1b] sm:$0xff]  ;;  %v12484_v15 = vld [vmem:[#allocation5 + $0x27] sm:$0xff]  ;;  %v12500_v18 = vld [vmem:[#allocation5 + $0x2f] sm:$0xff] }
 0x5c0   :  { %9589 = vmatprep.subr.mxu0 %v6692_v19  ;;  %9534 = vmatprep.mubr.msk.f32.mxu1 %vm133_vm4, %v5954_v57  ;;  %v6216_v21 = vmul.f32 %v13054_v58, %v6186_v55  ;;  %v6188_v52 = vld [vmem:[#allocation5 + $0x23] sm:$0xff]  ;;  %v6217_v17 = vmul.f32 %v13056_v38, %v6187_v36  ;;  %v6374_v39 = vmul.f32 %v12476_v48, %v13057_v45  ;;  %v13058_v44 = vld [vmem:[#allocation20_spill] sm:$0xff]  ;;  %v13065_v58 = vld [vmem:[#allocation37_spill] sm:$0xff] }
 0x5c1   :  { %9547 = vmatprep.mubr.msk.f32.mxu0 %vm133_vm4, %v5916_v6  ;;  %v6218_v29 = vmul.f32 %v13058_v44, %v6188_v52  ;;  %v6375_v47 = vmul.f32 %v12484_v15, %v12373_v46  ;;  %v6189_v53 = vld [vmem:[#allocation5 + $0x2b] sm:$0xff]  ;;  %v6849_v63 = vld [vmem:[%s13032_s4 + $0x68] sm:$0xff]  ;;  %v13059_v46 = vld [vmem:[#allocation22_spill] sm:$0xff]  ;;  %v6687_v55 = vmul.f32 %v12375_v8, %v12429_v13  ;;  %v6688_v13 = vmul.f32 %v12406_v12, %v12447_v51 }
 0x5c2   :  { %9535 = vmatmul.mubr.msk.f32.gmra.mxu1 %vm133_vm4, %v5955_v62  ;;  %v6498_v30 = vld [vmem:[#allocation5 + $0x8] sm:$0xff]  ;;  %v6219_v37 = vmul.f32 %v13059_v46, %v6189_v53  ;;  %v6499_v62 = vld [vmem:[#allocation5 + $0x10] sm:$0xff]  ;;  %v6501_v0 = vld [vmem:[#allocation5 + $0x20] sm:$0xff]  ;;  %v6689_v24 = vmul.f32 %v12438_v25, %v12453_v33 }
 0x5c3   :  { %9548 = vmatmul.mubr.msk.f32.gmra.mxu0 %vm133_vm4, %v5917_v11  ;;  %9554 = vmatprep.mubr.msk.f32.mxu1 %vm133_vm4, %v6214_v14  ;;  %v12493_v2 = vpop.permute.xlu1 %7133  ;;  %v12498_v49 = vpop.permute.xlu0 %6835  ;;  %v13060_v20 = vld [vmem:[#allocation26_spill] sm:$0xff]  ;;  %v13061_v32 = vld [vmem:[#allocation23_spill] sm:$0xff]  ;;  %v6500_v11 = vld [vmem:[#allocation5 + $0x18] sm:$0xff]  ;;  %v6529_v14 = vmul.f32 %v12377_v4, %v6499_v62  ;;  %v13066_v62 = vmov 0.0  }
 0x5c4   :  { %9567 = vmatprep.mubr.msk.f32.mxu0 %vm133_vm4, %v6371_v9  ;;  %v6528_v28 = vmul.f32 %v13061_v32, %v6498_v30  ;;  %v13062_v57 = vld [vmem:[#allocation38_spill] sm:$0xff]  ;;  %v6530_v42 = vmul.f32 %v12387_v10, %v6500_v11  ;;  %v6848_v1 = vld [vmem:[%s13032_s4 + $0x60] sm:$0xff]  ;;  %v13064_v8 = vld [vmem:[#allocation13_spill] sm:$0xff]  ;;  %144 = vst.msk [vmem:[#allocation6 + $0x8] sm:$0xff] %vm142_vm5, %v13066_v62 }
 0x5c5   :  { %v6685_v6 = vmul.f32 %v13062_v57, %v12404_v35  ;;  %v13063_v9 = vld [vmem:[#allocation14_spill] sm:$0xff]  ;;  %v6660_v36 = vld [vmem:[#allocation5 + $0x31] sm:$0xff]  ;;  %143 = vst.msk [vmem:[#allocation6] sm:$0xff] %vm142_vm5, %v13066_v62  ;;  %145 = vst.msk [vmem:[#allocation6 + $0x10] sm:$0xff] %vm142_vm5, %v13066_v62 }
 0x5c6   :  { %9555 = vmatmul.mubr.msk.f32.vlgmr.msra.gmra.mxu1 %vm133_vm4, %v6215_v54  ;;  %v6686_v35 = vmul.f32 %v13063_v9, %v12422_v50  ;;  %v6502_v54 = vld [vmem:[#allocation5 + $0x28] sm:$0xff]  ;;  %v7005_v4 = vld [vmem:[%s13032_s4 + $0x70] sm:$0xff]  ;;  %v6531_v50 = vmul.f32 %v13064_v8, %v6501_v0  ;;  %v7163_v12 = vld [vmem:[%s13032_s4 + $0x88] sm:$0xff]  ;;  %v6690_v51 = vmul.f32 %v12399_v60, %v6660_v36  ;;  %146 = vst.msk [vmem:[#allocation6 + $0x18] sm:$0xff] %vm142_vm5, %v13066_v62 }
 0x5c7   :  { %9568 = vmatmul.mubr.msk.f32.vlgmr.msra.gmra.mxu0 %vm133_vm4, %v6372_v61  ;;  %9557 = vmatprep.mubr.msk.f32.mxu1 %vm133_vm4, %v6216_v21  ;;  %v12521_v31 = vpop.permute.xlu1 %7137  ;;  %v6981_v43 = vpop.permute.xlu0 %6980  ;;  %v6532_v21 = vmul.f32 %v13065_v58, %v6502_v54  ;;  %v6969_v52 = vld [vmem:[#allocation5 + $0xe] sm:$0xff]  ;;  %v6814_v44 = vld [vmem:[#allocation5 + $0x1d] sm:$0xff]  ;;  %v6972_v53 = vld [vmem:[#allocation5 + $0x26] sm:$0xff]  ;;  %147 = vst.msk [vmem:[#allocation6 + $0x20] sm:$0xff] %vm142_vm5, %v13066_v62 }
 0x5c8   :  { %9570 = vmatprep.mubr.msk.f32.mxu0 %vm133_vm4, %v6373_v34  ;;  %9577 = vmatpush3.msra.mxu1 %v6535_v26  ;;  %v7006_v26 = vld [vmem:[%s13032_s4 + $0x78] sm:$0xff]  ;;  %v6503_v34 = vld [vmem:[#allocation5 + $0x30] sm:$0xff]  ;;  %v6999_v38 = vmul.f32 %v12463_v22, %v6969_v52  ;;  %v6844_v22 = vmul.f32 %v12385_v16, %v6814_v44  ;;  %v7157_v11 = vmul.f32 %v12521_v31, %v12467_v41 }
 0x5c9   :  { %9590 = vmatpush3.msra.mxu0 %v6692_v19  ;;  %9578 = vmatprep.subr.mxu1 %v6534_v27  ;;  %v6376_v19 = vmul.f32 %v12500_v18, %v13060_v20  ;;  %v6533_v25 = vmul.f32 %v12395_v7, %v6503_v34  ;;  %v6973_v30 = vld [vmem:[#allocation5 + $0x2e] sm:$0xff]  ;;  %148 = vst.msk [vmem:[#allocation6 + $0x28] sm:$0xff] %vm142_vm5, %v13066_v62  ;;  %149 = vst.msk [vmem:[#allocation6 + $0x30] sm:$0xff] %vm142_vm5, %v13066_v62 }
 0x5ca   :  { %9591 = vmatprep.subr.mxu0 %v6691_v3  ;;  %9558 = vmatmul.mubr.msk.f32.gmra.mxu1 %vm133_vm4, %v6217_v17  ;;  %v6813_v17 = vld [vmem:[#allocation5 + $0x15] sm:$0xff]  ;;  %150 = vst.msk [vmem:[#allocation7] sm:$0xff] %vm142_vm5, %v13066_v62  ;;  %151 = vst.msk [vmem:[#allocation7 + $0x8] sm:$0xff] %vm142_vm5, %v13066_v62 }
 0x5cb   :  { %9571 = vmatmul.mubr.msk.f32.gmra.mxu0 %vm133_vm4, %v6374_v39  ;;  %9560 = vmatprep.mubr.msk.f32.mxu1 %vm133_vm4, %v6218_v29  ;;  %v6989_v10 = vpop.permute.xlu1 %6988  ;;  %v6985_v61 = vpop.permute.xlu0 %6984  ;;  %v6971_v39 = vld [vmem:[#allocation5 + $0x1e] sm:$0xff]  ;;  %v6843_v60 = vmul.f32 %v12371_v56, %v6813_v17  ;;  %v7350_v41 = vld [vmem:[%s12877_s10] sm:$0xff] }
 0x5cc   :  { %9573 = vmatprep.mubr.msk.f32.mxu0 %vm133_vm4, %v6375_v47  ;;  %9579 = vmatpush3.msra.mxu1 %v6534_v27  ;;  %v6812_v27 = vld [vmem:[#allocation5 + $0xd] sm:$0xff]  ;;  %v6815_v47 = vld [vmem:[#allocation5 + $0x25] sm:$0xff]  ;;  %v7002_v46 = vmul.f32 %v6989_v10, %v6972_v53 }
 0x5cd   :  { %9592 = vmatpush3.msra.mxu0 %v6691_v3  ;;  %9602 = vmatprep.subr.mxu1 %v6849_v63  ;;  %v6842_v33 = vmul.f32 %v12469_v5, %v6812_v27  ;;  %v6970_v3 = vld [vmem:[#allocation5 + $0x16] sm:$0xff]  ;;  %v7001_v5 = vmul.f32 %v6985_v61, %v6971_v39  ;;  %v6845_v16 = vmul.f32 %v12392_v23, %v6815_v47 }
 0x5ce   :  { %9615 = vmatprep.subr.mxu0 %v7006_v26  ;;  %9561 = vmatmul.mubr.msk.f32.gmra.mxu1 %vm133_vm4, %v6219_v37  ;;  %v7000_v7 = vmul.f32 %v6981_v43, %v6970_v3 }
 0x5cf   :  { %9574 = vmatmul.mubr.msk.f32.gmra.mxu0 %vm133_vm4, %v6376_v19  ;;  %9580 = vmatprep.mubr.msk.f32.mxu1 %vm133_vm4, %v6528_v28  ;;  %v7146_v45 = vpop.permute.xlu1 %7145  ;;  %v7142_v29 = vpop.permute.xlu0 %7141  ;;  %v6974_v19 = vld [vmem:[#allocation5 + $0x36] sm:$0xff] }
 0x5d0   :  { %9593 = vmatprep.mubr.msk.f32.mxu0 %vm133_vm4, %v6685_v6  ;;  %v6817_v28 = vld [vmem:[#allocation5 + $0x35] sm:$0xff]  ;;  %v7156_v6 = vmul.f32 %v12493_v2, %v12461_v40  ;;  %v7158_v43 = vmul.f32 %v7142_v29, %v12476_v48 }
 0x5d1   :  { %v6847_v23 = vmul.f32 %v12431_v59, %v6817_v28  ;;  %v7159_v59 = vmul.f32 %v7146_v45, %v12484_v15 }
 0x5d2   :  { %9581 = vmatmul.mubr.msk.f32.vlgmr.msra.gmra.mxu1 %vm133_vm4, %v6529_v14  ;;  %v7131_v14 = vld [vmem:[#allocation5 + $0x37] sm:$0xff] }
 0x5d3   :  { %9594 = vmatmul.mubr.msk.f32.vlgmr.msra.gmra.mxu0 %vm133_vm4, %v6686_v35  ;;  %9583 = vmatprep.mubr.msk.f32.mxu1 %vm133_vm4, %v6530_v42  ;;  %v6993_v56 = vpop.permute.xlu1 %6992  ;;  %v6997_v20 = vpop.permute.xlu0 %6996 }
 0x5d4   :  { %9596 = vmatprep.mubr.msk.f32.mxu0 %vm133_vm4, %v6687_v55  ;;  %9603 = vmatpush3.msra.mxu1 %v6849_v63  ;;  %v6816_v63 = vld [vmem:[#allocation5 + $0x2d] sm:$0xff]  ;;  %v7003_v37 = vmul.f32 %v6993_v56, %v6973_v30  ;;  %v7004_v57 = vmul.f32 %v6997_v20, %v6974_v19 }
 0x5d5   :  { %9616 = vmatpush3.msra.mxu0 %v7006_v26  ;;  %9604 = vmatprep.subr.mxu1 %v6848_v1  ;;  %v7162_v26 = vld [vmem:[%s13032_s4 + $0x80] sm:$0xff]  ;;  %v6846_v32 = vmul.f32 %v12498_v49, %v6816_v63 }
 0x5d6   :  { %9617 = vmatprep.subr.mxu0 %v7005_v4  ;;  %9584 = vmatmul.mubr.msk.f32.gmra.mxu1 %vm133_vm4, %v6531_v50 }
 0x5d7   :  { %9597 = vmatmul.mubr.msk.f32.gmra.mxu0 %vm133_vm4, %v6688_v13  ;;  %9586 = vmatprep.mubr.msk.f32.mxu1 %vm133_vm4, %v6532_v21  ;;  %v7150_v49 = vpop.permute.xlu1 %7149 }
 0x5d8   :  { %9599 = vmatprep.mubr.msk.f32.mxu0 %vm133_vm4, %v6689_v24  ;;  %9605 = vmatpush3.msra.mxu1 %v6848_v1  ;;  %v7160_v40 = vmul.f32 %v7150_v49, %v12500_v18 }
 0x5d9   :  { %9618 = vmatpush3.msra.mxu0 %v7005_v4  ;;  %9628 = vmatprep.subr.mxu1 %v7163_v12 }
 0x5da   :  { %9587 = vmatmul.mubr.msk.f32.gmra.mxu1 %vm133_vm4, %v6533_v25 }
 0x5db   :  { %9600 = vmatmul.mubr.msk.f32.gmra.mxu0 %vm133_vm4, %v6690_v51  ;;  %9606 = vmatprep.mubr.msk.f32.mxu1 %vm133_vm4, %v6842_v33  ;;  %v7154_v2 = vpop.permute.xlu1 %7153 }
 0x5dc   :  { %9619 = vmatprep.mubr.msk.f32.mxu0 %vm133_vm4, %v6999_v38  ;;  %v7161_v9 = vmul.f32 %v7154_v2, %v7131_v14 }
 0x5de   :  { %9607 = vmatmul.mubr.msk.f32.vlgmr.msra.gmra.mxu1 %vm133_vm4, %v6843_v60 }
 0x5df   :  { %9620 = vmatmul.mubr.msk.f32.vlgmr.msra.gmra.mxu0 %vm133_vm4, %v7000_v7  ;;  %9609 = vmatprep.mubr.msk.f32.mxu1 %vm133_vm4, %v6844_v22 }
 0x5e0   :  { %9622 = vmatprep.mubr.msk.f32.mxu0 %vm133_vm4, %v7001_v5  ;;  %9629 = vmatpush3.msra.mxu1 %v7163_v12 }
 0x5e1   :  { %9630 = vmatprep.subr.mxu1 %v7162_v26 }
 0x5e2   :  { %9610 = vmatmul.mubr.msk.f32.gmra.mxu1 %vm133_vm4, %v6845_v16 }
 0x5e3   :  { %9623 = vmatmul.mubr.msk.f32.gmra.mxu0 %vm133_vm4, %v7002_v46  ;;  %9612 = vmatprep.mubr.msk.f32.mxu1 %vm133_vm4, %v6846_v32 }
 0x5e4   :  { %9625 = vmatprep.mubr.msk.f32.mxu0 %vm133_vm4, %v7003_v37  ;;  %9631 = vmatpush3.msra.mxu1 %v7162_v26 }
 0x5e5   :  { %9656 = vmatprep.subr.mxu1 %v13066_v62 }
 0x5e6   :  { %9613 = vmatmul.mubr.msk.f32.gmra.mxu1 %vm133_vm4, %v6847_v23 }
 0x5e7   :  { %9626 = vmatmul.mubr.msk.f32.gmra.mxu0 %vm133_vm4, %v7004_v57  ;;  %9632 = vmatprep.mubr.msk.f32.mxu1 %vm133_vm4, %v7156_v6 }
 0x5e8   :  { %9653 = vmatprep.mubr.msk.f32.mxu0 %vm7352_vm6, %v7350_v41 }
 0x5ea   :  { %9633 = vmatmul.mubr.msk.f32.vlgmr.msra.gmra.mxu1 %vm133_vm4, %v7157_v11 }
 0x5eb   :  { %9635 = vmatprep.mubr.msk.f32.mxu1 %vm133_vm4, %v7158_v43 }
 0x5ee   :  { %9636 = vmatmul.mubr.msk.f32.gmra.mxu1 %vm133_vm4, %v7159_v59 }
 0x5ef   :  { %9638 = vmatprep.mubr.msk.f32.mxu1 %vm133_vm4, %v7160_v40 }
 0x5f2   :  { %9639 = vmatmul.mubr.msk.f32.gmra.mxu1 %vm133_vm4, %v7161_v9 }
 0x5f3   :  { %9664 = vmatprep.mubr.msk.f32.mxu1 %vm10040_vm7, %v13066_v62 }
 0x679   :  { %v9530_v48 = vpop.f32.mrf.mxu1 }
 0x67a   :  { %v9543_v15 = vpop.f32.mrf.mxu0 }
 0x67b   :  { %v6042_v18 = vpop.f32.mrf.mxu1  ;;  %v6161_v45 = vadd.f32 %v9543_v15, %v9530_v48 }
 0x67c   :  { %v6155_v31 = vpop.f32.mrf.mxu0 }
 0x67d   :  { %v6156_v29 = vadd.f32 %v6155_v31, %v6042_v18 }
 0x67e   :  { %v9533_v35 = vpop.f32.mrf.mxu1 }
 0x67f   :  { %v9546_v42 = vpop.f32.mrf.mxu0 }
 0x680   :  { %v6052_v55 = vpop.f32.mrf.mxu1  ;;  %v6171_v22 = vadd.f32 %v9546_v42, %v9533_v35 }
 0x681   :  { %v6165_v0 = vpop.f32.mrf.mxu0 }
 0x682   :  { %v9536_v54 = vpop.f32.mrf.mxu1  ;;  %v6166_v53 = vadd.f32 %v6165_v0, %v6052_v55 }
 0x683   :  { %v9549_v1 = vpop.f32.mrf.mxu0 }
 0x684   :  { %v6062_v4 = vpop.f32.mrf.mxu1  ;;  %v6181_v20 = vadd.f32 %v9549_v1, %v9536_v54 }
 0x685   :  { %v6175_v10 = vpop.f32.mrf.mxu0 }
 0x686   :  { %v9556_v8 = vpop.f32.mrf.mxu1  ;;  %v6176_v28 = vadd.f32 %v6175_v10, %v6062_v4 }
 0x687   :  { %v9569_v50 = vpop.f32.mrf.mxu0  ;;  %v6336_v7 = vadd.f32 %v9556_v8, %v6161_v45 }
 0x688   :  { %v6306_v13 = vpop.f32.mrf.mxu1 }
 0x689   :  { %v6463_v61 = vpop.f32.mrf.mxu0  ;;  %v6335_v47 = vadd.f32 %v6306_v13, %v6156_v29  ;;  %v6493_v26 = vadd.f32 %v9569_v50, %v6336_v7 }
 0x68a   :  { %v9559_v58 = vpop.f32.mrf.mxu1 }
 0x68b   :  { %v9572_v21 = vpop.f32.mrf.mxu0  ;;  %v6338_v56 = vadd.f32 %v9559_v58, %v6171_v22  ;;  %v6492_v19 = vadd.f32 %v6463_v61, %v6335_v47 }
 0x68c   :  { %v6316_v24 = vpop.f32.mrf.mxu1 }
 0x68d   :  { %v6473_v34 = vpop.f32.mrf.mxu0  ;;  %v6337_v16 = vadd.f32 %v6316_v24, %v6166_v53  ;;  %v6495_v23 = vadd.f32 %v9572_v21, %v6338_v56  ;;  %v8639_v21 = vld [vmem:[%s12873_s6] ss:$0 sm:$0xff] }
 0x68e   :  { %v9562_v36 = vpop.f32.mrf.mxu1 }
 0x68f   :  { %v9575_v27 = vpop.f32.mrf.mxu0  ;;  %v6340_v6 = vadd.f32 %v9562_v36, %v6181_v20  ;;  %v6494_v11 = vadd.f32 %v6473_v34, %v6337_v16 }
 0x690   :  { %v6326_v52 = vpop.f32.mrf.mxu1 }
 0x691   :  { %v6483_v12 = vpop.f32.mrf.mxu0  ;;  %v6339_v43 = vadd.f32 %v6326_v52, %v6176_v28  ;;  %v6497_v48 = vadd.f32 %v9575_v27, %v6340_v6 }
 0x692   :  { %v9582_v25 = vpop.f32.mrf.mxu1 }
 0x693   :  { %v9595_v51 = vpop.f32.mrf.mxu0  ;;  %v6650_v32 = vadd.f32 %v9582_v25, %v6493_v26  ;;  %v6496_v31 = vadd.f32 %v6483_v12, %v6339_v43 }
 0x694   :  { %v6620_v33 = vpop.f32.mrf.mxu1 }
 0x695   :  { %v6777_v3 = vpop.f32.mrf.mxu0  ;;  %v6649_v49 = vadd.f32 %v6620_v33, %v6492_v19  ;;  %v6807_v2 = vadd.f32 %v9595_v51, %v6650_v32 }
 0x696   :  { %v9585_v38 = vpop.f32.mrf.mxu1 }
 0x697   :  { %v9598_v17 = vpop.f32.mrf.mxu0  ;;  %v6652_v14 = vadd.f32 %v9585_v38, %v6495_v23  ;;  %v6806_v15 = vadd.f32 %v6777_v3, %v6649_v49 }
 0x698   :  { %v6630_v39 = vpop.f32.mrf.mxu1 }
 0x699   :  { %v6787_v44 = vpop.f32.mrf.mxu0  ;;  %v6651_v9 = vadd.f32 %v6630_v39, %v6494_v11  ;;  %v6809_v55 = vadd.f32 %v9598_v17, %v6652_v14 }
 0x69a   :  { %v9588_v60 = vpop.f32.mrf.mxu1 }
 0x69b   :  { %v9601_v5 = vpop.f32.mrf.mxu0  ;;  %v6654_v0 = vadd.f32 %v9588_v60, %v6497_v48  ;;  %v6808_v1 = vadd.f32 %v6787_v44, %v6651_v9 }
 0x69c   :  { %v6640_v30 = vpop.f32.mrf.mxu1 }
 0x69d   :  { %v6797_v63 = vpop.f32.mrf.mxu0  ;;  %v6653_v4 = vadd.f32 %v6640_v30, %v6496_v31  ;;  %v6811_v24 = vadd.f32 %v9601_v5, %v6654_v0 }
 0x69e   :  { %v9608_v46 = vpop.f32.mrf.mxu1 }
 0x69f   :  { %v9621_v37 = vpop.f32.mrf.mxu0  ;;  %v6964_v18 = vadd.f32 %v9608_v46, %v6807_v2  ;;  %v6810_v27 = vadd.f32 %v6797_v63, %v6653_v4 }
 0x6a0   :  { %v6934_v57 = vpop.f32.mrf.mxu1 }
 0x6a1   :  { %v7091_v59 = vpop.f32.mrf.mxu0  ;;  %v6963_v54 = vadd.f32 %v6934_v57, %v6806_v15  ;;  %v7121_v8 = vadd.f32 %v9621_v37, %v6964_v18 }
 0x6a2   :  { %v9611_v40 = vpop.f32.mrf.mxu1 }
 0x6a3   :  { %v9624_v35 = vpop.f32.mrf.mxu0  ;;  %v6966_v50 = vadd.f32 %v9611_v40, %v6809_v55  ;;  %v7120_v34 = vadd.f32 %v7091_v59, %v6963_v54 }
 0x6a4   :  { %v6944_v41 = vpop.f32.mrf.mxu1 }
 0x6a5   :  { %v6965_v13 = vadd.f32 %v6944_v41, %v6808_v1  ;;  %v7101_v61 = vpop.f32.mrf.mxu0  ;;  %v7123_v12 = vadd.f32 %v9624_v35, %v6966_v50 }
 0x6a6   :  { %v9614_v42 = vpop.f32.mrf.mxu1 }
 0x6a7   :  { %v6968_v25 = vadd.f32 %v9614_v42, %v6811_v24  ;;  %v7122_v3 = vadd.f32 %v7101_v61, %v6965_v13  ;;  %v9627_v38 = vpop.f32.mrf.mxu0 }
 0x6a8   :  { %v6954_v10 = vpop.f32.mrf.mxu1 }
 0x6a9   :  { %v6967_v45 = vadd.f32 %v6954_v10, %v6810_v27  ;;  %v7125_v60 = vadd.f32 %v9627_v38, %v6968_v25  ;;  %v7111_v53 = vpop.f32.mrf.mxu0 }
 0x6aa   :  { %v9634_v58 = vpop.f32.mrf.mxu1 }
 0x6ab   :  { %v7278_v36 = vadd.f32 %v9634_v58, %v7121_v8  ;;  %v7124_v63 = vadd.f32 %v7111_v53, %v6967_v45  ;;  %v7438_v53 = vld [vmem:[%s12878_s11] sm:$0xff] }
 0x6ac   :  { %v7248_v52 = vpop.f32.mrf.mxu1 }
 0x6ad   :  { %v7291_v51 = vadd.f32 %v8639_v21, %v7278_v36  ;;  %v7277_v33 = vadd.f32 %v7248_v52, %v7120_v34 }
 0x6ae   :  { %v9637_v17 = vpop.f32.mrf.mxu1 }
 0x6af   :  { %v7297_v39 = vmax.f32 %v7291_v51, 0.0  ;;  %v7290_v44 = vadd.f32 %v8639_v21, %v7277_v33  ;;  %v7280_v29 = vadd.f32 %v9637_v17, %v7123_v12 }
 0x6b0   :  { %v7258_v7 = vpop.f32.mrf.mxu1 }
 0x6b1   :  { %7303 = vst.msk [vmem:[#allocation6 + $0x8] sm:$0xff] %vm142_vm5, %v7297_v39  ;;  %v7296_v5 = vmax.f32 %v7290_v44, 0.0  ;;  %v7293_v22 = vadd.f32 %v8639_v21, %v7280_v29  ;;  %v7279_v47 = vadd.f32 %v7258_v7, %v7122_v3  ;;  %v7351_v39 = vld [vmem:[%s12877_s10 + $0x8] sm:$0xf]  ;;  %v7446_v44 = vld [vmem:[%s12878_s11 + $0x38] sm:$0xff]  ;;  %v7445_v29 = vld [vmem:[%s12878_s11 + $0x30] sm:$0xff] }
 0x6b2   :  { %v9640_v30 = vpop.f32.mrf.mxu1  ;;  %9657 = vmatpush3.msra.mxu1 %v7446_v44  ;;  %v7441_v7 = vld [vmem:[%s12878_s11 + $0x18] sm:$0xff] }
 0x6b3   :  { %7302 = vst.msk [vmem:[#allocation6] sm:$0xff] %vm142_vm5, %v7296_v5  ;;  %v7299_v26 = vmax.f32 %v7293_v22, 0.0  ;;  %v7292_v56 = vadd.f32 %v8639_v21, %v7279_v47  ;;  %v7282_v16 = vadd.f32 %v9640_v30, %v7125_v60  ;;  %9658 = vmatprep.subr.mxu1 %v13066_v62  ;;  %v7440_v60 = vld [vmem:[%s12878_s11 + $0x10] sm:$0xff]  ;;  %v7444_v5 = vld [vmem:[%s12878_s11 + $0x28] sm:$0xff]  ;;  %v7443_v47 = vld [vmem:[%s12878_s11 + $0x20] sm:$0xff] }
 0x6b4   :  { %v7268_v46 = vpop.f32.mrf.mxu1  ;;  %9659 = vmatpush3.msra.mxu1 %v7445_v29  ;;  %v7439_v22 = vld [vmem:[%s12878_s11 + $0x8] sm:$0xff] }
 0x6b5   :  { %7305 = vst.msk [vmem:[#allocation6 + $0x18] sm:$0xff] %vm142_vm5, %v7299_v26  ;;  %v7298_v37 = vmax.f32 %v7292_v56, 0.0  ;;  %v7295_v20 = vadd.f32 %v8639_v21, %v7282_v16  ;;  %v7281_v19 = vadd.f32 %v7268_v46, %v7124_v63  ;;  %9660 = vmatprep.subr.mxu1 %v13066_v62  ;;  %v7597_v26 = vld [vmem:[%s12878_s11 + $0x58] sm:$0xff] }
 0x6b6   :  { %9661 = vmatpush3.msra.mxu1 %v7444_v5  ;;  %v7676_v56 = vld [vmem:[%s12878_s11 + $0x78] sm:$0xff]  ;;  %v8014_v5 = vld [vmem:[%s12882_s15 + $0x10] sm:$0xff] }
 0x6b7   :  { %7304 = vst.msk [vmem:[#allocation6 + $0x10] sm:$0xff] %vm142_vm5, %v7298_v37  ;;  %v7301_v32 = vmax.f32 %v7295_v20, 0.0  ;;  %v7294_v28 = vadd.f32 %v8639_v21, %v7281_v19  ;;  %9662 = vmatprep.subr.mxu1 %v13066_v62  ;;  %v7596_v37 = vld [vmem:[%s12878_s11 + $0x50] sm:$0xff]  ;;  %v7595_v19 = vld [vmem:[%s12878_s11 + $0x48] sm:$0xff] }
 0x6b8   :  { %v7309_v24 = vld [vmem:[#allocation6 + $0x8] sm:$0xff]  ;;  %9663 = vmatpush3.msra.mxu1 %v7443_v47  ;;  %v7675_v20 = vld [vmem:[%s12878_s11 + $0x70] sm:$0xff]  ;;  %v8012_v47 = vld [vmem:[%s12882_s15] sm:$0xff] }
 0x6b9   :  { %7307 = vst.msk [vmem:[#allocation6 + $0x28] sm:$0xff] %vm142_vm5, %v7301_v32  ;;  %v7300_v57 = vmax.f32 %v7294_v28, 0.0  ;;  %9678 = vmatprep.subr.mxu1 %v13066_v62  ;;  %v7674_v32 = vld [vmem:[%s12878_s11 + $0x68] sm:$0xff]  ;;  %v7594_v28 = vld [vmem:[%s12878_s11 + $0x40] sm:$0xff] }
 0x6ba   :  { %v7308_v34 = vld [vmem:[#allocation6] sm:$0xff] }
 0x6bb   :  { %7306 = vst.msk [vmem:[#allocation6 + $0x20] sm:$0xff] %vm142_vm5, %v7300_v57  ;;  %v7314_v36 = vld [vmem:[#allocation6 + $0x1] sm:$0xff]  ;;  %v7673_v57 = vld [vmem:[%s12878_s11 + $0x60] sm:$0xff] }
 0x6bc   :  { %v7311_v59 = vld [vmem:[#allocation6 + $0x18] sm:$0xff]  ;;  %v7326_v27 = vld [vmem:[#allocation6 + $0x6] sm:$0xff]  ;;  %v7320_v3 = vmax.f32 %v7308_v34, %v7314_v36 }
 0x6bd   :  { %v7332_v52 = vld [vmem:[#allocation6 + $0x7] sm:$0xff] }
 0x6be   :  { %v7310_v40 = vld [vmem:[#allocation6 + $0x10] sm:$0xff]  ;;  %v7338_v38 = vmax.f32 %v7326_v27, %v7332_v52 }
 0x6bf   :  { %v7316_v2 = vld [vmem:[#allocation6 + $0x11] sm:$0xff]  ;;  %v7315_v8 = vld [vmem:[#allocation6 + $0x9] sm:$0xff] }
 0x6c0   :  { %v7313_v23 = vld [vmem:[#allocation6 + $0x28] sm:$0xff]  ;;  %v7328_v14 = vld [vmem:[#allocation6 + $0x16] sm:$0xff]  ;;  %v7322_v58 = vmax.f32 %v7310_v40, %v7316_v2  ;;  %v7321_v25 = vmax.f32 %v7309_v24, %v7315_v8  ;;  %v7344_v45 = vmax.f32 %v7320_v3, %v7338_v38 }
 0x6c1   :  { %v7319_v6 = vld [vmem:[#allocation6 + $0x29] sm:$0xff]  ;;  %v7334_v9 = vld [vmem:[#allocation6 + $0x17] sm:$0xff] }
 0x6c2   :  { %v7331_v49 = vld [vmem:[#allocation6 + $0x2e] sm:$0xff]  ;;  %v7325_v11 = vmax.f32 %v7313_v23, %v7319_v6  ;;  %v7312_v48 = vld [vmem:[#allocation6 + $0x20] sm:$0xff]  ;;  %v7340_v21 = vmax.f32 %v7328_v14, %v7334_v9  ;;  %v7753_v40 = vld [vmem:[%s12878_s11 + $0x88] sm:$0xff] }
 0x6c3   :  { %v7337_v43 = vld [vmem:[#allocation6 + $0x2f] sm:$0xff]  ;;  %v7318_v15 = vld [vmem:[#allocation6 + $0x21] sm:$0xff]  ;;  %v7317_v42 = vld [vmem:[#allocation6 + $0x19] sm:$0xff] }
 0x6c4   :  { %v7343_v41 = vmax.f32 %v7331_v49, %v7337_v43  ;;  %v7330_v18 = vld [vmem:[#allocation6 + $0x26] sm:$0xff]  ;;  %v7324_v31 = vmax.f32 %v7312_v48, %v7318_v15  ;;  %v7329_v55 = vld [vmem:[#allocation6 + $0x1e] sm:$0xff]  ;;  %v7323_v1 = vmax.f32 %v7311_v59, %v7317_v42  ;;  %v7327_v50 = vld [vmem:[#allocation6 + $0xe] sm:$0xff]  ;;  %v7346_v33 = vmax.f32 %v7322_v58, %v7340_v21 }
 0x6c5   :  { %v7336_v35 = vld [vmem:[#allocation6 + $0x27] sm:$0xff]  ;;  %v7335_v4 = vld [vmem:[#allocation6 + $0x1f] sm:$0xff]  ;;  %v7333_v13 = vld [vmem:[#allocation6 + $0xf] sm:$0xff] }
 0x6c6   :  { %v7349_v0 = vmax.f32 %v7325_v11, %v7343_v41  ;;  %v7342_v54 = vmax.f32 %v7330_v18, %v7336_v35  ;;  %v7341_v10 = vmax.f32 %v7329_v55, %v7335_v4  ;;  %v7339_v51 = vmax.f32 %v7327_v50, %v7333_v13  ;;  %v7755_v23 = vld [vmem:[%s12878_s11 + $0x98] sm:$0xff]  ;;  %v7754_v43 = vld [vmem:[%s12878_s11 + $0x90] sm:$0xff]  ;;  %v7832_v2 = vld [vmem:[%s12878_s11 + $0xa8] sm:$0xff] }
 0x6c7   :  { %v7834_v11 = vld [vmem:[%s12878_s11 + $0xb8] sm:$0xff]  ;;  %v7833_v59 = vld [vmem:[%s12878_s11 + $0xb0] sm:$0xff]  ;;  %v7752_v14 = vld [vmem:[%s12878_s11 + $0x80] sm:$0xff] }
 0x6c8   :  { %9641 = vmatprep.subr.mxu0 %v7349_v0  ;;  %v7348_v61 = vmax.f32 %v7324_v31, %v7342_v54  ;;  %v7347_v12 = vmax.f32 %v7323_v1, %v7341_v10  ;;  %v7345_v17 = vmax.f32 %v7321_v25, %v7339_v51  ;;  %v7831_v9 = vld [vmem:[%s12878_s11 + $0xa0] sm:$0xff]  ;;  %v7929_v15 = vld [vmem:[%s12880_s13 + $0x58] sm:$0xff]  ;;  %v7928_v18 = vld [vmem:[%s12880_s13 + $0x50] sm:$0xff] }
 0x6c9   :  { %9642 = vmatpush3.msra.mxu0 %v7349_v0  ;;  %v7927_v31 = vld [vmem:[%s12880_s13 + $0x48] sm:$0xff]  ;;  %v7926_v35 = vld [vmem:[%s12880_s13 + $0x40] sm:$0xff]  ;;  %v7925_v42 = vld [vmem:[%s12880_s13 + $0x38] sm:$0xff] }
 0x6ca   :  { %9643 = vmatprep.subr.mxu0 %v7348_v61  ;;  %v7924_v55 = vld [vmem:[%s12880_s13 + $0x30] sm:$0xff]  ;;  %v7923_v0 = vld [vmem:[%s12880_s13 + $0x28] sm:$0xff]  ;;  %v7922_v54 = vld [vmem:[%s12880_s13 + $0x20] sm:$0xff] }
 0x6cb   :  { %9644 = vmatpush3.msra.mxu0 %v7348_v61  ;;  %v7921_v1 = vld [vmem:[%s12880_s13 + $0x18] sm:$0xff]  ;;  %v7920_v4 = vld [vmem:[%s12880_s13 + $0x10] sm:$0xff]  ;;  %v8017_v10 = vld [vmem:[%s12882_s15 + $0x28] sm:$0xff] }
 0x6cc   :  { %9645 = vmatprep.subr.mxu0 %v7347_v12  ;;  %v8016_v8 = vld [vmem:[%s12882_s15 + $0x20] sm:$0xff]  ;;  %v7919_v50 = vld [vmem:[%s12880_s13 + $0x8] sm:$0xff]  ;;  %v8015_v13 = vld [vmem:[%s12882_s15 + $0x18] sm:$0xff] }
 0x6cd   :  { %9646 = vmatpush3.msra.mxu0 %v7347_v12  ;;  %v7918_v61 = vld [vmem:[%s12880_s13] sm:$0xff] }
 0x6ce   :  { %9647 = vmatprep.subr.mxu0 %v7346_v33 }
 0x6cf   :  { %9648 = vmatpush3.msra.mxu0 %v7346_v33 }
 0x6d0   :  { %9649 = vmatprep.subr.mxu0 %v7345_v17 }
 0x6d1   :  { %9650 = vmatpush3.msra.mxu0 %v7345_v17 }
 0x6d2   :  { %9651 = vmatprep.subr.mxu0 %v7344_v45 }
 0x6d3   :  { %9652 = vmatpush3.msra.mxu0 %v7344_v45  ;;  %v8648_v45 = vld [vmem:[%s12879_s12] ss:$0 sm:$0xff] }
 0x6d4   :  { %9654 = vmatmul.mubr.msk.f32.vlgmr.msra.gmra.mxu0 %vm7352_vm6, %v7351_v39  ;;  %9667 = vmatprep.subr.mxu0 %v13066_v62 }
 0x6d5   :  { %9668 = vmatpush3.msra.mxu0 %v7441_v7  ;;  %9675 = vmatprep.mubr.msk.f32.mxu0 %vm10040_vm7, %v13066_v62 }
 0x6d6   :  { %9669 = vmatprep.subr.mxu0 %v13066_v62 }
 0x6d7   :  { %9670 = vmatpush3.msra.mxu0 %v7440_v60 }
 0x6d8   :  { %9671 = vmatprep.subr.mxu0 %v13066_v62 }
 0x6d9   :  { %9672 = vmatpush3.msra.mxu0 %v7439_v22  ;;  %v8013_v22 = vld [vmem:[%s12882_s15 + $0x8] sm:$0xff] }
 0x6da   :  { %9673 = vmatprep.subr.mxu0 %v13066_v62 }
 0x6db   :  { %9674 = vmatpush3.msra.mxu0 %v7438_v53  ;;  %v8649_v53 = vld [vmem:[%s12881_s14] ss:$0 sm:$0xff] }
 0x6dc   :  { %9689 = vmatprep.subr.mxu0 %v13066_v62 }
 0x794   :  { %v9655_v30 = vpop.f32.mrf.mxu0 }
 0x795   :  { %7436 = vst.msk [vmem:[#allocation7 + $0x8] sm:$0xf] %vm7435_vm8, %v9655_v30 }
 0x796   :  { %v7425_v63 = vpop.f32.mrf.mxu0 }
 0x797   :  { %7434 = vst.msk [vmem:[#allocation7] sm:$0xff] %vm142_vm5, %v7425_v63 }
 0x79c   :  { %v7751_v41 = vld [vmem:[#allocation7 + $0x8] sm:$0x3]  ;;  %v7830_v48 = vld [vmem:[#allocation7 + $0xa] sm:$0x3] }
 0x79e   :  { %v7442_v16 = vld [vmem:[#allocation7 + $0x2] sm:$0x3]  ;;  %v7437_v46 = vld [vmem:[#allocation7] sm:$0x3]  ;;  %v7593_v6 = vld [vmem:[#allocation7 + $0x4] sm:$0x3] }
 0x79f   :  { %9665 = vmatmul.mubr.msk.f32.vlgmr.msra.gmra.mxu1 %vm142_vm5, %v7442_v16  ;;  %9676 = vmatmul.mubr.msk.f32.vlgmr.msra.gmra.mxu0 %vm142_vm5, %v7437_v46  ;;  %v7672_v49 = vld [vmem:[#allocation7 + $0x6] sm:$0x3]  ;;  %v8101_v16 = vld [vmem:[%s12884_s17 + $0x10] sm:$0xff] }
 0x7a0   :  { %9679 = vmatpush3.msra.mxu1 %v7597_v26  ;;  %9690 = vmatpush3.msra.mxu0 %v7676_v56  ;;  %v8100_v46 = vld [vmem:[%s12884_s17 + $0x8] sm:$0xff] }
 0x7a1   :  { %9680 = vmatprep.subr.mxu1 %v13066_v62  ;;  %9691 = vmatprep.subr.mxu0 %v13066_v62 }
 0x7a2   :  { %9681 = vmatpush3.msra.mxu1 %v7596_v37  ;;  %9692 = vmatpush3.msra.mxu0 %v7675_v20  ;;  %v8099_v37 = vld [vmem:[%s12884_s17] sm:$0xff] }
 0x7a3   :  { %9682 = vmatprep.subr.mxu1 %v13066_v62  ;;  %9693 = vmatprep.subr.mxu0 %v13066_v62  ;;  %v8651_v20 = vld [vmem:[%s12883_s16] ss:$0 sm:$0xff] }
 0x7a4   :  { %9683 = vmatpush3.msra.mxu1 %v7595_v19  ;;  %9694 = vmatpush3.msra.mxu0 %v7674_v32 }
 0x7a5   :  { %9684 = vmatprep.subr.mxu1 %v13066_v62  ;;  %9695 = vmatprep.subr.mxu0 %v13066_v62 }
 0x7a6   :  { %9685 = vmatpush3.msra.mxu1 %v7594_v28  ;;  %9686 = vmatprep.mubr.msk.f32.mxu1 %vm10040_vm7, %v13066_v62 }
 0x7a7   :  { %9696 = vmatpush3.msra.mxu0 %v7673_v57  ;;  %9697 = vmatprep.mubr.msk.f32.mxu0 %vm10040_vm7, %v13066_v62 }
 0x7a8   :  { %9687 = vmatmul.mubr.msk.f32.vlgmr.msra.gmra.mxu1 %vm142_vm5, %v7593_v6  ;;  %9698 = vmatmul.mubr.msk.f32.vlgmr.msra.gmra.mxu0 %vm142_vm5, %v7672_v49  ;;  %v8184_v6 = vld [vmem:[%s12886_s19] sm:$0xff] }
 0x7a9   :  { %9700 = vmatprep.subr.mxu1 %v13066_v62  ;;  %9711 = vmatprep.subr.mxu0 %v13066_v62  ;;  %v8653_v49 = vld [vmem:[%s12885_s18] ss:$0 sm:$0xff]  ;;  %s10041_s18 = smov [#allocation8]  }
 0x7aa   :  { %9701 = vmatpush3.msra.mxu1 %v7755_v23  ;;  %9712 = vmatpush3.msra.mxu0 %v7834_v11  ;;  %v8185_v23 = vld [vmem:[%s12886_s19 + $0x8] sm:$0xf]  ;;  %s8290_s19 = sshll.u32 %s10041_s18, 4  ;;  %s8291_s19 = int_to_ptr.vmem [resolvable:$true] %s8290_s19 }
 0x7ab   :  { %9702 = vmatprep.subr.mxu1 %v13066_v62  ;;  %9713 = vmatprep.subr.mxu0 %v13066_v62  ;;  %p10013_p1 = scmp.lt.s32.totalorder %s8291_s19, %s8291_s19 }
 0x7ac   :  { %9703 = vmatpush3.msra.mxu1 %v7754_v43  ;;  %9714 = vmatpush3.msra.mxu0 %v7833_v59 }
 0x7ad   :  { %9704 = vmatprep.subr.mxu1 %v13066_v62  ;;  %9715 = vmatprep.subr.mxu0 %v13066_v62 }
 0x7ae   :  { %9705 = vmatpush3.msra.mxu1 %v7753_v40  ;;  %9716 = vmatpush3.msra.mxu0 %v7832_v2  ;;  %v8655_v2 = vld [vmem:[%s12887_s20] ss:$0 sm:$0xff]  ;;  %s10008_s20 = scalar_lea.vmem %s8291_s19, 32 }
 0x7af   :  { %9706 = vmatprep.subr.mxu1 %v13066_v62  ;;  %9717 = vmatprep.subr.mxu0 %v13066_v62  ;;  %p10009_p0 = scmp.ne.s32.totalorder %s8291_s19, %s10008_s20  ;;  %p10014_p2 = scmp.lt.s32.totalorder %s10008_s20, %s10008_s20 }
 0x7b0   :  { %9707 = vmatpush3.msra.mxu1 %v7752_v14  ;;  %9708 = vmatprep.mubr.msk.f32.mxu1 %vm10040_vm7, %v13066_v62 }
 0x7b1   :  { %9718 = vmatpush3.msra.mxu0 %v7831_v9  ;;  %9719 = vmatprep.mubr.msk.f32.mxu0 %vm10040_vm7, %v13066_v62  ;;  %p10015_p3 = por %p10014_p2, %p10013_p1 }
 0x7b2   :  { %9709 = vmatmul.mubr.msk.f32.vlgmr.msra.gmra.mxu1 %vm142_vm5, %v7751_v41  ;;  %9720 = vmatmul.mubr.msk.f32.vlgmr.msra.gmra.mxu0 %vm142_vm5, %v7830_v48 }
 0x7b3   :  { %9722 = vmatprep.subr.mxu1 %v13066_v62  ;;  %9746 = vmatprep.mubr.msk.f32.mxu1 %vm10040_vm7, %v13066_v62  ;;  %p10016_p4 = pnand %p10015_p3, %p10009_p0 }
 0x7b4   :  { %9749 = vmatprep.subr.mxu0 %v13066_v62  ;;  %9761 = vmatprep.mubr.msk.f32.mxu0 %vm10040_vm7, %v13066_v62 }
 0x7b5   :  { %9723 = vmatpush3.msra.mxu1 %v7929_v15  ;;  %9750 = vmatpush3.msra.mxu0 %v8017_v10 }
 0x7b6   :  { %9724 = vmatprep.subr.mxu1 %v13066_v62  ;;  %9751 = vmatprep.subr.mxu0 %v13066_v62 }
 0x7b7   :  { %9725 = vmatpush3.msra.mxu1 %v7928_v18  ;;  %9752 = vmatpush3.msra.mxu0 %v8016_v8 }
 0x7b8   :  { %9726 = vmatprep.subr.mxu1 %v13066_v62  ;;  %9753 = vmatprep.subr.mxu0 %v13066_v62 }
 0x7b9   :  { %9727 = vmatpush3.msra.mxu1 %v7927_v31  ;;  %9754 = vmatpush3.msra.mxu0 %v8015_v13 }
 0x7ba   :  { %9728 = vmatprep.subr.mxu1 %v13066_v62  ;;  %9755 = vmatprep.subr.mxu0 %v13066_v62 }
 0x7bb   :  { %9729 = vmatpush3.msra.mxu1 %v7926_v35  ;;  %9756 = vmatpush3.msra.mxu0 %v8014_v5 }
 0x7bc   :  { %9730 = vmatprep.subr.mxu1 %v13066_v62  ;;  %9757 = vmatprep.subr.mxu0 %v13066_v62 }
 0x7bd   :  { %9731 = vmatpush3.msra.mxu1 %v7925_v42  ;;  %9758 = vmatpush3.msra.mxu0 %v8013_v22 }
 0x7be   :  { %9732 = vmatprep.subr.mxu1 %v13066_v62  ;;  %9759 = vmatprep.subr.mxu0 %v13066_v62 }
 0x7bf   :  { %9733 = vmatpush3.msra.mxu1 %v7924_v55  ;;  %9760 = vmatpush3.msra.mxu0 %v8012_v47 }
 0x7c0   :  { %9734 = vmatprep.subr.mxu1 %v13066_v62  ;;  %9764 = vmatprep.subr.mxu0 %v13066_v62 }
 0x7c1   :  { %9735 = vmatpush3.msra.mxu1 %v7923_v0 }
 0x7c2   :  { %9736 = vmatprep.subr.mxu1 %v13066_v62 }
 0x7c3   :  { %9737 = vmatpush3.msra.mxu1 %v7922_v54 }
 0x7c4   :  { %9738 = vmatprep.subr.mxu1 %v13066_v62 }
 0x7c5   :  { %9739 = vmatpush3.msra.mxu1 %v7921_v1 }
 0x7c6   :  { %9740 = vmatprep.subr.mxu1 %v13066_v62 }
 0x7c7   :  { %9741 = vmatpush3.msra.mxu1 %v7920_v4 }
 0x7c8   :  { %9742 = vmatprep.subr.mxu1 %v13066_v62 }
 0x7c9   :  { %9743 = vmatpush3.msra.mxu1 %v7919_v50 }
 0x7ca   :  { %9744 = vmatprep.subr.mxu1 %v13066_v62 }
 0x7cb   :  { %9745 = vmatpush3.msra.mxu1 %v7918_v61 }
 0x7cc   :  { %9773 = vmatprep.subr.mxu1 %v13066_v62 }
 0x85f   :  { %v7516_v58 = vpop.f32.mrf.mxu1  ;;  %v7589_v21 = vpop.f32.mrf.mxu0 }
 0x860   :  { %v7590_v25 = vadd.f32 %v7589_v21, %v7516_v58 }
 0x861   :  { %v9666_v24 = vpop.f32.mrf.mxu1  ;;  %v9677_v34 = vpop.f32.mrf.mxu0 }
 0x868   :  { %v7667_v36 = vpop.f32.mrf.mxu1  ;;  %v7746_v27 = vpop.f32.mrf.mxu0 }
 0x869   :  { %v7671_v51 = vadd.f32 %v7667_v36, %v7590_v25 }
 0x86a   :  { %v9688_v52 = vpop.f32.mrf.mxu1  ;;  %v9699_v12 = vpop.f32.mrf.mxu0 }
 0x86b   :  { %v7750_v33 = vadd.f32 %v7746_v27, %v7671_v51 }
 0x872   :  { %v7825_v3 = vpop.f32.mrf.mxu1  ;;  %v7904_v38 = vpop.f32.mrf.mxu0 }
 0x873   :  { %v7829_v17 = vadd.f32 %v7825_v3, %v7750_v33 }
 0x874   :  { %v9710_v39 = vpop.f32.mrf.mxu1  ;;  %v9721_v44 = vpop.f32.mrf.mxu0 }
 0x875   :  { %v7908_v29 = vadd.f32 %v7904_v38, %v7829_v17 }
 0x877   :  { %v7916_v7 = vadd.f32 %v8648_v45, %v7908_v29 }
 0x879   :  { %v7917_v60 = vmax.f32 %v7916_v7, 0.0 }
 0x87b   :  { %9747 = vmatmul.mubr.msk.f32.vlgmr.msra.gmra.mxu1 %vm7937_vm9, %v7917_v60 }
 0x87c   :  { %9777 = vmatprep.mubr.msk.f32.mxu1 %vm10040_vm7, %v13066_v62  ;;  %9774 = vmatpush3.msk.msra.mxu1 %vm8197_vm11, %v8185_v23 }
 0x87d   :  { %9775 = vmatprep.subr.mxu1 %v13066_v62 }
 0x87e   :  { %9776 = vmatpush3.msra.mxu1 %v8184_v6 }
 0x93b   :  { %v8007_v30 = vpop.f32.mrf.mxu1 }
 0x93c   :  { %v8008_v63 = vadd.f32 %v8649_v53, %v8007_v30 }
 0x93d   :  { %v9748_v26 = vpop.f32.mrf.mxu1 }
 0x93e   :  { %v8011_v56 = vmax.f32 %v8008_v63, 0.0 }
 0x940   :  { %9762 = vmatmul.mubr.msk.f32.vlgmr.msra.gmra.mxu0 %vm7352_vm6, %v8011_v56 }
 0x941   :  { %9770 = vmatprep.mubr.msk.f32.mxu0 %vm10040_vm7, %v13066_v62  ;;  %9765 = vmatpush3.msra.mxu0 %v8101_v16 }
 0x942   :  { %9766 = vmatprep.subr.mxu0 %v13066_v62 }
 0x943   :  { %9767 = vmatpush3.msra.mxu0 %v8100_v46 }
 0x944   :  { %9768 = vmatprep.subr.mxu0 %v13066_v62 }
 0x945   :  { %9769 = vmatpush3.msra.mxu0 %v8099_v37 }
 0xa00   :  { %v8094_v19 = vpop.f32.mrf.mxu0 }
 0xa01   :  { %v8095_v32 = vadd.f32 %v8651_v20, %v8094_v19 }
 0xa02   :  { %v9763_v28 = vpop.f32.mrf.mxu0 }
 0xa03   :  { %v8098_v57 = vmax.f32 %v8095_v32, 0.0 }
 0xa05   :  { %9771 = vmatmul.mubr.msk.f32.vlgmr.msra.gmra.mxu0 %vm8109_vm10, %v8098_v57 }
 0xac5   :  { %v8179_v11 = vpop.f32.mrf.mxu0 }
 0xac6   :  { %v8180_v43 = vadd.f32 %v8653_v49, %v8179_v11 }
 0xac7   :  { %v9772_v59 = vpop.f32.mrf.mxu0 }
 0xac8   :  { %v8183_v40 = vmax.f32 %v8180_v43, 0.0 }
 0xaca   :  { %9778 = vmatmul.mubr.msk.f32.vlgmr.msra.gmra.mxu1 %vm8193_vm12, %v8183_v40 }
 0xb8a   :  { %v8267_v14 = vpop.f32.mrf.mxu1 }
 0xb8b   :  { %v8268_v9 = vadd.f32 %v8655_v2, %v8267_v14 }
 0xb8c   :  { %v9779_v41 = vpop.f32.mrf.mxu1 }
 0xb8d   :  { %v8272_v62 = vsel %vm8271_vm13, %v8268_v9, -inf }
 0xb8e   :  { %8273 = vmax.xlane.f32.xlu0 %v8272_v62 }
 0xc17   :  { %v8274_v48 = vpop.xlane.xlu0 %8273 }
 0xc18   :  { %v8275_v15 = vsub.f32 %v8268_v9, %v8274_v48 }
 0xc1a   :  { %v8276_v18 = vmul.f32 1.442695, %v8275_v15 }
 0xc1c   :  { %9973 = vpow2.f32 %v8276_v18 }
 0xc29   :  { %v9974_v31 = vpop.eup %9973 }
 0xc2a   :  { %v8278_v35 = vsel %vm8271_vm13, %v9974_v31, 0.0 }
 0xc2b   :  { %8279 = vadd.xlane.f32.xlu1 %v8278_v35 }
 0xcb4   :  { %v8280_v42 = vpop.xlane.xlu1 %8279 }
 0xcb5   :  { %9975 = vrcp.f32 %v8280_v42 }
 0xcc2   :  { %v9976_v55 = vpop.eup %9975 }
 0xcc3   :  { %v8282_v0 = vmul.f32 %v9976_v55, %v9974_v31 }
 0xcc5   :  { %8283 = vst.msk [vmem:[#allocation8] sm:$0x3] %vm8271_vm13, %v8282_v0 }
 0xcc6   :  { %10019 = shalt.err (!%p10016_p4)
}
 0xcc7   :  { %8293 = dma.vmem_to_hbm [thread:$0]  %s8291_s19, 32, %s12888_s21, [#allocation9]  }
 0xcc8   :  { %10028 = dma.done.wait [#allocation9], 32  }
 0xcc9   :  { %10029 = vsyncadd [#allocation9], 4294967264 }
 0xcca   :  { %8297 = vsyncpa [#allocation9], 1 }

</bundles_post_ra>
